<compile_context>
chip_gen: v7x
topology: tpu7x:2x2x1
jax: 0.10.0
libtpu: 0.0.40
codegen_flags: <defaults>
</compile_context>

<pallas_src>
import functools

import jax
import jax.numpy as jnp
from jax.experimental import pallas as pl
from jax.experimental.pallas import tpu as pltpu

# Small, module-consistent hyperparameters (PyTorch defaults are h=512, out=256).
N_IN = 2        # n_inputs
H = 64          # h_dim
OUT = 32        # out_dim
L = 50          # input sequence length (forced by the h_dim*24 Linear)
L1 = 50         # conv1 output length (k=5, s=1, p=2)
L2 = 24         # conv2 output length (k=5, s=2, p=1)
K = 5           # conv kernel size
KF = K * N_IN   # conv1 im2col feature width (10) -- NOT lane padded (saves HBM traffic)

OUT_PAD = ((OUT + 127) // 128) * 128    # lane-dense output store, sliced in wrapper
NPOS = 1 + L1                           # 51 reordered positions per batch element
O_BASE = 1 + L1 // 2                    # 26: start of the "even h1 positions" block
# conv2 tap k -> start position of its contiguous 24-row window in the scratch
TAP_START = ((0, 0), (2, 1), (4, 2), (1, O_BASE), (3, O_BASE + 1))

MXU_DTYPE = jnp.bfloat16   # matmul operand dtype; accumulation stays f32
B_ALIGN = 16               # bf16 scratch rows pack in pairs -> batch block % 16 == 0


def _elu(x):
    # ELU(alpha=1): x if x > 0 else exp(x) - 1.  (exp-1 kept instead of expm1 for
    # guaranteed Mosaic lowering; the cancellation error near 0 is <= 1 ulp of 1.0
    # in f32, far below the comparison tolerance.)
    return jnp.where(x > 0, x, jnp.exp(jnp.minimum(x, 0.0)) - 1.0)


def _choose_b_blk(batch):
    """Largest batch block (<=64, multiple of B_ALIGN) that keeps >= 2 grid steps."""
    bp = -(-batch // B_ALIGN) * B_ALIGN
    if bp >= 128:
        blk = 64
    elif bp >= 2 * B_ALIGN:
        blk = (bp // 2) // B_ALIGN * B_ALIGN   # keep G >= 2 so both v7x TCs work
    else:
        blk = B_ALIGN
    return min(blk, 64)


def _make_kernel(b_blk):
    assert b_blk % B_ALIGN == 0, "batch block must be a multiple of 16 (bf16 scratch)"

    def kernel(x_ref, w1_ref, b1_ref, w2_ref, b2_ref, w3_ref, o_ref,
               s_ref, acc_ref, flat_ref):
        """Fused conv1 -> ELU -> conv2 -> ELU -> flatten -> linear for b_blk batch elems.

        x_ref : (1, NPOS*b_blk, KF)  bf16 conv1 im2col, rows = (reordered pos, batch)
        w1_ref: (KF, H)              bf16, w1_col[k*N_IN+ci, co] = w1[co, ci, k]
        b1_ref: (1, H)               f32
        w2_ref: (K, H, H)            bf16, w2_r[k, ci, co] = w2[co, ci, k]
        b2_ref: (1, H)               f32
        w3_ref: (L2*H, OUT_PAD)      bf16, row l*H + c -> w3[o, c*L2 + l] (o zero-padded)
        o_ref : (b_blk, OUT_PAD)     f32 (lane-dense store; sliced in wrapper)
        s_ref : (NPOS*b_blk, H)      bf16 scratch: reordered conv1 activations
        acc_ref:(L2*b_blk, H)        f32 scratch: conv2 accumulator
        flat_ref:(b_blk, L2*H)       bf16 scratch: channel-major flattened h2
        """
        # ---- conv1: ONE MXU matmul over the whole batch block (M = NPOS*b_blk) ----
        h1 = jnp.dot(x_ref[0], w1_ref[...], preferred_element_type=jnp.float32)
        h1 = _elu(h1 + b1_ref[...])                       # bias + ELU in f32
        s_ref[...] = h1.astype(s_ref.dtype)
        # Reordered position 0 is conv2's left zero-pad row for every batch element;
        # it is the only padding row ever read, so zero just these b_blk rows.
        s_ref[0:b_blk, :] = jnp.zeros((b_blk, H), s_ref.dtype)

        # ---- conv2 (k=5, s=2, p=1): 5 accumulating matmuls on contiguous slices ----
        kk0, st0 = TAP_START[0]
        acc_ref[...] = jnp.dot(s_ref[st0 * b_blk:(st0 + L2) * b_blk, :], w2_ref[kk0],
                               preferred_element_type=jnp.float32)
        for kk, st in TAP_START[1:]:
            acc_ref[...] += jnp.dot(s_ref[st * b_blk:(st + L2) * b_blk, :], w2_ref[kk],
                                    preferred_element_type=jnp.float32)

        # ---- bias + ELU + channel-major Flatten into a lane-dense scratch ----
        # flat[b, l*H + c] = h2[b, c, l]  (matches PyTorch Flatten of (B, H, 24))
        b2 = jnp.broadcast_to(b2_ref[...], (b_blk, H))    # hoisted out of the loop
        for l in range(L2):
            h2_l = _elu(acc_ref[l * b_blk:(l + 1) * b_blk, :] + b2)
            flat_ref[:, l * H:(l + 1) * H] = h2_l.astype(flat_ref.dtype)

        # ---- Linear(bias=False): ONE (b_blk, L2*H) @ (L2*H, OUT_PAD) matmul ----
        o_ref[...] = jnp.dot(flat_ref[...], w3_ref[...],
                             preferred_element_type=jnp.float32)

    return kernel


def prepare_params(params, mxu_dtype=MXU_DTYPE):
    """One-off weight re-layout (hoisted out of the per-call forward path)."""
    w1, b1, w2, b2, w3 = params
    w1_col = jnp.transpose(w1, (2, 1, 0)).reshape(KF, H).astype(mxu_dtype)   # (KF, H)
    w2_r = jnp.transpose(w2, (2, 1, 0)).astype(mxu_dtype)                    # (K, H, H)
    # PyTorch Flatten of (B, H, 24) is channel-major: flat index = c*L2 + l.
    w3_r = jnp.transpose(w3.reshape(OUT, H, L2), (2, 1, 0))                  # (L2, H, OUT)
    w3_flat = jnp.pad(w3_r, ((0, 0), (0, 0), (0, OUT_PAD - OUT)))            # lane-dense
    w3_flat = w3_flat.reshape(L2 * H, OUT_PAD).astype(mxu_dtype)
    b1_r = b1.reshape(1, H).astype(jnp.float32)
    b2_r = b2.reshape(1, H).astype(jnp.float32)
    return (w1_col, b1_r, w2_r, b2_r, w3_flat)


def encoder_p1_forward(x, prepped):
    """x: (B, N_IN, L) float32 (PyTorch NCL). Returns (B, OUT) float32."""
    w1_col, b1_r, w2_r, b2_r, w3_flat = prepped
    B = x.shape[0]
    b_blk = _choose_b_blk(B)
    G = -(-B // b_blk)
    B_pad = G * b_blk
    if B_pad != B:
        x = jnp.pad(x, ((0, B_pad - B), (0, 0), (0, 0)))

    # --- wrapper-side layout glue (cheap; no 128-lane padding written to HBM) ---
    # conv1 im2col: row t holds [x_pad2[:, t+0], ..., x_pad2[:, t+4]], channel minor.
    x_pad2 = jnp.pad(x, ((0, 0), (0, 0), (2, 2)))                  # (B_pad, N_IN, L+4)
    idx = jnp.arange(L1)[:, None] + jnp.arange(K)[None, :]         # (L1, K)
    cols = x_pad2[:, :, idx]                                       # (B_pad, N_IN, L1, K)
    cols = jnp.transpose(cols, (0, 2, 3, 1)).reshape(B_pad, L1, KF)
    # Reorder rows so conv2's stride-2 taps are contiguous slices:
    #   [zero row (conv2 left pad), odd positions 1,3,...,49, even positions 0,2,...,48]
    xq = jnp.concatenate(
        [jnp.zeros((B_pad, 1, KF), cols.dtype), cols[:, 1::2, :], cols[:, 0::2, :]],
        axis=1)                                                    # (B_pad, NPOS, KF)
    # Interleave position-major / batch-minor inside each batch block; bf16 halves DMA.
    xq = xq.reshape(G, b_blk, NPOS, KF).transpose(0, 2, 1, 3)
    x_in = xq.reshape(G, NPOS * b_blk, KF).astype(MXU_DTYPE)
    # TODO(synk): for maximal input-bandwidth savings, DMA the raw (b_blk, N_IN, L)
    # block and build the im2col rows in-kernel instead of in the XLA wrapper.

    kernel = _make_kernel(b_blk)
    out_pad = pl.pallas_call(
        kernel,
        out_shape=jax.ShapeDtypeStruct((B_pad, OUT_PAD), jnp.float32),
        grid_spec=pltpu.PrefetchScalarGridSpec(
            num_scalar_prefetch=0,
            grid=(G,),
            in_specs=[
                pl.BlockSpec((1, NPOS * b_blk, KF), lambda g: (g, 0, 0)),
                pl.BlockSpec((KF, H), lambda g: (0, 0)),
                pl.BlockSpec((1, H), lambda g: (0, 0)),
                pl.BlockSpec((K, H, H), lambda g: (0, 0, 0)),
                pl.BlockSpec((1, H), lambda g: (0, 0)),
                pl.BlockSpec((L2 * H, OUT_PAD), lambda g: (0, 0)),
            ],
            out_specs=pl.BlockSpec((b_blk, OUT_PAD), lambda g: (g, 0)),
            scratch_shapes=[
                pltpu.VMEM((NPOS * b_blk, H), MXU_DTYPE),      # reordered conv1 acts
                pltpu.VMEM((L2 * b_blk, H), jnp.float32),      # conv2 accumulator
                pltpu.VMEM((b_blk, L2 * H), MXU_DTYPE),        # flattened h2
            ],
        ),
        compiler_params=pltpu.CompilerParams(
            # batch blocks are independent -> shard across TensorCores on v7x
            dimension_semantics=("parallel",),
            # explicit limit; re-budget (and keep weights bf16) at H=512/OUT=256
            vmem_limit_bytes=32 * 1024 * 1024,
        ),
    )(x_in, w1_col, b1_r, w2_r, b2_r, w3_flat)

    return out_pad[:B, :OUT]


def ref_forward(x, params):
    """Pure-JAX f32 reference mirroring the PyTorch forward."""
    w1, b1, w2, b2, w3 = params
    dn = ('NCH', 'OIH', 'NCH')
    y = jax.lax.conv_general_dilated(x, w1, window_strides=(1,),
                                     padding=[(2, 2)], dimension_numbers=dn)
    y = _elu(y + b1[None, :, None])
    y = jax.lax.conv_general_dilated(y, w2, window_strides=(2,),
                                     padding=[(1, 1)], dimension_numbers=dn)
    y = _elu(y + b2[None, :, None])
    y = y.reshape(y.shape[0], -1)                         # channel-major flatten
    return y @ w3.T


if __name__ == "__main__":
    key = jax.random.PRNGKey(0)
    kx, k1, k2, k3, k4, k5 = jax.random.split(key, 6)

    # Deterministic synthetic parameters (PyTorch shapes).
    w1 = 0.05 * jax.random.normal(k1, (H, N_IN, K), jnp.float32)   # Conv1d weight
    b1 = 0.05 * jax.random.normal(k2, (H,), jnp.float32)
    w2 = 0.05 * jax.random.normal(k3, (H, H, K), jnp.float32)
    b2 = 0.05 * jax.random.normal(k4, (H,), jnp.float32)
    w3 = 0.05 * jax.random.normal(k5, (OUT, H * L2), jnp.float32)  # Linear, no bias
    params = (w1, b1, w2, b2, w3)
    prepped = prepare_params(params)                 # one-off weight re-layout

    fwd = jax.jit(encoder_p1_forward)

    # B=64 -> b_blk=32, G=2 (both v7x cores); B=20 exercises the batch-padding path.
    for B in (64, 20):
        x = jax.random.normal(jax.random.fold_in(kx, B), (B, N_IN, L), jnp.float32)
        out = jax.block_until_ready(fwd(x, prepped))
        ref = jax.block_until_ready(ref_forward(x, params))
        assert out.shape == (B, OUT), out.shape
        if not jnp.allclose(out, ref, rtol=2e-2, atol=2e-2):
            raise AssertionError(
                f"B={B}: mismatch vs reference, max abs diff = "
                f"{jnp.max(jnp.abs(out - ref))}")

    print("KERNEL_OK")
</pallas_src>

<mosaic_0001>
module attributes {stable_mosaic.version = 11 : i64} {
  func.func @kernel(%arg0: i32, %arg1: memref<1x1632x10xbf16, #tpu.memory_space<vmem>>, %arg2: memref<10x64xbf16, #tpu.memory_space<vmem>>, %arg3: memref<1x64xf32, #tpu.memory_space<vmem>>, %arg4: memref<5x64x64xbf16, #tpu.memory_space<vmem>>, %arg5: memref<1x64xf32, #tpu.memory_space<vmem>>, %arg6: memref<1536x128xbf16, #tpu.memory_space<vmem>>, %arg7: memref<32x128xf32, #tpu.memory_space<vmem>>, %arg8: memref<1632x64xbf16, #tpu.memory_space<vmem>>, %arg9: memref<768x64xf32, #tpu.memory_space<vmem>>, %arg10: memref<32x1536xbf16, #tpu.memory_space<vmem>>) attributes {dimension_semantics = [#tpu.dimension_semantics<parallel>], iteration_bounds = array<i64: 2>, scalar_prefetch = 0 : i64, scratch_operands = 3 : i64, tpu.core_type = #tpu.core_type<tc>, window_params = [{transform_indices = @transform_0, window_bounds = array<i64: 1, 1632, 10>}, {pipeline_mode = #tpu.pipeline_mode<synchronous>, transform_indices = @transform_1, window_bounds = array<i64: 10, 64>}, {pipeline_mode = #tpu.pipeline_mode<synchronous>, transform_indices = @transform_2, window_bounds = array<i64: 1, 64>}, {pipeline_mode = #tpu.pipeline_mode<synchronous>, transform_indices = @transform_3, window_bounds = array<i64: 5, 64, 64>}, {pipeline_mode = #tpu.pipeline_mode<synchronous>, transform_indices = @transform_4, window_bounds = array<i64: 1, 64>}, {pipeline_mode = #tpu.pipeline_mode<synchronous>, transform_indices = @transform_5, window_bounds = array<i64: 1536, 128>}, {transform_indices = @transform_6, window_bounds = array<i64: 32, 128>}]} {
    %c0 = arith.constant 0 : index
    %c0_0 = arith.constant 0 : index
    %c0_1 = arith.constant 0 : index
    %0 = vector.load %arg1[%c0, %c0_0, %c0_1] : memref<1x1632x10xbf16, #tpu.memory_space<vmem>>, vector<1x1632x10xbf16>
    %1 = vector.shape_cast %0 : vector<1x1632x10xbf16> to vector<1632x10xbf16>
    %c0_2 = arith.constant 0 : index
    %c0_3 = arith.constant 0 : index
    %2 = vector.load %arg2[%c0_2, %c0_3] : memref<10x64xbf16, #tpu.memory_space<vmem>>, vector<10x64xbf16>
    %cst = arith.constant dense<0.000000e+00> : vector<1632x64xf32>
    %3 = tpu.matmul %1, %2, %cst {dimension_numbers = #tpu.dot_dimension_numbers<[1], [0], [0], [1], [0, 0, 1, 1], [], []>} : vector<1632x10xbf16>, vector<10x64xbf16>, vector<1632x64xf32> -> vector<1632x64xf32>
    %c0_4 = arith.constant 0 : index
    %c0_5 = arith.constant 0 : index
    %4 = vector.load %arg3[%c0_4, %c0_5] : memref<1x64xf32, #tpu.memory_space<vmem>>, vector<1x64xf32>
    %5 = vector.broadcast %4 : vector<1x64xf32> to vector<1632x64xf32>
    %6 = arith.addf %3, %5 : vector<1632x64xf32>
    %cst_6 = arith.constant 0.000000e+00 : f32
    %7 = vector.broadcast %cst_6 : f32 to vector<1632x64xf32>
    %8 = arith.cmpf ogt, %6, %7 : vector<1632x64xf32>
    %cst_7 = arith.constant 0.000000e+00 : f32
    %9 = vector.broadcast %cst_7 : f32 to vector<1632x64xf32>
    %10 = arith.minimumf %6, %9 : vector<1632x64xf32>
    %11 = math.exp %10 : vector<1632x64xf32>
    %cst_8 = arith.constant 1.000000e+00 : f32
    %12 = vector.broadcast %cst_8 : f32 to vector<1632x64xf32>
    %13 = arith.subf %11, %12 : vector<1632x64xf32>
    %14 = arith.select %8, %6, %13 : vector<1632x64xi1>, vector<1632x64xf32>
    %15 = arith.truncf %14 : vector<1632x64xf32> to vector<1632x64xbf16>
    %c0_9 = arith.constant 0 : index
    %c0_10 = arith.constant 0 : index
    %16 = vector.load %arg8[%c0_9, %c0_10] : memref<1632x64xbf16, #tpu.memory_space<vmem>>, vector<1632x64xbf16>
    tpu.vector_store %arg8[%c0_9, %c0_10], %15 {strides = array<i32>} : memref<1632x64xbf16, #tpu.memory_space<vmem>>, vector<1632x64xbf16>,
    %cst_11 = arith.constant 0.000000e+00 : bf16
    %17 = vector.broadcast %cst_11 : bf16 to vector<32x64xbf16>
    %c0_12 = arith.constant 0 : index
    %c0_13 = arith.constant 0 : index
    %18 = vector.load %arg8[%c0_12, %c0_13] : memref<1632x64xbf16, #tpu.memory_space<vmem>>, vector<32x64xbf16>
    tpu.vector_store %arg8[%c0_12, %c0_13], %17 {strides = array<i32>} : memref<1632x64xbf16, #tpu.memory_space<vmem>>, vector<32x64xbf16>,
    %c0_14 = arith.constant 0 : index
    %c0_15 = arith.constant 0 : index
    %19 = vector.load %arg8[%c0_14, %c0_15] : memref<1632x64xbf16, #tpu.memory_space<vmem>>, vector<768x64xbf16>
    %c0_16 = arith.constant 0 : index
    %c0_17 = arith.constant 0 : index
    %c0_18 = arith.constant 0 : index
    %20 = vector.load %arg4[%c0_16, %c0_17, %c0_18] : memref<5x64x64xbf16, #tpu.memory_space<vmem>>, vector<1x64x64xbf16>
    %21 = vector.shape_cast %20 : vector<1x64x64xbf16> to vector<64x64xbf16>
    %cst_19 = arith.constant dense<0.000000e+00> : vector<768x64xf32>
    %22 = tpu.matmul %19, %21, %cst_19 {dimension_numbers = #tpu.dot_dimension_numbers<[1], [0], [0], [1], [0, 0, 1, 1], [], []>} : vector<768x64xbf16>, vector<64x64xbf16>, vector<768x64xf32> -> vector<768x64xf32>
    %c0_20 = arith.constant 0 : index
    %c0_21 = arith.constant 0 : index
    %23 = vector.load %arg9[%c0_20, %c0_21] : memref<768x64xf32, #tpu.memory_space<vmem>>, vector<768x64xf32>
    tpu.vector_store %arg9[%c0_20, %c0_21], %22 {strides = array<i32>} : memref<768x64xf32, #tpu.memory_space<vmem>>, vector<768x64xf32>,
    %c0_22 = arith.constant 0 : index
    %c0_23 = arith.constant 0 : index
    %24 = vector.load %arg9[%c0_22, %c0_23] : memref<768x64xf32, #tpu.memory_space<vmem>>, vector<768x64xf32>
    %c32 = arith.constant 32 : index
    %c0_24 = arith.constant 0 : index
    %25 = vector.load %arg8[%c32, %c0_24] : memref<1632x64xbf16, #tpu.memory_space<vmem>>, vector<768x64xbf16>
    %c2 = arith.constant 2 : index
    %c0_25 = arith.constant 0 : index
    %c0_26 = arith.constant 0 : index
    %26 = vector.load %arg4[%c2, %c0_25, %c0_26] : memref<5x64x64xbf16, #tpu.memory_space<vmem>>, vector<1x64x64xbf16>
    %27 = vector.shape_cast %26 : vector<1x64x64xbf16> to vector<64x64xbf16>
    %cst_27 = arith.constant dense<0.000000e+00> : vector<768x64xf32>
    %28 = tpu.matmul %25, %27, %cst_27 {dimension_numbers = #tpu.dot_dimension_numbers<[1], [0], [0], [1], [0, 0, 1, 1], [], []>} : vector<768x64xbf16>, vector<64x64xbf16>, vector<768x64xf32> -> vector<768x64xf32>
    %29 = arith.addf %24, %28 : vector<768x64xf32>
    %c0_28 = arith.constant 0 : index
    %c0_29 = arith.constant 0 : index
    %30 = vector.load %arg9[%c0_28, %c0_29] : memref<768x64xf32, #tpu.memory_space<vmem>>, vector<768x64xf32>
    tpu.vector_store %arg9[%c0_28, %c0_29], %29 {strides = array<i32>} : memref<768x64xf32, #tpu.memory_space<vmem>>, vector<768x64xf32>,
    %c0_30 = arith.constant 0 : index
    %c0_31 = arith.constant 0 : index
    %31 = vector.load %arg9[%c0_30, %c0_31] : memref<768x64xf32, #tpu.memory_space<vmem>>, vector<768x64xf32>
    %c64 = arith.constant 64 : index
    %c0_32 = arith.constant 0 : index
    %32 = vector.load %arg8[%c64, %c0_32] : memref<1632x64xbf16, #tpu.memory_space<vmem>>, vector<768x64xbf16>
    %c4 = arith.constant 4 : index
    %c0_33 = arith.constant 0 : index
    %c0_34 = arith.constant 0 : index
    %33 = vector.load %arg4[%c4, %c0_33, %c0_34] : memref<5x64x64xbf16, #tpu.memory_space<vmem>>, vector<1x64x64xbf16>
    %34 = vector.shape_cast %33 : vector<1x64x64xbf16> to vector<64x64xbf16>
    %cst_35 = arith.constant dense<0.000000e+00> : vector<768x64xf32>
    %35 = tpu.matmul %32, %34, %cst_35 {dimension_numbers = #tpu.dot_dimension_numbers<[1], [0], [0], [1], [0, 0, 1, 1], [], []>} : vector<768x64xbf16>, vector<64x64xbf16>, vector<768x64xf32> -> vector<768x64xf32>
    %36 = arith.addf %31, %35 : vector<768x64xf32>
    %c0_36 = arith.constant 0 : index
    %c0_37 = arith.constant 0 : index
    %37 = vector.load %arg9[%c0_36, %c0_37] : memref<768x64xf32, #tpu.memory_space<vmem>>, vector<768x64xf32>
    tpu.vector_store %arg9[%c0_36, %c0_37], %36 {strides = array<i32>} : memref<768x64xf32, #tpu.memory_space<vmem>>, vector<768x64xf32>,
    %c0_38 = arith.constant 0 : index
    %c0_39 = arith.constant 0 : index
    %38 = vector.load %arg9[%c0_38, %c0_39] : memref<768x64xf32, #tpu.memory_space<vmem>>, vector<768x64xf32>
    %c832 = arith.constant 832 : index
    %c0_40 = arith.constant 0 : index
    %39 = vector.load %arg8[%c832, %c0_40] : memref<1632x64xbf16, #tpu.memory_space<vmem>>, vector<768x64xbf16>
    %c1 = arith.constant 1 : index
    %c0_41 = arith.constant 0 : index
    %c0_42 = arith.constant 0 : index
    %40 = vector.load %arg4[%c1, %c0_41, %c0_42] : memref<5x64x64xbf16, #tpu.memory_space<vmem>>, vector<1x64x64xbf16>
    %41 = vector.shape_cast %40 : vector<1x64x64xbf16> to vector<64x64xbf16>
    %cst_43 = arith.constant dense<0.000000e+00> : vector<768x64xf32>
    %42 = tpu.matmul %39, %41, %cst_43 {dimension_numbers = #tpu.dot_dimension_numbers<[1], [0], [0], [1], [0, 0, 1, 1], [], []>} : vector<768x64xbf16>, vector<64x64xbf16>, vector<768x64xf32> -> vector<768x64xf32>
    %43 = arith.addf %38, %42 : vector<768x64xf32>
    %c0_44 = arith.constant 0 : index
    %c0_45 = arith.constant 0 : index
    %44 = vector.load %arg9[%c0_44, %c0_45] : memref<768x64xf32, #tpu.memory_space<vmem>>, vector<768x64xf32>
    tpu.vector_store %arg9[%c0_44, %c0_45], %43 {strides = array<i32>} : memref<768x64xf32, #tpu.memory_space<vmem>>, vector<768x64xf32>,
    %c0_46 = arith.constant 0 : index
    %c0_47 = arith.constant 0 : index
    %45 = vector.load %arg9[%c0_46, %c0_47] : memref<768x64xf32, #tpu.memory_space<vmem>>, vector<768x64xf32>
    %c864 = arith.constant 864 : index
    %c0_48 = arith.constant 0 : index
    %46 = vector.load %arg8[%c864, %c0_48] : memref<1632x64xbf16, #tpu.memory_space<vmem>>, vector<768x64xbf16>
    %c3 = arith.constant 3 : index
    %c0_49 = arith.constant 0 : index
    %c0_50 = arith.constant 0 : index
    %47 = vector.load %arg4[%c3, %c0_49, %c0_50] : memref<5x64x64xbf16, #tpu.memory_space<vmem>>, vector<1x64x64xbf16>
    %48 = vector.shape_cast %47 : vector<1x64x64xbf16> to vector<64x64xbf16>
    %cst_51 = arith.constant dense<0.000000e+00> : vector<768x64xf32>
    %49 = tpu.matmul %46, %48, %cst_51 {dimension_numbers = #tpu.dot_dimension_numbers<[1], [0], [0], [1], [0, 0, 1, 1], [], []>} : vector<768x64xbf16>, vector<64x64xbf16>, vector<768x64xf32> -> vector<768x64xf32>
    %50 = arith.addf %45, %49 : vector<768x64xf32>
    %c0_52 = arith.constant 0 : index
    %c0_53 = arith.constant 0 : index
    %51 = vector.load %arg9[%c0_52, %c0_53] : memref<768x64xf32, #tpu.memory_space<vmem>>, vector<768x64xf32>
    tpu.vector_store %arg9[%c0_52, %c0_53], %50 {strides = array<i32>} : memref<768x64xf32, #tpu.memory_space<vmem>>, vector<768x64xf32>,
    %c0_54 = arith.constant 0 : index
    %c0_55 = arith.constant 0 : index
    %52 = vector.load %arg5[%c0_54, %c0_55] : memref<1x64xf32, #tpu.memory_space<vmem>>, vector<1x64xf32>
    %53 = vector.shape_cast %52 : vector<1x64xf32> to vector<1x64xf32>
    %54 = vector.broadcast %53 : vector<1x64xf32> to vector<32x64xf32>
    %c0_56 = arith.constant 0 : index
    %c0_57 = arith.constant 0 : index
    %55 = vector.load %arg9[%c0_56, %c0_57] : memref<768x64xf32, #tpu.memory_space<vmem>>, vector<32x64xf32>
    %56 = arith.addf %55, %54 : vector<32x64xf32>
    %cst_58 = arith.constant 0.000000e+00 : f32
    %57 = vector.broadcast %cst_58 : f32 to vector<32x64xf32>
    %58 = arith.cmpf ogt, %56, %57 : vector<32x64xf32>
    %cst_59 = arith.constant 0.000000e+00 : f32
    %59 = vector.broadcast %cst_59 : f32 to vector<32x64xf32>
    %60 = arith.minimumf %56, %59 : vector<32x64xf32>
    %61 = math.exp %60 : vector<32x64xf32>
    %cst_60 = arith.constant 1.000000e+00 : f32
    %62 = vector.broadcast %cst_60 : f32 to vector<32x64xf32>
    %63 = arith.subf %61, %62 : vector<32x64xf32>
    %64 = arith.select %58, %56, %63 : vector<32x64xi1>, vector<32x64xf32>
    %65 = arith.truncf %64 : vector<32x64xf32> to vector<32x64xbf16>
    %c0_61 = arith.constant 0 : index
    %c0_62 = arith.constant 0 : index
    %66 = vector.load %arg10[%c0_61, %c0_62] : memref<32x1536xbf16, #tpu.memory_space<vmem>>, vector<32x64xbf16>
    tpu.vector_store %arg10[%c0_61, %c0_62], %65 {strides = array<i32>} : memref<32x1536xbf16, #tpu.memory_space<vmem>>, vector<32x64xbf16>,
    %c32_63 = arith.constant 32 : index
    %c0_64 = arith.constant 0 : index
    %67 = vector.load %arg9[%c32_63, %c0_64] : memref<768x64xf32, #tpu.memory_space<vmem>>, vector<32x64xf32>
    %68 = arith.addf %67, %54 : vector<32x64xf32>
    %cst_65 = arith.constant 0.000000e+00 : f32
    %69 = vector.broadcast %cst_65 : f32 to vector<32x64xf32>
    %70 = arith.cmpf ogt, %68, %69 : vector<32x64xf32>
    %cst_66 = arith.constant 0.000000e+00 : f32
    %71 = vector.broadcast %cst_66 : f32 to vector<32x64xf32>
    %72 = arith.minimumf %68, %71 : vector<32x64xf32>
    %73 = math.exp %72 : vector<32x64xf32>
    %cst_67 = arith.constant 1.000000e+00 : f32
    %74 = vector.broadcast %cst_67 : f32 to vector<32x64xf32>
    %75 = arith.subf %73, %74 : vector<32x64xf32>
    %76 = arith.select %70, %68, %75 : vector<32x64xi1>, vector<32x64xf32>
    %77 = arith.truncf %76 : vector<32x64xf32> to vector<32x64xbf16>
    %c0_68 = arith.constant 0 : index
    %c64_69 = arith.constant 64 : index
    %78 = vector.load %arg10[%c0_68, %c64_69] : memref<32x1536xbf16, #tpu.memory_space<vmem>>, vector<32x64xbf16>
    tpu.vector_store %arg10[%c0_68, %c64_69], %77 {strides = array<i32>} : memref<32x1536xbf16, #tpu.memory_space<vmem>>, vector<32x64xbf16>,
    %c64_70 = arith.constant 64 : index
    %c0_71 = arith.constant 0 : index
    %79 = vector.load %arg9[%c64_70, %c0_71] : memref<768x64xf32, #tpu.memory_space<vmem>>, vector<32x64xf32>
    %80 = arith.addf %79, %54 : vector<32x64xf32>
    %cst_72 = arith.constant 0.000000e+00 : f32
    %81 = vector.broadcast %cst_72 : f32 to vector<32x64xf32>
    %82 = arith.cmpf ogt, %80, %81 : vector<32x64xf32>
    %cst_73 = arith.constant 0.000000e+00 : f32
    %83 = vector.broadcast %cst_73 : f32 to vector<32x64xf32>
    %84 = arith.minimumf %80, %83 : vector<32x64xf32>
    %85 = math.exp %84 : vector<32x64xf32>
    %cst_74 = arith.constant 1.000000e+00 : f32
    %86 = vector.broadcast %cst_74 : f32 to vector<32x64xf32>
    %87 = arith.subf %85, %86 : vector<32x64xf32>
    %88 = arith.select %82, %80, %87 : vector<32x64xi1>, vector<32x64xf32>
    %89 = arith.truncf %88 : vector<32x64xf32> to vector<32x64xbf16>
    %c0_75 = arith.constant 0 : index
    %c128 = arith.constant 128 : index
    %90 = vector.load %arg10[%c0_75, %c128] : memref<32x1536xbf16, #tpu.memory_space<vmem>>, vector<32x64xbf16>
    tpu.vector_store %arg10[%c0_75, %c128], %89 {strides = array<i32>} : memref<32x1536xbf16, #tpu.memory_space<vmem>>, vector<32x64xbf16>,
    %c96 = arith.constant 96 : index
    %c0_76 = arith.constant 0 : index
    %91 = vector.load %arg9[%c96, %c0_76] : memref<768x64xf32, #tpu.memory_space<vmem>>, vector<32x64xf32>
    %92 = arith.addf %91, %54 : vector<32x64xf32>
    %cst_77 = arith.constant 0.000000e+00 : f32
    %93 = vector.broadcast %cst_77 : f32 to vector<32x64xf32>
    %94 = arith.cmpf ogt, %92, %93 : vector<32x64xf32>
    %cst_78 = arith.constant 0.000000e+00 : f32
    %95 = vector.broadcast %cst_78 : f32 to vector<32x64xf32>
    %96 = arith.minimumf %92, %95 : vector<32x64xf32>
    %97 = math.exp %96 : vector<32x64xf32>
    %cst_79 = arith.constant 1.000000e+00 : f32
    %98 = vector.broadcast %cst_79 : f32 to vector<32x64xf32>
    %99 = arith.subf %97, %98 : vector<32x64xf32>
    %100 = arith.select %94, %92, %99 : vector<32x64xi1>, vector<32x64xf32>
    %101 = arith.truncf %100 : vector<32x64xf32> to vector<32x64xbf16>
    %c0_80 = arith.constant 0 : index
    %c192 = arith.constant 192 : index
    %102 = vector.load %arg10[%c0_80, %c192] : memref<32x1536xbf16, #tpu.memory_space<vmem>>, vector<32x64xbf16>
    tpu.vector_store %arg10[%c0_80, %c192], %101 {strides = array<i32>} : memref<32x1536xbf16, #tpu.memory_space<vmem>>, vector<32x64xbf16>,
    %c128_81 = arith.constant 128 : index
    %c0_82 = arith.constant 0 : index
    %103 = vector.load %arg9[%c128_81, %c0_82] : memref<768x64xf32, #tpu.memory_space<vmem>>, vector<32x64xf32>
    %104 = arith.addf %103, %54 : vector<32x64xf32>
    %cst_83 = arith.constant 0.000000e+00 : f32
    %105 = vector.broadcast %cst_83 : f32 to vector<32x64xf32>
    %106 = arith.cmpf ogt, %104, %105 : vector<32x64xf32>
    %cst_84 = arith.constant 0.000000e+00 : f32
    %107 = vector.broadcast %cst_84 : f32 to vector<32x64xf32>
    %108 = arith.minimumf %104, %107 : vector<32x64xf32>
    %109 = math.exp %108 : vector<32x64xf32>
    %cst_85 = arith.constant 1.000000e+00 : f32
    %110 = vector.broadcast %cst_85 : f32 to vector<32x64xf32>
    %111 = arith.subf %109, %110 : vector<32x64xf32>
    %112 = arith.select %106, %104, %111 : vector<32x64xi1>, vector<32x64xf32>
    %113 = arith.truncf %112 : vector<32x64xf32> to vector<32x64xbf16>
    %c0_86 = arith.constant 0 : index
    %c256 = arith.constant 256 : index
    %114 = vector.load %arg10[%c0_86, %c256] : memref<32x1536xbf16, #tpu.memory_space<vmem>>, vector<32x64xbf16>
    tpu.vector_store %arg10[%c0_86, %c256], %113 {strides = array<i32>} : memref<32x1536xbf16, #tpu.memory_space<vmem>>, vector<32x64xbf16>,
    %c160 = arith.constant 160 : index
    %c0_87 = arith.constant 0 : index
    %115 = vector.load %arg9[%c160, %c0_87] : memref<768x64xf32, #tpu.memory_space<vmem>>, vector<32x64xf32>
    %116 = arith.addf %115, %54 : vector<32x64xf32>
    %cst_88 = arith.constant 0.000000e+00 : f32
    %117 = vector.broadcast %cst_88 : f32 to vector<32x64xf32>
    %118 = arith.cmpf ogt, %116, %117 : vector<32x64xf32>
    %cst_89 = arith.constant 0.000000e+00 : f32
    %119 = vector.broadcast %cst_89 : f32 to vector<32x64xf32>
    %120 = arith.minimumf %116, %119 : vector<32x64xf32>
    %121 = math.exp %120 : vector<32x64xf32>
    %cst_90 = arith.constant 1.000000e+00 : f32
    %122 = vector.broadcast %cst_90 : f32 to vector<32x64xf32>
    %123 = arith.subf %121, %122 : vector<32x64xf32>
    %124 = arith.select %118, %116, %123 : vector<32x64xi1>, vector<32x64xf32>
    %125 = arith.truncf %124 : vector<32x64xf32> to vector<32x64xbf16>
    %c0_91 = arith.constant 0 : index
    %c320 = arith.constant 320 : index
    %126 = vector.load %arg10[%c0_91, %c320] : memref<32x1536xbf16, #tpu.memory_space<vmem>>, vector<32x64xbf16>
    tpu.vector_store %arg10[%c0_91, %c320], %125 {strides = array<i32>} : memref<32x1536xbf16, #tpu.memory_space<vmem>>, vector<32x64xbf16>,
    %c192_92 = arith.constant 192 : index
    %c0_93 = arith.constant 0 : index
    %127 = vector.load %arg9[%c192_92, %c0_93] : memref<768x64xf32, #tpu.memory_space<vmem>>, vector<32x64xf32>
    %128 = arith.addf %127, %54 : vector<32x64xf32>
    %cst_94 = arith.constant 0.000000e+00 : f32
    %129 = vector.broadcast %cst_94 : f32 to vector<32x64xf32>
    %130 = arith.cmpf ogt, %128, %129 : vector<32x64xf32>
    %cst_95 = arith.constant 0.000000e+00 : f32
    %131 = vector.broadcast %cst_95 : f32 to vector<32x64xf32>
    %132 = arith.minimumf %128, %131 : vector<32x64xf32>
    %133 = math.exp %132 : vector<32x64xf32>
    %cst_96 = arith.constant 1.000000e+00 : f32
    %134 = vector.broadcast %cst_96 : f32 to vector<32x64xf32>
    %135 = arith.subf %133, %134 : vector<32x64xf32>
    %136 = arith.select %130, %128, %135 : vector<32x64xi1>, vector<32x64xf32>
    %137 = arith.truncf %136 : vector<32x64xf32> to vector<32x64xbf16>
    %c0_97 = arith.constant 0 : index
    %c384 = arith.constant 384 : index
    %138 = vector.load %arg10[%c0_97, %c384] : memref<32x1536xbf16, #tpu.memory_space<vmem>>, vector<32x64xbf16>
    tpu.vector_store %arg10[%c0_97, %c384], %137 {strides = array<i32>} : memref<32x1536xbf16, #tpu.memory_space<vmem>>, vector<32x64xbf16>,
    %c224 = arith.constant 224 : index
    %c0_98 = arith.constant 0 : index
    %139 = vector.load %arg9[%c224, %c0_98] : memref<768x64xf32, #tpu.memory_space<vmem>>, vector<32x64xf32>
    %140 = arith.addf %139, %54 : vector<32x64xf32>
    %cst_99 = arith.constant 0.000000e+00 : f32
    %141 = vector.broadcast %cst_99 : f32 to vector<32x64xf32>
    %142 = arith.cmpf ogt, %140, %141 : vector<32x64xf32>
    %cst_100 = arith.constant 0.000000e+00 : f32
    %143 = vector.broadcast %cst_100 : f32 to vector<32x64xf32>
    %144 = arith.minimumf %140, %143 : vector<32x64xf32>
    %145 = math.exp %144 : vector<32x64xf32>
    %cst_101 = arith.constant 1.000000e+00 : f32
    %146 = vector.broadcast %cst_101 : f32 to vector<32x64xf32>
    %147 = arith.subf %145, %146 : vector<32x64xf32>
    %148 = arith.select %142, %140, %147 : vector<32x64xi1>, vector<32x64xf32>
    %149 = arith.truncf %148 : vector<32x64xf32> to vector<32x64xbf16>
    %c0_102 = arith.constant 0 : index
    %c448 = arith.constant 448 : index
    %150 = vector.load %arg10[%c0_102, %c448] : memref<32x1536xbf16, #tpu.memory_space<vmem>>, vector<32x64xbf16>
    tpu.vector_store %arg10[%c0_102, %c448], %149 {strides = array<i32>} : memref<32x1536xbf16, #tpu.memory_space<vmem>>, vector<32x64xbf16>,
    %c256_103 = arith.constant 256 : index
    %c0_104 = arith.constant 0 : index
    %151 = vector.load %arg9[%c256_103, %c0_104] : memref<768x64xf32, #tpu.memory_space<vmem>>, vector<32x64xf32>
    %152 = arith.addf %151, %54 : vector<32x64xf32>
    %cst_105 = arith.constant 0.000000e+00 : f32
    %153 = vector.broadcast %cst_105 : f32 to vector<32x64xf32>
    %154 = arith.cmpf ogt, %152, %153 : vector<32x64xf32>
    %cst_106 = arith.constant 0.000000e+00 : f32
    %155 = vector.broadcast %cst_106 : f32 to vector<32x64xf32>
    %156 = arith.minimumf %152, %155 : vector<32x64xf32>
    %157 = math.exp %156 : vector<32x64xf32>
    %cst_107 = arith.constant 1.000000e+00 : f32
    %158 = vector.broadcast %cst_107 : f32 to vector<32x64xf32>
    %159 = arith.subf %157, %158 : vector<32x64xf32>
    %160 = arith.select %154, %152, %159 : vector<32x64xi1>, vector<32x64xf32>
    %161 = arith.truncf %160 : vector<32x64xf32> to vector<32x64xbf16>
    %c0_108 = arith.constant 0 : index
    %c512 = arith.constant 512 : index
    %162 = vector.load %arg10[%c0_108, %c512] : memref<32x1536xbf16, #tpu.memory_space<vmem>>, vector<32x64xbf16>
    tpu.vector_store %arg10[%c0_108, %c512], %161 {strides = array<i32>} : memref<32x1536xbf16, #tpu.memory_space<vmem>>, vector<32x64xbf16>,
    %c288 = arith.constant 288 : index
    %c0_109 = arith.constant 0 : index
    %163 = vector.load %arg9[%c288, %c0_109] : memref<768x64xf32, #tpu.memory_space<vmem>>, vector<32x64xf32>
    %164 = arith.addf %163, %54 : vector<32x64xf32>
    %cst_110 = arith.constant 0.000000e+00 : f32
    %165 = vector.broadcast %cst_110 : f32 to vector<32x64xf32>
    %166 = arith.cmpf ogt, %164, %165 : vector<32x64xf32>
    %cst_111 = arith.constant 0.000000e+00 : f32
    %167 = vector.broadcast %cst_111 : f32 to vector<32x64xf32>
    %168 = arith.minimumf %164, %167 : vector<32x64xf32>
    %169 = math.exp %168 : vector<32x64xf32>
    %cst_112 = arith.constant 1.000000e+00 : f32
    %170 = vector.broadcast %cst_112 : f32 to vector<32x64xf32>
    %171 = arith.subf %169, %170 : vector<32x64xf32>
    %172 = arith.select %166, %164, %171 : vector<32x64xi1>, vector<32x64xf32>
    %173 = arith.truncf %172 : vector<32x64xf32> to vector<32x64xbf16>
    %c0_113 = arith.constant 0 : index
    %c576 = arith.constant 576 : index
    %174 = vector.load %arg10[%c0_113, %c576] : memref<32x1536xbf16, #tpu.memory_space<vmem>>, vector<32x64xbf16>
    tpu.vector_store %arg10[%c0_113, %c576], %173 {strides = array<i32>} : memref<32x1536xbf16, #tpu.memory_space<vmem>>, vector<32x64xbf16>,
    %c320_114 = arith.constant 320 : index
    %c0_115 = arith.constant 0 : index
    %175 = vector.load %arg9[%c320_114, %c0_115] : memref<768x64xf32, #tpu.memory_space<vmem>>, vector<32x64xf32>
    %176 = arith.addf %175, %54 : vector<32x64xf32>
    %cst_116 = arith.constant 0.000000e+00 : f32
    %177 = vector.broadcast %cst_116 : f32 to vector<32x64xf32>
    %178 = arith.cmpf ogt, %176, %177 : vector<32x64xf32>
    %cst_117 = arith.constant 0.000000e+00 : f32
    %179 = vector.broadcast %cst_117 : f32 to vector<32x64xf32>
    %180 = arith.minimumf %176, %179 : vector<32x64xf32>
    %181 = math.exp %180 : vector<32x64xf32>
    %cst_118 = arith.constant 1.000000e+00 : f32
    %182 = vector.broadcast %cst_118 : f32 to vector<32x64xf32>
    %183 = arith.subf %181, %182 : vector<32x64xf32>
    %184 = arith.select %178, %176, %183 : vector<32x64xi1>, vector<32x64xf32>
    %185 = arith.truncf %184 : vector<32x64xf32> to vector<32x64xbf16>
    %c0_119 = arith.constant 0 : index
    %c640 = arith.constant 640 : index
    %186 = vector.load %arg10[%c0_119, %c640] : memref<32x1536xbf16, #tpu.memory_space<vmem>>, vector<32x64xbf16>
    tpu.vector_store %arg10[%c0_119, %c640], %185 {strides = array<i32>} : memref<32x1536xbf16, #tpu.memory_space<vmem>>, vector<32x64xbf16>,
    %c352 = arith.constant 352 : index
    %c0_120 = arith.constant 0 : index
    %187 = vector.load %arg9[%c352, %c0_120] : memref<768x64xf32, #tpu.memory_space<vmem>>, vector<32x64xf32>
    %188 = arith.addf %187, %54 : vector<32x64xf32>
    %cst_121 = arith.constant 0.000000e+00 : f32
    %189 = vector.broadcast %cst_121 : f32 to vector<32x64xf32>
    %190 = arith.cmpf ogt, %188, %189 : vector<32x64xf32>
    %cst_122 = arith.constant 0.000000e+00 : f32
    %191 = vector.broadcast %cst_122 : f32 to vector<32x64xf32>
    %192 = arith.minimumf %188, %191 : vector<32x64xf32>
    %193 = math.exp %192 : vector<32x64xf32>
    %cst_123 = arith.constant 1.000000e+00 : f32
    %194 = vector.broadcast %cst_123 : f32 to vector<32x64xf32>
    %195 = arith.subf %193, %194 : vector<32x64xf32>
    %196 = arith.select %190, %188, %195 : vector<32x64xi1>, vector<32x64xf32>
    %197 = arith.truncf %196 : vector<32x64xf32> to vector<32x64xbf16>
    %c0_124 = arith.constant 0 : index
    %c704 = arith.constant 704 : index
    %198 = vector.load %arg10[%c0_124, %c704] : memref<32x1536xbf16, #tpu.memory_space<vmem>>, vector<32x64xbf16>
    tpu.vector_store %arg10[%c0_124, %c704], %197 {strides = array<i32>} : memref<32x1536xbf16, #tpu.memory_space<vmem>>, vector<32x64xbf16>,
    %c384_125 = arith.constant 384 : index
    %c0_126 = arith.constant 0 : index
    %199 = vector.load %arg9[%c384_125, %c0_126] : memref<768x64xf32, #tpu.memory_space<vmem>>, vector<32x64xf32>
    %200 = arith.addf %199, %54 : vector<32x64xf32>
    %cst_127 = arith.constant 0.000000e+00 : f32
    %201 = vector.broadcast %cst_127 : f32 to vector<32x64xf32>
    %202 = arith.cmpf ogt, %200, %201 : vector<32x64xf32>
    %cst_128 = arith.constant 0.000000e+00 : f32
    %203 = vector.broadcast %cst_128 : f32 to vector<32x64xf32>
    %204 = arith.minimumf %200, %203 : vector<32x64xf32>
    %205 = math.exp %204 : vector<32x64xf32>
    %cst_129 = arith.constant 1.000000e+00 : f32
    %206 = vector.broadcast %cst_129 : f32 to vector<32x64xf32>
    %207 = arith.subf %205, %206 : vector<32x64xf32>
    %208 = arith.select %202, %200, %207 : vector<32x64xi1>, vector<32x64xf32>
    %209 = arith.truncf %208 : vector<32x64xf32> to vector<32x64xbf16>
    %c0_130 = arith.constant 0 : index
    %c768 = arith.constant 768 : index
    %210 = vector.load %arg10[%c0_130, %c768] : memref<32x1536xbf16, #tpu.memory_space<vmem>>, vector<32x64xbf16>
    tpu.vector_store %arg10[%c0_130, %c768], %209 {strides = array<i32>} : memref<32x1536xbf16, #tpu.memory_space<vmem>>, vector<32x64xbf16>,
    %c416 = arith.constant 416 : index
    %c0_131 = arith.constant 0 : index
    %211 = vector.load %arg9[%c416, %c0_131] : memref<768x64xf32, #tpu.memory_space<vmem>>, vector<32x64xf32>
    %212 = arith.addf %211, %54 : vector<32x64xf32>
    %cst_132 = arith.constant 0.000000e+00 : f32
    %213 = vector.broadcast %cst_132 : f32 to vector<32x64xf32>
    %214 = arith.cmpf ogt, %212, %213 : vector<32x64xf32>
    %cst_133 = arith.constant 0.000000e+00 : f32
    %215 = vector.broadcast %cst_133 : f32 to vector<32x64xf32>
    %216 = arith.minimumf %212, %215 : vector<32x64xf32>
    %217 = math.exp %216 : vector<32x64xf32>
    %cst_134 = arith.constant 1.000000e+00 : f32
    %218 = vector.broadcast %cst_134 : f32 to vector<32x64xf32>
    %219 = arith.subf %217, %218 : vector<32x64xf32>
    %220 = arith.select %214, %212, %219 : vector<32x64xi1>, vector<32x64xf32>
    %221 = arith.truncf %220 : vector<32x64xf32> to vector<32x64xbf16>
    %c0_135 = arith.constant 0 : index
    %c832_136 = arith.constant 832 : index
    %222 = vector.load %arg10[%c0_135, %c832_136] : memref<32x1536xbf16, #tpu.memory_space<vmem>>, vector<32x64xbf16>
    tpu.vector_store %arg10[%c0_135, %c832_136], %221 {strides = array<i32>} : memref<32x1536xbf16, #tpu.memory_space<vmem>>, vector<32x64xbf16>,
    %c448_137 = arith.constant 448 : index
    %c0_138 = arith.constant 0 : index
    %223 = vector.load %arg9[%c448_137, %c0_138] : memref<768x64xf32, #tpu.memory_space<vmem>>, vector<32x64xf32>
    %224 = arith.addf %223, %54 : vector<32x64xf32>
    %cst_139 = arith.constant 0.000000e+00 : f32
    %225 = vector.broadcast %cst_139 : f32 to vector<32x64xf32>
    %226 = arith.cmpf ogt, %224, %225 : vector<32x64xf32>
    %cst_140 = arith.constant 0.000000e+00 : f32
    %227 = vector.broadcast %cst_140 : f32 to vector<32x64xf32>
    %228 = arith.minimumf %224, %227 : vector<32x64xf32>
    %229 = math.exp %228 : vector<32x64xf32>
    %cst_141 = arith.constant 1.000000e+00 : f32
    %230 = vector.broadcast %cst_141 : f32 to vector<32x64xf32>
    %231 = arith.subf %229, %230 : vector<32x64xf32>
    %232 = arith.select %226, %224, %231 : vector<32x64xi1>, vector<32x64xf32>
    %233 = arith.truncf %232 : vector<32x64xf32> to vector<32x64xbf16>
    %c0_142 = arith.constant 0 : index
    %c896 = arith.constant 896 : index
    %234 = vector.load %arg10[%c0_142, %c896] : memref<32x1536xbf16, #tpu.memory_space<vmem>>, vector<32x64xbf16>
    tpu.vector_store %arg10[%c0_142, %c896], %233 {strides = array<i32>} : memref<32x1536xbf16, #tpu.memory_space<vmem>>, vector<32x64xbf16>,
    %c480 = arith.constant 480 : index
    %c0_143 = arith.constant 0 : index
    %235 = vector.load %arg9[%c480, %c0_143] : memref<768x64xf32, #tpu.memory_space<vmem>>, vector<32x64xf32>
    %236 = arith.addf %235, %54 : vector<32x64xf32>
    %cst_144 = arith.constant 0.000000e+00 : f32
    %237 = vector.broadcast %cst_144 : f32 to vector<32x64xf32>
    %238 = arith.cmpf ogt, %236, %237 : vector<32x64xf32>
    %cst_145 = arith.constant 0.000000e+00 : f32
    %239 = vector.broadcast %cst_145 : f32 to vector<32x64xf32>
    %240 = arith.minimumf %236, %239 : vector<32x64xf32>
    %241 = math.exp %240 : vector<32x64xf32>
    %cst_146 = arith.constant 1.000000e+00 : f32
    %242 = vector.broadcast %cst_146 : f32 to vector<32x64xf32>
    %243 = arith.subf %241, %242 : vector<32x64xf32>
    %244 = arith.select %238, %236, %243 : vector<32x64xi1>, vector<32x64xf32>
    %245 = arith.truncf %244 : vector<32x64xf32> to vector<32x64xbf16>
    %c0_147 = arith.constant 0 : index
    %c960 = arith.constant 960 : index
    %246 = vector.load %arg10[%c0_147, %c960] : memref<32x1536xbf16, #tpu.memory_space<vmem>>, vector<32x64xbf16>
    tpu.vector_store %arg10[%c0_147, %c960], %245 {strides = array<i32>} : memref<32x1536xbf16, #tpu.memory_space<vmem>>, vector<32x64xbf16>,
    %c512_148 = arith.constant 512 : index
    %c0_149 = arith.constant 0 : index
    %247 = vector.load %arg9[%c512_148, %c0_149] : memref<768x64xf32, #tpu.memory_space<vmem>>, vector<32x64xf32>
    %248 = arith.addf %247, %54 : vector<32x64xf32>
    %cst_150 = arith.constant 0.000000e+00 : f32
    %249 = vector.broadcast %cst_150 : f32 to vector<32x64xf32>
    %250 = arith.cmpf ogt, %248, %249 : vector<32x64xf32>
    %cst_151 = arith.constant 0.000000e+00 : f32
    %251 = vector.broadcast %cst_151 : f32 to vector<32x64xf32>
    %252 = arith.minimumf %248, %251 : vector<32x64xf32>
    %253 = math.exp %252 : vector<32x64xf32>
    %cst_152 = arith.constant 1.000000e+00 : f32
    %254 = vector.broadcast %cst_152 : f32 to vector<32x64xf32>
    %255 = arith.subf %253, %254 : vector<32x64xf32>
    %256 = arith.select %250, %248, %255 : vector<32x64xi1>, vector<32x64xf32>
    %257 = arith.truncf %256 : vector<32x64xf32> to vector<32x64xbf16>
    %c0_153 = arith.constant 0 : index
    %c1024 = arith.constant 1024 : index
    %258 = vector.load %arg10[%c0_153, %c1024] : memref<32x1536xbf16, #tpu.memory_space<vmem>>, vector<32x64xbf16>
    tpu.vector_store %arg10[%c0_153, %c1024], %257 {strides = array<i32>} : memref<32x1536xbf16, #tpu.memory_space<vmem>>, vector<32x64xbf16>,
    %c544 = arith.constant 544 : index
    %c0_154 = arith.constant 0 : index
    %259 = vector.load %arg9[%c544, %c0_154] : memref<768x64xf32, #tpu.memory_space<vmem>>, vector<32x64xf32>
    %260 = arith.addf %259, %54 : vector<32x64xf32>
    %cst_155 = arith.constant 0.000000e+00 : f32
    %261 = vector.broadcast %cst_155 : f32 to vector<32x64xf32>
    %262 = arith.cmpf ogt, %260, %261 : vector<32x64xf32>
    %cst_156 = arith.constant 0.000000e+00 : f32
    %263 = vector.broadcast %cst_156 : f32 to vector<32x64xf32>
    %264 = arith.minimumf %260, %263 : vector<32x64xf32>
    %265 = math.exp %264 : vector<32x64xf32>
    %cst_157 = arith.constant 1.000000e+00 : f32
    %266 = vector.broadcast %cst_157 : f32 to vector<32x64xf32>
    %267 = arith.subf %265, %266 : vector<32x64xf32>
    %268 = arith.select %262, %260, %267 : vector<32x64xi1>, vector<32x64xf32>
    %269 = arith.truncf %268 : vector<32x64xf32> to vector<32x64xbf16>
    %c0_158 = arith.constant 0 : index
    %c1088 = arith.constant 1088 : index
    %270 = vector.load %arg10[%c0_158, %c1088] : memref<32x1536xbf16, #tpu.memory_space<vmem>>, vector<32x64xbf16>
    tpu.vector_store %arg10[%c0_158, %c1088], %269 {strides = array<i32>} : memref<32x1536xbf16, #tpu.memory_space<vmem>>, vector<32x64xbf16>,
    %c576_159 = arith.constant 576 : index
    %c0_160 = arith.constant 0 : index
    %271 = vector.load %arg9[%c576_159, %c0_160] : memref<768x64xf32, #tpu.memory_space<vmem>>, vector<32x64xf32>
    %272 = arith.addf %271, %54 : vector<32x64xf32>
    %cst_161 = arith.constant 0.000000e+00 : f32
    %273 = vector.broadcast %cst_161 : f32 to vector<32x64xf32>
    %274 = arith.cmpf ogt, %272, %273 : vector<32x64xf32>
    %cst_162 = arith.constant 0.000000e+00 : f32
    %275 = vector.broadcast %cst_162 : f32 to vector<32x64xf32>
    %276 = arith.minimumf %272, %275 : vector<32x64xf32>
    %277 = math.exp %276 : vector<32x64xf32>
    %cst_163 = arith.constant 1.000000e+00 : f32
    %278 = vector.broadcast %cst_163 : f32 to vector<32x64xf32>
    %279 = arith.subf %277, %278 : vector<32x64xf32>
    %280 = arith.select %274, %272, %279 : vector<32x64xi1>, vector<32x64xf32>
    %281 = arith.truncf %280 : vector<32x64xf32> to vector<32x64xbf16>
    %c0_164 = arith.constant 0 : index
    %c1152 = arith.constant 1152 : index
    %282 = vector.load %arg10[%c0_164, %c1152] : memref<32x1536xbf16, #tpu.memory_space<vmem>>, vector<32x64xbf16>
    tpu.vector_store %arg10[%c0_164, %c1152], %281 {strides = array<i32>} : memref<32x1536xbf16, #tpu.memory_space<vmem>>, vector<32x64xbf16>,
    %c608 = arith.constant 608 : index
    %c0_165 = arith.constant 0 : index
    %283 = vector.load %arg9[%c608, %c0_165] : memref<768x64xf32, #tpu.memory_space<vmem>>, vector<32x64xf32>
    %284 = arith.addf %283, %54 : vector<32x64xf32>
    %cst_166 = arith.constant 0.000000e+00 : f32
    %285 = vector.broadcast %cst_166 : f32 to vector<32x64xf32>
    %286 = arith.cmpf ogt, %284, %285 : vector<32x64xf32>
    %cst_167 = arith.constant 0.000000e+00 : f32
    %287 = vector.broadcast %cst_167 : f32 to vector<32x64xf32>
    %288 = arith.minimumf %284, %287 : vector<32x64xf32>
    %289 = math.exp %288 : vector<32x64xf32>
    %cst_168 = arith.constant 1.000000e+00 : f32
    %290 = vector.broadcast %cst_168 : f32 to vector<32x64xf32>
    %291 = arith.subf %289, %290 : vector<32x64xf32>
    %292 = arith.select %286, %284, %291 : vector<32x64xi1>, vector<32x64xf32>
    %293 = arith.truncf %292 : vector<32x64xf32> to vector<32x64xbf16>
    %c0_169 = arith.constant 0 : index
    %c1216 = arith.constant 1216 : index
    %294 = vector.load %arg10[%c0_169, %c1216] : memref<32x1536xbf16, #tpu.memory_space<vmem>>, vector<32x64xbf16>
    tpu.vector_store %arg10[%c0_169, %c1216], %293 {strides = array<i32>} : memref<32x1536xbf16, #tpu.memory_space<vmem>>, vector<32x64xbf16>,
    %c640_170 = arith.constant 640 : index
    %c0_171 = arith.constant 0 : index
    %295 = vector.load %arg9[%c640_170, %c0_171] : memref<768x64xf32, #tpu.memory_space<vmem>>, vector<32x64xf32>
    %296 = arith.addf %295, %54 : vector<32x64xf32>
    %cst_172 = arith.constant 0.000000e+00 : f32
    %297 = vector.broadcast %cst_172 : f32 to vector<32x64xf32>
    %298 = arith.cmpf ogt, %296, %297 : vector<32x64xf32>
    %cst_173 = arith.constant 0.000000e+00 : f32
    %299 = vector.broadcast %cst_173 : f32 to vector<32x64xf32>
    %300 = arith.minimumf %296, %299 : vector<32x64xf32>
    %301 = math.exp %300 : vector<32x64xf32>
    %cst_174 = arith.constant 1.000000e+00 : f32
    %302 = vector.broadcast %cst_174 : f32 to vector<32x64xf32>
    %303 = arith.subf %301, %302 : vector<32x64xf32>
    %304 = arith.select %298, %296, %303 : vector<32x64xi1>, vector<32x64xf32>
    %305 = arith.truncf %304 : vector<32x64xf32> to vector<32x64xbf16>
    %c0_175 = arith.constant 0 : index
    %c1280 = arith.constant 1280 : index
    %306 = vector.load %arg10[%c0_175, %c1280] : memref<32x1536xbf16, #tpu.memory_space<vmem>>, vector<32x64xbf16>
    tpu.vector_store %arg10[%c0_175, %c1280], %305 {strides = array<i32>} : memref<32x1536xbf16, #tpu.memory_space<vmem>>, vector<32x64xbf16>,
    %c672 = arith.constant 672 : index
    %c0_176 = arith.constant 0 : index
    %307 = vector.load %arg9[%c672, %c0_176] : memref<768x64xf32, #tpu.memory_space<vmem>>, vector<32x64xf32>
    %308 = arith.addf %307, %54 : vector<32x64xf32>
    %cst_177 = arith.constant 0.000000e+00 : f32
    %309 = vector.broadcast %cst_177 : f32 to vector<32x64xf32>
    %310 = arith.cmpf ogt, %308, %309 : vector<32x64xf32>
    %cst_178 = arith.constant 0.000000e+00 : f32
    %311 = vector.broadcast %cst_178 : f32 to vector<32x64xf32>
    %312 = arith.minimumf %308, %311 : vector<32x64xf32>
    %313 = math.exp %312 : vector<32x64xf32>
    %cst_179 = arith.constant 1.000000e+00 : f32
    %314 = vector.broadcast %cst_179 : f32 to vector<32x64xf32>
    %315 = arith.subf %313, %314 : vector<32x64xf32>
    %316 = arith.select %310, %308, %315 : vector<32x64xi1>, vector<32x64xf32>
    %317 = arith.truncf %316 : vector<32x64xf32> to vector<32x64xbf16>
    %c0_180 = arith.constant 0 : index
    %c1344 = arith.constant 1344 : index
    %318 = vector.load %arg10[%c0_180, %c1344] : memref<32x1536xbf16, #tpu.memory_space<vmem>>, vector<32x64xbf16>
    tpu.vector_store %arg10[%c0_180, %c1344], %317 {strides = array<i32>} : memref<32x1536xbf16, #tpu.memory_space<vmem>>, vector<32x64xbf16>,
    %c704_181 = arith.constant 704 : index
    %c0_182 = arith.constant 0 : index
    %319 = vector.load %arg9[%c704_181, %c0_182] : memref<768x64xf32, #tpu.memory_space<vmem>>, vector<32x64xf32>
    %320 = arith.addf %319, %54 : vector<32x64xf32>
    %cst_183 = arith.constant 0.000000e+00 : f32
    %321 = vector.broadcast %cst_183 : f32 to vector<32x64xf32>
    %322 = arith.cmpf ogt, %320, %321 : vector<32x64xf32>
    %cst_184 = arith.constant 0.000000e+00 : f32
    %323 = vector.broadcast %cst_184 : f32 to vector<32x64xf32>
    %324 = arith.minimumf %320, %323 : vector<32x64xf32>
    %325 = math.exp %324 : vector<32x64xf32>
    %cst_185 = arith.constant 1.000000e+00 : f32
    %326 = vector.broadcast %cst_185 : f32 to vector<32x64xf32>
    %327 = arith.subf %325, %326 : vector<32x64xf32>
    %328 = arith.select %322, %320, %327 : vector<32x64xi1>, vector<32x64xf32>
    %329 = arith.truncf %328 : vector<32x64xf32> to vector<32x64xbf16>
    %c0_186 = arith.constant 0 : index
    %c1408 = arith.constant 1408 : index
    %330 = vector.load %arg10[%c0_186, %c1408] : memref<32x1536xbf16, #tpu.memory_space<vmem>>, vector<32x64xbf16>
    tpu.vector_store %arg10[%c0_186, %c1408], %329 {strides = array<i32>} : memref<32x1536xbf16, #tpu.memory_space<vmem>>, vector<32x64xbf16>,
    %c736 = arith.constant 736 : index
    %c0_187 = arith.constant 0 : index
    %331 = vector.load %arg9[%c736, %c0_187] : memref<768x64xf32, #tpu.memory_space<vmem>>, vector<32x64xf32>
    %332 = arith.addf %331, %54 : vector<32x64xf32>
    %cst_188 = arith.constant 0.000000e+00 : f32
    %333 = vector.broadcast %cst_188 : f32 to vector<32x64xf32>
    %334 = arith.cmpf ogt, %332, %333 : vector<32x64xf32>
    %cst_189 = arith.constant 0.000000e+00 : f32
    %335 = vector.broadcast %cst_189 : f32 to vector<32x64xf32>
    %336 = arith.minimumf %332, %335 : vector<32x64xf32>
    %337 = math.exp %336 : vector<32x64xf32>
    %cst_190 = arith.constant 1.000000e+00 : f32
    %338 = vector.broadcast %cst_190 : f32 to vector<32x64xf32>
    %339 = arith.subf %337, %338 : vector<32x64xf32>
    %340 = arith.select %334, %332, %339 : vector<32x64xi1>, vector<32x64xf32>
    %341 = arith.truncf %340 : vector<32x64xf32> to vector<32x64xbf16>
    %c0_191 = arith.constant 0 : index
    %c1472 = arith.constant 1472 : index
    %342 = vector.load %arg10[%c0_191, %c1472] : memref<32x1536xbf16, #tpu.memory_space<vmem>>, vector<32x64xbf16>
    tpu.vector_store %arg10[%c0_191, %c1472], %341 {strides = array<i32>} : memref<32x1536xbf16, #tpu.memory_space<vmem>>, vector<32x64xbf16>,
    %c0_192 = arith.constant 0 : index
    %c0_193 = arith.constant 0 : index
    %343 = vector.load %arg10[%c0_192, %c0_193] : memref<32x1536xbf16, #tpu.memory_space<vmem>>, vector<32x1536xbf16>
    %c0_194 = arith.constant 0 : index
    %c0_195 = arith.constant 0 : index
    %344 = vector.load %arg6[%c0_194, %c0_195] : memref<1536x128xbf16, #tpu.memory_space<vmem>>, vector<1536x128xbf16>
    %cst_196 = arith.constant dense<0.000000e+00> : vector<32x128xf32>
    %345 = tpu.matmul %343, %344, %cst_196 {dimension_numbers = #tpu.dot_dimension_numbers<[1], [0], [0], [1], [0, 0, 1, 1], [], []>} : vector<32x1536xbf16>, vector<1536x128xbf16>, vector<32x128xf32> -> vector<32x128xf32>
    %c0_197 = arith.constant 0 : index
    %c0_198 = arith.constant 0 : index
    %346 = vector.load %arg7[%c0_197, %c0_198] : memref<32x128xf32, #tpu.memory_space<vmem>>, vector<32x128xf32>
    tpu.vector_store %arg7[%c0_197, %c0_198], %345 {strides = array<i32>} : memref<32x128xf32, #tpu.memory_space<vmem>>, vector<32x128xf32>,
    return
  }
  func.func @transform_0(%arg0: i32) -> (i32, i32, i32) {
    %c0_i32 = arith.constant 0 : i32
    %c0_i32_0 = arith.constant 0 : i32
    %c0_i32_1 = arith.constant 0 : i32
    return %arg0, %c0_i32, %c0_i32_0 : i32, i32, i32
  }
  func.func @transform_1(%arg0: i32) -> (i32, i32) {
    %c0_i32 = arith.constant 0 : i32
    %c0_i32_0 = arith.constant 0 : i32
    %c0_i32_1 = arith.constant 0 : i32
    return %c0_i32, %c0_i32_0 : i32, i32
  }
  func.func @transform_2(%arg0: i32) -> (i32, i32) {
    %c0_i32 = arith.constant 0 : i32
    %c0_i32_0 = arith.constant 0 : i32
    %c0_i32_1 = arith.constant 0 : i32
    return %c0_i32, %c0_i32_0 : i32, i32
  }
  func.func @transform_3(%arg0: i32) -> (i32, i32, i32) {
    %c0_i32 = arith.constant 0 : i32
    %c0_i32_0 = arith.constant 0 : i32
    %c0_i32_1 = arith.constant 0 : i32
    %c0_i32_2 = arith.constant 0 : i32
    return %c0_i32, %c0_i32_0, %c0_i32_1 : i32, i32, i32
  }
  func.func @transform_4(%arg0: i32) -> (i32, i32) {
    %c0_i32 = arith.constant 0 : i32
    %c0_i32_0 = arith.constant 0 : i32
    %c0_i32_1 = arith.constant 0 : i32
    return %c0_i32, %c0_i32_0 : i32, i32
  }
  func.func @transform_5(%arg0: i32) -> (i32, i32) {
    %c0_i32 = arith.constant 0 : i32
    %c0_i32_0 = arith.constant 0 : i32
    %c0_i32_1 = arith.constant 0 : i32
    return %c0_i32, %c0_i32_0 : i32, i32
  }
  func.func @transform_6(%arg0: i32) -> (i32, i32) {
    %c0_i32 = arith.constant 0 : i32
    %c0_i32_0 = arith.constant 0 : i32
    return %arg0, %c0_i32 : i32, i32
  }
}

</mosaic_0001>

<bundles_post_ra>
// kernel: encoder_p1_forward.1
= control target key start
LH: loop header
LB: loop body
LE: loop exit
PB: predicated region body
PF: predicated region fallthrough
CT: control target
= control target key end

     0   :  { %s13204_s21 = smov 0   ;;  %s17201_s0 = inlined_call_operand.vmem [shape: bf16[2,1632,10], index: 0, kind: input, shape index: {}]   ;;  %s17202_s1 = inlined_call_operand.vmem [shape: bf16[10,64], index: 1, kind: input, shape index: {}]   ;;  %s17203_s2 = inlined_call_operand.vmem [shape: f32[1,64], index: 2, kind: input, shape index: {}]   ;;  %s17204_s3 = inlined_call_operand.vmem [shape: bf16[5,64,64], index: 3, kind: input, shape index: {}]   ;;  %s17205_s4 = inlined_call_operand.vmem [shape: f32[1,64], index: 4, kind: input, shape index: {}]   ;;  %s17206_s5 = inlined_call_operand.vmem [shape: bf16[1536,128], index: 5, kind: input, shape index: {}]   ;;  %s17207_s6 = inlined_call_operand.vmem [shape: f32[64,128], index: 6, kind: output, shape index: {}]  }
   0x1 LB: > { %s13210_s22 = sadd.s32 4294967295, %s13165_s21   ;;  %p10148_p0 = scmp.ge.s32.totalorder %s13165_s21, 1  ;;  %s13165_s21 = sphi %s13204_s21, %s16_s21  }
   0x2   : > { %p212_p1 = scmp.lt.s32.totalorder %s13165_s21, 3 }
   0x4   : > { %p213_p2 = pnand %p10148_p0, %p212_p1 }
   0x6   : > { %216 = sbr.rel (%p213_p2) target bundleno = 1632 (0x660), region = 44 }
   0xd   : > { %v12318_v0 = vld [vmem:[%s17202_s1] sm:$0x1f]   ;;  %vm1289_vm0 = vcmask 1044480   ;;  %p242_p3 = scmp.lt.s32.totalorder %s13210_s22, 1  ;;  %vm982_vm1 = vcmask 80896   ;;  %v12368_v34 = vld [vmem:[%s17204_s3 + $0x8] sm:$0xff]  }
   0xe   : > { %12306 = vmatprep.subr.msk.bf16.mxu0 %vm1289_vm0, %v12318_v0  ;;  %v1291_v1 = vsel %vm1289_vm0, %v12318_v0, 0  ;;  %v12367_v31 = vld [vmem:[%s17204_s3] sm:$0xff]   ;;  %v12369_v35 = vld [vmem:[%s17204_s3 + $0x10] sm:$0xff]   ;;  %v12370_v38 = vld [vmem:[%s17204_s3 + $0x18] sm:$0xff]   ;;  %vm3468_vm2 = vcmask 523264   ;;  %s13168_s9 = smov 64  }
   0xf   : > { %11581 = vmatpush3.bf16.msra.mxu0 %v1291_v1  ;;  %s243_s25 = scalar_select %p242_p3, %s13210_s22, 1  ;;  %11786 = vmatprep.subr.bf16.mxu1 %v12367_v31  ;;  %v13317_v45 = vld [vmem:[%s17204_s3 + $0x40] sm:$0xff]  }
  0x10   : > { %11787 = vmatpush3.bf16.msra.mxu1 %v12367_v31  ;;  %v13341_v55 = vld [vmem:[%s17203_s2] ss:$0 sm:$0xff]  ;;  %s10150_s23 = sshll.u32 %s13210_s22, 2 }
  0x11   : > { %s12307_s26 = smul.u32 816, %s243_s25  ;;  %11788 = vmatprep.subr.bf16.mxu1 %v12368_v34  ;;  %p248_p4 = scmp.lt.s32.totalorder %s10150_s23, 7 }
  0x13   : > { %s13222_s29 = scalar_lea.vmem %s17201_s0, %s12307_s26  ;;  %s17237_s23 = smov (!%p248_p4, %s10150_s23), 7 }
  0x14   : > { %v12319_v2 = vld [vmem:[%s13222_s29] sm:$0xff]   ;;  %v12320_v3 = vld [vmem:[%s13222_s29 + $0x8] sm:$0xff]   ;;  %v12321_v4 = vld [vmem:[%s13222_s29 + $0x10] sm:$0xff]   ;;  %11789 = vmatpush3.bf16.msra.mxu1 %v12368_v34  ;;  %s10151_s24 = sshll.u32 %s17237_s23, 3 }
  0x15   : > { %11582 = vmatprep.mubr.msk.bf16.mxu0 %vm982_vm1, %v12319_v2  ;;  %v12322_v5 = vld [vmem:[%s13222_s29 + $0x18] sm:$0xff]   ;;  %v12323_v6 = vld [vmem:[%s13222_s29 + $0x20] sm:$0xff]   ;;  %v12324_v7 = vld [vmem:[%s13222_s29 + $0x28] sm:$0xff]   ;;  %11790 = vmatprep.subr.bf16.mxu1 %v12369_v35 }
  0x16   : > { %11583 = vmatmul.mubr.msk.bf16.vlgmr.msra.gmra.mrb[0].mxu0 %vm982_vm1, %v12320_v3  ;;  %v12325_v8 = vld [vmem:[%s13222_s29 + $0x30] sm:$0xff]   ;;  %v12326_v9 = vld [vmem:[%s13222_s29 + $0x38] sm:$0xff]   ;;  %v12327_v10 = vld [vmem:[%s13222_s29 + $0x40] sm:$0xff]  }
  0x17   : > { %11586 = vmatprep.mubr.msk.bf16.mxu0 %vm982_vm1, %v12321_v4  ;;  %v12328_v11 = vld [vmem:[%s13222_s29 + $0x48] sm:$0xff]   ;;  %v12329_v12 = vld [vmem:[%s13222_s29 + $0x50] sm:$0xff]   ;;  %v12330_v13 = vld [vmem:[%s13222_s29 + $0x58] sm:$0xff]  }
  0x18   : > { %v12331_v14 = vld [vmem:[%s13222_s29 + $0x60] sm:$0xff]   ;;  %v12332_v15 = vld [vmem:[%s13222_s29 + $0x68] sm:$0xff]   ;;  %v12333_v16 = vld [vmem:[%s13222_s29 + $0x70] sm:$0xff]   ;;  %11791 = vmatpush3.bf16.msra.mxu1 %v12369_v35 }
  0x19   : > { %v12334_v17 = vld [vmem:[%s13222_s29 + $0x78] sm:$0xff]   ;;  %v12335_v18 = vld [vmem:[%s13222_s29 + $0x80] sm:$0xff]   ;;  %v12336_v19 = vld [vmem:[%s13222_s29 + $0x88] sm:$0xff]   ;;  %11792 = vmatprep.subr.bf16.mxu1 %v12370_v38 }
  0x1a   : > { %v12337_v20 = vld [vmem:[%s13222_s29 + $0x90] sm:$0xff]   ;;  %v12338_v21 = vld [vmem:[%s13222_s29 + $0x98] sm:$0xff]   ;;  %v12339_v22 = vld [vmem:[%s13222_s29 + $0xa0] sm:$0xff]  }
  0x1b   : > { %v12340_v23 = vld [vmem:[%s13222_s29 + $0xa8] sm:$0xff]   ;;  %v12341_v24 = vld [vmem:[%s13222_s29 + $0xb0] sm:$0xff]   ;;  %v12342_v25 = vld [vmem:[%s13222_s29 + $0xb8] sm:$0xff]  }
  0x1c   : > { %v12343_v26 = vld [vmem:[%s13222_s29 + $0xc0] sm:$0xff]   ;;  %v12344_v27 = vld [vmem:[%s13222_s29 + $0xc8] sm:$0xff]   ;;  %v12345_v28 = vld [vmem:[%s13222_s29 + $0xd0] sm:$0xff]   ;;  %11793 = vmatpush3.bf16.msra.mxu1 %v12370_v38 }
  0x1d   : > { %v12346_v29 = vld [vmem:[%s13222_s29 + $0xd8] sm:$0xff]   ;;  %v12347_v30 = vld [vmem:[%s13222_s29 + $0xe0] sm:$0xff]   ;;  %v12348_v32 = vld [vmem:[%s13222_s29 + $0xe8] sm:$0xff]   ;;  %11890 = vmatprep.subr.bf16.mxu1 %v13317_v45 }
  0x1e   : > { %11587 = vmatmul.mubr.msk.bf16.gmra.mrb[4].mxu0 %vm982_vm1, %v12322_v5  ;;  %v12349_v33 = vld [vmem:[%s13222_s29 + $0xf0] sm:$0xff]   ;;  %v12350_v36 = vld [vmem:[%s13222_s29 + $0xf8] sm:$0xff]   ;;  %v12351_v37 = vld [vmem:[%s13222_s29 + $0x100] sm:$0xff]  }
  0x1f   : > { %11590 = vmatprep.mubr.msk.bf16.mxu0 %vm982_vm1, %v12323_v6  ;;  %v12352_v39 = vld [vmem:[%s13222_s29 + $0x108] sm:$0xff]   ;;  %v12353_v40 = vld [vmem:[%s13222_s29 + $0x110] sm:$0xff]   ;;  %v12354_v41 = vld [vmem:[%s13222_s29 + $0x118] sm:$0xff]  }
  0x20   : > { %v12355_v42 = vld [vmem:[%s13222_s29 + $0x120] sm:$0xff]   ;;  %v12356_v43 = vld [vmem:[%s13222_s29 + $0x128] sm:$0xff]   ;;  %v12357_v44 = vld [vmem:[%s13222_s29 + $0x130] sm:$0xff]  }
  0x21   : > { %v12358_v46 = vld [vmem:[%s13222_s29 + $0x138] sm:$0xff]   ;;  %v12359_v47 = vld [vmem:[%s13222_s29 + $0x140] sm:$0xff]   ;;  %v12360_v48 = vld [vmem:[%s13222_s29 + $0x148] sm:$0xff]  }
  0x22   : > { %v12361_v49 = vld [vmem:[%s13222_s29 + $0x150] sm:$0xff]   ;;  %v12362_v50 = vld [vmem:[%s13222_s29 + $0x158] sm:$0xff]   ;;  %v12363_v51 = vld [vmem:[%s13222_s29 + $0x160] sm:$0xff]  }
  0x23   : > { %v12364_v52 = vld [vmem:[%s13222_s29 + $0x168] sm:$0xff]   ;;  %v12365_v53 = vld [vmem:[%s13222_s29 + $0x170] sm:$0xff]   ;;  %v12366_v54 = vld [vmem:[%s13222_s29 + $0x178] sm:$0xff]  }
  0x26   : > { %11591 = vmatmul.mubr.msk.bf16.gmra.mrb[8].mxu0 %vm982_vm1, %v12324_v7 }
  0x27   : > { %11594 = vmatprep.mubr.msk.bf16.mxu0 %vm982_vm1, %v12325_v8 }
  0x2e   : > { %11595 = vmatmul.mubr.msk.bf16.gmra.mrb[12].mxu0 %vm982_vm1, %v12326_v9 }
  0x2f   : > { %11598 = vmatprep.mubr.msk.bf16.mxu0 %vm982_vm1, %v12327_v10 }
  0x36   : > { %11599 = vmatmul.mubr.msk.bf16.gmra.mrb[16].mxu0 %vm982_vm1, %v12328_v11 }
  0x37   : > { %11602 = vmatprep.mubr.msk.bf16.mxu0 %vm982_vm1, %v12329_v12 }
  0x3e   : > { %11603 = vmatmul.mubr.msk.bf16.gmra.mrb[20].mxu0 %vm982_vm1, %v12330_v13 }
  0x3f   : > { %11606 = vmatprep.mubr.msk.bf16.mxu0 %vm982_vm1, %v12331_v14 }
  0x46   : > { %11607 = vmatmul.mubr.msk.bf16.gmra.mrb[24].mxu0 %vm982_vm1, %v12332_v15 }
  0x47   : > { %11610 = vmatprep.mubr.msk.bf16.mxu0 %vm982_vm1, %v12333_v16 }
  0x4e   : > { %11611 = vmatmul.mubr.msk.bf16.gmra.mrb[28].mxu0 %vm982_vm1, %v12334_v17 }
  0x4f   : > { %11614 = vmatprep.mubr.msk.bf16.mxu0 %vm982_vm1, %v12335_v18 }
  0x56   : > { %11615 = vmatmul.mubr.msk.bf16.gmra.mrb[32].mxu0 %vm982_vm1, %v12336_v19 }
  0x57   : > { %11618 = vmatprep.mubr.msk.bf16.mxu0 %vm982_vm1, %v12337_v20 }
  0x5e   : > { %11619 = vmatmul.mubr.msk.bf16.gmra.mrb[36].mxu0 %vm982_vm1, %v12338_v21 }
  0x5f   : > { %11622 = vmatprep.mubr.msk.bf16.mxu0 %vm982_vm1, %v12339_v22 }
  0x66   : > { %11623 = vmatmul.mubr.msk.bf16.gmra.mrb[40].mxu0 %vm982_vm1, %v12340_v23 }
  0x67   : > { %11626 = vmatprep.mubr.msk.bf16.mxu0 %vm982_vm1, %v12341_v24 }
  0x6e   : > { %11627 = vmatmul.mubr.msk.bf16.gmra.mrb[44].mxu0 %vm982_vm1, %v12342_v25 }
  0x6f   : > { %11630 = vmatprep.mubr.msk.bf16.mxu0 %vm982_vm1, %v12343_v26 }
  0x76   : > { %11631 = vmatmul.mubr.msk.bf16.gmra.mrb[48].mxu0 %vm982_vm1, %v12344_v27 }
  0x77   : > { %11634 = vmatprep.mubr.msk.bf16.mxu0 %vm982_vm1, %v12345_v28 }
  0x7e   : > { %11635 = vmatmul.mubr.msk.bf16.gmra.mrb[52].mxu0 %vm982_vm1, %v12346_v29 }
  0x7f   : > { %11638 = vmatprep.mubr.msk.bf16.mxu0 %vm982_vm1, %v12347_v30 }
  0x86   : > { %11639 = vmatmul.mubr.msk.bf16.gmra.mrb[56].mxu0 %vm982_vm1, %v12348_v32 }
  0x87   : > { %11642 = vmatprep.mubr.msk.bf16.mxu0 %vm982_vm1, %v12349_v33 }
  0x8e   : > { %11643 = vmatmul.mubr.msk.bf16.gmra.mrb[60].mxu0 %vm982_vm1, %v12350_v36 }
  0x8f   : > { %11646 = vmatprep.mubr.msk.bf16.mxu0 %vm982_vm1, %v12351_v37  ;;  %v12374_v37 = vld [vmem:[%s13222_s29 + $0x180] sm:$0xff]  }
  0x96   : > { %11647 = vmatmul.mubr.msk.bf16.gmra.mrb[64].mxu0 %vm982_vm1, %v12352_v39 }
  0x97   : > { %11650 = vmatprep.mubr.msk.bf16.mxu0 %vm982_vm1, %v12353_v40 }
  0x9e   : > { %11651 = vmatmul.mubr.msk.bf16.gmra.mrb[68].mxu0 %vm982_vm1, %v12354_v41  ;;  %v12375_v41 = vld [vmem:[%s13222_s29 + $0x188] sm:$0xff]  }
  0x9f   : > { %11654 = vmatprep.mubr.msk.bf16.mxu0 %vm982_vm1, %v12355_v42 }
  0xa6   : > { %11655 = vmatmul.mubr.msk.bf16.gmra.mrb[72].mxu0 %vm982_vm1, %v12356_v43 }
  0xa7   : > { %11658 = vmatprep.mubr.msk.bf16.mxu0 %vm982_vm1, %v12357_v44 }
  0xae   : > { %11659 = vmatmul.mubr.msk.bf16.gmra.mrb[76].mxu0 %vm982_vm1, %v12358_v46 }
  0xaf   : > { %11662 = vmatprep.mubr.msk.bf16.mxu0 %vm982_vm1, %v12359_v47 }
  0xb6   : > { %11663 = vmatmul.mubr.msk.bf16.gmra.mrb[80].mxu0 %vm982_vm1, %v12360_v48 }
  0xb7   : > { %11666 = vmatprep.mubr.msk.bf16.mxu0 %vm982_vm1, %v12361_v49 }
  0xbe   : > { %11667 = vmatmul.mubr.msk.bf16.gmra.mrb[84].mxu0 %vm982_vm1, %v12362_v50 }
  0xbf   : > { %11670 = vmatprep.mubr.msk.bf16.mxu0 %vm982_vm1, %v12363_v51 }
  0xc6   : > { %11671 = vmatmul.mubr.msk.bf16.gmra.mrb[88].mxu0 %vm982_vm1, %v12364_v52 }
  0xc7   : > { %11674 = vmatprep.mubr.msk.bf16.mxu0 %vm982_vm1, %v12365_v53 }
  0xce   : > { %11675 = vmatmul.mubr.msk.bf16.gmra.mrb[92].mxu0 %vm982_vm1, %v12366_v54 }
  0xcf   : > { %11678 = vmatprep.mubr.msk.bf16.mxu0 %vm982_vm1, %v12374_v37 }
  0xd6   : > { %11679 = vmatmul.mubr.msk.bf16.gmra.mrb[96].mxu0 %vm982_vm1, %v12375_v41 }
  0xe9   : > { %v11584_v56 = vpop.f32.mrb[0].mxu0 }
  0xea   : > { %v1336_v57 = vadd.f32 %v11584_v56, %v13341_v55  ;;  %v1327_v58 = vpop.f32.mrb[1].mxu0 }
  0xeb   : > { %v13345_v59 = vadd.f32 %v13341_v55, %v1327_v58  ;;  %v11585_v60 = vpop.f32.mrb[2].mxu0 }
  0xec   : > { %v2348_v61 = vmin.f32 %v1336_v57, 0.0  ;;  %v1339_v62 = vadd.f32 %v11585_v60, %v13341_v55  ;;  %v1330_v63 = vpop.f32.mrb[3].mxu0  ;;  %vm2144_vm3 = vcmp.gt.f32.partialorder %v1336_v57, 0.0 }
  0xed   : > { %v2346_v0 = vmin.f32 %v13345_v59, 0.0  ;;  %v13350_v1 = vadd.f32 %v13341_v55, %v1330_v63  ;;  %vm2142_vm4 = vcmp.gt.f32.partialorder %v13345_v59, 0.0  ;;  %v13167_v63 = vmov 0  }
  0xee   : > { %v2554_v2 = vmul.f32 1.442695, %v2348_v61  ;;  %v2349_v3 = vmin.f32 %v1339_v62, 0.0  ;;  %vm2145_vm5 = vcmp.gt.f32.partialorder %v1339_v62, 0.0 }
  0xef   : > { %v2550_v4 = vmul.f32 1.442695, %v2346_v0  ;;  %v2347_v5 = vmin.f32 %v13350_v1, 0.0  ;;  %vm2143_vm6 = vcmp.gt.f32.partialorder %v13350_v1, 0.0 }
  0xf0   : > { %12537 = vpow2.f32 %v2554_v2  ;;  %v2556_v6 = vmul.f32 1.442695, %v2349_v3 }
  0xf1   : > { %12539 = vpow2.f32 %v2550_v4  ;;  %v2552_v7 = vmul.f32 1.442695, %v2347_v5  ;;  %v11588_v8 = vpop.f32.mrb[4].mxu0 }
  0xf2   : > { %12541 = vpow2.f32 %v2556_v6  ;;  %v13354_v9 = vadd.f32 %v11588_v8, %v13341_v55  ;;  %v1343_v10 = vpop.f32.mrb[5].mxu0 }
  0xf3   : > { %12543 = vpow2.f32 %v2552_v7  ;;  %v13357_v11 = vadd.f32 %v13341_v55, %v1343_v10  ;;  %v11589_v12 = vpop.f32.mrb[6].mxu0 }
  0xf4   : > { %v2352_v13 = vmin.f32 %v13354_v9, 0.0  ;;  %v13361_v14 = vadd.f32 %v11589_v12, %v13341_v55  ;;  %v1346_v15 = vpop.f32.mrb[7].mxu0  ;;  %vm2148_vm7 = vcmp.gt.f32.partialorder %v13354_v9, 0.0 }
  0xf5   : > { %v2350_v16 = vmin.f32 %v13357_v11, 0.0  ;;  %v13365_v17 = vadd.f32 %v13341_v55, %v1346_v15  ;;  %vm2146_vm8 = vcmp.gt.f32.partialorder %v13357_v11, 0.0 }
  0xf6   : > { %v2562_v18 = vmul.f32 1.442695, %v2352_v13  ;;  %v2353_v19 = vmin.f32 %v13361_v14, 0.0  ;;  %vm2149_vm9 = vcmp.gt.f32.partialorder %v13361_v14, 0.0 }
  0xf7   : > { %v2558_v20 = vmul.f32 1.442695, %v2350_v16  ;;  %v2351_v21 = vmin.f32 %v13365_v17, 0.0  ;;  %vm2147_vm10 = vcmp.gt.f32.partialorder %v13365_v17, 0.0 }
  0xf8   : > { %12545 = vpow2.f32 %v2562_v18  ;;  %v2564_v22 = vmul.f32 1.442695, %v2353_v19 }
  0xf9   : > { %12547 = vpow2.f32 %v2558_v20  ;;  %v2560_v23 = vmul.f32 1.442695, %v2351_v21  ;;  %v11592_v24 = vpop.f32.mrb[8].mxu0 }
  0xfa   : > { %v12538_v25 = vpop.eup %12537  ;;  %12549 = vpow2.f32 %v2564_v22  ;;  %v13370_v26 = vadd.f32 %v11592_v24, %v13341_v55  ;;  %v1359_v27 = vpop.f32.mrb[9].mxu0 }
  0xfb   : > { %v12540_v28 = vpop.eup %12539  ;;  %v10360_v29 = vadd.f32 -1.0, %v12538_v25  ;;  %12551 = vpow2.f32 %v2560_v23  ;;  %v13373_v30 = vadd.f32 %v13341_v55, %v1359_v27  ;;  %v11593_v31 = vpop.f32.mrb[10].mxu0 }
  0xfc   : > { %v12542_v32 = vpop.eup %12541  ;;  %v10358_v33 = vadd.f32 -1.0, %v12540_v28  ;;  %v2356_v34 = vmin.f32 %v13370_v26, 0.0  ;;  %v13377_v35 = vadd.f32 %v11593_v31, %v13341_v55  ;;  %v1362_v36 = vpop.f32.mrb[11].mxu0  ;;  %vm2152_vm11 = vcmp.gt.f32.partialorder %v13370_v26, 0.0 }
  0xfd   : > { %v12544_v38 = vpop.eup %12543  ;;  %v10361_v39 = vadd.f32 -1.0, %v12542_v32  ;;  %v2354_v40 = vmin.f32 %v13373_v30, 0.0  ;;  %v3164_v42 = vsel %vm2144_vm3, %v1336_v57, %v10360_v29  ;;  %v13387_v49 = vadd.f32 %v13341_v55, %v1362_v36 }
  0xfe   : > { %v10359_v43 = vadd.f32 -1.0, %v12544_v38  ;;  %v2570_v44 = vmul.f32 1.442695, %v2356_v34  ;;  %v2357_v48 = vmin.f32 %v13377_v35, 0.0  ;;  %v3162_v50 = vsel %vm2142_vm4, %v13345_v59, %v10358_v33  ;;  %v12372_v34 = vld [vmem:[%s17204_s3 + $0x48] sm:$0xff]  }
  0xff   : > { %v3165_v46 = vsel %vm2145_vm5, %v1339_v62, %v10361_v39  ;;  %v2566_v47 = vmul.f32 1.442695, %v2354_v40  ;;  %v2355_v58 = vmin.f32 %v13387_v49, 0.0  ;;  %vm2153_vm12 = vcmp.gt.f32.partialorder %v13377_v35, 0.0 }
 0x100   : > { %v3367_v51 = vpack.c.bf16 %v3165_v46, %v3164_v42  ;;  %v3163_v52 = vsel %vm2143_vm6, %v13350_v1, %v10359_v43  ;;  %12553 = vpow2.f32 %v2570_v44  ;;  %v2572_v54 = vmul.f32 1.442695, %v2357_v48 }
 0x101   : > { %v3366_v53 = vpack.c.bf16 %v3163_v52, %v3162_v50  ;;  %v11596_v56 = vpop.f32.mrb[12].mxu0  ;;  %12555 = vpow2.f32 %v2566_v47  ;;  %v2568_v4 = vmul.f32 1.442695, %v2355_v58  ;;  %vm2150_vm13 = vcmp.gt.f32.partialorder %v13373_v30, 0.0 }
 0x102   : > { %v12546_v57 = vpop.eup %12545  ;;  %3470 = vst.msk [vmem:[#allocation2 + $0x8] sm:$0xff] %vm3468_vm2, %v3367_v51  ;;  %v13395_v60 = vadd.f32 %v11596_v56, %v13341_v55  ;;  %v1375_v61 = vpop.f32.mrb[13].mxu0  ;;  %12557 = vpow2.f32 %v2572_v54  ;;  %v12373_v51 = vld [vmem:[%s17204_s3 + $0x50] sm:$0xff]   ;;  %vm2151_vm14 = vcmp.gt.f32.partialorder %v13387_v49, 0.0 }
 0x103   : > { %v12548_v62 = vpop.eup %12547  ;;  %3572 = vst.msk [vmem:[#allocation2 + $0x8] sm:$0xff] %vm3468_vm2, %v13167_v63  ;;  %3469 = vst.msk [vmem:[#allocation2] sm:$0xff] %vm3468_vm2, %v3366_v53  ;;  %v10364_v59 = vadd.f32 -1.0, %v12546_v57  ;;  %v13401_v0 = vadd.f32 %v13341_v55, %v1375_v61  ;;  %v11597_v1 = vpop.f32.mrb[14].mxu0  ;;  %12559 = vpow2.f32 %v2568_v4 }
 0x104   : > { %v12550_v2 = vpop.eup %12549  ;;  %3571 = vst.msk [vmem:[#allocation2] sm:$0xff] %vm3468_vm2, %v13167_v63  ;;  %v10362_v3 = vadd.f32 -1.0, %v12548_v62  ;;  %v2360_v5 = vmin.f32 %v13395_v60, 0.0  ;;  %v1378_v6 = vpop.f32.mrb[15].mxu0  ;;  %v13414_v19 = vadd.f32 %v11597_v1, %v13341_v55  ;;  %vm2156_vm15 = vcmp.gt.f32.partialorder %v13395_v60, 0.0 }
 0x105   : > { %v12552_v7 = vpop.eup %12551  ;;  %v10365_v8 = vadd.f32 -1.0, %v12550_v2  ;;  %v2358_v10 = vmin.f32 %v13401_v0, 0.0  ;;  %v3168_v12 = vsel %vm2148_vm7, %v13354_v9, %v10364_v59  ;;  %v13417_v20 = vadd.f32 %v13341_v55, %v1378_v6 }
 0x106   : > { %v10363_v13 = vadd.f32 -1.0, %v12552_v7  ;;  %v2578_v15 = vmul.f32 1.442695, %v2360_v5  ;;  %v3166_v21 = vsel %vm2146_vm8, %v13357_v11, %v10362_v3  ;;  %v2361_v24 = vmin.f32 %v13414_v19, 0.0 }
 0x107   : > { %v3169_v16 = vsel %vm2149_vm9, %v13361_v14, %v10365_v8  ;;  %v2574_v18 = vmul.f32 1.442695, %v2358_v10  ;;  %v2359_v27 = vmin.f32 %v13417_v20, 0.0  ;;  %vm2154_vm0 = vcmp.gt.f32.partialorder %v13401_v0, 0.0 }
 0x108   : > { %v3369_v22 = vpack.c.bf16 %v3169_v16, %v3168_v12  ;;  %v3167_v23 = vsel %vm2147_vm10, %v13365_v17, %v10363_v13  ;;  %12561 = vpow2.f32 %v2578_v15  ;;  %v2580_v11 = vmul.f32 1.442695, %v2361_v24 }
 0x109   : > { %v3368_v9 = vpack.c.bf16 %v3167_v23, %v3166_v21  ;;  %v11600_v25 = vpop.f32.mrb[16].mxu0  ;;  %12563 = vpow2.f32 %v2574_v18  ;;  %v2576_v38 = vmul.f32 1.442695, %v2359_v27  ;;  %vm2157_vm3 = vcmp.gt.f32.partialorder %v13414_v19, 0.0 }
 0x10a   : > { %v12554_v14 = vpop.eup %12553  ;;  %3472 = vst.msk [vmem:[#allocation2 + $0x18] sm:$0xff] %vm3468_vm2, %v3369_v22  ;;  %v13427_v28 = vadd.f32 %v11600_v25, %v13341_v55  ;;  %v1391_v29 = vpop.f32.mrb[17].mxu0  ;;  %v3574_v31 = vld [vmem:[#allocation2 + $0x8] sm:$0xff]  ;;  %12565 = vpow2.f32 %v2580_v11  ;;  %vm2155_vm4 = vcmp.gt.f32.partialorder %v13417_v20, 0.0 }
 0x10b   : > { %3471 = vst.msk [vmem:[#allocation2 + $0x10] sm:$0xff] %vm3468_vm2, %v3368_v9  ;;  %v13431_v17 = vadd.f32 %v13341_v55, %v1391_v29  ;;  %v11601_v32 = vpop.f32.mrb[18].mxu0  ;;  %v3573_v33 = vld [vmem:[#allocation2] sm:$0xff]  ;;  %v12556_v36 = vpop.eup %12555  ;;  %v10368_v37 = vadd.f32 -1.0, %v12554_v14  ;;  %12567 = vpow2.f32 %v2576_v38 }
 0x10c   : > { %v2364_v39 = vmin.f32 %v13427_v28, 0.0  ;;  %v1394_v40 = vpop.f32.mrb[19].mxu0  ;;  %11794 = vmatprep.mubr.msk.bf16.mxu1 %vm3468_vm2, %v3573_v33  ;;  %v12558_v41 = vpop.eup %12557  ;;  %v10366_v46 = vadd.f32 -1.0, %v12556_v36  ;;  %v13444_v48 = vadd.f32 %v11601_v32, %v13341_v55  ;;  %vm2160_vm5 = vcmp.gt.f32.partialorder %v13427_v28, 0.0 }
 0x10d   : > { %v2362_v42 = vmin.f32 %v13431_v17, 0.0  ;;  %11795 = vmatmul.mubr.msk.bf16.vlgmr.msra.gmra.mrb[0].mxu1 %vm3468_vm2, %v3574_v31  ;;  %v10369_v43 = vadd.f32 -1.0, %v12558_v41  ;;  %v13447_v50 = vadd.f32 %v13341_v55, %v1394_v40  ;;  %v12560_v52 = vpop.eup %12559  ;;  %v3172_v53 = vsel %vm2152_vm11, %v13370_v26, %v10368_v37  ;;  %v12377_v40 = vld [vmem:[%s13222_s29 + $0x198] sm:$0xff]  }
 0x10e   : > { %v2586_v44 = vmul.f32 1.442695, %v2364_v39  ;;  %11891 = vmatpush3.bf16.msra.mxu1 %v13317_v45  ;;  %v10367_v56 = vadd.f32 -1.0, %v12560_v52  ;;  %v2365_v61 = vmin.f32 %v13444_v48, 0.0  ;;  %vm2158_vm6 = vcmp.gt.f32.partialorder %v13431_v17, 0.0 }
 0x10f   : > { %v2582_v47 = vmul.f32 1.442695, %v2362_v42  ;;  %11892 = vmatprep.subr.bf16.mxu1 %v12372_v34  ;;  %v3173_v45 = vsel %vm2153_vm12, %v13377_v35, %v10369_v43  ;;  %v2363_v62 = vmin.f32 %v13447_v50, 0.0  ;;  %v3170_v35 = vsel %vm2150_vm13, %v13373_v30, %v10366_v46 }
 0x110   : > { %v3371_v54 = vpack.c.bf16 %v3173_v45, %v3172_v53  ;;  %12569 = vpow2.f32 %v2586_v44  ;;  %v3171_v1 = vsel %vm2151_vm14, %v13387_v49, %v10367_v56  ;;  %v2588_v6 = vmul.f32 1.442695, %v2365_v61 }
 0x111   : > { %v11604_v57 = vpop.f32.mrb[20].mxu0  ;;  %12571 = vpow2.f32 %v2582_v47  ;;  %v3370_v5 = vpack.c.bf16 %v3171_v1, %v3170_v35  ;;  %v2584_v7 = vmul.f32 1.442695, %v2363_v62  ;;  %v3576_v10 = vld [vmem:[#allocation2 + $0x18] sm:$0xff]  ;;  %vm2161_vm7 = vcmp.gt.f32.partialorder %v13444_v48, 0.0 }
 0x112   : > { %v12562_v58 = vpop.eup %12561  ;;  %v13461_v63 = vadd.f32 %v11604_v57, %v13341_v55  ;;  %v1407_v59 = vpop.f32.mrb[21].mxu0  ;;  %v3575_v26 = vld [vmem:[#allocation2 + $0x10] sm:$0xff]  ;;  %11893 = vmatpush3.bf16.msra.mxu1 %v12372_v34  ;;  %3474 = vst.msk [vmem:[#allocation2 + $0x28] sm:$0xff] %vm3468_vm2, %v3371_v54  ;;  %12573 = vpow2.f32 %v2588_v6  ;;  %vm2159_vm8 = vcmp.gt.f32.partialorder %v13447_v50, 0.0 }
 0x113   : > { %v13467_v2 = vadd.f32 %v13341_v55, %v1407_v59  ;;  %v11605_v3 = vpop.f32.mrb[22].mxu0  ;;  %11798 = vmatprep.mubr.msk.bf16.mxu1 %vm3468_vm2, %v3575_v26  ;;  %11894 = vmatprep.subr.bf16.mxu1 %v12373_v51  ;;  %v12564_v4 = vpop.eup %12563  ;;  %v10372_v30 = vadd.f32 -1.0, %v12562_v58  ;;  %3473 = vst.msk [vmem:[#allocation2 + $0x20] sm:$0xff] %vm3468_vm2, %v3370_v5  ;;  %12575 = vpow2.f32 %v2584_v7  ;;  %v12376_v34 = vld [vmem:[%s13222_s29 + $0x190] sm:$0xff]  }
 0x114   : > { %v1410_v8 = vpop.f32.mrb[23].mxu0  ;;  %v2368_v49 = vmin.f32 %v13461_v63, 0.0  ;;  %v13478_v13 = vadd.f32 %v11605_v3, %v13341_v55  ;;  %v12566_v15 = vpop.eup %12565  ;;  %v10370_v16 = vadd.f32 -1.0, %v12564_v4  ;;  %11682 = vmatprep.mubr.msk.bf16.mxu0 %vm982_vm1, %v12376_v34  ;;  %vm2164_vm9 = vcmp.gt.f32.partialorder %v13461_v63, 0.0 }
 0x115   : > { %11799 = vmatmul.mubr.msk.bf16.gmra.mrb[4].mxu1 %vm3468_vm2, %v3576_v10  ;;  %v2366_v12 = vmin.f32 %v13467_v2, 0.0  ;;  %v13481_v21 = vadd.f32 %v13341_v55, %v1410_v8  ;;  %v12568_v22 = vpop.eup %12567  ;;  %v10373_v23 = vadd.f32 -1.0, %v12566_v15  ;;  %v3176_v25 = vsel %vm2156_vm15, %v13395_v60, %v10372_v30  ;;  %11683 = vmatmul.mubr.msk.bf16.gmra.mrb[100].mxu0 %vm982_vm1, %v12377_v40 }
 0x116   : > { %11895 = vmatpush3.bf16.msra.mxu1 %v12373_v51  ;;  %v2594_v18 = vmul.f32 1.442695, %v2368_v49  ;;  %v2369_v24 = vmin.f32 %v13478_v13, 0.0  ;;  %v10371_v14 = vadd.f32 -1.0, %v12568_v22  ;;  %v3174_v60 = vsel %vm2154_vm0, %v13401_v0, %v10370_v16  ;;  %v12379_v49 = vld [vmem:[%s13222_s29 + $0x1a0] sm:$0xff]  }
 0x117   : > { %v2590_v9 = vmul.f32 1.442695, %v2366_v12  ;;  %v2367_v27 = vmin.f32 %v13481_v21, 0.0  ;;  %v3177_v31 = vsel %vm2157_vm3, %v13414_v19, %v10373_v23  ;;  %v12380_v12 = vld [vmem:[%s13222_s29 + $0x1a8] sm:$0xff]   ;;  %11686 = vmatprep.mubr.msk.bf16.mxu0 %vm982_vm1, %v12379_v49  ;;  %vm2162_vm10 = vcmp.gt.f32.partialorder %v13467_v2, 0.0 }
 0x118   : > { %12577 = vpow2.f32 %v2594_v18  ;;  %v2596_v11 = vmul.f32 1.442695, %v2369_v24  ;;  %v3373_v36 = vpack.c.bf16 %v3177_v31, %v3176_v25  ;;  %v3175_v37 = vsel %vm2155_vm4, %v13417_v20, %v10371_v14 }
 0x119   : > { %v11608_v29 = vpop.f32.mrb[24].mxu0  ;;  %12579 = vpow2.f32 %v2590_v9  ;;  %v2592_v38 = vmul.f32 1.442695, %v2367_v27  ;;  %v3372_v41 = vpack.c.bf16 %v3175_v37, %v3174_v60  ;;  %v3578_v51 = vld [vmem:[#allocation2 + $0x28] sm:$0xff]  ;;  %vm2165_vm11 = vcmp.gt.f32.partialorder %v13478_v13, 0.0 }
 0x11a   : > { %v13493_v32 = vadd.f32 %v11608_v29, %v13341_v55  ;;  %v1423_v33 = vpop.f32.mrb[25].mxu0  ;;  %v12570_v19 = vpop.eup %12569  ;;  %12581 = vpow2.f32 %v2596_v11  ;;  %3476 = vst.msk [vmem:[#allocation2 + $0x38] sm:$0xff] %vm3468_vm2, %v3373_v36  ;;  %v3577_v46 = vld [vmem:[#allocation2 + $0x20] sm:$0xff]  ;;  %vm2163_vm12 = vcmp.gt.f32.partialorder %v13481_v21, 0.0 }
 0x11b   : > { %v11609_v39 = vpop.f32.mrb[26].mxu0  ;;  %v12572_v43 = vpop.eup %12571  ;;  %12583 = vpow2.f32 %v2592_v38  ;;  %v13507_v44 = vadd.f32 %v13341_v55, %v1423_v33  ;;  %3475 = vst.msk [vmem:[#allocation2 + $0x30] sm:$0xff] %vm3468_vm2, %v3372_v41  ;;  %11802 = vmatprep.mubr.msk.bf16.mxu1 %vm3468_vm2, %v3577_v46  ;;  %v10376_v52 = vadd.f32 -1.0, %v12570_v19 }
 0x11c   : > { %v1426_v42 = vpop.f32.mrb[27].mxu0  ;;  %v2372_v0 = vmin.f32 %v13493_v32, 0.0  ;;  %v13513_v20 = vadd.f32 %v11609_v39, %v13341_v55  ;;  %v12574_v54 = vpop.eup %12573  ;;  %v10374_v56 = vadd.f32 -1.0, %v12572_v43  ;;  %vm2168_vm13 = vcmp.gt.f32.partialorder %v13493_v32, 0.0 }
 0x11d   : > { %v13517_v47 = vadd.f32 %v13341_v55, %v1426_v42  ;;  %v2370_v45 = vmin.f32 %v13507_v44, 0.0  ;;  %11803 = vmatmul.mubr.msk.bf16.gmra.mrb[8].mxu1 %vm3468_vm2, %v3578_v51  ;;  %v12576_v61 = vpop.eup %12575  ;;  %v10377_v62 = vadd.f32 -1.0, %v12574_v54  ;;  %v3180_v7 = vsel %vm2160_vm5, %v13427_v28, %v10376_v52  ;;  %11687 = vmatmul.mubr.msk.bf16.gmra.mrb[104].mxu0 %vm982_vm1, %v12380_v12 }
 0x11e   : > { %v2602_v53 = vmul.f32 1.442695, %v2372_v0  ;;  %v2373_v57 = vmin.f32 %v13513_v20, 0.0  ;;  %v10375_v35 = vadd.f32 -1.0, %v12576_v61  ;;  %v3178_v16 = vsel %vm2158_vm6, %v13431_v17, %v10374_v56  ;;  %v12381_v0 = vld [vmem:[%s13222_s29 + $0x1b0] sm:$0xff]  }
 0x11f   : > { %v2371_v58 = vmin.f32 %v13517_v47, 0.0  ;;  %v2598_v59 = vmul.f32 1.442695, %v2370_v45  ;;  %v3181_v8 = vsel %vm2161_vm7, %v13444_v48, %v10377_v62  ;;  %11690 = vmatprep.mubr.msk.bf16.mxu0 %vm982_vm1, %v12381_v0  ;;  %vm2166_vm14 = vcmp.gt.f32.partialorder %v13507_v44, 0.0 }
 0x120   : > { %12585 = vpow2.f32 %v2602_v53  ;;  %v2604_v1 = vmul.f32 1.442695, %v2373_v57  ;;  %v3375_v18 = vpack.c.bf16 %v3181_v8, %v3180_v7  ;;  %v3179_v28 = vsel %vm2159_vm8, %v13447_v50, %v10375_v35 }
 0x121   : > { %v11612_v26 = vpop.f32.mrb[28].mxu0  ;;  %v2600_v3 = vmul.f32 1.442695, %v2371_v58  ;;  %12587 = vpow2.f32 %v2598_v59  ;;  %v3374_v48 = vpack.c.bf16 %v3179_v28, %v3178_v16  ;;  %v3580_v14 = vld [vmem:[#allocation2 + $0x38] sm:$0xff]  ;;  %vm2169_vm15 = vcmp.gt.f32.partialorder %v13513_v20, 0.0 }
 0x122   : > { %v13527_v4 = vadd.f32 %v11612_v26, %v13341_v55  ;;  %v1439_v5 = vpop.f32.mrb[29].mxu0  ;;  %v12578_v6 = vpop.eup %12577  ;;  %12589 = vpow2.f32 %v2604_v1  ;;  %v3579_v24 = vld [vmem:[#allocation2 + $0x30] sm:$0xff]  ;;  %3478 = vst.msk [vmem:[#allocation2 + $0x48] sm:$0xff] %vm3468_vm2, %v3375_v18  ;;  %vm2167_vm0 = vcmp.gt.f32.partialorder %v13517_v47, 0.0 }
 0x123   : > { %v13536_v10 = vadd.f32 %v13341_v55, %v1439_v5  ;;  %v11613_v30 = vpop.f32.mrb[30].mxu0  ;;  %v12580_v15 = vpop.eup %12579  ;;  %v10380_v23 = vadd.f32 -1.0, %v12578_v6  ;;  %12591 = vpow2.f32 %v2600_v3  ;;  %11806 = vmatprep.mubr.msk.bf16.mxu1 %vm3468_vm2, %v3579_v24  ;;  %3477 = vst.msk [vmem:[#allocation2 + $0x40] sm:$0xff] %vm3468_vm2, %v3374_v48 }
 0x124   : > { %v1442_v22 = vpop.f32.mrb[31].mxu0  ;;  %v10378_v9 = vadd.f32 -1.0, %v12580_v15  ;;  %v12582_v25 = vpop.eup %12581  ;;  %v2376_v17 = vmin.f32 %v13527_v4, 0.0  ;;  %v13557_v31 = vadd.f32 %v11613_v30, %v13341_v55  ;;  %vm2172_vm3 = vcmp.gt.f32.partialorder %v13527_v4, 0.0 }
 0x125   : > { %v2374_v50 = vmin.f32 %v13536_v10, 0.0  ;;  %v12584_v27 = vpop.eup %12583  ;;  %v10381_v29 = vadd.f32 -1.0, %v12582_v25  ;;  %v13560_v11 = vadd.f32 %v13341_v55, %v1442_v22  ;;  %11807 = vmatmul.mubr.msk.bf16.gmra.mrb[12].mxu1 %vm3468_vm2, %v3580_v14  ;;  %v3184_v36 = vsel %vm2164_vm9, %v13461_v63, %v10380_v23  ;;  %v12384_v23 = vld [vmem:[%s13222_s29 + $0x1c0] sm:$0xff]  }
 0x126   : > { %v10379_v33 = vadd.f32 -1.0, %v12584_v27  ;;  %v2610_v34 = vmul.f32 1.442695, %v2376_v17  ;;  %v3182_v37 = vsel %vm2162_vm10, %v13467_v2, %v10378_v9  ;;  %v2377_v39 = vmin.f32 %v13557_v31, 0.0  ;;  %v12385_v17 = vld [vmem:[%s13222_s29 + $0x1c8] sm:$0xff]  }
 0x127   : > { %v2606_v60 = vmul.f32 1.442695, %v2374_v50  ;;  %v3185_v38 = vsel %vm2165_vm11, %v13478_v13, %v10381_v29  ;;  %v2375_v42 = vmin.f32 %v13560_v11, 0.0  ;;  %v12382_v13 = vld [vmem:[%s13222_s29 + $0x1b8] sm:$0xff]   ;;  %vm2170_vm4 = vcmp.gt.f32.partialorder %v13536_v10, 0.0 }
 0x128   : > { %v3377_v19 = vpack.c.bf16 %v3185_v38, %v3184_v36  ;;  %v3183_v41 = vsel %vm2163_vm12, %v13481_v21, %v10379_v33  ;;  %12593 = vpow2.f32 %v2610_v34  ;;  %v2612_v51 = vmul.f32 1.442695, %v2377_v39  ;;  %11691 = vmatmul.mubr.msk.bf16.gmra.mrb[108].mxu0 %vm982_vm1, %v12382_v13  ;;  %v12378_v36 = vld [vmem:[%s17204_s3 + $0x58] sm:$0xff]  }
 0x129   : > { %v11616_v40 = vpop.f32.mrb[32].mxu0  ;;  %v3376_v63 = vpack.c.bf16 %v3183_v41, %v3182_v37  ;;  %12595 = vpow2.f32 %v2606_v60  ;;  %v2608_v45 = vmul.f32 1.442695, %v2375_v42  ;;  %v3582_v6 = vld [vmem:[#allocation2 + $0x48] sm:$0xff]  ;;  %11694 = vmatprep.mubr.msk.bf16.mxu0 %vm982_vm1, %v12384_v23  ;;  %vm2173_vm5 = vcmp.gt.f32.partialorder %v13557_v31, 0.0  ;;  %11896 = vmatprep.subr.bf16.mxu1 %v12378_v36 }
 0x12a   : > { %v1455_v43 = vpop.f32.mrb[33].mxu0  ;;  %v12586_v46 = vpop.eup %12585  ;;  %v13576_v2 = vadd.f32 %v11616_v40, %v13341_v55  ;;  %3480 = vst.msk [vmem:[#allocation2 + $0x58] sm:$0xff] %vm3468_vm2, %v3377_v19  ;;  %12597 = vpow2.f32 %v2612_v51  ;;  %v3581_v26 = vld [vmem:[#allocation2 + $0x40] sm:$0xff]  ;;  %vm2171_vm6 = vcmp.gt.f32.partialorder %v13560_v11, 0.0  ;;  %11897 = vmatpush3.bf16.msra.mxu1 %v12378_v36 }
 0x12b   : > { %v11617_v52 = vpop.f32.mrb[34].mxu0  ;;  %v10384_v53 = vadd.f32 -1.0, %v12586_v46  ;;  %v13581_v21 = vadd.f32 %v13341_v55, %v1455_v43  ;;  %v12588_v57 = vpop.eup %12587  ;;  %3479 = vst.msk [vmem:[#allocation2 + $0x50] sm:$0xff] %vm3468_vm2, %v3376_v63  ;;  %12599 = vpow2.f32 %v2608_v45  ;;  %11810 = vmatprep.mubr.msk.bf16.mxu1 %vm3468_vm2, %v3581_v26 }
 0x12c   : > { %v13584_v54 = vadd.f32 %v11617_v52, %v13341_v55  ;;  %v1458_v56 = vpop.f32.mrb[35].mxu0  ;;  %v2380_v58 = vmin.f32 %v13576_v2, 0.0  ;;  %v12590_v62 = vpop.eup %12589  ;;  %v10382_v59 = vadd.f32 -1.0, %v12588_v57  ;;  %v12386_v57 = vld [vmem:[%s13222_s29 + $0x1d0] sm:$0xff]   ;;  %vm2176_vm7 = vcmp.gt.f32.partialorder %v13576_v2, 0.0 }
 0x12d   : > { %v13591_v61 = vadd.f32 %v13341_v55, %v1458_v56  ;;  %v12592_v35 = vpop.eup %12591  ;;  %v10385_v1 = vadd.f32 -1.0, %v12590_v62  ;;  %v2378_v5 = vmin.f32 %v13581_v21, 0.0  ;;  %v3188_v7 = vsel %vm2168_vm13, %v13493_v32, %v10384_v53  ;;  %11811 = vmatmul.mubr.msk.bf16.gmra.mrb[16].mxu1 %vm3468_vm2, %v3582_v6 }
 0x12e   : > { %v2618_v3 = vmul.f32 1.442695, %v2380_v58  ;;  %v3186_v8 = vsel %vm2166_vm14, %v13507_v44, %v10382_v59  ;;  %v10383_v30 = vadd.f32 -1.0, %v12592_v35  ;;  %v2381_v49 = vmin.f32 %v13584_v54, 0.0 }
 0x12f   : > { %v3189_v12 = vsel %vm2169_vm15, %v13513_v20, %v10385_v1  ;;  %v2614_v15 = vmul.f32 1.442695, %v2378_v5  ;;  %v2379_v16 = vmin.f32 %v13591_v61, 0.0  ;;  %v12387_v1 = vld [vmem:[%s13222_s29 + $0x1d8] sm:$0xff]   ;;  %vm2174_vm8 = vcmp.gt.f32.partialorder %v13581_v21, 0.0 }
 0x130   : > { %12601 = vpow2.f32 %v2618_v3  ;;  %v3379_v28 = vpack.c.bf16 %v3189_v12, %v3188_v7  ;;  %v3187_v32 = vsel %vm2167_vm0, %v13517_v47, %v10383_v30  ;;  %v2620_v44 = vmul.f32 1.442695, %v2381_v49  ;;  %11695 = vmatmul.mubr.msk.bf16.gmra.mrb[112].mxu0 %vm982_vm1, %v12385_v17  ;;  %v12383_v49 = vld [vmem:[%s17204_s3 + $0x20] sm:$0xff]  }
 0x131   : > { %v11620_v18 = vpop.f32.mrb[36].mxu0  ;;  %v3378_v9 = vpack.c.bf16 %v3187_v32, %v3186_v8  ;;  %12603 = vpow2.f32 %v2614_v15  ;;  %v2616_v20 = vmul.f32 1.442695, %v2379_v16  ;;  %v3584_v42 = vld [vmem:[#allocation2 + $0x58] sm:$0xff]  ;;  %11698 = vmatprep.mubr.msk.bf16.mxu0 %vm982_vm1, %v12386_v57  ;;  %vm2177_vm9 = vcmp.gt.f32.partialorder %v13584_v54, 0.0  ;;  %12098 = vmatprep.subr.bf16.mxu0 %v12383_v49 }
 0x132   : > { %v13613_v22 = vadd.f32 %v11620_v18, %v13341_v55  ;;  %v1471_v48 = vpop.f32.mrb[37].mxu0  ;;  %v12594_v50 = vpop.eup %12593  ;;  %3482 = vst.msk [vmem:[#allocation2 + $0x68] sm:$0xff] %vm3468_vm2, %v3379_v28  ;;  %12605 = vpow2.f32 %v2620_v44  ;;  %v3583_v27 = vld [vmem:[#allocation2 + $0x50] sm:$0xff]  ;;  %vm2175_vm10 = vcmp.gt.f32.partialorder %v13591_v61, 0.0  ;;  %12099 = vmatpush3.bf16.msra.mxu0 %v12383_v49  ;;  %v12392_v49 = vld [vmem:[%s17204_s3 + $0x80] sm:$0xff]  }
 0x133   : > { %v13617_v24 = vadd.f32 %v13341_v55, %v1471_v48  ;;  %v11621_v25 = vpop.f32.mrb[38].mxu0  ;;  %v12596_v33 = vpop.eup %12595  ;;  %3481 = vst.msk [vmem:[#allocation2 + $0x60] sm:$0xff] %vm3468_vm2, %v3378_v9  ;;  %v10388_v34 = vadd.f32 -1.0, %v12594_v50  ;;  %12607 = vpow2.f32 %v2616_v20  ;;  %11814 = vmatprep.mubr.msk.bf16.mxu1 %vm3468_vm2, %v3583_v27  ;;  %11994 = vmatprep.subr.bf16.mxu1 %v12392_v49 }
 0x134   : > { %v2384_v47 = vmin.f32 %v13613_v22, 0.0  ;;  %v13623_v14 = vadd.f32 %v11621_v25, %v13341_v55  ;;  %v1474_v29 = vpop.f32.mrb[39].mxu0  ;;  %v10386_v37 = vadd.f32 -1.0, %v12596_v33  ;;  %v12598_v40 = vpop.eup %12597  ;;  %v12388_v25 = vld [vmem:[%s13222_s29 + $0x1e0] sm:$0xff]   ;;  %vm2180_vm11 = vcmp.gt.f32.partialorder %v13613_v22, 0.0 }
 0x135   : > { %v2382_v60 = vmin.f32 %v13617_v24, 0.0  ;;  %v13638_v41 = vadd.f32 %v13341_v55, %v1474_v29  ;;  %v12600_v43 = vpop.eup %12599  ;;  %v10389_v0 = vadd.f32 -1.0, %v12598_v40  ;;  %11815 = vmatmul.mubr.msk.bf16.gmra.mrb[20].mxu1 %vm3468_vm2, %v3584_v42  ;;  %v3192_v63 = vsel %vm2172_vm3, %v13527_v4, %v10388_v34 }
 0x136   : > { %v2626_v38 = vmul.f32 1.442695, %v2384_v47  ;;  %v2385_v39 = vmin.f32 %v13623_v14, 0.0  ;;  %v10387_v51 = vadd.f32 -1.0, %v12600_v43  ;;  %v3190_v53 = vsel %vm2170_vm4, %v13536_v10, %v10386_v37 }
 0x137   : > { %v2622_v19 = vmul.f32 1.442695, %v2382_v60  ;;  %v2383_v52 = vmin.f32 %v13638_v41, 0.0  ;;  %v3193_v45 = vsel %vm2173_vm5, %v13557_v31, %v10389_v0  ;;  %vm2178_vm12 = vcmp.gt.f32.partialorder %v13617_v24, 0.0 }
 0x138   : > { %12609 = vpow2.f32 %v2626_v38  ;;  %v2628_v46 = vmul.f32 1.442695, %v2385_v39  ;;  %v3381_v62 = vpack.c.bf16 %v3193_v45, %v3192_v63  ;;  %v3191_v59 = vsel %vm2171_vm6, %v13560_v11, %v10387_v51  ;;  %11699 = vmatmul.mubr.msk.bf16.gmra.mrb[116].mxu0 %vm982_vm1, %v12387_v1 }
 0x139   : > { %12611 = vpow2.f32 %v2622_v19  ;;  %v11624_v13 = vpop.f32.mrb[40].mxu0  ;;  %v2624_v26 = vmul.f32 1.442695, %v2383_v52  ;;  %v3380_v3 = vpack.c.bf16 %v3191_v59, %v3190_v53  ;;  %v3586_v23 = vld [vmem:[#allocation2 + $0x68] sm:$0xff]  ;;  %11702 = vmatprep.mubr.msk.bf16.mxu0 %vm982_vm1, %v12388_v25  ;;  %vm2181_vm13 = vcmp.gt.f32.partialorder %v13623_v14, 0.0 }
 0x13a   : > { %12613 = vpow2.f32 %v2628_v46  ;;  %v13653_v56 = vadd.f32 %v11624_v13, %v13341_v55  ;;  %v1487_v4 = vpop.f32.mrb[41].mxu0  ;;  %v12602_v58 = vpop.eup %12601  ;;  %v3585_v6 = vld [vmem:[#allocation2 + $0x60] sm:$0xff]  ;;  %3484 = vst.msk [vmem:[#allocation2 + $0x78] sm:$0xff] %vm3468_vm2, %v3381_v62  ;;  %vm2179_vm14 = vcmp.gt.f32.partialorder %v13638_v41, 0.0 }
 0x13b   : > { %v13660_v35 = vadd.f32 %v13341_v55, %v1487_v4  ;;  %v11625_v10 = vpop.f32.mrb[42].mxu0  ;;  %v10392_v31 = vadd.f32 -1.0, %v12602_v58  ;;  %v12604_v8 = vpop.eup %12603  ;;  %12615 = vpow2.f32 %v2624_v26  ;;  %11818 = vmatprep.mubr.msk.bf16.mxu1 %vm3468_vm2, %v3585_v6  ;;  %3483 = vst.msk [vmem:[#allocation2 + $0x70] sm:$0xff] %vm3468_vm2, %v3380_v3  ;;  %v13735_v6 = vld [vmem:[%s17203_s2] ss:$0 sm:$0xff] }
 0x13c   : > { %v2388_v5 = vmin.f32 %v13653_v56, 0.0  ;;  %v1490_v7 = vpop.f32.mrb[43].mxu0  ;;  %v13669_v30 = vadd.f32 %v11625_v10, %v13341_v55  ;;  %v12606_v12 = vpop.eup %12605  ;;  %v10390_v15 = vadd.f32 -1.0, %v12604_v8  ;;  %vm2184_vm15 = vcmp.gt.f32.partialorder %v13653_v56, 0.0 }
 0x13d   : > { %v2386_v11 = vmin.f32 %v13660_v35, 0.0  ;;  %v13678_v18 = vadd.f32 %v13341_v55, %v1490_v7  ;;  %v12608_v28 = vpop.eup %12607  ;;  %v10393_v32 = vadd.f32 -1.0, %v12606_v12  ;;  %v3196_v9 = vsel %vm2176_vm7, %v13576_v2, %v10392_v31  ;;  %11819 = vmatmul.mubr.msk.bf16.gmra.mrb[24].mxu1 %vm3468_vm2, %v3586_v23 }
 0x13e   : > { %v2634_v16 = vmul.f32 1.442695, %v2388_v5  ;;  %v2389_v48 = vmin.f32 %v13669_v30, 0.0  ;;  %v10391_v20 = vadd.f32 -1.0, %v12608_v28  ;;  %v3194_v2 = vsel %vm2174_vm8, %v13581_v21, %v10390_v15 }
 0x13f   : > { %v2630_v44 = vmul.f32 1.442695, %v2386_v11  ;;  %v3197_v17 = vsel %vm2177_vm9, %v13584_v54, %v10393_v32  ;;  %v2387_v47 = vmin.f32 %v13678_v18, 0.0  ;;  %v12389_v54 = vld [vmem:[%s13222_s29 + $0x1e8] sm:$0xff]   ;;  %v12391_v11 = vld [vmem:[%s13222_s29 + $0x1f8] sm:$0xff]   ;;  %vm2182_vm0 = vcmp.gt.f32.partialorder %v13660_v35, 0.0 }
 0x140   : > { %12617 = vpow2.f32 %v2634_v16  ;;  %v2636_v50 = vmul.f32 1.442695, %v2389_v48  ;;  %v3383_v33 = vpack.c.bf16 %v3197_v17, %v3196_v9  ;;  %v3195_v34 = vsel %vm2175_vm10, %v13591_v61, %v10391_v20  ;;  %11703 = vmatmul.mubr.msk.bf16.gmra.mrb[120].mxu0 %vm982_vm1, %v12389_v54 }
 0x141   : > { %12619 = vpow2.f32 %v2630_v44  ;;  %v11628_v27 = vpop.f32.mrb[44].mxu0  ;;  %v3382_v38 = vpack.c.bf16 %v3195_v34, %v3194_v2  ;;  %v2632_v40 = vmul.f32 1.442695, %v2387_v47  ;;  %v3588_v62 = vld [vmem:[#allocation2 + $0x78] sm:$0xff]  ;;  %vm2185_vm3 = vcmp.gt.f32.partialorder %v13669_v30, 0.0 }
 0x142   : > { %v12610_v29 = vpop.eup %12609  ;;  %v13696_v60 = vadd.f32 %v11628_v27, %v13341_v55  ;;  %v1503_v36 = vpop.f32.mrb[45].mxu0  ;;  %12621 = vpow2.f32 %v2636_v50  ;;  %3486 = vst.msk [vmem:[#allocation2 + $0x88] sm:$0xff] %vm3468_vm2, %v3383_v33  ;;  %v3587_v63 = vld [vmem:[#allocation2 + $0x70] sm:$0xff]  ;;  %vm2183_vm4 = vcmp.gt.f32.partialorder %v13678_v18, 0.0 }
 0x143   : > { %v12612_v37 = vpop.eup %12611  ;;  %v10396_v39 = vadd.f32 -1.0, %v12610_v29  ;;  %v11629_v19 = vpop.f32.mrb[46].mxu0  ;;  %v13704_v61 = vadd.f32 %v13341_v55, %v1503_v36  ;;  %3485 = vst.msk [vmem:[#allocation2 + $0x80] sm:$0xff] %vm3468_vm2, %v3382_v38  ;;  %12623 = vpow2.f32 %v2632_v40  ;;  %11822 = vmatprep.mubr.msk.bf16.mxu1 %vm3468_vm2, %v3587_v63  ;;  %v12394_v63 = vld [vmem:[%s13222_s29 + $0x208] sm:$0xff]  }
 0x144   : > { %v12614_v42 = vpop.eup %12613  ;;  %v2392_v21 = vmin.f32 %v13696_v60, 0.0  ;;  %v1506_v43 = vpop.f32.mrb[47].mxu0  ;;  %v13709_v46 = vadd.f32 %v11629_v19, %v13341_v55  ;;  %v10394_v51 = vadd.f32 -1.0, %v12612_v37  ;;  %vm2188_vm5 = vcmp.gt.f32.partialorder %v13696_v60, 0.0 }
 0x145   : > { %v10397_v0 = vadd.f32 -1.0, %v12614_v42  ;;  %v2390_v13 = vmin.f32 %v13704_v61, 0.0  ;;  %v12616_v53 = vpop.eup %12615  ;;  %v3200_v45 = vsel %vm2180_vm11, %v13613_v22, %v10396_v39  ;;  %v13721_v58 = vadd.f32 %v13341_v55, %v1506_v43  ;;  %11823 = vmatmul.mubr.msk.bf16.gmra.mrb[28].mxu1 %vm3468_vm2, %v3588_v62 }
 0x146   : > { %v2642_v52 = vmul.f32 1.442695, %v2392_v21  ;;  %v2393_v57 = vmin.f32 %v13709_v46, 0.0  ;;  %v10395_v26 = vadd.f32 -1.0, %v12616_v53  ;;  %v3198_v55 = vsel %vm2178_vm12, %v13617_v24, %v10394_v51 }
 0x147   : > { %v3201_v4 = vsel %vm2181_vm13, %v13623_v14, %v10397_v0  ;;  %v2638_v10 = vmul.f32 1.442695, %v2390_v13  ;;  %v2391_v22 = vmin.f32 %v13721_v58, 0.0  ;;  %v12390_v14 = vld [vmem:[%s13222_s29 + $0x1f0] sm:$0xff]   ;;  %v12393_v0 = vld [vmem:[%s13222_s29 + $0x200] sm:$0xff]   ;;  %vm2186_vm6 = vcmp.gt.f32.partialorder %v13704_v61, 0.0 }
 0x148   : > { %v3385_v59 = vpack.c.bf16 %v3201_v4, %v3200_v45  ;;  %12625 = vpow2.f32 %v2642_v52  ;;  %v2644_v1 = vmul.f32 1.442695, %v2393_v57  ;;  %v3199_v5 = vsel %vm2179_vm14, %v13638_v41, %v10395_v26  ;;  %11706 = vmatprep.mubr.msk.bf16.mxu0 %vm982_vm1, %v12390_v14 }
 0x149   : > { %v11632_v3 = vpop.f32.mrb[48].mxu0  ;;  %12627 = vpow2.f32 %v2638_v10  ;;  %v3384_v12 = vpack.c.bf16 %v3199_v5, %v3198_v55  ;;  %v2640_v41 = vmul.f32 1.442695, %v2391_v22  ;;  %11707 = vmatmul.mubr.msk.bf16.gmra.mrb[124].mxu0 %vm982_vm1, %v12391_v11  ;;  %v3590_v33 = vld [vmem:[#allocation2 + $0x88] sm:$0xff]  ;;  %vm2189_vm7 = vcmp.gt.f32.partialorder %v13709_v46, 0.0 }
 0x14a   : > { %v12618_v31 = vpop.eup %12617  ;;  %3488 = vst.msk [vmem:[#allocation2 + $0x98] sm:$0xff] %vm3468_vm2, %v3385_v59  ;;  %v13738_v7 = vadd.f32 %v13735_v6, %v11632_v3  ;;  %v1519_v8 = vpop.f32.mrb[49].mxu0  ;;  %12629 = vpow2.f32 %v2644_v1  ;;  %v3589_v44 = vld [vmem:[#allocation2 + $0x80] sm:$0xff]  ;;  %11710 = vmatprep.mubr.msk.bf16.mxu0 %vm982_vm1, %v12393_v0  ;;  %vm2187_vm8 = vcmp.gt.f32.partialorder %v13721_v58, 0.0 }
 0x14b   : > { %v12620_v24 = vpop.eup %12619  ;;  %v10400_v15 = vadd.f32 -1.0, %v12618_v31  ;;  %v11633_v16 = vpop.f32.mrb[50].mxu0  ;;  %v13747_v32 = vadd.f32 %v13735_v6, %v1519_v8  ;;  %3487 = vst.msk [vmem:[#allocation2 + $0x90] sm:$0xff] %vm3468_vm2, %v3384_v12  ;;  %12631 = vpow2.f32 %v2640_v41  ;;  %11826 = vmatprep.mubr.msk.bf16.mxu1 %vm3468_vm2, %v3589_v44 }
 0x14c   : > { %v2396_v28 = vmin.f32 %v13738_v7, 0.0  ;;  %v1522_v48 = vpop.f32.mrb[51].mxu0  ;;  %v12622_v23 = vpop.eup %12621  ;;  %v13752_v9 = vadd.f32 %v13735_v6, %v11633_v16  ;;  %v10398_v25 = vadd.f32 -1.0, %v12620_v24  ;;  %vm2192_vm9 = vcmp.gt.f32.partialorder %v13738_v7, 0.0 }
 0x14d   : > { %v13756_v20 = vadd.f32 %v13735_v6, %v1522_v48  ;;  %v10401_v17 = vadd.f32 -1.0, %v12622_v23  ;;  %v12624_v47 = vpop.eup %12623  ;;  %v3204_v27 = vsel %vm2184_vm15, %v13653_v56, %v10400_v15  ;;  %v2394_v29 = vmin.f32 %v13747_v32, 0.0  ;;  %11827 = vmatmul.mubr.msk.bf16.gmra.mrb[32].mxu1 %vm3468_vm2, %v3590_v33  ;;  %v12395_v15 = vld [vmem:[%s13222_s29 + $0x210] sm:$0xff]   ;;  %v12396_v48 = vld [vmem:[%s13222_s29 + $0x218] sm:$0xff]  }
 0x14e   : > { %v2650_v50 = vmul.f32 1.442695, %v2396_v28  ;;  %v2397_v2 = vmin.f32 %v13752_v9, 0.0  ;;  %v10399_v36 = vadd.f32 -1.0, %v12624_v47  ;;  %v3202_v19 = vsel %vm2182_vm0, %v13660_v35, %v10398_v25 }
 0x14f   : > { %v3205_v34 = vsel %vm2185_vm3, %v13669_v30, %v10401_v17  ;;  %v2395_v54 = vmin.f32 %v13756_v20, 0.0  ;;  %v2646_v56 = vmul.f32 1.442695, %v2394_v29  ;;  %vm2190_vm10 = vcmp.gt.f32.partialorder %v13747_v32, 0.0 }
 0x150   : > { %12633 = vpow2.f32 %v2650_v50  ;;  %v3387_v37 = vpack.c.bf16 %v3205_v34, %v3204_v27  ;;  %v2652_v38 = vmul.f32 1.442695, %v2397_v2  ;;  %v3203_v30 = vsel %vm2183_vm4, %v13678_v18, %v10399_v36 }
 0x151   : > { %v11636_v39 = vpop.f32.mrb[52].mxu0  ;;  %v2648_v42 = vmul.f32 1.442695, %v2395_v54  ;;  %v3386_v51 = vpack.c.bf16 %v3203_v30, %v3202_v19  ;;  %12635 = vpow2.f32 %v2646_v56  ;;  %11711 = vmatmul.mubr.msk.bf16.gmra.mrb[128].mxu0 %vm982_vm1, %v12394_v63  ;;  %v3592_v55 = vld [vmem:[#allocation2 + $0x98] sm:$0xff]  ;;  %vm2193_vm11 = vcmp.gt.f32.partialorder %v13752_v9, 0.0 }
 0x152   : > { %v12626_v40 = vpop.eup %12625  ;;  %v13773_v21 = vadd.f32 %v13735_v6, %v11636_v39  ;;  %v1535_v43 = vpop.f32.mrb[53].mxu0  ;;  %3490 = vst.msk [vmem:[#allocation2 + $0xa8] sm:$0xff] %vm3468_vm2, %v3387_v37  ;;  %12637 = vpow2.f32 %v2652_v38  ;;  %v3591_v4 = vld [vmem:[#allocation2 + $0x90] sm:$0xff]  ;;  %11714 = vmatprep.mubr.msk.bf16.mxu0 %vm982_vm1, %v12395_v15  ;;  %vm2191_vm12 = vcmp.gt.f32.partialorder %v13756_v20, 0.0 }
 0x153   : > { %v10404_v52 = vadd.f32 -1.0, %v12626_v40  ;;  %v13779_v13 = vadd.f32 %v13735_v6, %v1535_v43  ;;  %v11637_v53 = vpop.f32.mrb[54].mxu0  ;;  %v12628_v45 = vpop.eup %12627  ;;  %3489 = vst.msk [vmem:[#allocation2 + $0xa0] sm:$0xff] %vm3468_vm2, %v3386_v51  ;;  %12639 = vpow2.f32 %v2648_v42  ;;  %11830 = vmatprep.mubr.msk.bf16.mxu1 %vm3468_vm2, %v3591_v4 }
 0x154   : > { %v2400_v35 = vmin.f32 %v13773_v21, 0.0  ;;  %v13783_v18 = vadd.f32 %v13735_v6, %v11637_v53  ;;  %v1538_v57 = vpop.f32.mrb[55].mxu0  ;;  %v12630_v62 = vpop.eup %12629  ;;  %v10402_v59 = vadd.f32 -1.0, %v12628_v45  ;;  %v12397_v53 = vld [vmem:[%s13222_s29 + $0x220] sm:$0xff]   ;;  %vm2196_vm13 = vcmp.gt.f32.partialorder %v13773_v21, 0.0 }
 0x155   : > { %v10405_v26 = vadd.f32 -1.0, %v12630_v62  ;;  %v2398_v1 = vmin.f32 %v13779_v13, 0.0  ;;  %v12632_v22 = vpop.eup %12631  ;;  %v3208_v3 = vsel %vm2188_vm5, %v13696_v60, %v10404_v52  ;;  %v13796_v31 = vadd.f32 %v13735_v6, %v1538_v57  ;;  %11831 = vmatmul.mubr.msk.bf16.gmra.mrb[36].mxu1 %vm3468_vm2, %v3592_v55  ;;  %v12398_v62 = vld [vmem:[%s13222_s29 + $0x228] sm:$0xff]  }
 0x156   : > { %v2658_v10 = vmul.f32 1.442695, %v2400_v35  ;;  %v2401_v14 = vmin.f32 %v13783_v18, 0.0  ;;  %v10403_v8 = vadd.f32 -1.0, %v12632_v22  ;;  %v3206_v16 = vsel %vm2186_vm6, %v13704_v61, %v10402_v59 }
 0x157   : > { %v3209_v5 = vsel %vm2189_vm7, %v13709_v46, %v10405_v26  ;;  %v2654_v11 = vmul.f32 1.442695, %v2398_v1  ;;  %v2399_v24 = vmin.f32 %v13796_v31, 0.0  ;;  %vm2194_vm14 = vcmp.gt.f32.partialorder %v13779_v13, 0.0 }
 0x158   : > { %12641 = vpow2.f32 %v2658_v10  ;;  %v3389_v49 = vpack.c.bf16 %v3209_v5, %v3208_v3  ;;  %v2660_v60 = vmul.f32 1.442695, %v2401_v14  ;;  %v3207_v46 = vsel %vm2187_vm8, %v13721_v58, %v10403_v8 }
 0x159   : > { %v11640_v12 = vpop.f32.mrb[56].mxu0  ;;  %12643 = vpow2.f32 %v2654_v11  ;;  %v3388_v23 = vpack.c.bf16 %v3207_v46, %v3206_v16  ;;  %v2656_v25 = vmul.f32 1.442695, %v2399_v24  ;;  %11715 = vmatmul.mubr.msk.bf16.gmra.mrb[132].mxu0 %vm982_vm1, %v12396_v48  ;;  %v3594_v40 = vld [vmem:[#allocation2 + $0xa8] sm:$0xff]  ;;  %vm2197_vm15 = vcmp.gt.f32.partialorder %v13783_v18, 0.0 }
 0x15a   : > { %v12634_v41 = vpop.eup %12633  ;;  %v13808_v28 = vadd.f32 %v13735_v6, %v11640_v12  ;;  %v1551_v44 = vpop.f32.mrb[57].mxu0  ;;  %3492 = vst.msk [vmem:[#allocation2 + $0xb8] sm:$0xff] %vm3468_vm2, %v3389_v49  ;;  %12645 = vpow2.f32 %v2660_v60  ;;  %v3593_v27 = vld [vmem:[#allocation2 + $0xa0] sm:$0xff]  ;;  %11718 = vmatprep.mubr.msk.bf16.mxu0 %vm982_vm1, %v12397_v53  ;;  %vm2195_vm0 = vcmp.gt.f32.partialorder %v13796_v31, 0.0 }
 0x15b   : > { %v11641_v17 = vpop.f32.mrb[58].mxu0  ;;  %v10408_v50 = vadd.f32 -1.0, %v12634_v41  ;;  %v13815_v61 = vadd.f32 %v13735_v6, %v1551_v44  ;;  %v12636_v2 = vpop.eup %12635  ;;  %3491 = vst.msk [vmem:[#allocation2 + $0xb0] sm:$0xff] %vm3468_vm2, %v3388_v23  ;;  %12647 = vpow2.f32 %v2656_v25  ;;  %11834 = vmatprep.mubr.msk.bf16.mxu1 %vm3468_vm2, %v3593_v27 }
 0x15c   : > { %v2404_v47 = vmin.f32 %v13808_v28, 0.0  ;;  %v13818_v58 = vadd.f32 %v13735_v6, %v11641_v17  ;;  %v1554_v29 = vpop.f32.mrb[59].mxu0  ;;  %v12638_v34 = vpop.eup %12637  ;;  %v10406_v36 = vadd.f32 -1.0, %v12636_v2  ;;  %v12399_v17 = vld [vmem:[%s13222_s29 + $0x230] sm:$0xff]   ;;  %v12400_v2 = vld [vmem:[%s13222_s29 + $0x238] sm:$0xff]   ;;  %vm2200_vm3 = vcmp.gt.f32.partialorder %v13808_v28, 0.0 }
 0x15d   : > { %v13824_v33 = vadd.f32 %v13735_v6, %v1554_v29  ;;  %v2402_v37 = vmin.f32 %v13815_v61, 0.0  ;;  %v12640_v56 = vpop.eup %12639  ;;  %v10409_v38 = vadd.f32 -1.0, %v12638_v34  ;;  %v3212_v19 = vsel %vm2192_vm9, %v13738_v7, %v10408_v50  ;;  %11835 = vmatmul.mubr.msk.bf16.gmra.mrb[40].mxu1 %vm3468_vm2, %v3594_v40 }
 0x15e   : > { %v2666_v54 = vmul.f32 1.442695, %v2404_v47  ;;  %v2405_v39 = vmin.f32 %v13818_v58, 0.0  ;;  %v10407_v30 = vadd.f32 -1.0, %v12640_v56  ;;  %v3210_v43 = vsel %vm2190_vm10, %v13747_v32, %v10406_v36 }
 0x15f   : > { %v2662_v42 = vmul.f32 1.442695, %v2402_v37  ;;  %v3213_v0 = vsel %vm2193_vm11, %v13752_v9, %v10409_v38  ;;  %v2403_v51 = vmin.f32 %v13824_v33, 0.0  ;;  %vm2198_vm4 = vcmp.gt.f32.partialorder %v13815_v61, 0.0 }
 0x160   : > { %12649 = vpow2.f32 %v2666_v54  ;;  %v2668_v63 = vmul.f32 1.442695, %v2405_v39  ;;  %v3391_v35 = vpack.c.bf16 %v3213_v0, %v3212_v19  ;;  %v3211_v7 = vsel %vm2191_vm12, %v13756_v20, %v10407_v30 }
 0x161   : > { %v11644_v52 = vpop.f32.mrb[60].mxu0  ;;  %12651 = vpow2.f32 %v2662_v42  ;;  %v3390_v32 = vpack.c.bf16 %v3211_v7, %v3210_v43  ;;  %v2664_v9 = vmul.f32 1.442695, %v2403_v51  ;;  %11719 = vmatmul.mubr.msk.bf16.gmra.mrb[136].mxu0 %vm982_vm1, %v12398_v62  ;;  %v3596_v41 = vld [vmem:[#allocation2 + $0xb8] sm:$0xff]  ;;  %vm2201_vm5 = vcmp.gt.f32.partialorder %v13818_v58, 0.0 }
 0x162   : > { %v12642_v45 = vpop.eup %12641  ;;  %v13846_v4 = vadd.f32 %v13735_v6, %v11644_v52  ;;  %v1567_v57 = vpop.f32.mrb[61].mxu0  ;;  %12653 = vpow2.f32 %v2668_v63  ;;  %3494 = vst.msk [vmem:[#allocation2 + $0xc8] sm:$0xff] %vm3468_vm2, %v3391_v35  ;;  %v3595_v3 = vld [vmem:[#allocation2 + $0xb0] sm:$0xff]  ;;  %11722 = vmatprep.mubr.msk.bf16.mxu0 %vm982_vm1, %v12399_v17  ;;  %vm2199_vm6 = vcmp.gt.f32.partialorder %v13824_v33, 0.0 }
 0x163   : > { %v10412_v59 = vadd.f32 -1.0, %v12642_v45  ;;  %v11645_v26 = vpop.f32.mrb[62].mxu0  ;;  %v12644_v10 = vpop.eup %12643  ;;  %v13853_v20 = vadd.f32 %v13735_v6, %v1567_v57  ;;  %3493 = vst.msk [vmem:[#allocation2 + $0xc0] sm:$0xff] %vm3468_vm2, %v3390_v32  ;;  %12655 = vpow2.f32 %v2664_v9  ;;  %11838 = vmatprep.mubr.msk.bf16.mxu1 %vm3468_vm2, %v3595_v3  ;;  %v12401_v9 = vld [vmem:[%s13222_s29 + $0x240] sm:$0xff]  }
 0x164   : > { %v2408_v1 = vmin.f32 %v13846_v4, 0.0  ;;  %v13856_v22 = vadd.f32 %v13735_v6, %v11645_v26  ;;  %v1570_v14 = vpop.f32.mrb[63].mxu0  ;;  %v12646_v55 = vpop.eup %12645  ;;  %v10410_v8 = vadd.f32 -1.0, %v12644_v10  ;;  %vm2204_vm7 = vcmp.gt.f32.partialorder %v13846_v4, 0.0 }
 0x165   : > { %v13862_v5 = vadd.f32 %v13735_v6, %v1570_v14  ;;  %v10413_v11 = vadd.f32 -1.0, %v12646_v55  ;;  %v2406_v60 = vmin.f32 %v13853_v20, 0.0  ;;  %v12648_v24 = vpop.eup %12647  ;;  %v3216_v12 = vsel %vm2196_vm13, %v13773_v21, %v10412_v59  ;;  %11839 = vmatmul.mubr.msk.bf16.gmra.mrb[44].mxu1 %vm3468_vm2, %v3596_v41 }
 0x166   : > { %v2674_v49 = vmul.f32 1.442695, %v2408_v1  ;;  %v2409_v15 = vmin.f32 %v13856_v22, 0.0  ;;  %v10411_v46 = vadd.f32 -1.0, %v12648_v24  ;;  %v3214_v47 = vsel %vm2194_vm14, %v13779_v13, %v10410_v8 }
 0x167   : > { %v3217_v16 = vsel %vm2197_vm15, %v13783_v18, %v10413_v11  ;;  %v2670_v44 = vmul.f32 1.442695, %v2406_v60  ;;  %v2407_v21 = vmin.f32 %v13862_v5, 0.0  ;;  %vm2202_vm8 = vcmp.gt.f32.partialorder %v13853_v20, 0.0 }
 0x168   : > { %12657 = vpow2.f32 %v2674_v49  ;;  %v3393_v48 = vpack.c.bf16 %v3217_v16, %v3216_v12  ;;  %v2676_v23 = vmul.f32 1.442695, %v2409_v15  ;;  %v3215_v18 = vsel %vm2195_vm0, %v13796_v31, %v10411_v46  ;;  %v12402_v49 = vld [vmem:[%s13222_s29 + $0x248] sm:$0xff]  }
 0x169   : > { %v11648_v25 = vpop.f32.mrb[64].mxu0  ;;  %12659 = vpow2.f32 %v2670_v44  ;;  %v3392_v34 = vpack.c.bf16 %v3215_v18, %v3214_v47  ;;  %v2672_v54 = vmul.f32 1.442695, %v2407_v21  ;;  %11723 = vmatmul.mubr.msk.bf16.gmra.mrb[140].mxu0 %vm982_vm1, %v12400_v2  ;;  %v3598_v45 = vld [vmem:[#allocation2 + $0xc8] sm:$0xff]  ;;  %vm2205_vm9 = vcmp.gt.f32.partialorder %v13856_v22, 0.0 }
 0x16a   : > { %v12650_v50 = vpop.eup %12649  ;;  %v13880_v27 = vadd.f32 %v13735_v6, %v11648_v25  ;;  %v1583_v29 = vpop.f32.mrb[65].mxu0  ;;  %3496 = vst.msk [vmem:[#allocation2 + $0xd8] sm:$0xff] %vm3468_vm2, %v3393_v48  ;;  %12661 = vpow2.f32 %v2676_v23  ;;  %v3597_v39 = vld [vmem:[#allocation2 + $0xc0] sm:$0xff]  ;;  %11726 = vmatprep.mubr.msk.bf16.mxu0 %vm982_vm1, %v12401_v9  ;;  %vm2203_vm10 = vcmp.gt.f32.partialorder %v13862_v5, 0.0 }
 0x16b   : > { %v10416_v36 = vadd.f32 -1.0, %v12650_v50  ;;  %v11649_v37 = vpop.f32.mrb[66].mxu0  ;;  %v12652_v56 = vpop.eup %12651  ;;  %v13887_v31 = vadd.f32 %v13735_v6, %v1583_v29  ;;  %3495 = vst.msk [vmem:[#allocation2 + $0xd0] sm:$0xff] %vm3468_vm2, %v3392_v34  ;;  %12663 = vpow2.f32 %v2672_v54  ;;  %11842 = vmatprep.mubr.msk.bf16.mxu1 %vm3468_vm2, %v3597_v39  ;;  %v12403_v54 = vld [vmem:[%s13222_s29 + $0x250] sm:$0xff]  }
 0x16c   : > { %v2412_v13 = vmin.f32 %v13880_v27, 0.0  ;;  %v13890_v38 = vadd.f32 %v13735_v6, %v11649_v37  ;;  %v1586_v40 = vpop.f32.mrb[67].mxu0  ;;  %v12654_v19 = vpop.eup %12653  ;;  %v10414_v42 = vadd.f32 -1.0, %v12652_v56  ;;  %vm2208_vm11 = vcmp.gt.f32.partialorder %v13880_v27, 0.0 }
 0x16d   : > { %v13896_v30 = vadd.f32 %v13735_v6, %v1586_v40  ;;  %v10417_v43 = vadd.f32 -1.0, %v12654_v19  ;;  %v2410_v63 = vmin.f32 %v13887_v31, 0.0  ;;  %v12656_v51 = vpop.eup %12655  ;;  %v3220_v52 = vsel %vm2200_vm3, %v13808_v28, %v10416_v36  ;;  %11843 = vmatmul.mubr.msk.bf16.gmra.mrb[48].mxu1 %vm3468_vm2, %v3598_v45 }
 0x16e   : > { %v2682_v0 = vmul.f32 1.442695, %v2412_v13  ;;  %v2413_v53 = vmin.f32 %v13890_v38, 0.0  ;;  %v10415_v7 = vadd.f32 -1.0, %v12656_v51  ;;  %v3218_v10 = vsel %vm2198_vm4, %v13815_v61, %v10414_v42 }
 0x16f   : > { %v3221_v35 = vsel %vm2201_vm5, %v13818_v58, %v10417_v43  ;;  %v2678_v57 = vmul.f32 1.442695, %v2410_v63  ;;  %v2411_v28 = vmin.f32 %v13896_v30, 0.0  ;;  %vm2206_vm12 = vcmp.gt.f32.partialorder %v13887_v31, 0.0 }
 0x170   : > { %12665 = vpow2.f32 %v2682_v0  ;;  %v3395_v62 = vpack.c.bf16 %v3221_v35, %v3220_v52  ;;  %v2684_v32 = vmul.f32 1.442695, %v2413_v53  ;;  %v3219_v58 = vsel %vm2199_vm6, %v13824_v33, %v10415_v7  ;;  %v12404_v0 = vld [vmem:[%s13222_s29 + $0x258] sm:$0xff]  }
 0x171   : > { %v11652_v59 = vpop.f32.mrb[68].mxu0  ;;  %12667 = vpow2.f32 %v2678_v57  ;;  %v3394_v14 = vpack.c.bf16 %v3219_v58, %v3218_v10  ;;  %v2680_v8 = vmul.f32 1.442695, %v2411_v28  ;;  %11727 = vmatmul.mubr.msk.bf16.gmra.mrb[144].mxu0 %vm982_vm1, %v12402_v49  ;;  %v3600_v50 = vld [vmem:[#allocation2 + $0xd8] sm:$0xff]  ;;  %vm2209_vm13 = vcmp.gt.f32.partialorder %v13890_v38, 0.0 }
 0x172   : > { %v12658_v26 = vpop.eup %12657  ;;  %v13914_v1 = vadd.f32 %v13735_v6, %v11652_v59  ;;  %v1599_v3 = vpop.f32.mrb[69].mxu0  ;;  %3498 = vst.msk [vmem:[#allocation2 + $0xe8] sm:$0xff] %vm3468_vm2, %v3395_v62  ;;  %12669 = vpow2.f32 %v2684_v32  ;;  %v3599_v12 = vld [vmem:[#allocation2 + $0xd0] sm:$0xff]  ;;  %11730 = vmatprep.mubr.msk.bf16.mxu0 %vm982_vm1, %v12403_v54  ;;  %vm2207_vm14 = vcmp.gt.f32.partialorder %v13896_v30, 0.0 }
 0x173   : > { %v10420_v55 = vadd.f32 -1.0, %v12658_v26  ;;  %v11653_v11 = vpop.f32.mrb[70].mxu0  ;;  %v12660_v60 = vpop.eup %12659  ;;  %v13921_v33 = vadd.f32 %v13735_v6, %v1599_v3  ;;  %3497 = vst.msk [vmem:[#allocation2 + $0xe0] sm:$0xff] %vm3468_vm2, %v3394_v14  ;;  %12671 = vpow2.f32 %v2680_v8  ;;  %11846 = vmatprep.mubr.msk.bf16.mxu1 %vm3468_vm2, %v3599_v12 }
 0x174   : > { %v2416_v61 = vmin.f32 %v13914_v1, 0.0  ;;  %v13924_v24 = vadd.f32 %v13735_v6, %v11653_v11  ;;  %v1602_v15 = vpop.f32.mrb[71].mxu0  ;;  %v12662_v41 = vpop.eup %12661  ;;  %v10418_v46 = vadd.f32 -1.0, %v12660_v60  ;;  %v12406_v11 = vld [vmem:[%s13222_s29 + $0x260] sm:$0xff]   ;;  %vm2212_vm15 = vcmp.gt.f32.partialorder %v13914_v1, 0.0 }
 0x175   : > { %v13930_v16 = vadd.f32 %v13735_v6, %v1602_v15  ;;  %v10421_v44 = vadd.f32 -1.0, %v12662_v41  ;;  %v2414_v23 = vmin.f32 %v13921_v33, 0.0  ;;  %v12664_v21 = vpop.eup %12663  ;;  %v3224_v25 = vsel %vm2204_vm7, %v13846_v4, %v10420_v55  ;;  %11847 = vmatmul.mubr.msk.bf16.gmra.mrb[52].mxu1 %vm3468_vm2, %v3600_v50 }
 0x176   : > { %v2690_v48 = vmul.f32 1.442695, %v2416_v61  ;;  %v2417_v17 = vmin.f32 %v13924_v24, 0.0  ;;  %v10419_v18 = vadd.f32 -1.0, %v12664_v21  ;;  %v3222_v56 = vsel %vm2202_vm8, %v13853_v20, %v10418_v46 }
 0x177   : > { %v3225_v47 = vsel %vm2205_vm9, %v13856_v22, %v10421_v44  ;;  %v2686_v29 = vmul.f32 1.442695, %v2414_v23  ;;  %v2415_v4 = vmin.f32 %v13930_v16, 0.0  ;;  %vm2210_vm0 = vcmp.gt.f32.partialorder %v13921_v33, 0.0 }
 0x178   : > { %12673 = vpow2.f32 %v2690_v48  ;;  %v3397_v2 = vpack.c.bf16 %v3225_v47, %v3224_v25  ;;  %v2692_v34 = vmul.f32 1.442695, %v2417_v17  ;;  %v3223_v22 = vsel %vm2203_vm10, %v13862_v5, %v10419_v18  ;;  %v12407_v48 = vld [vmem:[%s13222_s29 + $0x268] sm:$0xff]  }
 0x179   : > { %v11656_v36 = vpop.f32.mrb[72].mxu0  ;;  %12675 = vpow2.f32 %v2686_v29  ;;  %v3396_v40 = vpack.c.bf16 %v3223_v22, %v3222_v56  ;;  %v2688_v42 = vmul.f32 1.442695, %v2415_v4  ;;  %11731 = vmatmul.mubr.msk.bf16.gmra.mrb[148].mxu0 %vm982_vm1, %v12404_v0  ;;  %v3602_v26 = vld [vmem:[#allocation2 + $0xe8] sm:$0xff]  ;;  %vm2213_vm3 = vcmp.gt.f32.partialorder %v13924_v24, 0.0 }
 0x17a   : > { %v12666_v37 = vpop.eup %12665  ;;  %v13948_v13 = vadd.f32 %v13735_v6, %v11656_v36  ;;  %v1615_v39 = vpop.f32.mrb[73].mxu0  ;;  %3500 = vst.msk [vmem:[#allocation2 + $0xf8] sm:$0xff] %vm3468_vm2, %v3397_v2  ;;  %12677 = vpow2.f32 %v2692_v34  ;;  %v3601_v52 = vld [vmem:[#allocation2 + $0xe0] sm:$0xff]  ;;  %11734 = vmatprep.mubr.msk.bf16.mxu0 %vm982_vm1, %v12406_v11  ;;  %vm2211_vm4 = vcmp.gt.f32.partialorder %v13930_v16, 0.0 }
 0x17b   : > { %v10424_v19 = vadd.f32 -1.0, %v12666_v37  ;;  %v11657_v43 = vpop.f32.mrb[74].mxu0  ;;  %v12668_v63 = vpop.eup %12667  ;;  %v13955_v5 = vadd.f32 %v13735_v6, %v1615_v39  ;;  %3499 = vst.msk [vmem:[#allocation2 + $0xf0] sm:$0xff] %vm3468_vm2, %v3396_v40  ;;  %12679 = vpow2.f32 %v2688_v42  ;;  %11850 = vmatprep.mubr.msk.bf16.mxu1 %vm3468_vm2, %v3601_v52 }
 0x17c   : > { %v2420_v20 = vmin.f32 %v13948_v13, 0.0  ;;  %v13958_v51 = vadd.f32 %v13735_v6, %v11657_v43  ;;  %v1618_v53 = vpop.f32.mrb[75].mxu0  ;;  %v12670_v45 = vpop.eup %12669  ;;  %v10422_v7 = vadd.f32 -1.0, %v12668_v63  ;;  %v12408_v43 = vld [vmem:[%s13222_s29 + $0x270] sm:$0xff]   ;;  %vm2216_vm5 = vcmp.gt.f32.partialorder %v13948_v13, 0.0 }
 0x17d   : > { %v13964_v35 = vadd.f32 %v13735_v6, %v1618_v53  ;;  %v10425_v57 = vadd.f32 -1.0, %v12670_v45  ;;  %v2418_v32 = vmin.f32 %v13955_v5, 0.0  ;;  %v12672_v28 = vpop.eup %12671  ;;  %v3228_v59 = vsel %vm2208_vm11, %v13880_v27, %v10424_v19  ;;  %11851 = vmatmul.mubr.msk.bf16.gmra.mrb[56].mxu1 %vm3468_vm2, %v3602_v26 }
 0x17e   : > { %v2698_v62 = vmul.f32 1.442695, %v2420_v20  ;;  %v2421_v9 = vmin.f32 %v13958_v51, 0.0  ;;  %v10423_v58 = vadd.f32 -1.0, %v12672_v28  ;;  %v3226_v60 = vsel %vm2206_vm12, %v13887_v31, %v10422_v7 }
 0x17f   : > { %v3229_v10 = vsel %vm2209_vm13, %v13890_v38, %v10425_v57  ;;  %v2694_v3 = vmul.f32 1.442695, %v2418_v32  ;;  %v2419_v27 = vmin.f32 %v13964_v35, 0.0  ;;  %vm2214_vm6 = vcmp.gt.f32.partialorder %v13955_v5, 0.0 }
 0x180   : > { %12681 = vpow2.f32 %v2698_v62  ;;  %v3399_v14 = vpack.c.bf16 %v3229_v10, %v3228_v59  ;;  %v2700_v55 = vmul.f32 1.442695, %v2421_v9  ;;  %v3227_v38 = vsel %vm2207_vm14, %v13896_v30, %v10423_v58  ;;  %v12409_v62 = vld [vmem:[%s13222_s29 + $0x278] sm:$0xff]  }
 0x181   : > { %v11660_v8 = vpop.f32.mrb[76].mxu0  ;;  %12683 = vpow2.f32 %v2694_v3  ;;  %v3398_v15 = vpack.c.bf16 %v3227_v38, %v3226_v60  ;;  %v2696_v46 = vmul.f32 1.442695, %v2419_v27  ;;  %11735 = vmatmul.mubr.msk.bf16.gmra.mrb[152].mxu0 %vm982_vm1, %v12407_v48  ;;  %v3604_v37 = vld [vmem:[#allocation2 + $0xf8] sm:$0xff]  ;;  %vm2217_vm7 = vcmp.gt.f32.partialorder %v13958_v51, 0.0 }
 0x182   : > { %v12674_v49 = vpop.eup %12673  ;;  %v13982_v61 = vadd.f32 %v13735_v6, %v11660_v8  ;;  %v1631_v12 = vpop.f32.mrb[77].mxu0  ;;  %3502 = vst.msk [vmem:[#allocation2 + $0x108] sm:$0xff] %vm3468_vm2, %v3399_v14  ;;  %12685 = vpow2.f32 %v2700_v55  ;;  %v3603_v25 = vld [vmem:[#allocation2 + $0xf0] sm:$0xff]  ;;  %11738 = vmatprep.mubr.msk.bf16.mxu0 %vm982_vm1, %v12408_v43  ;;  %vm2215_vm8 = vcmp.gt.f32.partialorder %v13964_v35, 0.0 }
 0x183   : > { %v10428_v41 = vadd.f32 -1.0, %v12674_v49  ;;  %v11661_v44 = vpop.f32.mrb[78].mxu0  ;;  %v12676_v23 = vpop.eup %12675  ;;  %v13989_v30 = vadd.f32 %v13735_v6, %v1631_v12  ;;  %3501 = vst.msk [vmem:[#allocation2 + $0x100] sm:$0xff] %vm3468_vm2, %v3398_v15  ;;  %12687 = vpow2.f32 %v2696_v46  ;;  %11854 = vmatprep.mubr.msk.bf16.mxu1 %vm3468_vm2, %v3603_v25 }
 0x184   : > { %v2424_v31 = vmin.f32 %v13982_v61, 0.0  ;;  %v13992_v21 = vadd.f32 %v13735_v6, %v11661_v44  ;;  %v1634_v17 = vpop.f32.mrb[79].mxu0  ;;  %v12678_v50 = vpop.eup %12677  ;;  %v10426_v18 = vadd.f32 -1.0, %v12676_v23  ;;  %v12410_v44 = vld [vmem:[%s13222_s29 + $0x280] sm:$0xff]   ;;  %vm2220_vm9 = vcmp.gt.f32.partialorder %v13982_v61, 0.0 }
 0x185   : > { %v13998_v47 = vadd.f32 %v13735_v6, %v1634_v17  ;;  %v10429_v29 = vadd.f32 -1.0, %v12678_v50  ;;  %v2422_v34 = vmin.f32 %v13989_v30, 0.0  ;;  %v12680_v4 = vpop.eup %12679  ;;  %v3232_v36 = vsel %vm2212_vm15, %v13914_v1, %v10428_v41  ;;  %11855 = vmatmul.mubr.msk.bf16.gmra.mrb[60].mxu1 %vm3468_vm2, %v3604_v37  ;;  %v12411_v37 = vld [vmem:[%s17204_s3 + $0x28] sm:$0xff]  }
 0x186   : > { %v2706_v2 = vmul.f32 1.442695, %v2424_v31  ;;  %v2425_v54 = vmin.f32 %v13992_v21, 0.0  ;;  %v10427_v22 = vadd.f32 -1.0, %v12680_v4  ;;  %v3230_v63 = vsel %vm2210_vm0, %v13921_v33, %v10426_v18  ;;  %12100 = vmatprep.subr.bf16.mxu0 %v12411_v37 }
 0x187   : > { %v3233_v56 = vsel %vm2213_vm3, %v13924_v24, %v10429_v29  ;;  %v2702_v39 = vmul.f32 1.442695, %v2422_v34  ;;  %v2423_v1 = vmin.f32 %v13998_v47, 0.0  ;;  %vm2218_vm10 = vcmp.gt.f32.partialorder %v13989_v30, 0.0  ;;  %12101 = vmatpush3.bf16.msra.mxu0 %v12411_v37 }
 0x188   : > { %12689 = vpow2.f32 %v2706_v2  ;;  %v3401_v40 = vpack.c.bf16 %v3233_v56, %v3232_v36  ;;  %v2708_v19 = vmul.f32 1.442695, %v2425_v54  ;;  %v3231_v24 = vsel %vm2211_vm4, %v13930_v16, %v10427_v22  ;;  %v12412_v2 = vld [vmem:[%s13222_s29 + $0x288] sm:$0xff]  }
 0x189   : > { %v11664_v42 = vpop.f32.mrb[80].mxu0  ;;  %12691 = vpow2.f32 %v2702_v39  ;;  %v3400_v53 = vpack.c.bf16 %v3231_v24, %v3230_v63  ;;  %v2704_v7 = vmul.f32 1.442695, %v2423_v1  ;;  %11739 = vmatmul.mubr.msk.bf16.gmra.mrb[156].mxu0 %vm982_vm1, %v12409_v62  ;;  %v3606_v49 = vld [vmem:[#allocation2 + $0x108] sm:$0xff]  ;;  %vm2221_vm11 = vcmp.gt.f32.partialorder %v13992_v21, 0.0  ;;  %v12413_v62 = vld [vmem:[%s13222_s29 + $0x290] sm:$0xff]  }
 0x18a   : > { %v12682_v0 = vpop.eup %12681  ;;  %v14016_v20 = vadd.f32 %v13735_v6, %v11664_v42  ;;  %v1647_v52 = vpop.f32.mrb[81].mxu0  ;;  %3504 = vst.msk [vmem:[#allocation2 + $0x118] sm:$0xff] %vm3468_vm2, %v3401_v40  ;;  %12693 = vpow2.f32 %v2708_v19  ;;  %v3605_v59 = vld [vmem:[#allocation2 + $0x100] sm:$0xff]  ;;  %11742 = vmatprep.mubr.msk.bf16.mxu0 %vm982_vm1, %v12410_v44  ;;  %vm2219_vm12 = vcmp.gt.f32.partialorder %v13998_v47, 0.0 }
 0x18b   : > { %v10432_v45 = vadd.f32 -1.0, %v12682_v0  ;;  %v11665_v57 = vpop.f32.mrb[82].mxu0  ;;  %v12684_v32 = vpop.eup %12683  ;;  %v14023_v16 = vadd.f32 %v13735_v6, %v1647_v52  ;;  %3503 = vst.msk [vmem:[#allocation2 + $0x110] sm:$0xff] %vm3468_vm2, %v3400_v53  ;;  %12695 = vpow2.f32 %v2704_v7  ;;  %11858 = vmatprep.mubr.msk.bf16.mxu1 %vm3468_vm2, %v3605_v59 }
 0x18c   : > { %v2428_v33 = vmin.f32 %v14016_v20, 0.0  ;;  %v14026_v28 = vadd.f32 %v13735_v6, %v11665_v57  ;;  %v1650_v9 = vpop.f32.mrb[83].mxu0  ;;  %v12686_v26 = vpop.eup %12685  ;;  %v10430_v58 = vadd.f32 -1.0, %v12684_v32  ;;  %vm2224_vm13 = vcmp.gt.f32.partialorder %v14016_v20, 0.0 }
 0x18d   : > { %v14032_v10 = vadd.f32 %v13735_v6, %v1650_v9  ;;  %v10433_v3 = vadd.f32 -1.0, %v12686_v26  ;;  %v2426_v55 = vmin.f32 %v14023_v16, 0.0  ;;  %v12688_v27 = vpop.eup %12687  ;;  %v3236_v8 = vsel %vm2216_vm5, %v13948_v13, %v10432_v45  ;;  %11859 = vmatmul.mubr.msk.bf16.gmra.mrb[64].mxu1 %vm3468_vm2, %v3606_v49 }
 0x18e   : > { %v2714_v14 = vmul.f32 1.442695, %v2428_v33  ;;  %v2429_v11 = vmin.f32 %v14026_v28, 0.0  ;;  %v10431_v38 = vadd.f32 -1.0, %v12688_v27  ;;  %v3234_v23 = vsel %vm2214_vm6, %v13955_v5, %v10430_v58 }
 0x18f   : > { %v3237_v60 = vsel %vm2217_vm7, %v13958_v51, %v10433_v3  ;;  %v2710_v12 = vmul.f32 1.442695, %v2426_v55  ;;  %v2427_v13 = vmin.f32 %v14032_v10, 0.0  ;;  %v12414_v55 = vld [vmem:[%s13222_s29 + $0x298] sm:$0xff]   ;;  %vm2222_vm14 = vcmp.gt.f32.partialorder %v14023_v16, 0.0 }
 0x190   : > { %12697 = vpow2.f32 %v2714_v14  ;;  %v3403_v15 = vpack.c.bf16 %v3237_v60, %v3236_v8  ;;  %v2716_v41 = vmul.f32 1.442695, %v2429_v11  ;;  %v3235_v51 = vsel %vm2215_vm8, %v13964_v35, %v10431_v38 }
 0x191   : > { %v11668_v46 = vpop.f32.mrb[84].mxu0  ;;  %12699 = vpow2.f32 %v2710_v12  ;;  %v3402_v17 = vpack.c.bf16 %v3235_v51, %v3234_v23  ;;  %v2712_v18 = vmul.f32 1.442695, %v2427_v13  ;;  %11743 = vmatmul.mubr.msk.bf16.gmra.mrb[160].mxu0 %vm982_vm1, %v12412_v2  ;;  %v3608_v63 = vld [vmem:[#allocation2 + $0x118] sm:$0xff]  ;;  %vm2225_vm15 = vcmp.gt.f32.partialorder %v14026_v28, 0.0 }
 0x192   : > { %v12690_v48 = vpop.eup %12689  ;;  %v14050_v31 = vadd.f32 %v13735_v6, %v11668_v46  ;;  %v1663_v25 = vpop.f32.mrb[85].mxu0  ;;  %3506 = vst.msk [vmem:[#allocation2 + $0x128] sm:$0xff] %vm3468_vm2, %v3403_v15  ;;  %12701 = vpow2.f32 %v2716_v41  ;;  %v3607_v36 = vld [vmem:[#allocation2 + $0x110] sm:$0xff]  ;;  %11746 = vmatprep.mubr.msk.bf16.mxu0 %vm982_vm1, %v12413_v62  ;;  %vm2223_vm0 = vcmp.gt.f32.partialorder %v14032_v10, 0.0 }
 0x193   : > { %v10436_v50 = vadd.f32 -1.0, %v12690_v48  ;;  %v11669_v29 = vpop.f32.mrb[86].mxu0  ;;  %v12692_v34 = vpop.eup %12691  ;;  %v14057_v35 = vadd.f32 %v13735_v6, %v1663_v25  ;;  %3505 = vst.msk [vmem:[#allocation2 + $0x120] sm:$0xff] %vm3468_vm2, %v3402_v17  ;;  %12703 = vpow2.f32 %v2712_v18  ;;  %11862 = vmatprep.mubr.msk.bf16.mxu1 %vm3468_vm2, %v3607_v36 }
 0x194   : > { %v2432_v5 = vmin.f32 %v14050_v31, 0.0  ;;  %v14060_v4 = vadd.f32 %v13735_v6, %v11669_v29  ;;  %v1666_v54 = vpop.f32.mrb[87].mxu0  ;;  %v12694_v56 = vpop.eup %12693  ;;  %v10434_v39 = vadd.f32 -1.0, %v12692_v34  ;;  %v12415_v29 = vld [vmem:[%s13222_s29 + $0x2a0] sm:$0xff]   ;;  %vm2228_vm3 = vcmp.gt.f32.partialorder %v14050_v31, 0.0 }
 0x195   : > { %v14069_v22 = vadd.f32 %v13735_v6, %v1666_v54  ;;  %v10437_v40 = vadd.f32 -1.0, %v12694_v56  ;;  %v2430_v1 = vmin.f32 %v14057_v35, 0.0  ;;  %v12696_v42 = vpop.eup %12695  ;;  %v3240_v43 = vsel %vm2220_vm9, %v13982_v61, %v10436_v50  ;;  %11863 = vmatmul.mubr.msk.bf16.gmra.mrb[68].mxu1 %vm3468_vm2, %v3608_v63 }
 0x196   : > { %v2722_v19 = vmul.f32 1.442695, %v2432_v5  ;;  %v2433_v0 = vmin.f32 %v14060_v4, 0.0  ;;  %v10435_v52 = vadd.f32 -1.0, %v12696_v42  ;;  %v3238_v33 = vsel %vm2218_vm10, %v13989_v30, %v10434_v39  ;;  %v14123_v5 = vld [vmem:[%s17203_s2] ss:$0 sm:$0xff] }
 0x197   : > { %v3241_v24 = vsel %vm2221_vm11, %v13992_v21, %v10437_v40  ;;  %v2718_v53 = vmul.f32 1.442695, %v2430_v1  ;;  %v2431_v7 = vmin.f32 %v14069_v22, 0.0  ;;  %vm2226_vm4 = vcmp.gt.f32.partialorder %v14057_v35, 0.0 }
 0x198   : > { %12705 = vpow2.f32 %v2722_v19  ;;  %v3405_v45 = vpack.c.bf16 %v3241_v24, %v3240_v43  ;;  %v2724_v61 = vmul.f32 1.442695, %v2433_v0  ;;  %v3239_v21 = vsel %vm2219_vm12, %v13998_v47, %v10435_v52 }
 0x199   : > { %v11672_v57 = vpop.f32.mrb[88].mxu0  ;;  %12707 = vpow2.f32 %v2718_v53  ;;  %v3404_v26 = vpack.c.bf16 %v3239_v21, %v3238_v33  ;;  %v2720_v3 = vmul.f32 1.442695, %v2431_v7  ;;  %11747 = vmatmul.mubr.msk.bf16.gmra.mrb[164].mxu0 %vm982_vm1, %v12414_v55  ;;  %v3610_v23 = vld [vmem:[#allocation2 + $0x128] sm:$0xff]  ;;  %vm2229_vm5 = vcmp.gt.f32.partialorder %v14060_v4, 0.0 }
 0x19a   : > { %v12698_v32 = vpop.eup %12697  ;;  %v14087_v59 = vadd.f32 %v13735_v6, %v11672_v57  ;;  %v1679_v9 = vpop.f32.mrb[89].mxu0  ;;  %3508 = vst.msk [vmem:[#allocation2 + $0x138] sm:$0xff] %vm3468_vm2, %v3405_v45  ;;  %12709 = vpow2.f32 %v2724_v61  ;;  %v3609_v11 = vld [vmem:[#allocation2 + $0x120] sm:$0xff]  ;;  %11750 = vmatprep.mubr.msk.bf16.mxu0 %vm982_vm1, %v12415_v29  ;;  %vm2227_vm6 = vcmp.gt.f32.partialorder %v14069_v22, 0.0 }
 0x19b   : > { %v10440_v58 = vadd.f32 -1.0, %v12698_v32  ;;  %v11673_v14 = vpop.f32.mrb[90].mxu0  ;;  %v12700_v27 = vpop.eup %12699  ;;  %v14094_v47 = vadd.f32 %v13735_v6, %v1679_v9  ;;  %3507 = vst.msk [vmem:[#allocation2 + $0x130] sm:$0xff] %vm3468_vm2, %v3404_v26  ;;  %12711 = vpow2.f32 %v2720_v3  ;;  %11866 = vmatprep.mubr.msk.bf16.mxu1 %vm3468_vm2, %v3609_v11  ;;  %v12417_v3 = vld [vmem:[%s13222_s29 + $0x2b0] sm:$0xff]   ;;  %v12418_v11 = vld [vmem:[%s13222_s29 + $0x2b8] sm:$0xff]  }
 0x19c   : > { %v2436_v30 = vmin.f32 %v14087_v59, 0.0  ;;  %v14097_v8 = vadd.f32 %v13735_v6, %v11673_v14  ;;  %v1682_v49 = vpop.f32.mrb[91].mxu0  ;;  %v12702_v60 = vpop.eup %12701  ;;  %v10438_v12 = vadd.f32 -1.0, %v12700_v27  ;;  %vm2232_vm7 = vcmp.gt.f32.partialorder %v14087_v59, 0.0 }
 0x19d   : > { %v14103_v38 = vadd.f32 %v13735_v6, %v1682_v49  ;;  %v10441_v15 = vadd.f32 -1.0, %v12702_v60  ;;  %v2434_v13 = vmin.f32 %v14094_v47, 0.0  ;;  %v12704_v46 = vpop.eup %12703  ;;  %v3244_v44 = vsel %vm2224_vm13, %v14016_v20, %v10440_v58  ;;  %11867 = vmatmul.mubr.msk.bf16.gmra.mrb[72].mxu1 %vm3468_vm2, %v3610_v23 }
 0x19e   : > { %v2730_v41 = vmul.f32 1.442695, %v2436_v30  ;;  %v2437_v48 = vmin.f32 %v14097_v8, 0.0  ;;  %v10439_v51 = vadd.f32 -1.0, %v12704_v46  ;;  %v3242_v34 = vsel %vm2222_vm14, %v14023_v16, %v10438_v12  ;;  %v12416_v16 = vld [vmem:[%s13222_s29 + $0x2a8] sm:$0xff]  }
 0x19f   : > { %v3245_v6 = vsel %vm2225_vm15, %v14026_v28, %v10441_v15  ;;  %v2726_v25 = vmul.f32 1.442695, %v2434_v13  ;;  %v2435_v20 = vmin.f32 %v14103_v38, 0.0  ;;  %vm2233_vm8 = vcmp.gt.f32.partialorder %v14097_v8, 0.0 }
 0x1a0   : > { %12713 = vpow2.f32 %v2730_v41  ;;  %v3407_v17 = vpack.c.bf16 %v3245_v6, %v3244_v44  ;;  %v2732_v50 = vmul.f32 1.442695, %v2437_v48  ;;  %v3243_v28 = vsel %vm2223_vm0, %v14032_v10, %v10439_v51  ;;  %v12420_v6 = vld [vmem:[%s13222_s29 + $0x2c0] sm:$0xff]  }
 0x1a1   : > { %v11676_v18 = vpop.f32.mrb[92].mxu0  ;;  %12715 = vpow2.f32 %v2726_v25  ;;  %v3406_v37 = vpack.c.bf16 %v3243_v28, %v3242_v34  ;;  %v2728_v39 = vmul.f32 1.442695, %v2435_v20  ;;  %11751 = vmatmul.mubr.msk.bf16.gmra.mrb[168].mxu0 %vm982_vm1, %v12416_v16  ;;  %v3612_v32 = vld [vmem:[#allocation2 + $0x138] sm:$0xff]  ;;  %vm2230_vm9 = vcmp.gt.f32.partialorder %v14094_v47, 0.0 }
 0x1a2   : > { %v12706_v2 = vpop.eup %12705  ;;  %v14126_v36 = vadd.f32 %v14123_v5, %v11676_v18  ;;  %v1695_v54 = vpop.f32.mrb[93].mxu0  ;;  %3510 = vst.msk [vmem:[#allocation2 + $0x148] sm:$0xff] %vm3468_vm2, %v3407_v17  ;;  %12717 = vpow2.f32 %v2732_v50  ;;  %v3611_v43 = vld [vmem:[#allocation2 + $0x130] sm:$0xff]  ;;  %11754 = vmatprep.mubr.msk.bf16.mxu0 %vm982_vm1, %v12417_v3  ;;  %vm2231_vm10 = vcmp.gt.f32.partialorder %v14103_v38, 0.0 }
 0x1a3   : > { %v10444_v56 = vadd.f32 -1.0, %v12706_v2  ;;  %v11677_v40 = vpop.f32.mrb[94].mxu0  ;;  %v12708_v10 = vpop.eup %12707  ;;  %v14133_v1 = vadd.f32 %v14123_v5, %v1695_v54  ;;  %3509 = vst.msk [vmem:[#allocation2 + $0x140] sm:$0xff] %vm3468_vm2, %v3406_v37  ;;  %12719 = vpow2.f32 %v2728_v39  ;;  %11870 = vmatprep.mubr.msk.bf16.mxu1 %vm3468_vm2, %v3611_v43  ;;  %v12422_v39 = vld [vmem:[%s13222_s29 + $0x2d0] sm:$0xff]   ;;  %v12425_v43 = vld [vmem:[%s13222_s29 + $0x2e8] sm:$0xff]  }
 0x1a4   : > { %v2440_v19 = vmin.f32 %v14126_v36, 0.0  ;;  %v14136_v42 = vadd.f32 %v14123_v5, %v11677_v40  ;;  %v1698_v0 = vpop.f32.mrb[95].mxu0  ;;  %v12710_v63 = vpop.eup %12709  ;;  %v10442_v52 = vadd.f32 -1.0, %v12708_v10  ;;  %vm2236_vm11 = vcmp.gt.f32.partialorder %v14126_v36, 0.0  ;;  %v12423_v10 = vld [vmem:[%s13222_s29 + $0x2d8] sm:$0xff]  }
 0x1a5   : > { %v14142_v24 = vadd.f32 %v14123_v5, %v1698_v0  ;;  %v10445_v53 = vadd.f32 -1.0, %v12710_v63  ;;  %v2438_v61 = vmin.f32 %v14133_v1, 0.0  ;;  %v12712_v7 = vpop.eup %12711  ;;  %v3248_v57 = vsel %vm2228_vm3, %v14050_v31, %v10444_v56  ;;  %11871 = vmatmul.mubr.msk.bf16.gmra.mrb[76].mxu1 %vm3468_vm2, %v3612_v32  ;;  %v12419_v32 = vld [vmem:[%s17204_s3 + $0x90] sm:$0xff]  }
 0x1a6   : > { %v2738_v45 = vmul.f32 1.442695, %v2440_v19  ;;  %v2441_v62 = vmin.f32 %v14136_v42, 0.0  ;;  %v10443_v21 = vadd.f32 -1.0, %v12712_v7  ;;  %v3246_v55 = vsel %vm2226_vm4, %v14057_v35, %v10442_v52  ;;  %v12426_v52 = vld [vmem:[%s13222_s29 + $0x2f0] sm:$0xff]   ;;  %v4408_v7 = vld [vmem:[#allocation2 + $0x20] sm:$0xff] }
 0x1a7   : > { %v3249_v33 = vsel %vm2229_vm5, %v14060_v4, %v10445_v53  ;;  %v2734_v9 = vmul.f32 1.442695, %v2438_v61  ;;  %v2439_v31 = vmin.f32 %v14142_v24, 0.0  ;;  %vm2237_vm12 = vcmp.gt.f32.partialorder %v14136_v42, 0.0  ;;  %v12427_v53 = vld [vmem:[%s13222_s29 + $0x2f8] sm:$0xff]  }
 0x1a8   : > { %12721 = vpow2.f32 %v2738_v45  ;;  %v3409_v26 = vpack.c.bf16 %v3249_v33, %v3248_v57  ;;  %v2740_v58 = vmul.f32 1.442695, %v2441_v62  ;;  %v3247_v27 = vsel %vm2227_vm6, %v14069_v22, %v10443_v21  ;;  %v12405_v45 = vld [vmem:[%s17204_s3 + $0x88] sm:$0xff]   ;;  %v4407_v61 = vld [vmem:[#allocation2 + $0x18] sm:$0xff]  ;;  %v13139_v57 = vld [vmem:[%s17204_s3 + $0x80] sm:$0xff]  }
 0x1a9   : > { %12723 = vpow2.f32 %v2734_v9  ;;  %v3408_v4 = vpack.c.bf16 %v3247_v27, %v3246_v55  ;;  %v2736_v30 = vmul.f32 1.442695, %v2439_v31  ;;  %11755 = vmatmul.mubr.msk.bf16.gmra.mrb[172].mxu0 %vm982_vm1, %v12418_v11  ;;  %v3614_v13 = vld [vmem:[#allocation2 + $0x148] sm:$0xff]  ;;  %vm2234_vm13 = vcmp.gt.f32.partialorder %v14133_v1, 0.0  ;;  %v12428_v62 = vld [vmem:[%s13222_s29 + $0x300] sm:$0xff]   ;;  %v11680_v33 = vpop.f32.mrb[96].mxu0 }
 0x1aa   : > { %v12714_v14 = vpop.eup %12713  ;;  %3512 = vst.msk [vmem:[#allocation2 + $0x158] sm:$0xff] %vm3468_vm2, %v3409_v26  ;;  %12725 = vpow2.f32 %v2740_v58  ;;  %v3613_v12 = vld [vmem:[#allocation2 + $0x140] sm:$0xff]  ;;  %11758 = vmatprep.mubr.msk.bf16.mxu0 %vm982_vm1, %v12420_v6  ;;  %vm2235_vm14 = vcmp.gt.f32.partialorder %v14142_v24, 0.0  ;;  %v1720_v21 = vadd.f32 %v14123_v5, %v11680_v33  ;;  %v1711_v9 = vpop.f32.mrb[97].mxu0  ;;  %v12429_v26 = vld [vmem:[%s13222_s29 + $0x308] sm:$0xff]  }
 0x1ab   : > { %v12716_v49 = vpop.eup %12715  ;;  %v10448_v60 = vadd.f32 -1.0, %v12714_v14  ;;  %3511 = vst.msk [vmem:[#allocation2 + $0x150] sm:$0xff] %vm3468_vm2, %v3408_v4  ;;  %12727 = vpow2.f32 %v2736_v30  ;;  %11874 = vmatprep.mubr.msk.bf16.mxu1 %vm3468_vm2, %v3613_v12  ;;  %v1712_v58 = vadd.f32 %v14123_v5, %v1711_v9  ;;  %v11681_v31 = vpop.f32.mrb[98].mxu0  ;;  %v4409_v30 = vld [vmem:[#allocation2 + $0x28] sm:$0xff] }
 0x1ac   : > { %v12718_v15 = vpop.eup %12717  ;;  %v10446_v35 = vadd.f32 -1.0, %v12716_v49  ;;  %v2444_v3 = vmin.f32 %v1720_v21, 0.0  ;;  %v1723_v14 = vadd.f32 %v14123_v5, %v11681_v31  ;;  %v1714_v55 = vpop.f32.mrb[99].mxu0  ;;  %vm2240_vm15 = vcmp.gt.f32.partialorder %v1720_v21, 0.0  ;;  %v4417_v33 = vld [vmem:[#allocation2 + $0x68] sm:$0xff] }
 0x1ad   : > { %v10449_v22 = vadd.f32 -1.0, %v12718_v15  ;;  %v12720_v41 = vpop.eup %12719  ;;  %v3252_v46 = vsel %vm2232_vm7, %v14087_v59, %v10448_v60  ;;  %11875 = vmatmul.mubr.msk.bf16.gmra.mrb[80].mxu1 %vm3468_vm2, %v3614_v13  ;;  %v12421_v59 = vld [vmem:[%s13222_s29 + $0x2c8] sm:$0xff]   ;;  %v2442_v27 = vmin.f32 %v1712_v58, 0.0  ;;  %v1715_v4 = vadd.f32 %v14123_v5, %v1714_v55  ;;  %v4410_v60 = vld [vmem:[#allocation2 + $0x30] sm:$0xff]  ;;  %v12431_v13 = vld [vmem:[%s13222_s29 + $0x318] sm:$0xff]  }
 0x1ae   : > { %v10447_v48 = vadd.f32 -1.0, %v12720_v41  ;;  %v3250_v25 = vsel %vm2230_vm9, %v14094_v47, %v10446_v35  ;;  %v2746_v11 = vmul.f32 1.442695, %v2444_v3  ;;  %v2445_v49 = vmin.f32 %v1723_v14, 0.0  ;;  %v12433_v55 = vld [vmem:[%s17204_s3 + $0x30] sm:$0xff]  }
 0x1af   : > { %v3253_v44 = vsel %vm2233_vm8, %v14097_v8, %v10449_v22  ;;  %v2742_v12 = vmul.f32 1.442695, %v2442_v27  ;;  %v2443_v15 = vmin.f32 %v1715_v4, 0.0  ;;  %v12430_v22 = vld [vmem:[%s13222_s29 + $0x310] sm:$0xff]   ;;  %vm2238_vm0 = vcmp.gt.f32.partialorder %v1712_v58, 0.0  ;;  %12102 = vmatprep.subr.bf16.mxu0 %v12433_v55 }
 0x1b0   : > { %v3411_v23 = vpack.c.bf16 %v3253_v44, %v3252_v46  ;;  %v3251_v17 = vsel %vm2231_vm10, %v14103_v38, %v10447_v48  ;;  %12729 = vpow2.f32 %v2746_v11  ;;  %v2748_v35 = vmul.f32 1.442695, %v2445_v49  ;;  %v4411_v46 = vld [vmem:[#allocation2 + $0x38] sm:$0xff]  ;;  %v4412_v48 = vld [vmem:[#allocation2 + $0x40] sm:$0xff]  ;;  %12103 = vmatpush3.bf16.msra.mxu0 %v12433_v55 }
 0x1b1   : > { %v3410_v50 = vpack.c.bf16 %v3251_v17, %v3250_v25  ;;  %11759 = vmatmul.mubr.msk.bf16.gmra.mrb[176].mxu0 %vm982_vm1, %v12421_v59  ;;  %v3616_v38 = vld [vmem:[#allocation2 + $0x158] sm:$0xff]  ;;  %12731 = vpow2.f32 %v2742_v12  ;;  %v2744_v41 = vmul.f32 1.442695, %v2443_v15  ;;  %vm2241_vm3 = vcmp.gt.f32.partialorder %v1723_v14, 0.0 }
 0x1b2   : > { %v12722_v51 = vpop.eup %12721  ;;  %3514 = vst.msk [vmem:[#allocation2 + $0x168] sm:$0xff] %vm3468_vm2, %v3411_v23  ;;  %v3615_v18 = vld [vmem:[#allocation2 + $0x150] sm:$0xff]  ;;  %11762 = vmatprep.mubr.msk.bf16.mxu0 %vm982_vm1, %v12422_v39  ;;  %12733 = vpow2.f32 %v2748_v35  ;;  %v12432_v44 = vld [vmem:[%s17204_s3 + $0x98] sm:$0xff]   ;;  %vm2239_vm4 = vcmp.gt.f32.partialorder %v1715_v4, 0.0 }
 0x1b3   : > { %v12724_v8 = vpop.eup %12723  ;;  %v10452_v20 = vadd.f32 -1.0, %v12722_v51  ;;  %3513 = vst.msk [vmem:[#allocation2 + $0x160] sm:$0xff] %vm3468_vm2, %v3410_v50  ;;  %11878 = vmatprep.mubr.msk.bf16.mxu1 %vm3468_vm2, %v3615_v18  ;;  %12735 = vpow2.f32 %v2744_v41 }
 0x1b4   : > { %v12726_v29 = vpop.eup %12725  ;;  %v10450_v2 = vadd.f32 -1.0, %v12724_v8 }
 0x1b5   : > { %v10453_v34 = vadd.f32 -1.0, %v12726_v29  ;;  %v12728_v47 = vpop.eup %12727  ;;  %v3256_v28 = vsel %vm2236_vm11, %v14126_v36, %v10452_v20  ;;  %11879 = vmatmul.mubr.msk.bf16.gmra.mrb[84].mxu1 %vm3468_vm2, %v3616_v38 }
 0x1b6   : > { %v10451_v37 = vadd.f32 -1.0, %v12728_v47  ;;  %v3254_v40 = vsel %vm2234_vm13, %v14133_v1, %v10450_v2  ;;  %v12424_v1 = vld [vmem:[%s13222_s29 + $0x2e0] sm:$0xff]  }
 0x1b7   : > { %v3257_v54 = vsel %vm2237_vm12, %v14136_v42, %v10453_v34  ;;  %v4413_v34 = vld [vmem:[#allocation2 + $0x48] sm:$0xff] }
 0x1b8   : > { %v3413_v56 = vpack.c.bf16 %v3257_v54, %v3256_v28  ;;  %v3255_v16 = vsel %vm2235_vm14, %v14142_v24, %v10451_v37  ;;  %v4406_v24 = vld [vmem:[#allocation2 + $0x10] sm:$0xff] }
 0x1b9   : > { %v3412_v36 = vpack.c.bf16 %v3255_v16, %v3254_v40  ;;  %11763 = vmatmul.mubr.msk.bf16.gmra.mrb[180].mxu0 %vm982_vm1, %v12423_v10  ;;  %v3618_v42 = vld [vmem:[#allocation2 + $0x168] sm:$0xff]  ;;  %v4414_v28 = vld [vmem:[#allocation2 + $0x50] sm:$0xff] }
 0x1ba   : > { %3516 = vst.msk [vmem:[#allocation2 + $0x178] sm:$0xff] %vm3468_vm2, %v3413_v56  ;;  %v3617_v19 = vld [vmem:[#allocation2 + $0x160] sm:$0xff]  ;;  %11766 = vmatprep.mubr.msk.bf16.mxu0 %vm982_vm1, %v12424_v1  ;;  %v12730_v25 = vpop.eup %12729 }
 0x1bb   : > { %3515 = vst.msk [vmem:[#allocation2 + $0x170] sm:$0xff] %vm3468_vm2, %v3412_v36  ;;  %11882 = vmatprep.mubr.msk.bf16.mxu1 %vm3468_vm2, %v3617_v19  ;;  %v12732_v50 = vpop.eup %12731  ;;  %v10456_v59 = vadd.f32 -1.0, %v12730_v25  ;;  %v4415_v19 = vld [vmem:[#allocation2 + $0x58] sm:$0xff] }
 0x1bc   : > { %v12734_v8 = vpop.eup %12733  ;;  %v10454_v20 = vadd.f32 -1.0, %v12732_v50  ;;  %v4420_v50 = vld [vmem:[#allocation2 + $0x80] sm:$0xff] }
 0x1bd   : > { %11883 = vmatmul.mubr.msk.bf16.gmra.mrb[88].mxu1 %vm3468_vm2, %v3618_v42  ;;  %v12736_v18 = vpop.eup %12735  ;;  %v3260_v29 = vsel %vm2240_vm15, %v1720_v21, %v10456_v59  ;;  %v10457_v2 = vadd.f32 -1.0, %v12734_v8  ;;  %v4416_v42 = vld [vmem:[#allocation2 + $0x60] sm:$0xff] }
 0x1be   : > { %v3258_v47 = vsel %vm2238_vm0, %v1712_v58, %v10454_v20  ;;  %v10455_v38 = vadd.f32 -1.0, %v12736_v18 }
 0x1bf   : > { %v3261_v37 = vsel %vm2241_vm3, %v1723_v14, %v10457_v2 }
 0x1c0   : > { %v3415_v39 = vpack.c.bf16 %v3261_v37, %v3260_v29  ;;  %v3259_v40 = vsel %vm2239_vm4, %v1715_v4, %v10455_v38 }
 0x1c1   : > { %11767 = vmatmul.mubr.msk.bf16.gmra.mrb[184].mxu0 %vm982_vm1, %v12425_v43  ;;  %v3620_v63 = vld [vmem:[#allocation2 + $0x178] sm:$0xff]  ;;  %v3414_v36 = vpack.c.bf16 %v3259_v40, %v3258_v47 }
 0x1c2   : > { %v3619_v0 = vld [vmem:[#allocation2 + $0x170] sm:$0xff]  ;;  %11770 = vmatprep.mubr.msk.bf16.mxu0 %vm982_vm1, %v12426_v52  ;;  %3518 = vst.msk [vmem:[#allocation2 + $0x188] sm:$0xff] %vm3468_vm2, %v3415_v39 }
 0x1c3   : > { %11886 = vmatprep.mubr.msk.bf16.mxu1 %vm3468_vm2, %v3619_v0  ;;  %3517 = vst.msk [vmem:[#allocation2 + $0x180] sm:$0xff] %vm3468_vm2, %v3414_v36 }
 0x1c5   : > { %11887 = vmatmul.mubr.msk.bf16.gmra.mrb[92].mxu1 %vm3468_vm2, %v3620_v63 }
 0x1c6   : > { %11898 = vmatprep.mubr.msk.bf16.mxu1 %vm3468_vm2, %v4406_v24 }
 0x1c9   : > { %11771 = vmatmul.mubr.msk.bf16.gmra.mrb[188].mxu0 %vm982_vm1, %v12427_v53 }
 0x1ca   : > { %11774 = vmatprep.mubr.msk.bf16.mxu0 %vm982_vm1, %v12428_v62 }
 0x1cd   : > { %11899 = vmatmul.mubr.msk.bf16.vlgmr.msra.gmra.mrb[96].mxu1 %vm3468_vm2, %v4407_v61 }
 0x1ce   : > { %11995 = vmatpush3.bf16.msra.mxu1 %v13139_v57  ;;  %11902 = vmatprep.mubr.msk.bf16.mxu1 %vm3468_vm2, %v4408_v7 }
 0x1cf   : > { %11996 = vmatprep.subr.bf16.mxu1 %v12405_v45 }
 0x1d1   : > { %11775 = vmatmul.mubr.msk.bf16.gmra.mrb[192].mxu0 %vm982_vm1, %v12429_v26  ;;  %v4418_v26 = vld [vmem:[#allocation2 + $0x70] sm:$0xff] }
 0x1d2   : > { %11997 = vmatpush3.bf16.msra.mxu1 %v12405_v45  ;;  %11778 = vmatprep.mubr.msk.bf16.mxu0 %vm982_vm1, %v12430_v22 }
 0x1d3   : > { %11998 = vmatprep.subr.bf16.mxu1 %v12419_v32 }
 0x1d5   : > { %11903 = vmatmul.mubr.msk.bf16.gmra.mrb[100].mxu1 %vm3468_vm2, %v4409_v30 }
 0x1d6   : > { %11906 = vmatprep.mubr.msk.bf16.mxu1 %vm3468_vm2, %v4410_v60  ;;  %11999 = vmatpush3.bf16.msra.mxu1 %v12419_v32 }
 0x1d7   : > { %12000 = vmatprep.subr.bf16.mxu1 %v12432_v44 }
 0x1d9   : > { %11779 = vmatmul.mubr.msk.bf16.gmra.mrb[196].mxu0 %vm982_vm1, %v12431_v13 }
 0x1da   : > { %12001 = vmatpush3.bf16.msra.mxu1 %v12432_v44 }
 0x1dd   : > { %11907 = vmatmul.mubr.msk.bf16.gmra.mrb[104].mxu1 %vm3468_vm2, %v4411_v46 }
 0x1de   : > { %11910 = vmatprep.mubr.msk.bf16.mxu1 %vm3468_vm2, %v4412_v48 }
 0x1e0   : > { %v11796_v23 = vpop.f32.mrb[0].mxu1 }
 0x1e1   : > { %4216 = vst.msk [vmem:[#allocation3 + $0x10] sm:$0xff] %vm3468_vm2, %v11796_v23  ;;  %v3831_v6 = vpop.f32.mrb[1].mxu1 }
 0x1e2   : > { %4214 = vst.msk [vmem:[#allocation3] sm:$0xff] %vm3468_vm2, %v3831_v6  ;;  %v11797_v51 = vpop.f32.mrb[2].mxu1 }
 0x1e3   : > { %4217 = vst.msk [vmem:[#allocation3 + $0x18] sm:$0xff] %vm3468_vm2, %v11797_v51  ;;  %v3834_v17 = vpop.f32.mrb[3].mxu1  ;;  %v4419_v51 = vld [vmem:[#allocation2 + $0x78] sm:$0xff] }
 0x1e4   : > { %4215 = vst.msk [vmem:[#allocation3 + $0x8] sm:$0xff] %vm3468_vm2, %v3834_v17 }
 0x1e5   : > { %11911 = vmatmul.mubr.msk.bf16.gmra.mrb[108].mxu1 %vm3468_vm2, %v4413_v34 }
 0x1e6   : > { %11914 = vmatprep.mubr.msk.bf16.mxu1 %vm3468_vm2, %v4414_v28 }
 0x1e8   : > { %v11800_v54 = vpop.f32.mrb[4].mxu1  ;;  %v11684_v1 = vpop.f32.mrb[100].mxu0 }
 0x1e9   : > { %4220 = vst.msk [vmem:[#allocation3 + $0x30] sm:$0xff] %vm3468_vm2, %v11800_v54  ;;  %v3847_v56 = vpop.f32.mrb[5].mxu1  ;;  %v14252_v0 = vadd.f32 %v14123_v5, %v11684_v1  ;;  %v1727_v53 = vpop.f32.mrb[101].mxu0 }
 0x1ea   : > { %4218 = vst.msk [vmem:[#allocation3 + $0x20] sm:$0xff] %vm3468_vm2, %v3847_v56  ;;  %v11801_v16 = vpop.f32.mrb[6].mxu1  ;;  %v14259_v61 = vadd.f32 %v14123_v5, %v1727_v53  ;;  %v11685_v7 = vpop.f32.mrb[102].mxu0 }
 0x1eb   : > { %4221 = vst.msk [vmem:[#allocation3 + $0x38] sm:$0xff] %vm3468_vm2, %v11801_v16  ;;  %v3850_v10 = vpop.f32.mrb[7].mxu1  ;;  %v2448_v52 = vmin.f32 %v14252_v0, 0.0  ;;  %v14263_v62 = vadd.f32 %v14123_v5, %v11685_v7  ;;  %v1730_v32 = vpop.f32.mrb[103].mxu0  ;;  %vm2244_vm5 = vcmp.gt.f32.partialorder %v14252_v0, 0.0 }
 0x1ec   : > { %4219 = vst.msk [vmem:[#allocation3 + $0x28] sm:$0xff] %vm3468_vm2, %v3850_v10  ;;  %v2446_v21 = vmin.f32 %v14259_v61, 0.0  ;;  %v14267_v9 = vadd.f32 %v14123_v5, %v1730_v32  ;;  %vm2242_vm6 = vcmp.gt.f32.partialorder %v14259_v61, 0.0  ;;  %v4422_v32 = vld [vmem:[#allocation2 + $0x90] sm:$0xff] }
 0x1ed   : > { %11915 = vmatmul.mubr.msk.bf16.gmra.mrb[112].mxu1 %vm3468_vm2, %v4415_v19  ;;  %v2754_v57 = vmul.f32 1.442695, %v2448_v52  ;;  %v2449_v58 = vmin.f32 %v14263_v62, 0.0  ;;  %vm2245_vm7 = vcmp.gt.f32.partialorder %v14263_v62, 0.0  ;;  %v4421_v52 = vld [vmem:[#allocation2 + $0x88] sm:$0xff] }
 0x1ee   : > { %11918 = vmatprep.mubr.msk.bf16.mxu1 %vm3468_vm2, %v4416_v42  ;;  %v2750_v31 = vmul.f32 1.442695, %v2446_v21  ;;  %v2447_v3 = vmin.f32 %v14267_v9, 0.0  ;;  %vm2243_vm8 = vcmp.gt.f32.partialorder %v14267_v9, 0.0 }
 0x1ef   : > { %12737 = vpow2.f32 %v2754_v57  ;;  %v2756_v4 = vmul.f32 1.442695, %v2449_v58 }
 0x1f0   : > { %v11804_v43 = vpop.f32.mrb[8].mxu1  ;;  %v11688_v14 = vpop.f32.mrb[104].mxu0  ;;  %12739 = vpow2.f32 %v2750_v31  ;;  %v2752_v60 = vmul.f32 1.442695, %v2447_v3 }
 0x1f1   : > { %4224 = vst.msk [vmem:[#allocation3 + $0x50] sm:$0xff] %vm3468_vm2, %v11804_v43  ;;  %v3863_v63 = vpop.f32.mrb[9].mxu1  ;;  %v14277_v30 = vadd.f32 %v14123_v5, %v11688_v14  ;;  %v1743_v11 = vpop.f32.mrb[105].mxu0  ;;  %12741 = vpow2.f32 %v2756_v4 }
 0x1f2   : > { %4222 = vst.msk [vmem:[#allocation3 + $0x40] sm:$0xff] %vm3468_vm2, %v3863_v63  ;;  %v11805_v24 = vpop.f32.mrb[10].mxu1  ;;  %v14281_v12 = vadd.f32 %v14123_v5, %v1743_v11  ;;  %v11689_v15 = vpop.f32.mrb[106].mxu0  ;;  %12743 = vpow2.f32 %v2752_v60 }
 0x1f3   : > { %4225 = vst.msk [vmem:[#allocation3 + $0x58] sm:$0xff] %vm3468_vm2, %v11805_v24  ;;  %v3866_v45 = vpop.f32.mrb[11].mxu1  ;;  %v2452_v22 = vmin.f32 %v14277_v30, 0.0  ;;  %v14286_v41 = vadd.f32 %v14123_v5, %v11689_v15  ;;  %v1746_v13 = vpop.f32.mrb[107].mxu0  ;;  %vm2248_vm9 = vcmp.gt.f32.partialorder %v14277_v30, 0.0 }
 0x1f4   : > { %4223 = vst.msk [vmem:[#allocation3 + $0x48] sm:$0xff] %vm3468_vm2, %v3866_v45  ;;  %v2450_v44 = vmin.f32 %v14281_v12, 0.0  ;;  %v14291_v48 = vadd.f32 %v14123_v5, %v1746_v13  ;;  %vm2246_vm10 = vcmp.gt.f32.partialorder %v14281_v12, 0.0 }
 0x1f5   : > { %11919 = vmatmul.mubr.msk.bf16.gmra.mrb[116].mxu1 %vm3468_vm2, %v4417_v33  ;;  %v2762_v23 = vmul.f32 1.442695, %v2452_v22  ;;  %v2453_v6 = vmin.f32 %v14286_v41, 0.0  ;;  %vm2249_vm11 = vcmp.gt.f32.partialorder %v14286_v41, 0.0 }
 0x1f6   : > { %11922 = vmatprep.mubr.msk.bf16.mxu1 %vm3468_vm2, %v4418_v26  ;;  %v2758_v25 = vmul.f32 1.442695, %v2450_v44  ;;  %v2451_v17 = vmin.f32 %v14291_v48, 0.0  ;;  %vm2247_vm12 = vcmp.gt.f32.partialorder %v14291_v48, 0.0 }
 0x1f7   : > { %12745 = vpow2.f32 %v2762_v23  ;;  %v2764_v59 = vmul.f32 1.442695, %v2453_v6 }
 0x1f8   : > { %v11808_v27 = vpop.f32.mrb[12].mxu1  ;;  %12747 = vpow2.f32 %v2758_v25  ;;  %v2760_v8 = vmul.f32 1.442695, %v2451_v17 }
 0x1f9   : > { %4228 = vst.msk [vmem:[#allocation3 + $0x70] sm:$0xff] %vm3468_vm2, %v11808_v27  ;;  %v3879_v49 = vpop.f32.mrb[13].mxu1  ;;  %v12738_v18 = vpop.eup %12737  ;;  %12749 = vpow2.f32 %v2764_v59 }
 0x1fa   : > { %4226 = vst.msk [vmem:[#allocation3 + $0x60] sm:$0xff] %vm3468_vm2, %v3879_v49  ;;  %v11809_v35 = vpop.f32.mrb[14].mxu1  ;;  %v10460_v47 = vadd.f32 -1.0, %v12738_v18  ;;  %12751 = vpow2.f32 %v2760_v8  ;;  %v12740_v40 = vpop.eup %12739  ;;  %v4423_v18 = vld [vmem:[#allocation2 + $0x98] sm:$0xff] }
 0x1fb   : > { %4229 = vst.msk [vmem:[#allocation3 + $0x78] sm:$0xff] %vm3468_vm2, %v11809_v35  ;;  %v3882_v46 = vpop.f32.mrb[15].mxu1  ;;  %v11692_v20 = vpop.f32.mrb[108].mxu0  ;;  %v10458_v1 = vadd.f32 -1.0, %v12740_v40 }
 0x1fc   : > { %4227 = vst.msk [vmem:[#allocation3 + $0x68] sm:$0xff] %vm3468_vm2, %v3882_v46  ;;  %v14299_v29 = vadd.f32 %v14123_v5, %v11692_v20  ;;  %v1759_v2 = vpop.f32.mrb[109].mxu0  ;;  %v12742_v19 = vpop.eup %12741  ;;  %v3264_v53 = vsel %vm2244_vm5, %v14252_v0, %v10460_v47 }
 0x1fd   : > { %11923 = vmatmul.mubr.msk.bf16.gmra.mrb[120].mxu1 %vm3468_vm2, %v4419_v51  ;;  %v14302_v38 = vadd.f32 %v14123_v5, %v1759_v2  ;;  %v11693_v28 = vpop.f32.mrb[110].mxu0  ;;  %v12744_v24 = vpop.eup %12743  ;;  %v10461_v45 = vadd.f32 -1.0, %v12742_v19  ;;  %v3262_v33 = vsel %vm2242_vm6, %v14259_v61, %v10458_v1 }
 0x1fe   : > { %11926 = vmatprep.mubr.msk.bf16.mxu1 %vm3468_vm2, %v4420_v50  ;;  %v2456_v37 = vmin.f32 %v14299_v29, 0.0  ;;  %v14309_v56 = vadd.f32 %v14123_v5, %v11693_v28  ;;  %v1762_v39 = vpop.f32.mrb[111].mxu0  ;;  %v10459_v21 = vadd.f32 -1.0, %v12744_v24  ;;  %v4424_v28 = vld [vmem:[#allocation2 + $0xa0] sm:$0xff]  ;;  %vm2252_vm13 = vcmp.gt.f32.partialorder %v14299_v29, 0.0 }
 0x1ff   : > { %v2454_v36 = vmin.f32 %v14302_v38, 0.0  ;;  %v14316_v10 = vadd.f32 %v14123_v5, %v1762_v39  ;;  %v3265_v0 = vsel %vm2245_vm7, %v14263_v62, %v10461_v45  ;;  %vm2250_vm14 = vcmp.gt.f32.partialorder %v14302_v38, 0.0 }
 0x200   : > { %v11812_v34 = vpop.f32.mrb[16].mxu1  ;;  %v2770_v43 = vmul.f32 1.442695, %v2456_v37  ;;  %v2457_v63 = vmin.f32 %v14309_v56, 0.0  ;;  %v3417_v14 = vpack.c.bf16 %v3265_v0, %v3264_v53  ;;  %v3263_v61 = vsel %vm2243_vm8, %v14267_v9, %v10459_v21 }
 0x201   : > { %4232 = vst.msk [vmem:[#allocation3 + $0x90] sm:$0xff] %vm3468_vm2, %v11812_v34  ;;  %v3895_v54 = vpop.f32.mrb[17].mxu1  ;;  %v2766_v7 = vmul.f32 1.442695, %v2454_v36  ;;  %v2455_v57 = vmin.f32 %v14316_v10, 0.0  ;;  %v12746_v3 = vpop.eup %12745  ;;  %v3416_v49 = vpack.c.bf16 %v3263_v61, %v3262_v33  ;;  %v12436_v36 = vld [vmem:[%s13222_s29 + $0x328] sm:$0xff]  }
 0x202   : > { %4230 = vst.msk [vmem:[#allocation3 + $0x80] sm:$0xff] %vm3468_vm2, %v3895_v54  ;;  %v11813_v16 = vpop.f32.mrb[18].mxu1  ;;  %12753 = vpow2.f32 %v2770_v43  ;;  %v2772_v26 = vmul.f32 1.442695, %v2457_v63  ;;  %v12748_v4 = vpop.eup %12747  ;;  %v10464_v62 = vadd.f32 -1.0, %v12746_v3  ;;  %3520 = vst.msk [vmem:[#allocation2 + $0x198] sm:$0xff] %vm3468_vm2, %v3417_v14 }
 0x203   : > { %4233 = vst.msk [vmem:[#allocation3 + $0x98] sm:$0xff] %vm3468_vm2, %v11813_v16  ;;  %v3898_v42 = vpop.f32.mrb[19].mxu1  ;;  %12755 = vpow2.f32 %v2766_v7  ;;  %v2768_v58 = vmul.f32 1.442695, %v2455_v57  ;;  %v11696_v31 = vpop.f32.mrb[112].mxu0  ;;  %v10462_v9 = vadd.f32 -1.0, %v12748_v4 }
 0x204   : > { %4231 = vst.msk [vmem:[#allocation3 + $0x88] sm:$0xff] %vm3468_vm2, %v3898_v42  ;;  %12757 = vpow2.f32 %v2772_v26  ;;  %v14339_v55 = vadd.f32 %v14123_v5, %v11696_v31  ;;  %v1775_v27 = vpop.f32.mrb[113].mxu0  ;;  %v12750_v35 = vpop.eup %12749  ;;  %3519 = vst.msk [vmem:[#allocation2 + $0x190] sm:$0xff] %vm3468_vm2, %v3416_v49  ;;  %v3268_v51 = vsel %vm2248_vm9, %v14277_v30, %v10464_v62  ;;  %vm2253_vm15 = vcmp.gt.f32.partialorder %v14309_v56, 0.0  ;;  %v12437_v14 = vld [vmem:[%s17204_s3 + $0x38] sm:$0xff]  }
 0x205   : > { %11927 = vmatmul.mubr.msk.bf16.gmra.mrb[124].mxu1 %vm3468_vm2, %v4421_v52  ;;  %12759 = vpow2.f32 %v2768_v58  ;;  %v14342_v60 = vadd.f32 %v14123_v5, %v1775_v27  ;;  %v11697_v15 = vpop.f32.mrb[114].mxu0  ;;  %v12752_v23 = vpop.eup %12751  ;;  %v10465_v25 = vadd.f32 -1.0, %v12750_v35  ;;  %v3266_v59 = vsel %vm2246_vm10, %v14281_v12, %v10462_v9  ;;  %v12434_v12 = vld [vmem:[%s17204_s3 + $0x60] sm:$0xff]   ;;  %12104 = vmatprep.subr.bf16.mxu0 %v12437_v14 }
 0x206   : > { %11930 = vmatprep.mubr.msk.bf16.mxu1 %vm3468_vm2, %v4422_v32  ;;  %v2460_v13 = vmin.f32 %v14339_v55, 0.0  ;;  %v14349_v46 = vadd.f32 %v14123_v5, %v11697_v15  ;;  %v1778_v44 = vpop.f32.mrb[115].mxu0  ;;  %v10463_v8 = vadd.f32 -1.0, %v12752_v23  ;;  %12202 = vmatprep.subr.bf16.mxu1 %v12434_v12  ;;  %vm2256_vm0 = vcmp.gt.f32.partialorder %v14339_v55, 0.0 }
 0x207   : > { %v2458_v17 = vmin.f32 %v14342_v60, 0.0  ;;  %v3269_v30 = vsel %vm2249_vm11, %v14286_v41, %v10465_v25  ;;  %v14368_v47 = vadd.f32 %v14123_v5, %v1778_v44  ;;  %v12435_v41 = vld [vmem:[%s13222_s29 + $0x320] sm:$0xff]   ;;  %12105 = vmatpush3.bf16.msra.mxu0 %v12437_v14  ;;  %vm2254_vm3 = vcmp.gt.f32.partialorder %v14342_v60, 0.0  ;;  %s251_s29 = scalar_lea.vmem %s17207_s6, %s10151_s24 }
 0x208   : > { %v11816_v11 = vpop.f32.mrb[20].mxu1  ;;  %v2778_v20 = vmul.f32 1.442695, %v2460_v13  ;;  %v2461_v34 = vmin.f32 %v14349_v46, 0.0  ;;  %v3419_v54 = vpack.c.bf16 %v3269_v30, %v3268_v51  ;;  %v3267_v37 = vsel %vm2247_vm12, %v14291_v48, %v10463_v8  ;;  %11782 = vmatprep.mubr.msk.bf16.mxu0 %vm982_vm1, %v12435_v41 }
 0x209   : > { %4236 = vst.msk [vmem:[#allocation3 + $0xb0] sm:$0xff] %vm3468_vm2, %v11816_v11  ;;  %v3911_v22 = vpop.f32.mrb[21].mxu1  ;;  %v2774_v2 = vmul.f32 1.442695, %v2458_v17  ;;  %v3418_v39 = vpack.c.bf16 %v3267_v37, %v3266_v59  ;;  %v2459_v42 = vmin.f32 %v14368_v47, 0.0  ;;  %11783 = vmatmul.mubr.msk.bf16.gmra.mrb[200].mxu0 %vm982_vm1, %v12436_v36  ;;  %vm2251_vm1 = vcmp.gt.f32.partialorder %v14316_v10, 0.0 }
 0x20a   : > { %4234 = vst.msk [vmem:[#allocation3 + $0xa0] sm:$0xff] %vm3468_vm2, %v3911_v22  ;;  %v11817_v6 = vpop.f32.mrb[22].mxu1  ;;  %12761 = vpow2.f32 %v2778_v20  ;;  %v2780_v40 = vmul.f32 1.442695, %v2461_v34  ;;  %3522 = vst.msk [vmem:[#allocation2 + $0x1a8] sm:$0xff] %vm3468_vm2, %v3419_v54  ;;  %v4425_v11 = vld [vmem:[#allocation2 + $0xa8] sm:$0xff] }
 0x20b   : > { %4237 = vst.msk [vmem:[#allocation3 + $0xb8] sm:$0xff] %vm3468_vm2, %v11817_v6  ;;  %v3914_v50 = vpop.f32.mrb[23].mxu1  ;;  %12763 = vpow2.f32 %v2774_v2  ;;  %v11700_v16 = vpop.f32.mrb[116].mxu0  ;;  %3521 = vst.msk [vmem:[#allocation2 + $0x1a0] sm:$0xff] %vm3468_vm2, %v3418_v39  ;;  %v2776_v32 = vmul.f32 1.442695, %v2459_v42 }
 0x20c   : > { %4235 = vst.msk [vmem:[#allocation3 + $0xa8] sm:$0xff] %vm3468_vm2, %v3914_v50  ;;  %v12754_v19 = vpop.eup %12753  ;;  %v14384_v1 = vadd.f32 %v14123_v5, %v11700_v16  ;;  %v1791_v48 = vpop.f32.mrb[117].mxu0  ;;  %12765 = vpow2.f32 %v2780_v40  ;;  %vm2257_vm4 = vcmp.gt.f32.partialorder %v14349_v46, 0.0  ;;  %v4427_v42 = vld [vmem:[#allocation2 + $0xb8] sm:$0xff]  ;;  %vm2255_vm5 = vcmp.gt.f32.partialorder %v14368_v47, 0.0 }
 0x20d   : > { %11931 = vmatmul.mubr.msk.bf16.gmra.mrb[128].mxu1 %vm3468_vm2, %v4423_v18  ;;  %v12756_v43 = vpop.eup %12755  ;;  %v10468_v24 = vadd.f32 -1.0, %v12754_v19  ;;  %v14390_v52 = vadd.f32 %v14123_v5, %v1791_v48  ;;  %v11701_v53 = vpop.f32.mrb[118].mxu0  ;;  %12767 = vpow2.f32 %v2776_v32 }
 0x20e   : > { %11934 = vmatprep.mubr.msk.bf16.mxu1 %vm3468_vm2, %v4424_v28  ;;  %v12758_v45 = vpop.eup %12757  ;;  %v10466_v57 = vadd.f32 -1.0, %v12756_v43  ;;  %v2464_v33 = vmin.f32 %v14384_v1, 0.0  ;;  %v1794_v3 = vpop.f32.mrb[119].mxu0  ;;  %v14414_v15 = vadd.f32 %v14123_v5, %v11701_v53  ;;  %v4428_v53 = vld [vmem:[#allocation2 + $0xc0] sm:$0xff]  ;;  %vm2260_vm6 = vcmp.gt.f32.partialorder %v14384_v1, 0.0 }
 0x20f   : > { %v12760_v21 = vpop.eup %12759  ;;  %v3272_v0 = vsel %vm2252_vm13, %v14299_v29, %v10468_v24  ;;  %v10469_v58 = vadd.f32 -1.0, %v12758_v45  ;;  %v2462_v31 = vmin.f32 %v14390_v52, 0.0  ;;  %v14417_v35 = vadd.f32 %v14123_v5, %v1794_v3 }
 0x210   : > { %v11820_v63 = vpop.f32.mrb[24].mxu1  ;;  %v3270_v27 = vsel %vm2250_vm14, %v14302_v38, %v10466_v57  ;;  %v10467_v4 = vadd.f32 -1.0, %v12760_v21  ;;  %v2786_v29 = vmul.f32 1.442695, %v2464_v33  ;;  %v4426_v38 = vld [vmem:[#allocation2 + $0xb0] sm:$0xff]  ;;  %v2465_v13 = vmin.f32 %v14414_v15, 0.0 }
 0x211   : > { %4240 = vst.msk [vmem:[#allocation3 + $0xd0] sm:$0xff] %vm3468_vm2, %v11820_v63  ;;  %v3927_v7 = vpop.f32.mrb[25].mxu1  ;;  %v3273_v49 = vsel %vm2253_vm15, %v14309_v56, %v10469_v58  ;;  %v2782_v62 = vmul.f32 1.442695, %v2462_v31  ;;  %v6267_v23 = vld [vmem:[#allocation2 + $0x1a8] sm:$0xff]  ;;  %v2463_v51 = vmin.f32 %v14417_v35, 0.0 }
 0x212   : > { %4238 = vst.msk [vmem:[#allocation3 + $0xc0] sm:$0xff] %vm3468_vm2, %v3927_v7  ;;  %v11821_v26 = vpop.f32.mrb[26].mxu1  ;;  %v3421_v22 = vpack.c.bf16 %v3273_v49, %v3272_v0  ;;  %v3271_v9 = vsel %vm2251_vm1, %v14316_v10, %v10467_v4  ;;  %12769 = vpow2.f32 %v2786_v29  ;;  %v6266_v10 = vld [vmem:[#allocation2 + $0x1a0] sm:$0xff]  ;;  %v2788_v20 = vmul.f32 1.442695, %v2465_v13 }
 0x213   : > { %4241 = vst.msk [vmem:[#allocation3 + $0xd8] sm:$0xff] %vm3468_vm2, %v11821_v26  ;;  %v3930_v61 = vpop.f32.mrb[27].mxu1  ;;  %v3420_v56 = vpack.c.bf16 %v3271_v9, %v3270_v27  ;;  %12771 = vpow2.f32 %v2782_v62  ;;  %v11704_v44 = vpop.f32.mrb[120].mxu0  ;;  %12106 = vmatprep.mubr.msk.bf16.mxu0 %vm3468_vm2, %v6266_v10  ;;  %v2784_v34 = vmul.f32 1.442695, %v2463_v51  ;;  %vm2258_vm7 = vcmp.gt.f32.partialorder %v14390_v52, 0.0 }
 0x214   : > { %4239 = vst.msk [vmem:[#allocation3 + $0xc8] sm:$0xff] %vm3468_vm2, %v3930_v61  ;;  %v12762_v6 = vpop.eup %12761  ;;  %3524 = vst.msk [vmem:[#allocation2 + $0x1b8] sm:$0xff] %vm3468_vm2, %v3421_v22  ;;  %v14428_v25 = vadd.f32 %v14123_v5, %v11704_v44  ;;  %v1807_v17 = vpop.f32.mrb[121].mxu0  ;;  %12107 = vmatmul.mubr.msk.bf16.vlgmr.msra.gmra.mrb[204].mxu0 %vm3468_vm2, %v6267_v23  ;;  %12773 = vpow2.f32 %v2788_v20  ;;  %v14475_v61 = vld [vmem:[%s17203_s2] ss:$0 sm:$0xff]  ;;  %vm2261_vm8 = vcmp.gt.f32.partialorder %v14414_v15, 0.0 }
 0x215   : > { %11935 = vmatmul.mubr.msk.bf16.gmra.mrb[132].mxu1 %vm3468_vm2, %v4425_v11  ;;  %v12764_v50 = vpop.eup %12763  ;;  %3523 = vst.msk [vmem:[#allocation2 + $0x1b0] sm:$0xff] %vm3468_vm2, %v3420_v56  ;;  %v10472_v8 = vadd.f32 -1.0, %v12762_v6  ;;  %v14433_v18 = vadd.f32 %v14123_v5, %v1807_v17  ;;  %v11705_v30 = vpop.f32.mrb[122].mxu0  ;;  %12775 = vpow2.f32 %v2784_v34  ;;  %v4429_v6 = vld [vmem:[#allocation2 + $0xc8] sm:$0xff]  ;;  %vm2259_vm9 = vcmp.gt.f32.partialorder %v14417_v35, 0.0 }
 0x216   : > { %11938 = vmatprep.mubr.msk.bf16.mxu1 %vm3468_vm2, %v4426_v38  ;;  %v2468_v12 = vmin.f32 %v14428_v25, 0.0  ;;  %v12766_v28 = vpop.eup %12765  ;;  %v10470_v37 = vadd.f32 -1.0, %v12764_v50  ;;  %v1810_v39 = vpop.f32.mrb[123].mxu0  ;;  %v14449_v43 = vadd.f32 %v14123_v5, %v11705_v30  ;;  %v4430_v50 = vld [vmem:[#allocation2 + $0xd0] sm:$0xff]  ;;  %vm2264_vm10 = vcmp.gt.f32.partialorder %v14428_v25, 0.0 }
 0x217   : > { %v2466_v41 = vmin.f32 %v14433_v18, 0.0  ;;  %v3276_v16 = vsel %vm2256_vm0, %v14339_v55, %v10472_v8  ;;  %v10473_v36 = vadd.f32 -1.0, %v12766_v28  ;;  %v14452_v63 = vadd.f32 %v14123_v5, %v1810_v39  ;;  %v12768_v24 = vpop.eup %12767 }
 0x218   : > { %v11824_v59 = vpop.f32.mrb[28].mxu1  ;;  %v2794_v19 = vmul.f32 1.442695, %v2468_v12  ;;  %v3274_v45 = vsel %vm2254_vm3, %v14342_v60, %v10470_v37  ;;  %v10471_v57 = vadd.f32 -1.0, %v12768_v24  ;;  %v2469_v26 = vmin.f32 %v14449_v43, 0.0 }
 0x219   : > { %4244 = vst.msk [vmem:[#allocation3 + $0xf0] sm:$0xff] %vm3468_vm2, %v11824_v59  ;;  %v3943_v2 = vpop.f32.mrb[29].mxu1  ;;  %v2790_v48 = vmul.f32 1.442695, %v2466_v41  ;;  %v3277_v55 = vsel %vm2257_vm4, %v14349_v46, %v10473_v36  ;;  %v2467_v0 = vmin.f32 %v14452_v63, 0.0  ;;  %vm2262_vm11 = vcmp.gt.f32.partialorder %v14433_v18, 0.0 }
 0x21a   : > { %4242 = vst.msk [vmem:[#allocation3 + $0xe0] sm:$0xff] %vm3468_vm2, %v3943_v2  ;;  %v11825_v54 = vpop.f32.mrb[30].mxu1  ;;  %12777 = vpow2.f32 %v2794_v19  ;;  %v3423_v7 = vpack.c.bf16 %v3277_v55, %v3276_v16  ;;  %v3275_v60 = vsel %vm2255_vm5, %v14368_v47, %v10471_v57  ;;  %v2796_v49 = vmul.f32 1.442695, %v2469_v26 }
 0x21b   : > { %4245 = vst.msk [vmem:[#allocation3 + $0xf8] sm:$0xff] %vm3468_vm2, %v11825_v54  ;;  %v3946_v40 = vpop.f32.mrb[31].mxu1  ;;  %12779 = vpow2.f32 %v2790_v48  ;;  %v6269_v33 = vld [vmem:[#allocation2 + $0x1b8] sm:$0xff]  ;;  %v3422_v29 = vpack.c.bf16 %v3275_v60, %v3274_v45  ;;  %v2792_v62 = vmul.f32 1.442695, %v2467_v0  ;;  %vm2265_vm12 = vcmp.gt.f32.partialorder %v14449_v43, 0.0 }
 0x21c   : > { %4243 = vst.msk [vmem:[#allocation3 + $0xe8] sm:$0xff] %vm3468_vm2, %v3946_v40  ;;  %v11708_v32 = vpop.f32.mrb[124].mxu0  ;;  %v12770_v21 = vpop.eup %12769  ;;  %v6268_v31 = vld [vmem:[#allocation2 + $0x1b0] sm:$0xff]  ;;  %3526 = vst.msk [vmem:[#allocation2 + $0x1c8] sm:$0xff] %vm3468_vm2, %v3423_v7  ;;  %12781 = vpow2.f32 %v2796_v49  ;;  %v4431_v0 = vld [vmem:[#allocation2 + $0xd8] sm:$0xff]  ;;  %vm2263_vm13 = vcmp.gt.f32.partialorder %v14452_v63, 0.0 }
 0x21d   : > { %11939 = vmatmul.mubr.msk.bf16.gmra.mrb[136].mxu1 %vm3468_vm2, %v4427_v42  ;;  %v14466_v46 = vadd.f32 %v14123_v5, %v11708_v32  ;;  %v1823_v58 = vpop.f32.mrb[125].mxu0  ;;  %v12772_v3 = vpop.eup %12771  ;;  %12110 = vmatprep.mubr.msk.bf16.mxu0 %vm3468_vm2, %v6268_v31  ;;  %v10476_v11 = vadd.f32 -1.0, %v12770_v21  ;;  %3525 = vst.msk [vmem:[#allocation2 + $0x1c0] sm:$0xff] %vm3468_vm2, %v3422_v29  ;;  %12783 = vpow2.f32 %v2792_v62 }
 0x21e   : > { %11942 = vmatprep.mubr.msk.bf16.mxu1 %vm3468_vm2, %v4428_v53  ;;  %v14478_v27 = vadd.f32 %v14475_v61, %v1823_v58  ;;  %v11709_v5 = vpop.f32.mrb[126].mxu0  ;;  %12111 = vmatmul.mubr.msk.bf16.gmra.mrb[208].mxu0 %vm3468_vm2, %v6269_v33  ;;  %v10474_v38 = vadd.f32 -1.0, %v12772_v3  ;;  %v12774_v23 = vpop.eup %12773 }
 0x21f   : > { %v2472_v22 = vmin.f32 %v14466_v46, 0.0  ;;  %v1826_v9 = vpop.f32.mrb[127].mxu0  ;;  %v14492_v44 = vadd.f32 %v14475_v61, %v11709_v5  ;;  %v12776_v10 = vpop.eup %12775  ;;  %v3280_v59 = vsel %vm2260_vm6, %v14384_v1, %v10476_v11  ;;  %v10477_v8 = vadd.f32 -1.0, %v12774_v23 }
 0x220   : > { %v11828_v14 = vpop.f32.mrb[32].mxu1  ;;  %v2470_v13 = vmin.f32 %v14478_v27, 0.0  ;;  %v14497_v17 = vadd.f32 %v14475_v61, %v1826_v9  ;;  %v3278_v2 = vsel %vm2258_vm7, %v14390_v52, %v10474_v38  ;;  %v10475_v34 = vadd.f32 -1.0, %v12776_v10 }
 0x221   : > { %4248 = vst.msk [vmem:[#allocation3 + $0x110] sm:$0xff] %vm3468_vm2, %v11828_v14  ;;  %v3959_v4 = vpop.f32.mrb[33].mxu1  ;;  %v2802_v51 = vmul.f32 1.442695, %v2472_v22  ;;  %v2473_v30 = vmin.f32 %v14492_v44, 0.0  ;;  %v3281_v1 = vsel %vm2261_vm8, %v14414_v15, %v10477_v8  ;;  %v4432_v14 = vld [vmem:[#allocation2 + $0xe0] sm:$0xff] }
 0x222   : > { %4246 = vst.msk [vmem:[#allocation3 + $0x100] sm:$0xff] %vm3468_vm2, %v3959_v4  ;;  %v11829_v47 = vpop.f32.mrb[34].mxu1  ;;  %v2798_v20 = vmul.f32 1.442695, %v2470_v13  ;;  %v2471_v12 = vmin.f32 %v14497_v17, 0.0  ;;  %v3425_v36 = vpack.c.bf16 %v3281_v1, %v3280_v59  ;;  %v3279_v52 = vsel %vm2259_vm9, %v14417_v35, %v10475_v34 }
 0x223   : > { %4249 = vst.msk [vmem:[#allocation3 + $0x118] sm:$0xff] %vm3468_vm2, %v11829_v47  ;;  %v3962_v56 = vpop.f32.mrb[35].mxu1  ;;  %12785 = vpow2.f32 %v2802_v51  ;;  %v2804_v37 = vmul.f32 1.442695, %v2473_v30  ;;  %v3424_v24 = vpack.c.bf16 %v3279_v52, %v3278_v2  ;;  %v6271_v55 = vld [vmem:[#allocation2 + $0x1c8] sm:$0xff]  ;;  %vm2268_vm14 = vcmp.gt.f32.partialorder %v14466_v46, 0.0 }
 0x224   : > { %4247 = vst.msk [vmem:[#allocation3 + $0x108] sm:$0xff] %vm3468_vm2, %v3962_v56  ;;  %v11712_v28 = vpop.f32.mrb[128].mxu0  ;;  %v12778_v54 = vpop.eup %12777  ;;  %12787 = vpow2.f32 %v2798_v20  ;;  %v2800_v19 = vmul.f32 1.442695, %v2471_v12  ;;  %3528 = vst.msk [vmem:[#allocation2 + $0x1d8] sm:$0xff] %vm3468_vm2, %v3425_v36  ;;  %v6270_v32 = vld [vmem:[#allocation2 + $0x1c0] sm:$0xff] }
 0x225   : > { %11943 = vmatmul.mubr.msk.bf16.gmra.mrb[140].mxu1 %vm3468_vm2, %v4429_v6  ;;  %v14513_v41 = vadd.f32 %v14475_v61, %v11712_v28  ;;  %v1839_v39 = vpop.f32.mrb[129].mxu0  ;;  %v12780_v40 = vpop.eup %12779  ;;  %v10480_v15 = vadd.f32 -1.0, %v12778_v54  ;;  %12789 = vpow2.f32 %v2804_v37  ;;  %3527 = vst.msk [vmem:[#allocation2 + $0x1d0] sm:$0xff] %vm3468_vm2, %v3424_v24  ;;  %12114 = vmatprep.mubr.msk.bf16.mxu0 %vm3468_vm2, %v6270_v32  ;;  %vm2266_vm15 = vcmp.gt.f32.partialorder %v14478_v27, 0.0 }
 0x226   : > { %11946 = vmatprep.mubr.msk.bf16.mxu1 %vm3468_vm2, %v4430_v50  ;;  %v11713_v42 = vpop.f32.mrb[130].mxu0  ;;  %v10478_v7 = vadd.f32 -1.0, %v12780_v40  ;;  %12791 = vpow2.f32 %v2800_v19  ;;  %v14524_v57 = vadd.f32 %v14475_v61, %v1839_v39  ;;  %12115 = vmatmul.mubr.msk.bf16.gmra.mrb[212].mxu0 %vm3468_vm2, %v6271_v55  ;;  %v12782_v3 = vpop.eup %12781  ;;  %vm2269_vm1 = vcmp.gt.f32.partialorder %v14492_v44, 0.0  ;;  %v4433_v40 = vld [vmem:[#allocation2 + $0xe8] sm:$0xff] }
 0x227   : > { %v1842_v53 = vpop.f32.mrb[131].mxu0  ;;  %v2476_v35 = vmin.f32 %v14513_v41, 0.0  ;;  %v14530_v21 = vadd.f32 %v14475_v61, %v11713_v42  ;;  %v3284_v60 = vsel %vm2264_vm10, %v14428_v25, %v10480_v15  ;;  %v12784_v29 = vpop.eup %12783  ;;  %v10481_v49 = vadd.f32 -1.0, %v12782_v3  ;;  %v4434_v42 = vld [vmem:[#allocation2 + $0xf0] sm:$0xff] }
 0x228   : > { %v11832_v16 = vpop.f32.mrb[36].mxu1  ;;  %v14534_v26 = vadd.f32 %v14475_v61, %v1842_v53  ;;  %v2474_v31 = vmin.f32 %v14524_v57, 0.0  ;;  %v3282_v11 = vsel %vm2262_vm11, %v14433_v18, %v10478_v7  ;;  %v10479_v38 = vadd.f32 -1.0, %v12784_v29 }
 0x229   : > { %4252 = vst.msk [vmem:[#allocation3 + $0x130] sm:$0xff] %vm3468_vm2, %v11832_v16  ;;  %v3975_v48 = vpop.f32.mrb[37].mxu1  ;;  %v2810_v58 = vmul.f32 1.442695, %v2476_v35  ;;  %v2477_v5 = vmin.f32 %v14530_v21, 0.0  ;;  %v3285_v6 = vsel %vm2265_vm12, %v14449_v43, %v10481_v49  ;;  %vm2267_vm0 = vcmp.gt.f32.partialorder %v14497_v17, 0.0 }
 0x22a   : > { %4250 = vst.msk [vmem:[#allocation3 + $0x120] sm:$0xff] %vm3468_vm2, %v3975_v48  ;;  %v11833_v45 = vpop.f32.mrb[38].mxu1  ;;  %v2475_v4 = vmin.f32 %v14534_v26, 0.0  ;;  %v2806_v62 = vmul.f32 1.442695, %v2474_v31  ;;  %v3427_v59 = vpack.c.bf16 %v3285_v6, %v3284_v60  ;;  %v3283_v8 = vsel %vm2263_vm13, %v14452_v63, %v10479_v38  ;;  %v4435_v6 = vld [vmem:[#allocation2 + $0xf8] sm:$0xff] }
 0x22b   : > { %4253 = vst.msk [vmem:[#allocation3 + $0x138] sm:$0xff] %vm3468_vm2, %v11833_v45  ;;  %v3978_v33 = vpop.f32.mrb[39].mxu1  ;;  %12793 = vpow2.f32 %v2810_v58  ;;  %v2812_v22 = vmul.f32 1.442695, %v2477_v5  ;;  %v6273_v43 = vld [vmem:[#allocation2 + $0x1d8] sm:$0xff]  ;;  %v3426_v34 = vpack.c.bf16 %v3283_v8, %v3282_v11  ;;  %vm2272_vm3 = vcmp.gt.f32.partialorder %v14513_v41, 0.0 }
 0x22c   : > { %4251 = vst.msk [vmem:[#allocation3 + $0x128] sm:$0xff] %vm3468_vm2, %v3978_v33  ;;  %v11716_v47 = vpop.f32.mrb[132].mxu0  ;;  %v2808_v25 = vmul.f32 1.442695, %v2475_v4  ;;  %12795 = vpow2.f32 %v2806_v62  ;;  %v6272_v28 = vld [vmem:[#allocation2 + $0x1d0] sm:$0xff]  ;;  %3530 = vst.msk [vmem:[#allocation2 + $0x1e8] sm:$0xff] %vm3468_vm2, %v3427_v59 }
 0x22d   : > { %11947 = vmatmul.mubr.msk.bf16.gmra.mrb[144].mxu1 %vm3468_vm2, %v4431_v0  ;;  %v14552_v9 = vadd.f32 %v14475_v61, %v11716_v47  ;;  %v1855_v56 = vpop.f32.mrb[133].mxu0  ;;  %v12786_v13 = vpop.eup %12785  ;;  %12797 = vpow2.f32 %v2812_v22  ;;  %12118 = vmatprep.mubr.msk.bf16.mxu0 %vm3468_vm2, %v6272_v28  ;;  %3529 = vst.msk [vmem:[#allocation2 + $0x1e0] sm:$0xff] %vm3468_vm2, %v3426_v34  ;;  %vm2270_vm4 = vcmp.gt.f32.partialorder %v14524_v57, 0.0  ;;  %vm2273_vm5 = vcmp.gt.f32.partialorder %v14530_v21, 0.0 }
 0x22e   : > { %11950 = vmatprep.mubr.msk.bf16.mxu1 %vm3468_vm2, %v4432_v14  ;;  %v14559_v18 = vadd.f32 %v14475_v61, %v1855_v56  ;;  %v11717_v51 = vpop.f32.mrb[134].mxu0  ;;  %v12788_v10 = vpop.eup %12787  ;;  %v10484_v20 = vadd.f32 -1.0, %v12786_v13  ;;  %12799 = vpow2.f32 %v2808_v25  ;;  %12119 = vmatmul.mubr.msk.bf16.gmra.mrb[216].mxu0 %vm3468_vm2, %v6273_v43  ;;  %vm2271_vm6 = vcmp.gt.f32.partialorder %v14534_v26, 0.0  ;;  %v13141_v43 = vld [vmem:[#allocation2 + $0x100] sm:$0xff] }
 0x22f   : > { %v1858_v30 = vpop.f32.mrb[135].mxu0  ;;  %v10482_v12 = vadd.f32 -1.0, %v12788_v10  ;;  %v12790_v54 = vpop.eup %12789  ;;  %v2480_v63 = vmin.f32 %v14552_v9, 0.0  ;;  %v14580_v52 = vadd.f32 %v14475_v61, %v11717_v51  ;;  %vm2276_vm7 = vcmp.gt.f32.partialorder %v14552_v9, 0.0 }
 0x230   : > { %v11836_v23 = vpop.f32.mrb[40].mxu1  ;;  %v2478_v37 = vmin.f32 %v14559_v18, 0.0  ;;  %v12792_v39 = vpop.eup %12791  ;;  %v3288_v16 = vsel %vm2268_vm14, %v14466_v46, %v10484_v20  ;;  %v10485_v36 = vadd.f32 -1.0, %v12790_v54  ;;  %v14583_v19 = vadd.f32 %v14475_v61, %v1858_v30 }
 0x231   : > { %4256 = vst.msk [vmem:[#allocation3 + $0x150] sm:$0xff] %vm3468_vm2, %v11836_v23  ;;  %v3991_v50 = vpop.f32.mrb[41].mxu1  ;;  %v3286_v48 = vsel %vm2266_vm15, %v14478_v27, %v10482_v12  ;;  %v10483_v24 = vadd.f32 -1.0, %v12792_v39  ;;  %v2818_v15 = vmul.f32 1.442695, %v2480_v63  ;;  %v2481_v55 = vmin.f32 %v14580_v52, 0.0 }
 0x232   : > { %4254 = vst.msk [vmem:[#allocation3 + $0x140] sm:$0xff] %vm3468_vm2, %v3991_v50  ;;  %v11837_v2 = vpop.f32.mrb[42].mxu1  ;;  %v2814_v53 = vmul.f32 1.442695, %v2478_v37  ;;  %v3289_v46 = vsel %vm2269_vm1, %v14492_v44, %v10485_v36  ;;  %v2479_v27 = vmin.f32 %v14583_v19, 0.0  ;;  %vm2274_vm8 = vcmp.gt.f32.partialorder %v14559_v18, 0.0 }
 0x233   : > { %4257 = vst.msk [vmem:[#allocation3 + $0x158] sm:$0xff] %vm3468_vm2, %v11837_v2  ;;  %v3994_v1 = vpop.f32.mrb[43].mxu1  ;;  %v3429_v7 = vpack.c.bf16 %v3289_v46, %v3288_v16  ;;  %v3287_v35 = vsel %vm2267_vm0, %v14497_v17, %v10483_v24  ;;  %12801 = vpow2.f32 %v2818_v15  ;;  %v2820_v31 = vmul.f32 1.442695, %v2481_v55  ;;  %v6275_v38 = vld [vmem:[#allocation2 + $0x1e8] sm:$0xff] }
 0x234   : > { %4255 = vst.msk [vmem:[#allocation3 + $0x148] sm:$0xff] %vm3468_vm2, %v3994_v1  ;;  %v11720_v45 = vpop.f32.mrb[136].mxu0  ;;  %v3428_v58 = vpack.c.bf16 %v3287_v35, %v3286_v48  ;;  %12803 = vpow2.f32 %v2814_v53  ;;  %v2816_v17 = vmul.f32 1.442695, %v2479_v27  ;;  %v6274_v13 = vld [vmem:[#allocation2 + $0x1e0] sm:$0xff]  ;;  %vm2277_vm9 = vcmp.gt.f32.partialorder %v14580_v52, 0.0 }
 0x235   : > { %11951 = vmatmul.mubr.msk.bf16.gmra.mrb[148].mxu1 %vm3468_vm2, %v4433_v40  ;;  %v1871_v32 = vpop.f32.mrb[137].mxu0  ;;  %v12794_v33 = vpop.eup %12793  ;;  %v14601_v44 = vadd.f32 %v14475_v61, %v11720_v45  ;;  %3532 = vst.msk [vmem:[#allocation2 + $0x1f8] sm:$0xff] %vm3468_vm2, %v3429_v7  ;;  %12805 = vpow2.f32 %v2820_v31  ;;  %12122 = vmatprep.mubr.msk.bf16.mxu0 %vm3468_vm2, %v6274_v13  ;;  %vm2275_vm10 = vcmp.gt.f32.partialorder %v14583_v19, 0.0 }
 0x236   : > { %11954 = vmatprep.mubr.msk.bf16.mxu1 %vm3468_vm2, %v4434_v42  ;;  %v11721_v3 = vpop.f32.mrb[138].mxu0  ;;  %v10488_v60 = vadd.f32 -1.0, %v12794_v33  ;;  %v14606_v5 = vadd.f32 %v14475_v61, %v1871_v32  ;;  %v12796_v11 = vpop.eup %12795  ;;  %3531 = vst.msk [vmem:[#allocation2 + $0x1f0] sm:$0xff] %vm3468_vm2, %v3428_v58  ;;  %12807 = vpow2.f32 %v2816_v17  ;;  %12123 = vmatmul.mubr.msk.bf16.gmra.mrb[220].mxu0 %vm3468_vm2, %v6275_v38 }
 0x237   : > { %v14609_v4 = vadd.f32 %v14475_v61, %v11721_v3  ;;  %v1874_v29 = vpop.f32.mrb[139].mxu0  ;;  %v2484_v62 = vmin.f32 %v14601_v44, 0.0  ;;  %v12798_v22 = vpop.eup %12797  ;;  %v10486_v56 = vadd.f32 -1.0, %v12796_v11  ;;  %v13143_v11 = vld [vmem:[#allocation2 + $0x110] sm:$0xff]  ;;  %vm2280_vm11 = vcmp.gt.f32.partialorder %v14601_v44, 0.0 }
 0x238   : > { %v11840_v0 = vpop.f32.mrb[44].mxu1  ;;  %v14616_v47 = vadd.f32 %v14475_v61, %v1874_v29  ;;  %v12800_v23 = vpop.eup %12799  ;;  %v3292_v51 = vsel %vm2272_vm3, %v14513_v41, %v10488_v60  ;;  %v10489_v10 = vadd.f32 -1.0, %v12798_v22  ;;  %v2482_v59 = vmin.f32 %v14606_v5, 0.0 }
 0x239   : > { %4260 = vst.msk [vmem:[#allocation3 + $0x170] sm:$0xff] %vm3468_vm2, %v11840_v0  ;;  %v4007_v14 = vpop.f32.mrb[45].mxu1  ;;  %v2826_v50 = vmul.f32 1.442695, %v2484_v62  ;;  %v3290_v8 = vsel %vm2270_vm4, %v14524_v57, %v10486_v56  ;;  %v10487_v20 = vadd.f32 -1.0, %v12800_v23  ;;  %v2485_v30 = vmin.f32 %v14609_v4, 0.0 }
 0x23a   : > { %4258 = vst.msk [vmem:[#allocation3 + $0x160] sm:$0xff] %vm3468_vm2, %v4007_v14  ;;  %v11841_v49 = vpop.f32.mrb[46].mxu1  ;;  %v3293_v41 = vsel %vm2273_vm5, %v14530_v21, %v10489_v10  ;;  %v2822_v2 = vmul.f32 1.442695, %v2482_v59  ;;  %v2483_v34 = vmin.f32 %v14616_v47, 0.0  ;;  %v13142_v14 = vld [vmem:[#allocation2 + $0x108] sm:$0xff] }
 0x23b   : > { %4261 = vst.msk [vmem:[#allocation3 + $0x178] sm:$0xff] %vm3468_vm2, %v11841_v49  ;;  %v4010_v25 = vpop.f32.mrb[47].mxu1  ;;  %12809 = vpow2.f32 %v2826_v50  ;;  %v3431_v28 = vpack.c.bf16 %v3293_v41, %v3292_v51  ;;  %v3291_v57 = vsel %vm2271_vm6, %v14534_v26, %v10487_v20  ;;  %v2828_v54 = vmul.f32 1.442695, %v2485_v30 }
 0x23c   : > { %4259 = vst.msk [vmem:[#allocation3 + $0x168] sm:$0xff] %vm3468_vm2, %v4010_v25  ;;  %v11724_v12 = vpop.f32.mrb[140].mxu0  ;;  %v3430_v39 = vpack.c.bf16 %v3291_v57, %v3290_v8  ;;  %12811 = vpow2.f32 %v2822_v2  ;;  %v2824_v40 = vmul.f32 1.442695, %v2483_v34  ;;  %v6277_v7 = vld [vmem:[#allocation2 + $0x1f8] sm:$0xff]  ;;  %vm2278_vm12 = vcmp.gt.f32.partialorder %v14606_v5, 0.0 }
 0x23d   : > { %11955 = vmatmul.mubr.msk.bf16.gmra.mrb[152].mxu1 %vm3468_vm2, %v4435_v6  ;;  %v14642_v1 = vadd.f32 %v14475_v61, %v11724_v12  ;;  %v1887_v63 = vpop.f32.mrb[141].mxu0  ;;  %v12802_v36 = vpop.eup %12801  ;;  %3534 = vst.msk [vmem:[#allocation2 + $0x208] sm:$0xff] %vm3468_vm2, %v3431_v28  ;;  %12813 = vpow2.f32 %v2828_v54  ;;  %v6276_v24 = vld [vmem:[#allocation2 + $0x1f0] sm:$0xff]  ;;  %vm2281_vm13 = vcmp.gt.f32.partialorder %v14609_v4, 0.0  ;;  %vm2279_vm14 = vcmp.gt.f32.partialorder %v14616_v47, 0.0 }
 0x23e   : > { %11958 = vmatprep.mubr.msk.bf16.mxu1 %vm3468_vm2, %v13141_v43  ;;  %v14645_v21 = vadd.f32 %v14475_v61, %v1887_v63  ;;  %v11725_v16 = vpop.f32.mrb[142].mxu0  ;;  %v12804_v53 = vpop.eup %12803  ;;  %3533 = vst.msk [vmem:[#allocation2 + $0x200] sm:$0xff] %vm3468_vm2, %v3430_v39  ;;  %v10492_v55 = vadd.f32 -1.0, %v12802_v36  ;;  %12815 = vpow2.f32 %v2824_v40  ;;  %12126 = vmatprep.mubr.msk.bf16.mxu0 %vm3468_vm2, %v6276_v24 }
 0x23f   : > { %v2488_v26 = vmin.f32 %v14642_v1, 0.0  ;;  %v14651_v48 = vadd.f32 %v14475_v61, %v11725_v16  ;;  %v1890_v15 = vpop.f32.mrb[143].mxu0  ;;  %v10490_v27 = vadd.f32 -1.0, %v12804_v53  ;;  %v12806_v0 = vpop.eup %12805  ;;  %12127 = vmatmul.mubr.msk.bf16.gmra.mrb[224].mxu0 %vm3468_vm2, %v6277_v7  ;;  %vm2284_vm15 = vcmp.gt.f32.partialorder %v14642_v1, 0.0  ;;  %v13145_v53 = vld [vmem:[#allocation2 + $0x120] sm:$0xff] }
 0x240   : > { %v11844_v37 = vpop.f32.mrb[48].mxu1  ;;  %v2486_v45 = vmin.f32 %v14645_v21, 0.0  ;;  %v14665_v31 = vadd.f32 %v14475_v61, %v1890_v15  ;;  %v12808_v3 = vpop.eup %12807  ;;  %v3296_v60 = vsel %vm2276_vm7, %v14552_v9, %v10492_v55  ;;  %v10493_v17 = vadd.f32 -1.0, %v12806_v0 }
 0x241   : > { %4264 = vst.msk [vmem:[#allocation3 + $0x190] sm:$0xff] %vm3468_vm2, %v11844_v37  ;;  %v4023_v42 = vpop.f32.mrb[49].mxu1  ;;  %v2834_v32 = vmul.f32 1.442695, %v2488_v26  ;;  %v2489_v33 = vmin.f32 %v14651_v48, 0.0  ;;  %v3294_v49 = vsel %vm2274_vm8, %v14559_v18, %v10490_v27  ;;  %v10491_v62 = vadd.f32 -1.0, %v12808_v3 }
 0x242   : > { %4262 = vst.msk [vmem:[#allocation3 + $0x180] sm:$0xff] %vm3468_vm2, %v4023_v42  ;;  %v11845_v46 = vpop.f32.mrb[50].mxu1  ;;  %v2830_v58 = vmul.f32 1.442695, %v2486_v45  ;;  %v2487_v38 = vmin.f32 %v14665_v31, 0.0  ;;  %v3297_v9 = vsel %vm2277_vm9, %v14580_v52, %v10493_v17  ;;  %v13144_v26 = vld [vmem:[#allocation2 + $0x118] sm:$0xff] }
 0x243   : > { %4265 = vst.msk [vmem:[#allocation3 + $0x198] sm:$0xff] %vm3468_vm2, %v11845_v46  ;;  %v4026_v35 = vpop.f32.mrb[51].mxu1  ;;  %12817 = vpow2.f32 %v2834_v32  ;;  %v2836_v29 = vmul.f32 1.442695, %v2489_v33  ;;  %v3433_v6 = vpack.c.bf16 %v3297_v9, %v3296_v60  ;;  %v3295_v18 = vsel %vm2275_vm10, %v14583_v19, %v10491_v62 }
 0x244   : > { %4263 = vst.msk [vmem:[#allocation3 + $0x188] sm:$0xff] %vm3468_vm2, %v4026_v35  ;;  %12819 = vpow2.f32 %v2830_v58  ;;  %v11728_v22 = vpop.f32.mrb[144].mxu0  ;;  %v2832_v51 = vmul.f32 1.442695, %v2487_v38  ;;  %v3432_v59 = vpack.c.bf16 %v3295_v18, %v3294_v49  ;;  %v6279_v12 = vld [vmem:[#allocation2 + $0x208] sm:$0xff]  ;;  %vm2282_vm1 = vcmp.gt.f32.partialorder %v14645_v21, 0.0 }
 0x245   : > { %11959 = vmatmul.mubr.msk.bf16.gmra.mrb[156].mxu1 %vm3468_vm2, %v13142_v14  ;;  %12821 = vpow2.f32 %v2836_v29  ;;  %v14682_v25 = vadd.f32 %v14475_v61, %v11728_v22  ;;  %v1903_v56 = vpop.f32.mrb[145].mxu0  ;;  %v12810_v13 = vpop.eup %12809  ;;  %v6278_v30 = vld [vmem:[#allocation2 + $0x200] sm:$0xff]  ;;  %3536 = vst.msk [vmem:[#allocation2 + $0x218] sm:$0xff] %vm3468_vm2, %v3433_v6  ;;  %vm2285_vm0 = vcmp.gt.f32.partialorder %v14651_v48, 0.0  ;;  %vm2283_vm3 = vcmp.gt.f32.partialorder %v14665_v31, 0.0 }
 0x246   : > { %11962 = vmatprep.mubr.msk.bf16.mxu1 %vm3468_vm2, %v13143_v11  ;;  %v14688_v10 = vadd.f32 %v14475_v61, %v1903_v56  ;;  %v11729_v50 = vpop.f32.mrb[146].mxu0  ;;  %v10496_v8 = vadd.f32 -1.0, %v12810_v13  ;;  %v12812_v41 = vpop.eup %12811  ;;  %12823 = vpow2.f32 %v2832_v51  ;;  %12130 = vmatprep.mubr.msk.bf16.mxu0 %vm3468_vm2, %v6278_v30  ;;  %3535 = vst.msk [vmem:[#allocation2 + $0x210] sm:$0xff] %vm3468_vm2, %v3432_v59 }
 0x247   : > { %v2492_v20 = vmin.f32 %v14682_v25, 0.0  ;;  %v1906_v43 = vpop.f32.mrb[147].mxu0  ;;  %v14698_v34 = vadd.f32 %v14475_v61, %v11729_v50  ;;  %v12814_v28 = vpop.eup %12813  ;;  %v10494_v54 = vadd.f32 -1.0, %v12812_v41  ;;  %12131 = vmatmul.mubr.msk.bf16.gmra.mrb[228].mxu0 %vm3468_vm2, %v6279_v12  ;;  %v13147_v41 = vld [vmem:[#allocation2 + $0x130] sm:$0xff]  ;;  %vm2288_vm4 = vcmp.gt.f32.partialorder %v14682_v25, 0.0 }
 0x248   : > { %v11848_v23 = vpop.f32.mrb[52].mxu1  ;;  %v2490_v2 = vmin.f32 %v14688_v10, 0.0  ;;  %v14705_v37 = vadd.f32 %v14475_v61, %v1906_v43  ;;  %v12816_v39 = vpop.eup %12815  ;;  %v3300_v40 = vsel %vm2280_vm11, %v14601_v44, %v10496_v8  ;;  %v10497_v16 = vadd.f32 -1.0, %v12814_v28  ;;  %v13146_v8 = vld [vmem:[#allocation2 + $0x128] sm:$0xff] }
 0x249   : > { %4268 = vst.msk [vmem:[#allocation3 + $0x1b0] sm:$0xff] %vm3468_vm2, %v11848_v23  ;;  %v4039_v52 = vpop.f32.mrb[53].mxu1  ;;  %v2842_v63 = vmul.f32 1.442695, %v2492_v20  ;;  %v2493_v42 = vmin.f32 %v14698_v34, 0.0  ;;  %v3298_v24 = vsel %vm2278_vm12, %v14606_v5, %v10494_v54  ;;  %v10495_v15 = vadd.f32 -1.0, %v12816_v39 }
 0x24a   : > { %4266 = vst.msk [vmem:[#allocation3 + $0x1a0] sm:$0xff] %vm3468_vm2, %v4039_v52  ;;  %v11849_v19 = vpop.f32.mrb[54].mxu1  ;;  %v2838_v36 = vmul.f32 1.442695, %v2490_v2  ;;  %v3301_v44 = vsel %vm2281_vm13, %v14609_v4, %v10497_v16  ;;  %v2491_v55 = vmin.f32 %v14705_v37, 0.0  ;;  %vm2286_vm5 = vcmp.gt.f32.partialorder %v14688_v10, 0.0 }
 0x24b   : > { %4269 = vst.msk [vmem:[#allocation3 + $0x1b8] sm:$0xff] %vm3468_vm2, %v11849_v19  ;;  %v4042_v57 = vpop.f32.mrb[55].mxu1  ;;  %12825 = vpow2.f32 %v2842_v63  ;;  %v2844_v46 = vmul.f32 1.442695, %v2493_v42  ;;  %v3435_v5 = vpack.c.bf16 %v3301_v44, %v3300_v40  ;;  %v3299_v35 = vsel %vm2279_vm14, %v14616_v47, %v10495_v15 }
 0x24c   : > { %4267 = vst.msk [vmem:[#allocation3 + $0x1a8] sm:$0xff] %vm3468_vm2, %v4042_v57  ;;  %12827 = vpow2.f32 %v2838_v36  ;;  %v11732_v45 = vpop.f32.mrb[148].mxu0  ;;  %v3434_v4 = vpack.c.bf16 %v3299_v35, %v3298_v24  ;;  %v2840_v3 = vmul.f32 1.442695, %v2491_v55  ;;  %v6281_v13 = vld [vmem:[#allocation2 + $0x218] sm:$0xff]  ;;  %vm2289_vm6 = vcmp.gt.f32.partialorder %v14698_v34, 0.0 }
 0x24d   : > { %11963 = vmatmul.mubr.msk.bf16.gmra.mrb[160].mxu1 %vm3468_vm2, %v13144_v26  ;;  %v12818_v7 = vpop.eup %12817  ;;  %v14728_v27 = vadd.f32 %v14475_v61, %v11732_v45  ;;  %v1919_v32 = vpop.f32.mrb[149].mxu0  ;;  %12829 = vpow2.f32 %v2844_v46  ;;  %3538 = vst.msk [vmem:[#allocation2 + $0x228] sm:$0xff] %vm3468_vm2, %v3435_v5  ;;  %v6280_v56 = vld [vmem:[#allocation2 + $0x210] sm:$0xff]  ;;  %vm2287_vm7 = vcmp.gt.f32.partialorder %v14705_v37, 0.0 }
 0x24e   : > { %11966 = vmatprep.mubr.msk.bf16.mxu1 %vm3468_vm2, %v13145_v53  ;;  %v12820_v33 = vpop.eup %12819  ;;  %v10500_v58 = vadd.f32 -1.0, %v12818_v7  ;;  %v11733_v14 = vpop.f32.mrb[150].mxu0  ;;  %v14735_v11 = vadd.f32 %v14475_v61, %v1919_v32  ;;  %3537 = vst.msk [vmem:[#allocation2 + $0x220] sm:$0xff] %vm3468_vm2, %v3434_v4  ;;  %12831 = vpow2.f32 %v2840_v3  ;;  %12134 = vmatprep.mubr.msk.bf16.mxu0 %vm3468_vm2, %v6280_v56 }
 0x24f   : > { %v12822_v60 = vpop.eup %12821  ;;  %v10498_v47 = vadd.f32 -1.0, %v12820_v33  ;;  %v2496_v29 = vmin.f32 %v14728_v27, 0.0  ;;  %v1922_v49 = vpop.f32.mrb[151].mxu0  ;;  %v14743_v9 = vadd.f32 %v14475_v61, %v11733_v14  ;;  %12135 = vmatmul.mubr.msk.bf16.gmra.mrb[232].mxu0 %vm3468_vm2, %v6281_v13  ;;  %v13148_v14 = vld [vmem:[#allocation2 + $0x138] sm:$0xff]  ;;  %vm2292_vm8 = vcmp.gt.f32.partialorder %v14728_v27, 0.0 }
 0x250   : > { %v11852_v0 = vpop.f32.mrb[56].mxu1  ;;  %v3304_v38 = vsel %vm2284_vm15, %v14642_v1, %v10500_v58  ;;  %v10501_v22 = vadd.f32 -1.0, %v12822_v60  ;;  %v2494_v18 = vmin.f32 %v14735_v11, 0.0  ;;  %v12824_v51 = vpop.eup %12823  ;;  %v14758_v59 = vadd.f32 %v14475_v61, %v1922_v49 }
 0x251   : > { %4272 = vst.msk [vmem:[#allocation3 + $0x1d0] sm:$0xff] %vm3468_vm2, %v11852_v0  ;;  %v4055_v17 = vpop.f32.mrb[57].mxu1  ;;  %v2850_v6 = vmul.f32 1.442695, %v2496_v29  ;;  %v3302_v1 = vsel %vm2282_vm1, %v14645_v21, %v10498_v47  ;;  %v2497_v52 = vmin.f32 %v14743_v9, 0.0  ;;  %v10499_v30 = vadd.f32 -1.0, %v12824_v51 }
 0x252   : > { %4270 = vst.msk [vmem:[#allocation3 + $0x1c0] sm:$0xff] %vm3468_vm2, %v4055_v17  ;;  %v11853_v62 = vpop.f32.mrb[58].mxu1  ;;  %v3305_v50 = vsel %vm2285_vm0, %v14651_v48, %v10501_v22  ;;  %v2846_v43 = vmul.f32 1.442695, %v2494_v18  ;;  %v2495_v48 = vmin.f32 %v14758_v59, 0.0  ;;  %vm2290_vm9 = vcmp.gt.f32.partialorder %v14735_v11, 0.0 }
 0x253   : > { %4273 = vst.msk [vmem:[#allocation3 + $0x1d8] sm:$0xff] %vm3468_vm2, %v11853_v62  ;;  %v4058_v23 = vpop.f32.mrb[59].mxu1  ;;  %v3437_v20 = vpack.c.bf16 %v3305_v50, %v3304_v38  ;;  %12833 = vpow2.f32 %v2850_v6  ;;  %v2852_v21 = vmul.f32 1.442695, %v2497_v52  ;;  %v3303_v12 = vsel %vm2283_vm3, %v14665_v31, %v10499_v30 }
 0x254   : > { %4271 = vst.msk [vmem:[#allocation3 + $0x1c8] sm:$0xff] %vm3468_vm2, %v4058_v23  ;;  %v11736_v19 = vpop.f32.mrb[152].mxu0  ;;  %12835 = vpow2.f32 %v2846_v43  ;;  %v3436_v39 = vpack.c.bf16 %v3303_v12, %v3302_v1  ;;  %v2848_v16 = vmul.f32 1.442695, %v2495_v48  ;;  %v6283_v7 = vld [vmem:[#allocation2 + $0x228] sm:$0xff]  ;;  %vm2293_vm10 = vcmp.gt.f32.partialorder %v14743_v9, 0.0 }
 0x255   : > { %11967 = vmatmul.mubr.msk.bf16.gmra.mrb[164].mxu1 %vm3468_vm2, %v13146_v8  ;;  %v12826_v2 = vpop.eup %12825  ;;  %3540 = vst.msk [vmem:[#allocation2 + $0x238] sm:$0xff] %vm3468_vm2, %v3437_v20  ;;  %v14770_v28 = vadd.f32 %v14475_v61, %v11736_v19  ;;  %v1935_v57 = vpop.f32.mrb[153].mxu0  ;;  %12837 = vpow2.f32 %v2852_v21  ;;  %v6282_v15 = vld [vmem:[#allocation2 + $0x220] sm:$0xff]  ;;  %vm2291_vm11 = vcmp.gt.f32.partialorder %v14758_v59, 0.0 }
 0x256   : > { %11970 = vmatprep.mubr.msk.bf16.mxu1 %vm3468_vm2, %v13147_v41  ;;  %v12828_v54 = vpop.eup %12827  ;;  %v10504_v40 = vadd.f32 -1.0, %v12826_v2  ;;  %v11737_v36 = vpop.f32.mrb[154].mxu0  ;;  %v14776_v24 = vadd.f32 %v14475_v61, %v1935_v57  ;;  %3539 = vst.msk [vmem:[#allocation2 + $0x230] sm:$0xff] %vm3468_vm2, %v3436_v39  ;;  %12839 = vpow2.f32 %v2848_v16  ;;  %12138 = vmatprep.mubr.msk.bf16.mxu0 %vm3468_vm2, %v6282_v15 }
 0x257   : > { %v10502_v31 = vadd.f32 -1.0, %v12828_v54  ;;  %v2500_v26 = vmin.f32 %v14770_v28, 0.0  ;;  %v1938_v53 = vpop.f32.mrb[155].mxu0  ;;  %v12830_v44 = vpop.eup %12829  ;;  %v14782_v55 = vadd.f32 %v14475_v61, %v11737_v36  ;;  %12139 = vmatmul.mubr.msk.bf16.gmra.mrb[236].mxu0 %vm3468_vm2, %v6283_v7  ;;  %v13150_v36 = vld [vmem:[#allocation2 + $0x148] sm:$0xff]  ;;  %vm2296_vm12 = vcmp.gt.f32.partialorder %v14770_v28, 0.0 }
 0x258   : > { %v11856_v63 = vpop.f32.mrb[60].mxu1  ;;  %v14786_v45 = vadd.f32 %v14475_v61, %v1938_v53  ;;  %v3308_v35 = vsel %vm2288_vm4, %v14682_v25, %v10504_v40  ;;  %v10505_v32 = vadd.f32 -1.0, %v12830_v44  ;;  %v12832_v0 = vpop.eup %12831  ;;  %v2498_v58 = vmin.f32 %v14776_v24, 0.0 }
 0x259   : > { %4276 = vst.msk [vmem:[#allocation3 + $0x1f0] sm:$0xff] %vm3468_vm2, %v11856_v63  ;;  %v4071_v42 = vpop.f32.mrb[61].mxu1  ;;  %v2858_v33 = vmul.f32 1.442695, %v2500_v26  ;;  %v3306_v4 = vsel %vm2286_vm5, %v14688_v10, %v10502_v31  ;;  %v2501_v3 = vmin.f32 %v14782_v55, 0.0  ;;  %v10503_v60 = vadd.f32 -1.0, %v12832_v0 }
 0x25a   : > { %4274 = vst.msk [vmem:[#allocation3 + $0x1e0] sm:$0xff] %vm3468_vm2, %v4071_v42  ;;  %v11857_v46 = vpop.f32.mrb[62].mxu1  ;;  %v3309_v25 = vsel %vm2289_vm6, %v14698_v34, %v10505_v32  ;;  %v2499_v17 = vmin.f32 %v14786_v45, 0.0  ;;  %v13149_v10 = vld [vmem:[#allocation2 + $0x140] sm:$0xff]  ;;  %v2854_v29 = vmul.f32 1.442695, %v2498_v58 }
 0x25b   : > { %4277 = vst.msk [vmem:[#allocation3 + $0x1f8] sm:$0xff] %vm3468_vm2, %v11857_v46  ;;  %v4074_v5 = vpop.f32.mrb[63].mxu1  ;;  %12841 = vpow2.f32 %v2858_v33  ;;  %v3439_v47 = vpack.c.bf16 %v3309_v25, %v3308_v35  ;;  %v2860_v49 = vmul.f32 1.442695, %v2501_v3  ;;  %v3307_v22 = vsel %vm2287_vm7, %v14705_v37, %v10503_v60 }
 0x25c   : > { %4275 = vst.msk [vmem:[#allocation3 + $0x1e8] sm:$0xff] %vm3468_vm2, %v4074_v5  ;;  %v11740_v62 = vpop.f32.mrb[156].mxu0  ;;  %v2856_v34 = vmul.f32 1.442695, %v2499_v17  ;;  %v3438_v6 = vpack.c.bf16 %v3307_v22, %v3306_v4  ;;  %12843 = vpow2.f32 %v2854_v29  ;;  %v6285_v48 = vld [vmem:[#allocation2 + $0x238] sm:$0xff]  ;;  %vm2294_vm13 = vcmp.gt.f32.partialorder %v14776_v24, 0.0 }
 0x25d   : > { %11971 = vmatmul.mubr.msk.bf16.gmra.mrb[168].mxu1 %vm3468_vm2, %v13148_v14  ;;  %v12834_v38 = vpop.eup %12833  ;;  %v14811_v56 = vadd.f32 %v14475_v61, %v11740_v62  ;;  %v1951_v13 = vpop.f32.mrb[157].mxu0  ;;  %3542 = vst.msk [vmem:[#allocation2 + $0x248] sm:$0xff] %vm3468_vm2, %v3439_v47  ;;  %12845 = vpow2.f32 %v2860_v49  ;;  %v6284_v20 = vld [vmem:[#allocation2 + $0x230] sm:$0xff]  ;;  %vm2297_vm14 = vcmp.gt.f32.partialorder %v14782_v55, 0.0  ;;  %vm2295_vm15 = vcmp.gt.f32.partialorder %v14786_v45, 0.0 }
 0x25e   : > { %11974 = vmatprep.mubr.msk.bf16.mxu1 %vm3468_vm2, %v13149_v10  ;;  %v10508_v18 = vadd.f32 -1.0, %v12834_v38  ;;  %v14815_v51 = vadd.f32 %v14475_v61, %v1951_v13  ;;  %v11741_v1 = vpop.f32.mrb[158].mxu0  ;;  %v12836_v50 = vpop.eup %12835  ;;  %3541 = vst.msk [vmem:[#allocation2 + $0x240] sm:$0xff] %vm3468_vm2, %v3438_v6  ;;  %12847 = vpow2.f32 %v2856_v34  ;;  %12142 = vmatprep.mubr.msk.bf16.mxu0 %vm3468_vm2, %v6284_v20 }
 0x25f   : > { %v2504_v52 = vmin.f32 %v14811_v56, 0.0  ;;  %v14821_v8 = vadd.f32 %v14475_v61, %v11741_v1  ;;  %v1954_v30 = vpop.f32.mrb[159].mxu0  ;;  %v12838_v43 = vpop.eup %12837  ;;  %v10506_v21 = vadd.f32 -1.0, %v12836_v50  ;;  %12143 = vmatmul.mubr.msk.bf16.gmra.mrb[240].mxu0 %vm3468_vm2, %v6285_v48  ;;  %vm2300_vm1 = vcmp.gt.f32.partialorder %v14811_v56, 0.0  ;;  %v14897_v48 = vld [vmem:[%s17203_s2] ss:$0 sm:$0xff] }
 0x260   : > { %v11860_v23 = vpop.f32.mrb[64].mxu1  ;;  %v3312_v2 = vsel %vm2292_vm8, %v14728_v27, %v10508_v18  ;;  %v10509_v12 = vadd.f32 -1.0, %v12838_v43  ;;  %v2502_v54 = vmin.f32 %v14815_v51, 0.0  ;;  %v12840_v63 = vpop.eup %12839  ;;  %v14839_v16 = vadd.f32 %v14475_v61, %v1954_v30  ;;  %v13152_v18 = vld [vmem:[#allocation2 + $0x158] sm:$0xff] }
 0x261   : > { %4280 = vst.msk [vmem:[#allocation3 + $0x210] sm:$0xff] %vm3468_vm2, %v11860_v23  ;;  %v4087_v37 = vpop.f32.mrb[65].mxu1  ;;  %v2866_v57 = vmul.f32 1.442695, %v2504_v52  ;;  %v3310_v39 = vsel %vm2290_vm9, %v14735_v11, %v10506_v21  ;;  %v2505_v40 = vmin.f32 %v14821_v8, 0.0  ;;  %v10507_v42 = vadd.f32 -1.0, %v12840_v63 }
 0x262   : > { %4278 = vst.msk [vmem:[#allocation3 + $0x200] sm:$0xff] %vm3468_vm2, %v4087_v37  ;;  %v11861_v41 = vpop.f32.mrb[66].mxu1  ;;  %v3313_v27 = vsel %vm2293_vm10, %v14743_v9, %v10509_v12  ;;  %v2862_v31 = vmul.f32 1.442695, %v2502_v54  ;;  %v13151_v11 = vld [vmem:[#allocation2 + $0x150] sm:$0xff]  ;;  %v2503_v53 = vmin.f32 %v14839_v16, 0.0 }
 0x263   : > { %4281 = vst.msk [vmem:[#allocation3 + $0x218] sm:$0xff] %vm3468_vm2, %v11861_v41  ;;  %v4090_v19 = vpop.f32.mrb[67].mxu1  ;;  %12849 = vpow2.f32 %v2866_v57  ;;  %v3441_v26 = vpack.c.bf16 %v3313_v27, %v3312_v2  ;;  %v2868_v15 = vmul.f32 1.442695, %v2505_v40  ;;  %v3311_v7 = vsel %vm2291_vm11, %v14758_v59, %v10507_v42  ;;  %v13153_v52 = vld [vmem:[#allocation2 + $0x160] sm:$0xff] }
 0x264   : > { %4279 = vst.msk [vmem:[#allocation3 + $0x208] sm:$0xff] %vm3468_vm2, %v4090_v19  ;;  %v11744_v44 = vpop.f32.mrb[160].mxu0  ;;  %12851 = vpow2.f32 %v2862_v31  ;;  %v3440_v32 = vpack.c.bf16 %v3311_v7, %v3310_v39  ;;  %v2864_v0 = vmul.f32 1.442695, %v2503_v53  ;;  %v6287_v29 = vld [vmem:[#allocation2 + $0x248] sm:$0xff]  ;;  %vm2298_vm0 = vcmp.gt.f32.partialorder %v14815_v51, 0.0 }
 0x265   : > { %11975 = vmatmul.mubr.msk.bf16.gmra.mrb[172].mxu1 %vm3468_vm2, %v13150_v36  ;;  %v12842_v46 = vpop.eup %12841  ;;  %v14852_v9 = vadd.f32 %v14475_v61, %v11744_v44  ;;  %v1967_v5 = vpop.f32.mrb[161].mxu0  ;;  %3544 = vst.msk [vmem:[#allocation2 + $0x258] sm:$0xff] %vm3468_vm2, %v3441_v26  ;;  %12853 = vpow2.f32 %v2868_v15  ;;  %v6286_v25 = vld [vmem:[#allocation2 + $0x240] sm:$0xff]  ;;  %vm2301_vm3 = vcmp.gt.f32.partialorder %v14821_v8, 0.0  ;;  %vm2299_vm4 = vcmp.gt.f32.partialorder %v14839_v16, 0.0 }
 0x266   : > { %11978 = vmatprep.mubr.msk.bf16.mxu1 %vm3468_vm2, %v13151_v11  ;;  %v10512_v33 = vadd.f32 -1.0, %v12842_v46  ;;  %v11745_v4 = vpop.f32.mrb[162].mxu0  ;;  %v14859_v3 = vadd.f32 %v14475_v61, %v1967_v5  ;;  %v12844_v17 = vpop.eup %12843  ;;  %3543 = vst.msk [vmem:[#allocation2 + $0x250] sm:$0xff] %vm3468_vm2, %v3440_v32  ;;  %12855 = vpow2.f32 %v2864_v0  ;;  %12146 = vmatprep.mubr.msk.bf16.mxu0 %vm3468_vm2, %v6286_v25  ;;  %v4449_v0 = vld [vmem:[#allocation2 + $0x168] sm:$0xff] }
 0x267   : > { %v2508_v59 = vmin.f32 %v14852_v9, 0.0  ;;  %v14862_v14 = vadd.f32 %v14475_v61, %v11745_v4  ;;  %v1970_v60 = vpop.f32.mrb[163].mxu0  ;;  %v12846_v49 = vpop.eup %12845  ;;  %v10510_v38 = vadd.f32 -1.0, %v12844_v17  ;;  %12147 = vmatmul.mubr.msk.bf16.gmra.mrb[244].mxu0 %vm3468_vm2, %v6287_v29  ;;  %vm2304_vm5 = vcmp.gt.f32.partialorder %v14852_v9, 0.0 }
 0x268   : > { %v11864_v35 = vpop.f32.mrb[68].mxu1  ;;  %v14869_v47 = vadd.f32 %v14475_v61, %v1970_v60  ;;  %v2506_v34 = vmin.f32 %v14859_v3, 0.0  ;;  %v12848_v13 = vpop.eup %12847  ;;  %v3316_v23 = vsel %vm2296_vm12, %v14770_v28, %v10512_v33  ;;  %v10513_v61 = vadd.f32 -1.0, %v12846_v49 }
 0x269   : > { %4284 = vst.msk [vmem:[#allocation3 + $0x230] sm:$0xff] %vm3468_vm2, %v11864_v35  ;;  %v4103_v58 = vpop.f32.mrb[69].mxu1  ;;  %v2874_v22 = vmul.f32 1.442695, %v2508_v59  ;;  %v2509_v6 = vmin.f32 %v14862_v14, 0.0  ;;  %v3314_v1 = vsel %vm2294_vm13, %v14776_v24, %v10510_v38  ;;  %v10511_v50 = vadd.f32 -1.0, %v12848_v13 }
 0x26a   : > { %4282 = vst.msk [vmem:[#allocation3 + $0x220] sm:$0xff] %vm3468_vm2, %v4103_v58  ;;  %v11865_v10 = vpop.f32.mrb[70].mxu1  ;;  %v2870_v37 = vmul.f32 1.442695, %v2506_v34  ;;  %v3317_v28 = vsel %vm2297_vm14, %v14782_v55, %v10513_v61  ;;  %v2507_v30 = vmin.f32 %v14869_v47, 0.0  ;;  %v4450_v59 = vld [vmem:[#allocation2 + $0x170] sm:$0xff] }
 0x26b   : > { %4285 = vst.msk [vmem:[#allocation3 + $0x238] sm:$0xff] %vm3468_vm2, %v11865_v10  ;;  %v4106_v62 = vpop.f32.mrb[71].mxu1  ;;  %12857 = vpow2.f32 %v2874_v22  ;;  %v2876_v20 = vmul.f32 1.442695, %v2509_v6  ;;  %v3443_v24 = vpack.c.bf16 %v3317_v28, %v3316_v23  ;;  %v3315_v21 = vsel %vm2295_vm15, %v14786_v45, %v10511_v50 }
 0x26c   : > { %4283 = vst.msk [vmem:[#allocation3 + $0x228] sm:$0xff] %vm3468_vm2, %v4106_v62  ;;  %v11748_v43 = vpop.f32.mrb[164].mxu0  ;;  %12859 = vpow2.f32 %v2870_v37  ;;  %v3442_v12 = vpack.c.bf16 %v3315_v21, %v3314_v1  ;;  %v2872_v54 = vmul.f32 1.442695, %v2507_v30  ;;  %v6289_v44 = vld [vmem:[#allocation2 + $0x258] sm:$0xff]  ;;  %vm2302_vm6 = vcmp.gt.f32.partialorder %v14859_v3, 0.0 }
 0x26d   : > { %11979 = vmatmul.mubr.msk.bf16.gmra.mrb[176].mxu1 %vm3468_vm2, %v13152_v18  ;;  %v12850_v41 = vpop.eup %12849  ;;  %v14900_v55 = vadd.f32 %v14897_v48, %v11748_v43  ;;  %v1983_v19 = vpop.f32.mrb[165].mxu0  ;;  %12861 = vpow2.f32 %v2876_v20  ;;  %3546 = vst.msk [vmem:[#allocation2 + $0x268] sm:$0xff] %vm3468_vm2, %v3443_v24  ;;  %v6288_v42 = vld [vmem:[#allocation2 + $0x250] sm:$0xff]  ;;  %vm2305_vm7 = vcmp.gt.f32.partialorder %v14862_v14, 0.0  ;;  %vm2303_vm8 = vcmp.gt.f32.partialorder %v14869_v47, 0.0 }
 0x26e   : > { %11982 = vmatprep.mubr.msk.bf16.mxu1 %vm3468_vm2, %v13153_v52  ;;  %v10516_v57 = vadd.f32 -1.0, %v12850_v41  ;;  %v11749_v63 = vpop.f32.mrb[166].mxu0  ;;  %v12852_v39 = vpop.eup %12851  ;;  %v14907_v36 = vadd.f32 %v14897_v48, %v1983_v19  ;;  %3545 = vst.msk [vmem:[#allocation2 + $0x260] sm:$0xff] %vm3468_vm2, %v3442_v12  ;;  %12863 = vpow2.f32 %v2872_v54  ;;  %12150 = vmatprep.mubr.msk.bf16.mxu0 %vm3468_vm2, %v6288_v42  ;;  %v4451_v54 = vld [vmem:[#allocation2 + $0x178] sm:$0xff] }
 0x26f   : > { %v2512_v40 = vmin.f32 %v14900_v55, 0.0  ;;  %v14910_v27 = vadd.f32 %v14897_v48, %v11749_v63  ;;  %v1986_v31 = vpop.f32.mrb[167].mxu0  ;;  %v12854_v11 = vpop.eup %12853  ;;  %v10514_v15 = vadd.f32 -1.0, %v12852_v39  ;;  %12151 = vmatmul.mubr.msk.bf16.gmra.mrb[248].mxu0 %vm3468_vm2, %v6289_v44  ;;  %vm2308_vm9 = vcmp.gt.f32.partialorder %v14900_v55, 0.0 }
 0x270   : > { %v11868_v2 = vpop.f32.mrb[72].mxu1  ;;  %v14917_v53 = vadd.f32 %v14897_v48, %v1986_v31  ;;  %v3320_v7 = vsel %vm2300_vm1, %v14811_v56, %v10516_v57  ;;  %v10517_v5 = vadd.f32 -1.0, %v12854_v11  ;;  %v2510_v32 = vmin.f32 %v14907_v36, 0.0  ;;  %v12856_v33 = vpop.eup %12855 }
 0x271   : > { %4288 = vst.msk [vmem:[#allocation3 + $0x250] sm:$0xff] %vm3468_vm2, %v11868_v2  ;;  %v4119_v45 = vpop.f32.mrb[73].mxu1  ;;  %v2882_v35 = vmul.f32 1.442695, %v2512_v40  ;;  %v3318_v4 = vsel %vm2298_vm0, %v14815_v51, %v10514_v15  ;;  %v2513_v58 = vmin.f32 %v14910_v27, 0.0  ;;  %v10515_v25 = vadd.f32 -1.0, %v12856_v33 }
 0x272   : > { %4286 = vst.msk [vmem:[#allocation3 + $0x240] sm:$0xff] %vm3468_vm2, %v4119_v45  ;;  %v11869_v26 = vpop.f32.mrb[74].mxu1  ;;  %v3321_v56 = vsel %vm2301_vm3, %v14821_v8, %v10517_v5  ;;  %v2878_v60 = vmul.f32 1.442695, %v2510_v32  ;;  %v2511_v10 = vmin.f32 %v14917_v53, 0.0  ;;  %v4452_v45 = vld [vmem:[#allocation2 + $0x180] sm:$0xff] }
 0x273   : > { %4289 = vst.msk [vmem:[#allocation3 + $0x258] sm:$0xff] %vm3468_vm2, %v11869_v26  ;;  %v4122_v46 = vpop.f32.mrb[75].mxu1  ;;  %12865 = vpow2.f32 %v2882_v35  ;;  %v3445_v17 = vpack.c.bf16 %v3321_v56, %v3320_v7  ;;  %v2884_v51 = vmul.f32 1.442695, %v2513_v58  ;;  %v3319_v62 = vsel %vm2299_vm4, %v14839_v16, %v10515_v25 }
 0x274   : > { %4287 = vst.msk [vmem:[#allocation3 + $0x248] sm:$0xff] %vm3468_vm2, %v4122_v46  ;;  %v11752_v29 = vpop.f32.mrb[168].mxu0  ;;  %12867 = vpow2.f32 %v2878_v60  ;;  %v3444_v34 = vpack.c.bf16 %v3319_v62, %v3318_v4  ;;  %v2880_v23 = vmul.f32 1.442695, %v2511_v10  ;;  %v6291_v41 = vld [vmem:[#allocation2 + $0x268] sm:$0xff]  ;;  %vm2306_vm10 = vcmp.gt.f32.partialorder %v14907_v36, 0.0 }
 0x275   : > { %11983 = vmatmul.mubr.msk.bf16.gmra.mrb[180].mxu1 %vm3468_vm2, %v4449_v0  ;;  %v12858_v49 = vpop.eup %12857  ;;  %v14940_v8 = vadd.f32 %v14897_v48, %v11752_v29  ;;  %v1999_v38 = vpop.f32.mrb[169].mxu0  ;;  %3548 = vst.msk [vmem:[#allocation2 + $0x278] sm:$0xff] %vm3468_vm2, %v3445_v17  ;;  %12869 = vpow2.f32 %v2884_v51  ;;  %v6290_v37 = vld [vmem:[#allocation2 + $0x260] sm:$0xff]  ;;  %vm2309_vm11 = vcmp.gt.f32.partialorder %v14910_v27, 0.0  ;;  %vm2307_vm12 = vcmp.gt.f32.partialorder %v14917_v53, 0.0 }
 0x276   : > { %11986 = vmatprep.mubr.msk.bf16.mxu1 %vm3468_vm2, %v4450_v59  ;;  %v10520_v13 = vadd.f32 -1.0, %v12858_v49  ;;  %v11753_v61 = vpop.f32.mrb[170].mxu0  ;;  %v12860_v6 = vpop.eup %12859  ;;  %v14947_v1 = vadd.f32 %v14897_v48, %v1999_v38  ;;  %3547 = vst.msk [vmem:[#allocation2 + $0x270] sm:$0xff] %vm3468_vm2, %v3444_v34  ;;  %12871 = vpow2.f32 %v2880_v23  ;;  %12154 = vmatprep.mubr.msk.bf16.mxu0 %vm3468_vm2, %v6290_v37  ;;  %v4453_v23 = vld [vmem:[#allocation2 + $0x188] sm:$0xff] }
 0x277   : > { %v2516_v16 = vmin.f32 %v14940_v8, 0.0  ;;  %v14950_v50 = vadd.f32 %v14897_v48, %v11753_v61  ;;  %v2002_v52 = vpop.f32.mrb[171].mxu0  ;;  %v12862_v28 = vpop.eup %12861  ;;  %v10518_v30 = vadd.f32 -1.0, %v12860_v6  ;;  %12155 = vmatmul.mubr.msk.bf16.gmra.mrb[252].mxu0 %vm3468_vm2, %v6291_v41  ;;  %vm2312_vm13 = vcmp.gt.f32.partialorder %v14940_v8, 0.0 }
 0x278   : > { %v11872_v22 = vpop.f32.mrb[76].mxu1  ;;  %v14957_v43 = vadd.f32 %v14897_v48, %v2002_v52  ;;  %v3324_v21 = vsel %vm2304_vm5, %v14852_v9, %v10520_v13  ;;  %v10521_v19 = vadd.f32 -1.0, %v12862_v28  ;;  %v2514_v12 = vmin.f32 %v14947_v1, 0.0  ;;  %v12864_v57 = vpop.eup %12863 }
 0x279   : > { %4292 = vst.msk [vmem:[#allocation3 + $0x270] sm:$0xff] %vm3468_vm2, %v11872_v22  ;;  %v4135_v18 = vpop.f32.mrb[77].mxu1  ;;  %v2890_v2 = vmul.f32 1.442695, %v2516_v16  ;;  %v3322_v63 = vsel %vm2302_vm6, %v14859_v3, %v10518_v30  ;;  %v2517_v39 = vmin.f32 %v14950_v50, 0.0  ;;  %v10519_v40 = vadd.f32 -1.0, %v12864_v57 }
 0x27a   : > { %4290 = vst.msk [vmem:[#allocation3 + $0x260] sm:$0xff] %vm3468_vm2, %v4135_v18  ;;  %v11873_v20 = vpop.f32.mrb[78].mxu1  ;;  %v3325_v9 = vsel %vm2305_vm7, %v14862_v14, %v10521_v19  ;;  %v2886_v42 = vmul.f32 1.442695, %v2514_v12  ;;  %v2515_v11 = vmin.f32 %v14957_v43, 0.0  ;;  %v5336_v18 = vld [vmem:[#allocation2 + $0x20] sm:$0xff] }
 0x27b   : > { %4293 = vst.msk [vmem:[#allocation3 + $0x278] sm:$0xff] %vm3468_vm2, %v11873_v20  ;;  %v4138_v24 = vpop.f32.mrb[79].mxu1  ;;  %12873 = vpow2.f32 %v2890_v2  ;;  %v3447_v31 = vpack.c.bf16 %v3325_v9, %v3324_v21  ;;  %v2892_v3 = vmul.f32 1.442695, %v2517_v39  ;;  %v3323_v44 = vsel %vm2303_vm8, %v14869_v47, %v10519_v40 }
 0x27c   : > { %4291 = vst.msk [vmem:[#allocation3 + $0x268] sm:$0xff] %vm3468_vm2, %v4138_v24  ;;  %v11756_v26 = vpop.f32.mrb[172].mxu0  ;;  %12875 = vpow2.f32 %v2886_v42  ;;  %v3446_v5 = vpack.c.bf16 %v3323_v44, %v3322_v63  ;;  %v2888_v32 = vmul.f32 1.442695, %v2515_v11  ;;  %v6293_v29 = vld [vmem:[#allocation2 + $0x278] sm:$0xff]  ;;  %vm2310_vm14 = vcmp.gt.f32.partialorder %v14947_v1, 0.0 }
 0x27d   : > { %11987 = vmatmul.mubr.msk.bf16.gmra.mrb[184].mxu1 %vm3468_vm2, %v4451_v54  ;;  %v12866_v15 = vpop.eup %12865  ;;  %v14980_v14 = vadd.f32 %v14897_v48, %v11756_v26  ;;  %v2015_v46 = vpop.f32.mrb[173].mxu0  ;;  %3550 = vst.msk [vmem:[#allocation2 + $0x288] sm:$0xff] %vm3468_vm2, %v3447_v31  ;;  %12877 = vpow2.f32 %v2892_v3  ;;  %v6292_v56 = vld [vmem:[#allocation2 + $0x270] sm:$0xff]  ;;  %vm2313_vm15 = vcmp.gt.f32.partialorder %v14950_v50, 0.0  ;;  %v12438_v44 = vld [vmem:[%s17204_s3 + $0x68] sm:$0xff]   ;;  %vm2311_vm1 = vcmp.gt.f32.partialorder %v14957_v43, 0.0 }
 0x27e   : > { %11990 = vmatprep.mubr.msk.bf16.mxu1 %vm3468_vm2, %v4452_v45  ;;  %v10524_v35 = vadd.f32 -1.0, %v12866_v15  ;;  %v11757_v33 = vpop.f32.mrb[174].mxu0  ;;  %v12868_v0 = vpop.eup %12867  ;;  %v14987_v58 = vadd.f32 %v14897_v48, %v2015_v46  ;;  %3549 = vst.msk [vmem:[#allocation2 + $0x280] sm:$0xff] %vm3468_vm2, %v3446_v5  ;;  %12879 = vpow2.f32 %v2888_v32  ;;  %12158 = vmatprep.mubr.msk.bf16.mxu0 %vm3468_vm2, %v6292_v56 }
 0x27f   : > { %v2520_v47 = vmin.f32 %v14980_v14, 0.0  ;;  %v14990_v59 = vadd.f32 %v14897_v48, %v11757_v33  ;;  %v2018_v25 = vpop.f32.mrb[175].mxu0  ;;  %v12870_v60 = vpop.eup %12869  ;;  %v10522_v51 = vadd.f32 -1.0, %v12868_v0  ;;  %12159 = vmatmul.mubr.msk.bf16.gmra.mrb[0].mxu0 %vm3468_vm2, %v6293_v29  ;;  %v5337_v33 = vld [vmem:[#allocation2 + $0x28] sm:$0xff]  ;;  %vm2316_vm0 = vcmp.gt.f32.partialorder %v14980_v14, 0.0 }
 0x280   : > { %v11876_v7 = vpop.f32.mrb[80].mxu1  ;;  %v14997_v10 = vadd.f32 %v14897_v48, %v2018_v25  ;;  %v3328_v62 = vsel %vm2308_vm9, %v14900_v55, %v10524_v35  ;;  %v10525_v38 = vadd.f32 -1.0, %v12870_v60  ;;  %v2518_v34 = vmin.f32 %v14987_v58, 0.0  ;;  %v12872_v13 = vpop.eup %12871 }
 0x281   : > { %4296 = vst.msk [vmem:[#allocation3 + $0x290] sm:$0xff] %vm3468_vm2, %v11876_v7  ;;  %v4151_v4 = vpop.f32.mrb[81].mxu1  ;;  %v2898_v22 = vmul.f32 1.442695, %v2520_v47  ;;  %v3326_v61 = vsel %vm2306_vm10, %v14907_v36, %v10522_v51  ;;  %v2521_v6 = vmin.f32 %v14990_v59, 0.0  ;;  %v10523_v16 = vadd.f32 -1.0, %v12872_v13 }
 0x282   : > { %4294 = vst.msk [vmem:[#allocation3 + $0x280] sm:$0xff] %vm3468_vm2, %v4151_v4  ;;  %v11877_v17 = vpop.f32.mrb[82].mxu1  ;;  %v3329_v55 = vsel %vm2309_vm11, %v14910_v27, %v10525_v38  ;;  %v2894_v37 = vmul.f32 1.442695, %v2518_v34  ;;  %v2519_v28 = vmin.f32 %v14997_v10, 0.0  ;;  %v5338_v47 = vld [vmem:[#allocation2 + $0x30] sm:$0xff] }
 0x283   : > { %4297 = vst.msk [vmem:[#allocation3 + $0x298] sm:$0xff] %vm3468_vm2, %v11877_v17  ;;  %v4154_v49 = vpop.f32.mrb[83].mxu1  ;;  %12881 = vpow2.f32 %v2898_v22  ;;  %v3449_v52 = vpack.c.bf16 %v3329_v55, %v3328_v62  ;;  %v2900_v36 = vmul.f32 1.442695, %v2521_v6  ;;  %v3327_v41 = vsel %vm2307_vm12, %v14917_v53, %v10523_v16 }
 0x284   : > { %4295 = vst.msk [vmem:[#allocation3 + $0x288] sm:$0xff] %vm3468_vm2, %v4154_v49  ;;  %v11760_v20 = vpop.f32.mrb[176].mxu0  ;;  %12883 = vpow2.f32 %v2894_v37  ;;  %v3448_v19 = vpack.c.bf16 %v3327_v41, %v3326_v61  ;;  %v2896_v12 = vmul.f32 1.442695, %v2519_v28  ;;  %v6295_v26 = vld [vmem:[#allocation2 + $0x288] sm:$0xff]  ;;  %vm2314_vm3 = vcmp.gt.f32.partialorder %v14987_v58, 0.0 }
 0x285   : > { %11991 = vmatmul.mubr.msk.bf16.gmra.mrb[188].mxu1 %vm3468_vm2, %v4453_v23  ;;  %v12874_v30 = vpop.eup %12873  ;;  %v15020_v27 = vadd.f32 %v14897_v48, %v11760_v20  ;;  %v2031_v24 = vpop.f32.mrb[177].mxu0  ;;  %3552 = vst.msk [vmem:[#allocation2 + $0x298] sm:$0xff] %vm3468_vm2, %v3449_v52  ;;  %12885 = vpow2.f32 %v2900_v36  ;;  %v6294_v9 = vld [vmem:[#allocation2 + $0x280] sm:$0xff]  ;;  %vm2317_vm4 = vcmp.gt.f32.partialorder %v14990_v59, 0.0  ;;  %vm2315_vm5 = vcmp.gt.f32.partialorder %v14997_v10, 0.0 }
 0x286   : > { %12002 = vmatprep.mubr.msk.bf16.mxu1 %vm3468_vm2, %v5336_v18  ;;  %v10528_v2 = vadd.f32 -1.0, %v12874_v30  ;;  %v11761_v57 = vpop.f32.mrb[178].mxu0  ;;  %v12876_v54 = vpop.eup %12875  ;;  %v15027_v39 = vadd.f32 %v14897_v48, %v2031_v24  ;;  %3551 = vst.msk [vmem:[#allocation2 + $0x290] sm:$0xff] %vm3468_vm2, %v3448_v19  ;;  %12887 = vpow2.f32 %v2896_v12  ;;  %12162 = vmatprep.mubr.msk.bf16.mxu0 %vm3468_vm2, %v6294_v9 }
 0x287   : > { %v2524_v53 = vmin.f32 %v15020_v27, 0.0  ;;  %v15030_v45 = vadd.f32 %v14897_v48, %v11761_v57  ;;  %v2034_v40 = vpop.f32.mrb[179].mxu0  ;;  %v12878_v42 = vpop.eup %12877  ;;  %v10526_v3 = vadd.f32 -1.0, %v12876_v54  ;;  %12163 = vmatmul.mubr.msk.bf16.gmra.mrb[4].mxu0 %vm3468_vm2, %v6295_v26  ;;  %vm2320_vm6 = vcmp.gt.f32.partialorder %v15020_v27, 0.0 }
 0x288   : > { %v11880_v21 = vpop.f32.mrb[84].mxu1  ;;  %v15037_v11 = vadd.f32 %v14897_v48, %v2034_v40  ;;  %v3332_v46 = vsel %vm2312_vm13, %v14940_v8, %v10528_v2  ;;  %v10529_v7 = vadd.f32 -1.0, %v12878_v42  ;;  %v2522_v35 = vmin.f32 %v15027_v39, 0.0  ;;  %v12880_v32 = vpop.eup %12879  ;;  %v5340_v40 = vld [vmem:[#allocation2 + $0x40] sm:$0xff] }
 0x289   : > { %4300 = vst.msk [vmem:[#allocation3 + $0x2b0] sm:$0xff] %vm3468_vm2, %v11880_v21  ;;  %v4167_v63 = vpop.f32.mrb[85].mxu1  ;;  %v2906_v5 = vmul.f32 1.442695, %v2524_v53  ;;  %v3330_v0 = vsel %vm2310_vm14, %v14947_v1, %v10526_v3  ;;  %v2525_v4 = vmin.f32 %v15030_v45, 0.0  ;;  %v10527_v56 = vadd.f32 -1.0, %v12880_v32 }
 0x28a   : > { %4298 = vst.msk [vmem:[#allocation3 + $0x2a0] sm:$0xff] %vm3468_vm2, %v4167_v63  ;;  %v11881_v31 = vpop.f32.mrb[86].mxu1  ;;  %v3333_v8 = vsel %vm2313_vm15, %v14950_v50, %v10529_v7  ;;  %v2902_v25 = vmul.f32 1.442695, %v2522_v35  ;;  %v13155_v1 = vld [vmem:[%s17204_s3 + $0x60] sm:$0xff]   ;;  %v2523_v51 = vmin.f32 %v15037_v11, 0.0 }
 0x28b   : > { %4301 = vst.msk [vmem:[#allocation3 + $0x2b8] sm:$0xff] %vm3468_vm2, %v11881_v31  ;;  %v4170_v15 = vpop.f32.mrb[87].mxu1  ;;  %12889 = vpow2.f32 %v2906_v5  ;;  %v3451_v60 = vpack.c.bf16 %v3333_v8, %v3332_v46  ;;  %v2908_v17 = vmul.f32 1.442695, %v2525_v4  ;;  %v12439_v50 = vld [vmem:[%s17204_s3 + $0x70] sm:$0xff]   ;;  %v3331_v62 = vsel %vm2311_vm1, %v14957_v43, %v10527_v56  ;;  %v5339_v63 = vld [vmem:[#allocation2 + $0x38] sm:$0xff] }
 0x28c   : > { %4299 = vst.msk [vmem:[#allocation3 + $0x2a8] sm:$0xff] %vm3468_vm2, %v4170_v15  ;;  %v11764_v29 = vpop.f32.mrb[180].mxu0  ;;  %12891 = vpow2.f32 %v2902_v25  ;;  %v3450_v13 = vpack.c.bf16 %v3331_v62, %v3330_v0  ;;  %v2904_v61 = vmul.f32 1.442695, %v2523_v51  ;;  %v6297_v24 = vld [vmem:[#allocation2 + $0x298] sm:$0xff]  ;;  %vm2318_vm7 = vcmp.gt.f32.partialorder %v15027_v39, 0.0 }
 0x28d   : > { %12003 = vmatmul.mubr.msk.bf16.vlgmr.msra.gmra.mrb[192].mxu1 %vm3468_vm2, %v5337_v33  ;;  %v12882_v49 = vpop.eup %12881  ;;  %v15071_v38 = vadd.f32 %v14897_v48, %v11764_v29  ;;  %v2047_v22 = vpop.f32.mrb[181].mxu0  ;;  %3554 = vst.msk [vmem:[#allocation2 + $0x2a8] sm:$0xff] %vm3468_vm2, %v3451_v60  ;;  %12893 = vpow2.f32 %v2908_v17  ;;  %v6296_v52 = vld [vmem:[#allocation2 + $0x290] sm:$0xff]  ;;  %vm2321_vm8 = vcmp.gt.f32.partialorder %v15030_v45, 0.0  ;;  %vm2319_vm9 = vcmp.gt.f32.partialorder %v15037_v11, 0.0 }
 0x28e   : > { %12203 = vmatpush3.bf16.msra.mxu1 %v13155_v1  ;;  %12006 = vmatprep.mubr.msk.bf16.mxu1 %vm3468_vm2, %v5338_v47  ;;  %v10532_v23 = vadd.f32 -1.0, %v12882_v49  ;;  %v11765_v6 = vpop.f32.mrb[182].mxu0  ;;  %v12884_v18 = vpop.eup %12883  ;;  %v15078_v16 = vadd.f32 %v14897_v48, %v2047_v22  ;;  %3553 = vst.msk [vmem:[#allocation2 + $0x2a0] sm:$0xff] %vm3468_vm2, %v3450_v13  ;;  %12895 = vpow2.f32 %v2904_v61  ;;  %v5341_v61 = vld [vmem:[#allocation2 + $0x48] sm:$0xff] }
 0x28f   : > { %12204 = vmatprep.subr.bf16.mxu1 %v12438_v44  ;;  %v2528_v43 = vmin.f32 %v15071_v38, 0.0  ;;  %v15081_v37 = vadd.f32 %v14897_v48, %v11765_v6  ;;  %v2050_v36 = vpop.f32.mrb[183].mxu0  ;;  %v12886_v28 = vpop.eup %12885  ;;  %v10530_v30 = vadd.f32 -1.0, %v12884_v18  ;;  %12166 = vmatprep.mubr.msk.bf16.mxu0 %vm3468_vm2, %v6296_v52  ;;  %vm2324_vm10 = vcmp.gt.f32.partialorder %v15071_v38, 0.0 }
 0x290   : > { %v11884_v34 = vpop.f32.mrb[88].mxu1  ;;  %v15088_v41 = vadd.f32 %v14897_v48, %v2050_v36  ;;  %v3336_v19 = vsel %vm2316_vm0, %v14980_v14, %v10532_v23  ;;  %v10533_v2 = vadd.f32 -1.0, %v12886_v28  ;;  %v2526_v57 = vmin.f32 %v15078_v16, 0.0  ;;  %v12888_v54 = vpop.eup %12887  ;;  %12167 = vmatmul.mubr.msk.bf16.gmra.mrb[8].mxu0 %vm3468_vm2, %v6297_v24 }
 0x291   : > { %4304 = vst.msk [vmem:[#allocation3 + $0x2d0] sm:$0xff] %vm3468_vm2, %v11884_v34  ;;  %v4183_v55 = vpop.f32.mrb[89].mxu1  ;;  %v2914_v12 = vmul.f32 1.442695, %v2528_v43  ;;  %v3334_v53 = vsel %vm2314_vm3, %v14987_v58, %v10530_v30  ;;  %v2529_v9 = vmin.f32 %v15081_v37, 0.0  ;;  %v10531_v42 = vadd.f32 -1.0, %v12888_v54 }
 0x292   : > { %4302 = vst.msk [vmem:[#allocation3 + $0x2c0] sm:$0xff] %vm3468_vm2, %v4183_v55  ;;  %v11885_v20 = vpop.f32.mrb[90].mxu1  ;;  %12205 = vmatpush3.bf16.msra.mxu1 %v12438_v44  ;;  %v3337_v14 = vsel %vm2317_vm4, %v14990_v59, %v10533_v2  ;;  %v2910_v31 = vmul.f32 1.442695, %v2526_v57  ;;  %v2527_v26 = vmin.f32 %v15088_v41, 0.0  ;;  %vm2322_vm11 = vcmp.gt.f32.partialorder %v15078_v16, 0.0 }
 0x293   : > { %4305 = vst.msk [vmem:[#allocation3 + $0x2d8] sm:$0xff] %vm3468_vm2, %v11885_v20  ;;  %v4186_v21 = vpop.f32.mrb[91].mxu1  ;;  %12206 = vmatprep.subr.bf16.mxu1 %v12439_v50  ;;  %12897 = vpow2.f32 %v2914_v12  ;;  %v3453_v58 = vpack.c.bf16 %v3337_v14, %v3336_v19  ;;  %v2916_v3 = vmul.f32 1.442695, %v2529_v9  ;;  %v3335_v46 = vsel %vm2315_vm5, %v14997_v10, %v10531_v42  ;;  %v12440_v30 = vld [vmem:[%s17204_s3 + $0x78] sm:$0xff]   ;;  %v4312_v2 = vld [vmem:[#allocation3 + $0x10] sm:$0xff] }
 0x294   : > { %4303 = vst.msk [vmem:[#allocation3 + $0x2c8] sm:$0xff] %vm3468_vm2, %v4186_v21  ;;  %v11768_v15 = vpop.f32.mrb[184].mxu0  ;;  %12899 = vpow2.f32 %v2910_v31  ;;  %v3452_v35 = vpack.c.bf16 %v3335_v46, %v3334_v53  ;;  %v2912_v33 = vmul.f32 1.442695, %v2527_v26  ;;  %v6299_v49 = vld [vmem:[#allocation2 + $0x2a8] sm:$0xff]  ;;  %vm2325_vm12 = vcmp.gt.f32.partialorder %v15081_v37, 0.0 }
 0x295   : > { %12007 = vmatmul.mubr.msk.bf16.gmra.mrb[196].mxu1 %vm3468_vm2, %v5339_v63  ;;  %v12890_v44 = vpop.eup %12889  ;;  %v15113_v59 = vadd.f32 %v14897_v48, %v11768_v15  ;;  %v2063_v7 = vpop.f32.mrb[185].mxu0  ;;  %3556 = vst.msk [vmem:[#allocation2 + $0x2b8] sm:$0xff] %vm3468_vm2, %v3453_v58  ;;  %12901 = vpow2.f32 %v2916_v3  ;;  %v6298_v25 = vld [vmem:[#allocation2 + $0x2a0] sm:$0xff]  ;;  %vm2323_vm13 = vcmp.gt.f32.partialorder %v15088_v41, 0.0 }
 0x296   : > { %12010 = vmatprep.mubr.msk.bf16.mxu1 %vm3468_vm2, %v5340_v40  ;;  %12207 = vmatpush3.bf16.msra.mxu1 %v12439_v50  ;;  %v10536_v32 = vadd.f32 -1.0, %v12890_v44  ;;  %v11769_v0 = vpop.f32.mrb[186].mxu0  ;;  %v12892_v4 = vpop.eup %12891  ;;  %v15120_v8 = vadd.f32 %v14897_v48, %v2063_v7  ;;  %3555 = vst.msk [vmem:[#allocation2 + $0x2b0] sm:$0xff] %vm3468_vm2, %v3452_v35  ;;  %12903 = vpow2.f32 %v2912_v33  ;;  %v4313_v44 = vld [vmem:[#allocation3 + $0x18] sm:$0xff] }
 0x297   : > { %v2532_v10 = vmin.f32 %v15113_v59, 0.0  ;;  %v15123_v56 = vadd.f32 %v14897_v48, %v11769_v0  ;;  %v2066_v1 = vpop.f32.mrb[187].mxu0  ;;  %v12894_v60 = vpop.eup %12893  ;;  %v10534_v51 = vadd.f32 -1.0, %v12892_v4  ;;  %12170 = vmatprep.mubr.msk.bf16.mxu0 %vm3468_vm2, %v6298_v25  ;;  %12208 = vmatprep.subr.bf16.mxu1 %v12440_v30  ;;  %vm2328_vm14 = vcmp.gt.f32.partialorder %v15113_v59, 0.0 }
 0x298   : > { %v11888_v5 = vpop.f32.mrb[92].mxu1  ;;  %v15130_v29 = vadd.f32 %v14897_v48, %v2066_v1  ;;  %v3340_v62 = vsel %vm2320_vm6, %v15020_v27, %v10536_v32  ;;  %v10537_v22 = vadd.f32 -1.0, %v12894_v60  ;;  %v2530_v13 = vmin.f32 %v15120_v8, 0.0  ;;  %v12896_v23 = vpop.eup %12895  ;;  %v5342_v27 = vld [vmem:[#allocation2 + $0x50] sm:$0xff]  ;;  %12171 = vmatmul.mubr.msk.bf16.gmra.mrb[12].mxu0 %vm3468_vm2, %v6299_v49  ;;  %v4311_v32 = vld [vmem:[#allocation3 + $0x8] sm:$0xff] }
 0x299   : > { %4308 = vst.msk [vmem:[#allocation3 + $0x2f0] sm:$0xff] %vm3468_vm2, %v11888_v5  ;;  %v4199_v47 = vpop.f32.mrb[93].mxu1  ;;  %v2922_v34 = vmul.f32 1.442695, %v2532_v10  ;;  %v3338_v6 = vsel %vm2318_vm7, %v15027_v39, %v10534_v51  ;;  %v2533_v18 = vmin.f32 %v15123_v56, 0.0  ;;  %v10535_v43 = vadd.f32 -1.0, %v12896_v23 }
 0x29a   : > { %4306 = vst.msk [vmem:[#allocation3 + $0x2e0] sm:$0xff] %vm3468_vm2, %v4199_v47  ;;  %v11889_v17 = vpop.f32.mrb[94].mxu1  ;;  %v3341_v55 = vsel %vm2321_vm8, %v15030_v45, %v10537_v22  ;;  %v2918_v52 = vmul.f32 1.442695, %v2530_v13  ;;  %v2531_v28 = vmin.f32 %v15130_v29, 0.0  ;;  %12209 = vmatpush3.bf16.msra.mxu1 %v12440_v30  ;;  %v5343_v1 = vld [vmem:[#allocation2 + $0x58] sm:$0xff] }
 0x29b   : > { %4309 = vst.msk [vmem:[#allocation3 + $0x2f8] sm:$0xff] %vm3468_vm2, %v11889_v17  ;;  %v4202_v50 = vpop.f32.mrb[95].mxu1  ;;  %12905 = vpow2.f32 %v2922_v34  ;;  %v3455_v39 = vpack.c.bf16 %v3341_v55, %v3340_v62  ;;  %v2924_v36 = vmul.f32 1.442695, %v2533_v18  ;;  %v3339_v45 = vsel %vm2319_vm9, %v15037_v11, %v10535_v43  ;;  %v4310_v11 = vld [vmem:[#allocation3] sm:$0xff] }
 0x29c   : > { %4307 = vst.msk [vmem:[#allocation3 + $0x2e8] sm:$0xff] %vm3468_vm2, %v4202_v50  ;;  %v11772_v20 = vpop.f32.mrb[188].mxu0  ;;  %12907 = vpow2.f32 %v2918_v52  ;;  %v3454_v57 = vpack.c.bf16 %v3339_v45, %v3338_v6  ;;  %v2920_v63 = vmul.f32 1.442695, %v2531_v28  ;;  %v6301_v5 = vld [vmem:[#allocation2 + $0x2b8] sm:$0xff]  ;;  %vm2326_vm15 = vcmp.gt.f32.partialorder %v15120_v8, 0.0 }
 0x29d   : > { %12011 = vmatmul.mubr.msk.bf16.gmra.mrb[200].mxu1 %vm3468_vm2, %v5341_v61  ;;  %v12898_v24 = vpop.eup %12897  ;;  %v15160_v21 = vadd.f32 %v14897_v48, %v11772_v20  ;;  %v2079_v19 = vpop.f32.mrb[189].mxu0  ;;  %3558 = vst.msk [vmem:[#allocation2 + $0x2c8] sm:$0xff] %vm3468_vm2, %v3455_v39  ;;  %12909 = vpow2.f32 %v2924_v36  ;;  %v6300_v58 = vld [vmem:[#allocation2 + $0x2b0] sm:$0xff]  ;;  %vm2329_vm1 = vcmp.gt.f32.partialorder %v15123_v56, 0.0  ;;  %vm2327_vm0 = vcmp.gt.f32.partialorder %v15130_v29, 0.0 }
 0x29e   : > { %12014 = vmatprep.mubr.msk.bf16.mxu1 %vm3468_vm2, %v5342_v27  ;;  %v10540_v54 = vadd.f32 -1.0, %v12898_v24  ;;  %v11773_v53 = vpop.f32.mrb[190].mxu0  ;;  %v12900_v9 = vpop.eup %12899  ;;  %v15166_v31 = vadd.f32 %v14897_v48, %v2079_v19  ;;  %3557 = vst.msk [vmem:[#allocation2 + $0x2c0] sm:$0xff] %vm3468_vm2, %v3454_v57  ;;  %12911 = vpow2.f32 %v2920_v63  ;;  %12174 = vmatprep.mubr.msk.bf16.mxu0 %vm3468_vm2, %v6300_v58  ;;  %v4314_v43 = vld [vmem:[#allocation3 + $0x20] sm:$0xff]  ;;  %v4317_v57 = vld [vmem:[#allocation3 + $0x38] sm:$0xff] }
 0x29f   : > { %v2536_v42 = vmin.f32 %v15160_v21, 0.0  ;;  %v2082_v3 = vpop.f32.mrb[191].mxu0  ;;  %v12902_v26 = vpop.eup %12901  ;;  %v10538_v7 = vadd.f32 -1.0, %v12900_v9  ;;  %v15181_v51 = vadd.f32 %v14897_v48, %v11773_v53  ;;  %vm2332_vm3 = vcmp.gt.f32.partialorder %v15160_v21, 0.0 }
 0x2a0   : > { %v11900_v12 = vpop.f32.mrb[96].mxu1  ;;  %v3344_v0 = vsel %vm2324_vm10, %v15071_v38, %v10540_v54  ;;  %v10541_v4 = vadd.f32 -1.0, %v12902_v26  ;;  %v12904_v10 = vpop.eup %12903  ;;  %v2534_v17 = vmin.f32 %v15166_v31, 0.0  ;;  %v5344_v38 = vld [vmem:[#allocation2 + $0x60] sm:$0xff]  ;;  %v15189_v62 = vadd.f32 %v14897_v48, %v2082_v3  ;;  %12175 = vmatmul.mubr.msk.bf16.gmra.mrb[16].mxu0 %vm3468_vm2, %v6301_v5  ;;  %v5346_v5 = vld [vmem:[#allocation2 + $0x70] sm:$0xff] }
 0x2a1   : > { %v5050_v40 = vadd.f32 %v11900_v12, %v4312_v2  ;;  %v4665_v14 = vpop.f32.mrb[97].mxu1  ;;  %v2930_v47 = vmul.f32 1.442695, %v2536_v42  ;;  %v3342_v60 = vsel %vm2322_vm11, %v15078_v16, %v10538_v7  ;;  %v10539_v50 = vadd.f32 -1.0, %v12904_v10  ;;  %v4320_v10 = vld [vmem:[#allocation3 + $0x50] sm:$0xff] }
 0x2a2   : > { %v5048_v15 = vadd.f32 %v4665_v14, %v4310_v11  ;;  %v11901_v46 = vpop.f32.mrb[98].mxu1  ;;  %v3345_v49 = vsel %vm2325_vm12, %v15081_v37, %v10541_v4  ;;  %v2926_v22 = vmul.f32 1.442695, %v2534_v17  ;;  %v2537_v34 = vmin.f32 %v15181_v51, 0.0  ;;  %v4316_v37 = vld [vmem:[#allocation3 + $0x30] sm:$0xff]  ;;  %v4315_v14 = vld [vmem:[#allocation3 + $0x28] sm:$0xff] }
 0x2a3   : > { %5146 = vst.msk [vmem:[#allocation3 + $0x10] sm:$0xff] %vm3468_vm2, %v5050_v40  ;;  %v5051_v35 = vadd.f32 %v11901_v46, %v4313_v44  ;;  %v4668_v33 = vpop.f32.mrb[99].mxu1  ;;  %12913 = vpow2.f32 %v2930_v47  ;;  %v3457_v16 = vpack.c.bf16 %v3345_v49, %v3344_v0  ;;  %v3343_v61 = vsel %vm2323_vm13, %v15088_v41, %v10539_v50  ;;  %v5345_v44 = vld [vmem:[#allocation2 + $0x68] sm:$0xff] }
 0x2a4   : > { %5144 = vst.msk [vmem:[#allocation3] sm:$0xff] %vm3468_vm2, %v5048_v15  ;;  %v5049_v25 = vadd.f32 %v4668_v33, %v4311_v32  ;;  %v11776_v13 = vpop.f32.mrb[192].mxu0  ;;  %v2535_v6 = vmin.f32 %v15189_v62, 0.0  ;;  %v3456_v52 = vpack.c.bf16 %v3343_v61, %v3342_v60  ;;  %12915 = vpow2.f32 %v2926_v22  ;;  %v6303_v40 = vld [vmem:[#allocation2 + $0x2c8] sm:$0xff] }
 0x2a5   : > { %5147 = vst.msk [vmem:[#allocation3 + $0x18] sm:$0xff] %vm3468_vm2, %v5051_v35  ;;  %12015 = vmatmul.mubr.msk.bf16.gmra.mrb[204].mxu1 %vm3468_vm2, %v5343_v1  ;;  %v12906_v23 = vpop.eup %12905  ;;  %v15202_v18 = vadd.f32 %v14897_v48, %v11776_v13  ;;  %v2095_v27 = vpop.f32.mrb[193].mxu0  ;;  %3560 = vst.msk [vmem:[#allocation2 + $0x2d8] sm:$0xff] %vm3468_vm2, %v3457_v16  ;;  %v2932_v36 = vmul.f32 1.442695, %v2537_v34  ;;  %v6302_v19 = vld [vmem:[#allocation2 + $0x2c0] sm:$0xff] }
 0x2a6   : > { %5145 = vst.msk [vmem:[#allocation3 + $0x8] sm:$0xff] %vm3468_vm2, %v5049_v25  ;;  %12018 = vmatprep.mubr.msk.bf16.mxu1 %vm3468_vm2, %v5344_v38  ;;  %v10544_v39 = vadd.f32 -1.0, %v12906_v23  ;;  %v11777_v28 = vpop.f32.mrb[194].mxu0  ;;  %v12908_v20 = vpop.eup %12907  ;;  %v2928_v24 = vmul.f32 1.442695, %v2535_v6  ;;  %3559 = vst.msk [vmem:[#allocation2 + $0x2d0] sm:$0xff] %vm3468_vm2, %v3456_v52  ;;  %12178 = vmatprep.mubr.msk.bf16.mxu0 %vm3468_vm2, %v6302_v19  ;;  %v15218_v46 = vadd.f32 %v14897_v48, %v2095_v27 }
 0x2a7   : > { %v2540_v45 = vmin.f32 %v15202_v18, 0.0  ;;  %v12910_v2 = vpop.eup %12909  ;;  %v10542_v53 = vadd.f32 -1.0, %v12908_v20  ;;  %12917 = vpow2.f32 %v2932_v36  ;;  %v2098_v9 = vpop.f32.mrb[195].mxu0  ;;  %v15221_v7 = vadd.f32 %v14897_v48, %v11777_v28  ;;  %v4318_v38 = vld [vmem:[#allocation3 + $0x40] sm:$0xff]  ;;  %v4319_v28 = vld [vmem:[#allocation3 + $0x48] sm:$0xff] }
 0x2a8   : > { %v11904_v55 = vpop.f32.mrb[100].mxu1  ;;  %v3348_v63 = vsel %vm2328_vm14, %v15113_v59, %v10544_v39  ;;  %v10545_v58 = vadd.f32 -1.0, %v12910_v2  ;;  %12919 = vpow2.f32 %v2928_v24  ;;  %v12912_v26 = vpop.eup %12911  ;;  %v15229_v33 = vadd.f32 %v14897_v48, %v2098_v9  ;;  %12179 = vmatmul.mubr.msk.bf16.gmra.mrb[20].mxu0 %vm3468_vm2, %v6303_v40  ;;  %v5347_v19 = vld [vmem:[#allocation2 + $0x78] sm:$0xff]  ;;  %v15265_v9 = vld [vmem:[%s17203_s2] ss:$0 sm:$0xff] }
 0x2a9   : > { %v5054_v30 = vadd.f32 %v11904_v55, %v4316_v37  ;;  %v4681_v41 = vpop.f32.mrb[101].mxu1  ;;  %v2938_v3 = vmul.f32 1.442695, %v2540_v45  ;;  %v3346_v59 = vsel %vm2326_vm15, %v15120_v8, %v10542_v53  ;;  %v10543_v32 = vadd.f32 -1.0, %v12912_v26 }
 0x2aa   : > { %v5052_v12 = vadd.f32 %v4681_v41, %v4314_v43  ;;  %v11905_v54 = vpop.f32.mrb[102].mxu1  ;;  %v3349_v35 = vsel %vm2329_vm1, %v15123_v56, %v10545_v58  ;;  %v2538_v0 = vmin.f32 %v15218_v46, 0.0  ;;  %v2541_v25 = vmin.f32 %v15221_v7, 0.0  ;;  %v4321_v43 = vld [vmem:[#allocation3 + $0x58] sm:$0xff] }
 0x2ab   : > { %5150 = vst.msk [vmem:[#allocation3 + $0x30] sm:$0xff] %vm3468_vm2, %v5054_v30  ;;  %v5055_v11 = vadd.f32 %v11905_v54, %v4317_v57  ;;  %v4684_v42 = vpop.f32.mrb[103].mxu1  ;;  %12921 = vpow2.f32 %v2938_v3  ;;  %v3459_v8 = vpack.c.bf16 %v3349_v35, %v3348_v63  ;;  %v3347_v56 = vsel %vm2327_vm0, %v15130_v29, %v10543_v32  ;;  %v5348_v57 = vld [vmem:[#allocation2 + $0x80] sm:$0xff]  ;;  %v4322_v35 = vld [vmem:[#allocation3 + $0x60] sm:$0xff] }
 0x2ac   : > { %5148 = vst.msk [vmem:[#allocation3 + $0x20] sm:$0xff] %vm3468_vm2, %v5052_v12  ;;  %v5053_v15 = vadd.f32 %v4684_v42, %v4315_v14  ;;  %v11780_v4 = vpop.f32.mrb[196].mxu0  ;;  %v2539_v1 = vmin.f32 %v15229_v33, 0.0  ;;  %v3458_v49 = vpack.c.bf16 %v3347_v56, %v3346_v59  ;;  %v2934_v16 = vmul.f32 1.442695, %v2538_v0  ;;  %v6305_v36 = vld [vmem:[#allocation2 + $0x2d8] sm:$0xff] }
 0x2ad   : > { %5151 = vst.msk [vmem:[#allocation3 + $0x38] sm:$0xff] %vm3468_vm2, %v5055_v11  ;;  %12019 = vmatmul.mubr.msk.bf16.gmra.mrb[208].mxu1 %vm3468_vm2, %v5345_v44  ;;  %v12914_v47 = vpop.eup %12913  ;;  %v2111_v60 = vpop.f32.mrb[197].mxu0  ;;  %3562 = vst.msk [vmem:[#allocation2 + $0x2e8] sm:$0xff] %vm3468_vm2, %v3459_v8  ;;  %v15243_v22 = vadd.f32 %v14897_v48, %v11780_v4  ;;  %v2940_v23 = vmul.f32 1.442695, %v2541_v25  ;;  %v6304_v6 = vld [vmem:[#allocation2 + $0x2d0] sm:$0xff] }
 0x2ae   : > { %5149 = vst.msk [vmem:[#allocation3 + $0x28] sm:$0xff] %vm3468_vm2, %v5053_v15  ;;  %12022 = vmatprep.mubr.msk.bf16.mxu1 %vm3468_vm2, %v5346_v5  ;;  %v10548_v50 = vadd.f32 -1.0, %v12914_v47  ;;  %v11781_v34 = vpop.f32.mrb[198].mxu0  ;;  %v2936_v37 = vmul.f32 1.442695, %v2539_v1  ;;  %v15246_v61 = vadd.f32 %v14897_v48, %v2111_v60  ;;  %v12916_v27 = vpop.eup %12915  ;;  %3561 = vst.msk [vmem:[#allocation2 + $0x2e0] sm:$0xff] %vm3468_vm2, %v3458_v49  ;;  %12923 = vpow2.f32 %v2934_v16  ;;  %12182 = vmatprep.mubr.msk.bf16.mxu0 %vm3468_vm2, %v6304_v6 }
 0x2af   : > { %vm2330_vm4 = vcmp.gt.f32.partialorder %v15166_v31, 0.0  ;;  %vm2333_vm5 = vcmp.gt.f32.partialorder %v15181_v51, 0.0  ;;  %v2114_v39 = vpop.f32.mrb[199].mxu0  ;;  %v10546_v30 = vadd.f32 -1.0, %v12916_v27  ;;  %12925 = vpow2.f32 %v2940_v23  ;;  %v4324_v15 = vld [vmem:[#allocation3 + $0x70] sm:$0xff]  ;;  %v4323_v60 = vld [vmem:[#allocation3 + $0x68] sm:$0xff] }
 0x2b0   : > { %v11908_v17 = vpop.f32.mrb[104].mxu1  ;;  %v2544_v41 = vmin.f32 %v15243_v22, 0.0  ;;  %vm2331_vm6 = vcmp.gt.f32.partialorder %v15189_v62, 0.0  ;;  %12927 = vpow2.f32 %v2936_v37  ;;  %v2542_v2 = vmin.f32 %v15246_v61, 0.0  ;;  %12183 = vmatmul.mubr.msk.bf16.gmra.mrb[24].mxu0 %vm3468_vm2, %v6305_v36 }
 0x2b1   : > { %v5058_v13 = vadd.f32 %v11908_v17, %v4320_v10  ;;  %v4697_v29 = vpop.f32.mrb[105].mxu1  ;;  %v12918_v24 = vpop.eup %12917  ;;  %v3352_v54 = vsel %vm2332_vm3, %v15160_v21, %v10548_v50  ;;  %v15268_v40 = vadd.f32 %v15265_v9, %v11781_v34  ;;  %v3350_v21 = vsel %vm2330_vm4, %v15166_v31, %v10546_v30  ;;  %v4325_v10 = vld [vmem:[#allocation3 + $0x78] sm:$0xff] }
 0x2b2   : > { %v5056_v55 = vadd.f32 %v4697_v29, %v4318_v38  ;;  %v11909_v52 = vpop.f32.mrb[106].mxu1  ;;  %v12920_v12 = vpop.eup %12919  ;;  %v10549_v63 = vadd.f32 -1.0, %v12918_v24  ;;  %v2946_v53 = vmul.f32 1.442695, %v2544_v41  ;;  %v2942_v14 = vmul.f32 1.442695, %v2542_v2 }
 0x2b3   : > { %5154 = vst.msk [vmem:[#allocation3 + $0x50] sm:$0xff] %vm3468_vm2, %v5058_v13  ;;  %v5059_v48 = vadd.f32 %v11909_v52, %v4321_v43  ;;  %v4700_v20 = vpop.f32.mrb[107].mxu1  ;;  %v10547_v11 = vadd.f32 -1.0, %v12920_v12  ;;  %v15277_v42 = vadd.f32 %v15265_v9, %v2114_v39  ;;  %v2545_v26 = vmin.f32 %v15268_v40, 0.0  ;;  %v5349_v50 = vld [vmem:[#allocation2 + $0x88] sm:$0xff]  ;;  %v5350_v13 = vld [vmem:[#allocation2 + $0x90] sm:$0xff] }
 0x2b4   : > { %5152 = vst.msk [vmem:[#allocation3 + $0x40] sm:$0xff] %vm3468_vm2, %v5056_v55  ;;  %v5057_v45 = vadd.f32 %v4700_v20, %v4319_v28  ;;  %v3353_v3 = vsel %vm2333_vm5, %v15181_v51, %v10549_v63  ;;  %12929 = vpow2.f32 %v2946_v53  ;;  %v6307_v1 = vld [vmem:[#allocation2 + $0x2e8] sm:$0xff]  ;;  %vm2336_vm7 = vcmp.gt.f32.partialorder %v15202_v18, 0.0  ;;  %v4328_v43 = vld [vmem:[#allocation3 + $0x90] sm:$0xff]  ;;  %v4326_v28 = vld [vmem:[#allocation3 + $0x80] sm:$0xff] }
 0x2b5   : > { %5155 = vst.msk [vmem:[#allocation3 + $0x58] sm:$0xff] %vm3468_vm2, %v5059_v48  ;;  %12023 = vmatmul.mubr.msk.bf16.gmra.mrb[212].mxu1 %vm3468_vm2, %v5347_v19  ;;  %v12922_v58 = vpop.eup %12921  ;;  %v3461_v59 = vpack.c.bf16 %v3353_v3, %v3352_v54  ;;  %v3351_v31 = vsel %vm2331_vm6, %v15189_v62, %v10547_v11  ;;  %12931 = vpow2.f32 %v2942_v14  ;;  %v2948_v0 = vmul.f32 1.442695, %v2545_v26  ;;  %v6306_v4 = vld [vmem:[#allocation2 + $0x2e0] sm:$0xff]  ;;  %v4327_v63 = vld [vmem:[#allocation3 + $0x88] sm:$0xff] }
 0x2b6   : > { %5153 = vst.msk [vmem:[#allocation3 + $0x48] sm:$0xff] %vm3468_vm2, %v5057_v45  ;;  %12026 = vmatprep.mubr.msk.bf16.mxu1 %vm3468_vm2, %v5348_v57  ;;  %v3460_v8 = vpack.c.bf16 %v3351_v31, %v3350_v21  ;;  %v10552_v56 = vadd.f32 -1.0, %v12922_v58  ;;  %v2543_v25 = vmin.f32 %v15277_v42, 0.0  ;;  %12186 = vmatprep.mubr.msk.bf16.mxu0 %vm3468_vm2, %v6306_v4  ;;  %vm2334_vm8 = vcmp.gt.f32.partialorder %v15218_v46, 0.0  ;;  %v4329_v45 = vld [vmem:[#allocation3 + $0x98] sm:$0xff]  ;;  %v5351_v53 = vld [vmem:[#allocation2 + $0x98] sm:$0xff] }
 0x2b7   : > { %3564 = vst.msk [vmem:[#allocation2 + $0x2f8] sm:$0xff] %vm3468_vm2, %v3461_v59  ;;  %12933 = vpow2.f32 %v2948_v0  ;;  %vm2337_vm9 = vcmp.gt.f32.partialorder %v15221_v7, 0.0  ;;  %vm2335_vm10 = vcmp.gt.f32.partialorder %v15229_v33, 0.0  ;;  %vm2340_vm11 = vcmp.gt.f32.partialorder %v15243_v22, 0.0  ;;  %v5352_v11 = vld [vmem:[#allocation2 + $0xa0] sm:$0xff] }
 0x2b8   : > { %v11912_v44 = vpop.f32.mrb[108].mxu1  ;;  %3563 = vst.msk [vmem:[#allocation2 + $0x2f0] sm:$0xff] %vm3468_vm2, %v3460_v8  ;;  %v12924_v38 = vpop.eup %12923  ;;  %v2944_v16 = vmul.f32 1.442695, %v2543_v25  ;;  %12187 = vmatmul.mubr.msk.bf16.gmra.mrb[28].mxu0 %vm3468_vm2, %v6307_v1  ;;  %v3356_v37 = vsel %vm2336_vm7, %v15202_v18, %v10552_v56  ;;  %vm2341_vm12 = vcmp.gt.f32.partialorder %v15268_v40, 0.0  ;;  %vm2338_vm13 = vcmp.gt.f32.partialorder %v15246_v61, 0.0 }
 0x2b9   : > { %v5062_v5 = vadd.f32 %v11912_v44, %v4324_v15  ;;  %v4713_v32 = vpop.f32.mrb[109].mxu1  ;;  %v12926_v34 = vpop.eup %12925  ;;  %v10550_v29 = vadd.f32 -1.0, %v12924_v38  ;;  %v4332_v15 = vld [vmem:[#allocation3 + $0xb0] sm:$0xff]  ;;  %vm2339_vm14 = vcmp.gt.f32.partialorder %v15277_v42, 0.0  ;;  %v4331_v56 = vld [vmem:[#allocation3 + $0xa8] sm:$0xff] }
 0x2ba   : > { %v5060_v47 = vadd.f32 %v4713_v32, %v4322_v35  ;;  %v11913_v51 = vpop.f32.mrb[110].mxu1  ;;  %v12928_v23 = vpop.eup %12927  ;;  %v10553_v6 = vadd.f32 -1.0, %v12926_v34  ;;  %12935 = vpow2.f32 %v2944_v16 }
 0x2bb   : > { %5158 = vst.msk [vmem:[#allocation3 + $0x70] sm:$0xff] %vm3468_vm2, %v5062_v5  ;;  %v5063_v62 = vadd.f32 %v11913_v51, %v4325_v10  ;;  %v4716_v17 = vpop.f32.mrb[111].mxu1  ;;  %v3354_v27 = vsel %vm2334_vm8, %v15218_v46, %v10550_v29  ;;  %v10551_v55 = vadd.f32 -1.0, %v12928_v23  ;;  %v4330_v5 = vld [vmem:[#allocation3 + $0xa0] sm:$0xff] }
 0x2bc   : > { %5156 = vst.msk [vmem:[#allocation3 + $0x60] sm:$0xff] %vm3468_vm2, %v5060_v47  ;;  %v5061_v49 = vadd.f32 %v4716_v17, %v4323_v60  ;;  %v3357_v39 = vsel %vm2337_vm9, %v15221_v7, %v10553_v6  ;;  %v4333_v47 = vld [vmem:[#allocation3 + $0xb8] sm:$0xff]  ;;  %v5354_v17 = vld [vmem:[#allocation2 + $0xb0] sm:$0xff] }
 0x2bd   : > { %5159 = vst.msk [vmem:[#allocation3 + $0x78] sm:$0xff] %vm3468_vm2, %v5063_v62  ;;  %12027 = vmatmul.mubr.msk.bf16.gmra.mrb[216].mxu1 %vm3468_vm2, %v5349_v50  ;;  %v3463_v30 = vpack.c.bf16 %v3357_v39, %v3356_v37  ;;  %v3355_v18 = vsel %vm2335_vm10, %v15229_v33, %v10551_v55  ;;  %v5353_v62 = vld [vmem:[#allocation2 + $0xa8] sm:$0xff]  ;;  %v4334_v50 = vld [vmem:[#allocation3 + $0xc0] sm:$0xff]  ;;  %v4335_v37 = vld [vmem:[#allocation3 + $0xc8] sm:$0xff] }
 0x2be   : > { %5157 = vst.msk [vmem:[#allocation3 + $0x68] sm:$0xff] %vm3468_vm2, %v5061_v49  ;;  %12030 = vmatprep.mubr.msk.bf16.mxu1 %vm3468_vm2, %v5350_v13  ;;  %v12930_v36 = vpop.eup %12929  ;;  %v3462_v2 = vpack.c.bf16 %v3355_v18, %v3354_v27  ;;  %v6309_v46 = vld [vmem:[#allocation2 + $0x2f8] sm:$0xff]  ;;  %v4337_v13 = vld [vmem:[#allocation3 + $0xd8] sm:$0xff] }
 0x2bf   : > { %v12932_v41 = vpop.eup %12931  ;;  %v10556_v12 = vadd.f32 -1.0, %v12930_v36  ;;  %v6308_v57 = vld [vmem:[#allocation2 + $0x2f0] sm:$0xff]  ;;  %3566 = vst.msk [vmem:[#allocation2 + $0x308] sm:$0xff] %vm3468_vm2, %v3463_v30  ;;  %v5355_v55 = vld [vmem:[#allocation2 + $0xb8] sm:$0xff]  ;;  %v4340_v36 = vld [vmem:[#allocation3 + $0xf0] sm:$0xff] }
 0x2c0   : > { %v11916_v52 = vpop.f32.mrb[112].mxu1  ;;  %12190 = vmatprep.mubr.msk.bf16.mxu0 %vm3468_vm2, %v6308_v57  ;;  %3565 = vst.msk [vmem:[#allocation2 + $0x300] sm:$0xff] %vm3468_vm2, %v3462_v2  ;;  %v10554_v14 = vadd.f32 -1.0, %v12932_v41  ;;  %v4341_v41 = vld [vmem:[#allocation3 + $0xf8] sm:$0xff] }
 0x2c1   : > { %v5066_v48 = vadd.f32 %v11916_v52, %v4328_v43  ;;  %v4729_v20 = vpop.f32.mrb[113].mxu1  ;;  %v12934_v21 = vpop.eup %12933  ;;  %12191 = vmatmul.mubr.msk.bf16.gmra.mrb[32].mxu0 %vm3468_vm2, %v6309_v46  ;;  %v3360_v58 = vsel %vm2340_vm11, %v15243_v22, %v10556_v12  ;;  %v5356_v52 = vld [vmem:[#allocation2 + $0xc0] sm:$0xff]  ;;  %v5357_v57 = vld [vmem:[#allocation2 + $0xc8] sm:$0xff]  ;;  %v5358_v46 = vld [vmem:[#allocation2 + $0xd0] sm:$0xff] }
 0x2c2   : > { %v5064_v24 = vadd.f32 %v4729_v20, %v4326_v28  ;;  %v11917_v19 = vpop.f32.mrb[114].mxu1  ;;  %v10557_v3 = vadd.f32 -1.0, %v12934_v21  ;;  %v3358_v32 = vsel %vm2338_vm13, %v15246_v61, %v10554_v14  ;;  %v4338_v20 = vld [vmem:[#allocation3 + $0xe0] sm:$0xff] }
 0x2c3   : > { %5162 = vst.msk [vmem:[#allocation3 + $0x90] sm:$0xff] %vm3468_vm2, %v5066_v48  ;;  %v5067_v54 = vadd.f32 %v11917_v19, %v4329_v45  ;;  %v4732_v7 = vpop.f32.mrb[115].mxu1  ;;  %v4339_v19 = vld [vmem:[#allocation3 + $0xe8] sm:$0xff] }
 0x2c4   : > { %5160 = vst.msk [vmem:[#allocation3 + $0x80] sm:$0xff] %vm3468_vm2, %v5064_v24  ;;  %v5065_v33 = vadd.f32 %v4732_v7, %v4327_v63  ;;  %v12936_v26 = vpop.eup %12935  ;;  %v3361_v59 = vsel %vm2341_vm12, %v15268_v40, %v10557_v3  ;;  %v4343_v3 = vld [vmem:[#allocation3 + $0x108] sm:$0xff] }
 0x2c5   : > { %5163 = vst.msk [vmem:[#allocation3 + $0x98] sm:$0xff] %vm3468_vm2, %v5067_v54  ;;  %12031 = vmatmul.mubr.msk.bf16.gmra.mrb[220].mxu1 %vm3468_vm2, %v5351_v53  ;;  %v3465_v8 = vpack.c.bf16 %v3361_v59, %v3360_v58  ;;  %v10555_v0 = vadd.f32 -1.0, %v12936_v26  ;;  %v4344_v54 = vld [vmem:[#allocation3 + $0x110] sm:$0xff] }
 0x2c6   : > { %5161 = vst.msk [vmem:[#allocation3 + $0x88] sm:$0xff] %vm3468_vm2, %v5065_v33  ;;  %12034 = vmatprep.mubr.msk.bf16.mxu1 %vm3468_vm2, %v5352_v11  ;;  %v6311_v10 = vld [vmem:[#allocation2 + $0x308] sm:$0xff]  ;;  %v4342_v33 = vld [vmem:[#allocation3 + $0x100] sm:$0xff]  ;;  %v5360_v59 = vld [vmem:[#allocation2 + $0xe0] sm:$0xff] }
 0x2c7   : > { %3568 = vst.msk [vmem:[#allocation2 + $0x318] sm:$0xff] %vm3468_vm2, %v3465_v8  ;;  %v3359_v40 = vsel %vm2339_vm14, %v15277_v42, %v10555_v0  ;;  %v6310_v1 = vld [vmem:[#allocation2 + $0x300] sm:$0xff]  ;;  %v4345_v11 = vld [vmem:[#allocation3 + $0x118] sm:$0xff] }
 0x2c8   : > { %v11920_v44 = vpop.f32.mrb[116].mxu1  ;;  %v3464_v60 = vpack.c.bf16 %v3359_v40, %v3358_v32  ;;  %12194 = vmatprep.mubr.msk.bf16.mxu0 %vm3468_vm2, %v6310_v1  ;;  %v4336_v42 = vld [vmem:[#allocation3 + $0xd0] sm:$0xff]  ;;  %v4349_v40 = vld [vmem:[#allocation3 + $0x138] sm:$0xff] }
 0x2c9   : > { %v5070_v31 = vadd.f32 %v11920_v44, %v4332_v15  ;;  %v4745_v35 = vpop.f32.mrb[117].mxu1  ;;  %12195 = vmatmul.mubr.msk.bf16.gmra.mrb[36].mxu0 %vm3468_vm2, %v6311_v10  ;;  %v5359_v44 = vld [vmem:[#allocation2 + $0xd8] sm:$0xff]  ;;  %v4348_v32 = vld [vmem:[#allocation3 + $0x130] sm:$0xff] }
 0x2ca   : > { %v5068_v4 = vadd.f32 %v4745_v35, %v4330_v5  ;;  %v11921_v22 = vpop.f32.mrb[118].mxu1  ;;  %3567 = vst.msk [vmem:[#allocation2 + $0x310] sm:$0xff] %vm3468_vm2, %v3464_v60  ;;  %v4347_v60 = vld [vmem:[#allocation3 + $0x128] sm:$0xff] }
 0x2cb   : > { %5166 = vst.msk [vmem:[#allocation3 + $0xb0] sm:$0xff] %vm3468_vm2, %v5070_v31  ;;  %v5071_v51 = vadd.f32 %v11921_v22, %v4333_v47  ;;  %v4748_v25 = vpop.f32.mrb[119].mxu1  ;;  %v4346_v22 = vld [vmem:[#allocation3 + $0x120] sm:$0xff] }
 0x2cc   : > { %5164 = vst.msk [vmem:[#allocation3 + $0xa0] sm:$0xff] %vm3468_vm2, %v5068_v4  ;;  %v5069_v61 = vadd.f32 %v4748_v25, %v4331_v56 }
 0x2cd   : > { %5167 = vst.msk [vmem:[#allocation3 + $0xb8] sm:$0xff] %vm3468_vm2, %v5071_v51  ;;  %12035 = vmatmul.mubr.msk.bf16.gmra.mrb[224].mxu1 %vm3468_vm2, %v5353_v62 }
 0x2ce   : > { %5165 = vst.msk [vmem:[#allocation3 + $0xa8] sm:$0xff] %vm3468_vm2, %v5069_v61  ;;  %12038 = vmatprep.mubr.msk.bf16.mxu1 %vm3468_vm2, %v5354_v17  ;;  %v6313_v43 = vld [vmem:[#allocation2 + $0x318] sm:$0xff] }
 0x2d0   : > { %v11924_v38 = vpop.f32.mrb[120].mxu1 }
 0x2d1   : > { %v5074_v49 = vadd.f32 %v11924_v38, %v4336_v42  ;;  %v4761_v16 = vpop.f32.mrb[121].mxu1  ;;  %v6312_v39 = vld [vmem:[#allocation2 + $0x310] sm:$0xff] }
 0x2d2   : > { %v5072_v34 = vadd.f32 %v4761_v16, %v4334_v50  ;;  %v11925_v29 = vpop.f32.mrb[122].mxu1  ;;  %12198 = vmatprep.mubr.msk.bf16.mxu0 %vm3468_vm2, %v6312_v39  ;;  %v5361_v16 = vld [vmem:[#allocation2 + $0xe8] sm:$0xff] }
 0x2d3   : > { %5170 = vst.msk [vmem:[#allocation3 + $0xd0] sm:$0xff] %vm3468_vm2, %v5074_v49  ;;  %v5075_v23 = vadd.f32 %v11925_v29, %v4337_v13  ;;  %v4764_v6 = vpop.f32.mrb[123].mxu1  ;;  %12199 = vmatmul.mubr.msk.bf16.gmra.mrb[40].mxu0 %vm3468_vm2, %v6313_v43  ;;  %v4352_v43 = vld [vmem:[#allocation3 + $0x150] sm:$0xff] }
 0x2d4   : > { %5168 = vst.msk [vmem:[#allocation3 + $0xc0] sm:$0xff] %vm3468_vm2, %v5072_v34  ;;  %v5073_v27 = vadd.f32 %v4764_v6, %v4335_v37 }
 0x2d5   : > { %5171 = vst.msk [vmem:[#allocation3 + $0xd8] sm:$0xff] %vm3468_vm2, %v5075_v23  ;;  %12039 = vmatmul.mubr.msk.bf16.gmra.mrb[228].mxu1 %vm3468_vm2, %v5355_v55  ;;  %v5362_v23 = vld [vmem:[#allocation2 + $0xf0] sm:$0xff] }
 0x2d6   : > { %5169 = vst.msk [vmem:[#allocation3 + $0xc8] sm:$0xff] %vm3468_vm2, %v5073_v27  ;;  %12042 = vmatprep.mubr.msk.bf16.mxu1 %vm3468_vm2, %v5356_v52 }
 0x2d8   : > { %v11928_v48 = vpop.f32.mrb[124].mxu1 }
 0x2d9   : > { %v5078_v28 = vadd.f32 %v11928_v48, %v4340_v36  ;;  %v4777_v30 = vpop.f32.mrb[125].mxu1  ;;  %v4350_v48 = vld [vmem:[#allocation3 + $0x140] sm:$0xff] }
 0x2da   : > { %v5076_v18 = vadd.f32 %v4777_v30, %v4338_v20  ;;  %v11929_v24 = vpop.f32.mrb[126].mxu1  ;;  %v4353_v30 = vld [vmem:[#allocation3 + $0x158] sm:$0xff] }
 0x2db   : > { %5174 = vst.msk [vmem:[#allocation3 + $0xf0] sm:$0xff] %vm3468_vm2, %v5078_v28  ;;  %v5079_v45 = vadd.f32 %v11929_v24, %v4341_v41  ;;  %v4780_v2 = vpop.f32.mrb[127].mxu1  ;;  %v4351_v24 = vld [vmem:[#allocation3 + $0x148] sm:$0xff] }
 0x2dc   : > { %5172 = vst.msk [vmem:[#allocation3 + $0xe0] sm:$0xff] %vm3468_vm2, %v5076_v18  ;;  %v5077_v12 = vadd.f32 %v4780_v2, %v4339_v19  ;;  %v11784_v31 = vpop.f32.mrb[200].mxu0  ;;  %v5363_v2 = vld [vmem:[#allocation2 + $0xf8] sm:$0xff] }
 0x2dd   : > { %5175 = vst.msk [vmem:[#allocation3 + $0xf8] sm:$0xff] %vm3468_vm2, %v5079_v45  ;;  %12043 = vmatmul.mubr.msk.bf16.gmra.mrb[232].mxu1 %vm3468_vm2, %v5357_v57  ;;  %v15360_v5 = vadd.f32 %v15265_v9, %v11784_v31  ;;  %v2127_v35 = vpop.f32.mrb[201].mxu0  ;;  %v5364_v57 = vld [vmem:[#allocation2 + $0x100] sm:$0xff] }
 0x2de   : > { %5173 = vst.msk [vmem:[#allocation3 + $0xe8] sm:$0xff] %vm3468_vm2, %v5077_v12  ;;  %12046 = vmatprep.mubr.msk.bf16.mxu1 %vm3468_vm2, %v5358_v46  ;;  %v15363_v0 = vadd.f32 %v15265_v9, %v2127_v35  ;;  %v11785_v4 = vpop.f32.mrb[202].mxu0 }
 0x2df   : > { %v2548_v51 = vmin.f32 %v15360_v5, 0.0  ;;  %v15367_v56 = vadd.f32 %v15265_v9, %v11785_v4  ;;  %v2130_v49 = vpop.f32.mrb[203].mxu0  ;;  %vm2344_vm15 = vcmp.gt.f32.partialorder %v15360_v5, 0.0  ;;  %v4355_v4 = vld [vmem:[#allocation3 + $0x168] sm:$0xff] }
 0x2e0   : > { %v11932_v63 = vpop.f32.mrb[128].mxu1  ;;  %v2546_v61 = vmin.f32 %v15363_v0, 0.0  ;;  %v15374_v13 = vadd.f32 %v15265_v9, %v2130_v49  ;;  %vm2342_vm0 = vcmp.gt.f32.partialorder %v15363_v0, 0.0 }
 0x2e1   : > { %v5082_v7 = vadd.f32 %v11932_v63, %v4344_v54  ;;  %v4793_v53 = vpop.f32.mrb[129].mxu1  ;;  %v2954_v42 = vmul.f32 1.442695, %v2548_v51  ;;  %v2549_v38 = vmin.f32 %v15367_v56, 0.0  ;;  %vm2345_vm1 = vcmp.gt.f32.partialorder %v15367_v56, 0.0  ;;  %v5365_v51 = vld [vmem:[#allocation2 + $0x108] sm:$0xff] }
 0x2e2   : > { %v5080_v21 = vadd.f32 %v4793_v53, %v4342_v33  ;;  %v11933_v14 = vpop.f32.mrb[130].mxu1  ;;  %v2950_v34 = vmul.f32 1.442695, %v2546_v61  ;;  %v2547_v27 = vmin.f32 %v15374_v13, 0.0  ;;  %v4356_v53 = vld [vmem:[#allocation3 + $0x170] sm:$0xff]  ;;  %vm2343_vm3 = vcmp.gt.f32.partialorder %v15374_v13, 0.0 }
 0x2e3   : > { %5178 = vst.msk [vmem:[#allocation3 + $0x110] sm:$0xff] %vm3468_vm2, %v5082_v7  ;;  %v5083_v58 = vadd.f32 %v11933_v14, %v4345_v11  ;;  %v4796_v26 = vpop.f32.mrb[131].mxu1  ;;  %12937 = vpow2.f32 %v2954_v42  ;;  %v2956_v37 = vmul.f32 1.442695, %v2549_v38 }
 0x2e4   : > { %5176 = vst.msk [vmem:[#allocation3 + $0x100] sm:$0xff] %vm3468_vm2, %v5080_v21  ;;  %v5081_v15 = vadd.f32 %v4796_v26, %v4343_v3  ;;  %12939 = vpow2.f32 %v2950_v34  ;;  %v2952_v39 = vmul.f32 1.442695, %v2547_v27  ;;  %v4354_v3 = vld [vmem:[#allocation3 + $0x160] sm:$0xff] }
 0x2e5   : > { %5179 = vst.msk [vmem:[#allocation3 + $0x118] sm:$0xff] %vm3468_vm2, %v5083_v58  ;;  %12047 = vmatmul.mubr.msk.bf16.gmra.mrb[236].mxu1 %vm3468_vm2, %v5359_v44  ;;  %12941 = vpow2.f32 %v2956_v37 }
 0x2e6   : > { %5177 = vst.msk [vmem:[#allocation3 + $0x108] sm:$0xff] %vm3468_vm2, %v5081_v15  ;;  %12050 = vmatprep.mubr.msk.bf16.mxu1 %vm3468_vm2, %v5360_v59  ;;  %12943 = vpow2.f32 %v2952_v39  ;;  %v4357_v59 = vld [vmem:[#allocation3 + $0x178] sm:$0xff] }
 0x2e7   : > { %v15376_v29 = vpop.f32.mrb[204].mxu0 }
 0x2e8   : > { %v11936_v8 = vpop.f32.mrb[132].mxu1  ;;  %v15380_v6 = vpop.f32.mrb[205].mxu0 }
 0x2e9   : > { %v5086_v47 = vadd.f32 %v11936_v8, %v4348_v32  ;;  %v4809_v10 = vpop.f32.mrb[133].mxu1  ;;  %v15385_v9 = vpop.f32.mrb[206].mxu0 }
 0x2ea   : > { %v5084_v25 = vadd.f32 %v4809_v10, %v4346_v22  ;;  %v11937_v1 = vpop.f32.mrb[134].mxu1  ;;  %v15387_v55 = vpop.f32.mrb[207].mxu0 }
 0x2eb   : > { %5182 = vst.msk [vmem:[#allocation3 + $0x130] sm:$0xff] %vm3468_vm2, %v5086_v47  ;;  %v5087_v62 = vadd.f32 %v11937_v1, %v4349_v40  ;;  %v4812_v17 = vpop.f32.mrb[135].mxu1 }
 0x2ec   : > { %5180 = vst.msk [vmem:[#allocation3 + $0x120] sm:$0xff] %vm3468_vm2, %v5084_v25  ;;  %v5085_v50 = vadd.f32 %v4812_v17, %v4347_v60  ;;  %v4360_v60 = vld [vmem:[#allocation3 + $0x190] sm:$0xff] }
 0x2ed   : > { %5183 = vst.msk [vmem:[#allocation3 + $0x138] sm:$0xff] %vm3468_vm2, %v5087_v62  ;;  %12051 = vmatmul.mubr.msk.bf16.gmra.mrb[240].mxu1 %vm3468_vm2, %v5361_v16  ;;  %v12938_v63 = vpop.eup %12937 }
 0x2ee   : > { %5181 = vst.msk [vmem:[#allocation3 + $0x128] sm:$0xff] %vm3468_vm2, %v5085_v50  ;;  %12054 = vmatprep.mubr.msk.bf16.mxu1 %vm3468_vm2, %v5362_v23  ;;  %v12940_v33 = vpop.eup %12939  ;;  %v10560_v11 = vadd.f32 -1.0, %v12938_v63  ;;  %v4358_v50 = vld [vmem:[#allocation3 + $0x180] sm:$0xff]  ;;  %v4361_v23 = vld [vmem:[#allocation3 + $0x198] sm:$0xff] }
 0x2ef   : > { %v12942_v14 = vpop.eup %12941  ;;  %v10558_v15 = vadd.f32 -1.0, %v12940_v33 }
 0x2f0   : > { %v11940_v52 = vpop.f32.mrb[136].mxu1  ;;  %v3364_v35 = vsel %vm2344_vm15, %v15360_v5, %v10560_v11  ;;  %v10561_v32 = vadd.f32 -1.0, %v12942_v14  ;;  %v12944_v22 = vpop.eup %12943  ;;  %v5366_v5 = vld [vmem:[#allocation2 + $0x110] sm:$0xff] }
 0x2f1   : > { %v5090_v36 = vadd.f32 %v11940_v52, %v4352_v43  ;;  %v4825_v28 = vpop.f32.mrb[137].mxu1  ;;  %v15391_v12 = vpop.f32.mrb[208].mxu0  ;;  %v3362_v40 = vsel %vm2342_vm0, %v15363_v0, %v10558_v15  ;;  %v10559_v61 = vadd.f32 -1.0, %v12944_v22  ;;  %v4359_v43 = vld [vmem:[#allocation3 + $0x188] sm:$0xff] }
 0x2f2   : > { %v5088_v20 = vadd.f32 %v4825_v28, %v4350_v48  ;;  %v11941_v18 = vpop.f32.mrb[138].mxu1  ;;  %v15395_v46 = vpop.f32.mrb[209].mxu0  ;;  %v3365_v25 = vsel %vm2345_vm1, %v15367_v56, %v10561_v32  ;;  %v5368_v48 = vld [vmem:[#allocation2 + $0x120] sm:$0xff] }
 0x2f3   : > { %5186 = vst.msk [vmem:[#allocation3 + $0x150] sm:$0xff] %vm3468_vm2, %v5090_v36  ;;  %v5091_v41 = vadd.f32 %v11941_v18, %v4353_v30  ;;  %v4828_v45 = vpop.f32.mrb[139].mxu1  ;;  %v15399_v54 = vpop.f32.mrb[210].mxu0  ;;  %v3467_v1 = vpack.c.bf16 %v3365_v25, %v3364_v35  ;;  %v3363_v62 = vsel %vm2343_vm3, %v15374_v13, %v10559_v61  ;;  %v5367_v36 = vld [vmem:[#allocation2 + $0x118] sm:$0xff]  ;;  %v5372_v61 = vld [vmem:[#allocation2 + $0x140] sm:$0xff] }
 0x2f4   : > { %5184 = vst.msk [vmem:[#allocation3 + $0x140] sm:$0xff] %vm3468_vm2, %v5088_v20  ;;  %v5089_v19 = vadd.f32 %v4828_v45, %v4351_v24  ;;  %v15402_v7 = vpop.f32.mrb[211].mxu0  ;;  %v3466_v42 = vpack.c.bf16 %v3363_v62, %v3362_v40  ;;  %v4364_v20 = vld [vmem:[#allocation3 + $0x1b0] sm:$0xff]  ;;  %v4362_v24 = vld [vmem:[#allocation3 + $0x1a0] sm:$0xff] }
 0x2f5   : > { %5187 = vst.msk [vmem:[#allocation3 + $0x158] sm:$0xff] %vm3468_vm2, %v5091_v41  ;;  %12055 = vmatmul.mubr.msk.bf16.gmra.mrb[244].mxu1 %vm3468_vm2, %v5363_v2  ;;  %3570 = vst.msk [vmem:[#allocation2 + $0x328] sm:$0xff] %vm3468_vm2, %v3467_v1  ;;  %v5371_v1 = vld [vmem:[#allocation2 + $0x138] sm:$0xff]  ;;  %v4372_v62 = vld [vmem:[#allocation3 + $0x1f0] sm:$0xff] }
 0x2f6   : > { %5185 = vst.msk [vmem:[#allocation3 + $0x148] sm:$0xff] %vm3468_vm2, %v5089_v19  ;;  %12058 = vmatprep.mubr.msk.bf16.mxu1 %vm3468_vm2, %v5364_v57  ;;  %3569 = vst.msk [vmem:[#allocation2 + $0x320] sm:$0xff] %vm3468_vm2, %v3466_v42  ;;  %v4365_v57 = vld [vmem:[#allocation3 + $0x1b8] sm:$0xff] }
 0x2f8   : > { %v11944_v21 = vpop.f32.mrb[140].mxu1 }
 0x2f9   : > { %v5094_v58 = vadd.f32 %v11944_v21, %v4356_v53  ;;  %v4841_v26 = vpop.f32.mrb[141].mxu1  ;;  %v15418_v56 = vpop.f32.mrb[212].mxu0  ;;  %v4363_v21 = vld [vmem:[#allocation3 + $0x1a8] sm:$0xff] }
 0x2fa   : > { %v5092_v44 = vadd.f32 %v4841_v26, %v4354_v3  ;;  %v11945_v31 = vpop.f32.mrb[142].mxu1  ;;  %v15420_v38 = vpop.f32.mrb[213].mxu0  ;;  %v5370_v3 = vld [vmem:[#allocation2 + $0x130] sm:$0xff]  ;;  %v4368_v26 = vld [vmem:[#allocation3 + $0x1d0] sm:$0xff] }
 0x2fb   : > { %5190 = vst.msk [vmem:[#allocation3 + $0x170] sm:$0xff] %vm3468_vm2, %v5094_v58  ;;  %v5095_v8 = vadd.f32 %v11945_v31, %v4357_v59  ;;  %v4844_v47 = vpop.f32.mrb[143].mxu1  ;;  %v15422_v16 = vpop.f32.mrb[214].mxu0  ;;  %v5369_v58 = vld [vmem:[#allocation2 + $0x128] sm:$0xff]  ;;  %v4366_v31 = vld [vmem:[#allocation3 + $0x1c0] sm:$0xff] }
 0x2fc   : > { %5188 = vst.msk [vmem:[#allocation3 + $0x160] sm:$0xff] %vm3468_vm2, %v5092_v44  ;;  %v5093_v10 = vadd.f32 %v4844_v47, %v4355_v4  ;;  %v15425_v27 = vpop.f32.mrb[215].mxu0  ;;  %v4369_v4 = vld [vmem:[#allocation3 + $0x1d8] sm:$0xff] }
 0x2fd   : > { %5191 = vst.msk [vmem:[#allocation3 + $0x178] sm:$0xff] %vm3468_vm2, %v5095_v8  ;;  %12059 = vmatmul.mubr.msk.bf16.gmra.mrb[248].mxu1 %vm3468_vm2, %v5365_v51  ;;  %v4367_v51 = vld [vmem:[#allocation3 + $0x1c8] sm:$0xff] }
 0x2fe   : > { %5189 = vst.msk [vmem:[#allocation3 + $0x168] sm:$0xff] %vm3468_vm2, %v5093_v10  ;;  %12062 = vmatprep.mubr.msk.bf16.mxu1 %vm3468_vm2, %v5366_v5 }
 0x300   : > { %v11948_v17 = vpop.f32.mrb[144].mxu1 }
 0x301   : > { %v5098_v49 = vadd.f32 %v11948_v17, %v4360_v60  ;;  %v4857_v0 = vpop.f32.mrb[145].mxu1  ;;  %v15433_v28 = vpop.f32.mrb[216].mxu0 }
 0x302   : > { %v5096_v34 = vadd.f32 %v4857_v0, %v4358_v50  ;;  %v11949_v37 = vpop.f32.mrb[146].mxu1  ;;  %v15435_v18 = vpop.f32.mrb[217].mxu0 }
 0x303   : > { %5194 = vst.msk [vmem:[#allocation3 + $0x190] sm:$0xff] %vm3468_vm2, %v5098_v49  ;;  %v5099_v13 = vadd.f32 %v11949_v37, %v4361_v23  ;;  %v4860_v52 = vpop.f32.mrb[147].mxu1  ;;  %v15437_v19 = vpop.f32.mrb[218].mxu0  ;;  %v4370_v49 = vld [vmem:[#allocation3 + $0x1e0] sm:$0xff]  ;;  %v4373_v23 = vld [vmem:[#allocation3 + $0x1f8] sm:$0xff] }
 0x304   : > { %5192 = vst.msk [vmem:[#allocation3 + $0x180] sm:$0xff] %vm3468_vm2, %v5096_v34  ;;  %v5097_v39 = vadd.f32 %v4860_v52, %v4359_v43  ;;  %v15439_v33 = vpop.f32.mrb[219].mxu0  ;;  %v4371_v52 = vld [vmem:[#allocation3 + $0x1e8] sm:$0xff] }
 0x305   : > { %5195 = vst.msk [vmem:[#allocation3 + $0x198] sm:$0xff] %vm3468_vm2, %v5099_v13  ;;  %12063 = vmatmul.mubr.msk.bf16.gmra.mrb[252].mxu1 %vm3468_vm2, %v5367_v36 }
 0x306   : > { %5193 = vst.msk [vmem:[#allocation3 + $0x188] sm:$0xff] %vm3468_vm2, %v5097_v39  ;;  %12066 = vmatprep.mubr.msk.bf16.mxu1 %vm3468_vm2, %v5368_v48 }
 0x308   : > { %v11952_v30 = vpop.f32.mrb[148].mxu1 }
 0x309   : > { %v5102_v41 = vadd.f32 %v11952_v30, %v4364_v20  ;;  %v4873_v45 = vpop.f32.mrb[149].mxu1  ;;  %v15447_v44 = vpop.f32.mrb[220].mxu0  ;;  %v5373_v20 = vld [vmem:[#allocation2 + $0x148] sm:$0xff]  ;;  %v5374_v30 = vld [vmem:[#allocation2 + $0x150] sm:$0xff] }
 0x30a   : > { %v5100_v2 = vadd.f32 %v4873_v45, %v4362_v24  ;;  %v11953_v63 = vpop.f32.mrb[150].mxu1  ;;  %v15449_v32 = vpop.f32.mrb[221].mxu0 }
 0x30b   : > { %5198 = vst.msk [vmem:[#allocation3 + $0x1b0] sm:$0xff] %vm3468_vm2, %v5102_v41  ;;  %v5103_v53 = vadd.f32 %v11953_v63, %v4365_v57  ;;  %v4876_v11 = vpop.f32.mrb[151].mxu1  ;;  %v15451_v22 = vpop.f32.mrb[222].mxu0  ;;  %v4376_v41 = vld [vmem:[#allocation3 + $0x210] sm:$0xff]  ;;  %v4374_v57 = vld [vmem:[#allocation3 + $0x200] sm:$0xff] }
 0x30c   : > { %5196 = vst.msk [vmem:[#allocation3 + $0x1a0] sm:$0xff] %vm3468_vm2, %v5100_v2  ;;  %v5101_v14 = vadd.f32 %v4876_v11, %v4363_v21  ;;  %v15454_v5 = vpop.f32.mrb[223].mxu0  ;;  %v4377_v11 = vld [vmem:[#allocation3 + $0x218] sm:$0xff] }
 0x30d   : > { %5199 = vst.msk [vmem:[#allocation3 + $0x1b8] sm:$0xff] %vm3468_vm2, %v5103_v53  ;;  %12067 = vmatmul.mubr.msk.bf16.gmra.mrb[0].mxu1 %vm3468_vm2, %v5369_v58 }
 0x30e   : > { %5197 = vst.msk [vmem:[#allocation3 + $0x1a8] sm:$0xff] %vm3468_vm2, %v5101_v14  ;;  %12070 = vmatprep.mubr.msk.bf16.mxu1 %vm3468_vm2, %v5370_v3 }
 0x310   : > { %v11956_v15 = vpop.f32.mrb[152].mxu1 }
 0x311   : > { %v5106_v59 = vadd.f32 %v11956_v15, %v4368_v26  ;;  %v4889_v35 = vpop.f32.mrb[153].mxu1  ;;  %v4375_v26 = vld [vmem:[#allocation3 + $0x208] sm:$0xff] }
 0x312   : > { %v5104_v8 = vadd.f32 %v4889_v35, %v4366_v31  ;;  %v11957_v47 = vpop.f32.mrb[154].mxu1  ;;  %v15461_v17 = vpop.f32.mrb[224].mxu0  ;;  %v5375_v35 = vld [vmem:[#allocation2 + $0x158] sm:$0xff] }
 0x313   : > { %5202 = vst.msk [vmem:[#allocation3 + $0x1d0] sm:$0xff] %vm3468_vm2, %v5106_v59  ;;  %v5107_v10 = vadd.f32 %v11957_v47, %v4369_v4  ;;  %v4892_v25 = vpop.f32.mrb[155].mxu1  ;;  %v15463_v0 = vpop.f32.mrb[225].mxu0  ;;  %v4380_v4 = vld [vmem:[#allocation3 + $0x230] sm:$0xff] }
 0x314   : > { %5200 = vst.msk [vmem:[#allocation3 + $0x1c0] sm:$0xff] %vm3468_vm2, %v5104_v8  ;;  %v5105_v40 = vadd.f32 %v4892_v25, %v4367_v51  ;;  %v15465_v13 = vpop.f32.mrb[226].mxu0  ;;  %v5376_v8 = vld [vmem:[#allocation2 + $0x160] sm:$0xff]  ;;  %v4378_v25 = vld [vmem:[#allocation3 + $0x220] sm:$0xff] }
 0x315   : > { %5203 = vst.msk [vmem:[#allocation3 + $0x1d8] sm:$0xff] %vm3468_vm2, %v5107_v10  ;;  %12071 = vmatmul.mubr.msk.bf16.gmra.mrb[4].mxu1 %vm3468_vm2, %v5371_v1  ;;  %v15468_v36 = vpop.f32.mrb[227].mxu0 }
 0x316   : > { %5201 = vst.msk [vmem:[#allocation3 + $0x1c8] sm:$0xff] %vm3468_vm2, %v5105_v40  ;;  %12074 = vmatprep.mubr.msk.bf16.mxu1 %vm3468_vm2, %v5372_v61 }
 0x318   : > { %v11960_v60 = vpop.f32.mrb[156].mxu1 }
 0x319   : > { %v5110_v42 = vadd.f32 %v11960_v60, %v4372_v62  ;;  %v4905_v50 = vpop.f32.mrb[157].mxu1  ;;  %v4381_v62 = vld [vmem:[#allocation3 + $0x238] sm:$0xff] }
 0x31a   : > { %v5108_v34 = vadd.f32 %v4905_v50, %v4370_v49  ;;  %v11961_v37 = vpop.f32.mrb[158].mxu1  ;;  %v15475_v45 = vpop.f32.mrb[228].mxu0  ;;  %v4379_v50 = vld [vmem:[#allocation3 + $0x228] sm:$0xff] }
 0x31b   : > { %5206 = vst.msk [vmem:[#allocation3 + $0x1f0] sm:$0xff] %vm3468_vm2, %v5110_v42  ;;  %v5111_v43 = vadd.f32 %v11961_v37, %v4373_v23  ;;  %v4908_v39 = vpop.f32.mrb[159].mxu1  ;;  %v15477_v53 = vpop.f32.mrb[229].mxu0 }
 0x31c   : > { %5204 = vst.msk [vmem:[#allocation3 + $0x1e0] sm:$0xff] %vm3468_vm2, %v5108_v34  ;;  %v5109_v48 = vadd.f32 %v4908_v39, %v4371_v52  ;;  %v15479_v58 = vpop.f32.mrb[230].mxu0  ;;  %v5378_v52 = vld [vmem:[#allocation2 + $0x170] sm:$0xff]  ;;  %v4384_v39 = vld [vmem:[#allocation3 + $0x250] sm:$0xff] }
 0x31d   : > { %5207 = vst.msk [vmem:[#allocation3 + $0x1f8] sm:$0xff] %vm3468_vm2, %v5111_v43  ;;  %12075 = vmatmul.mubr.msk.bf16.gmra.mrb[8].mxu1 %vm3468_vm2, %v5373_v20  ;;  %v15482_v59 = vpop.f32.mrb[231].mxu0  ;;  %v5377_v43 = vld [vmem:[#allocation2 + $0x168] sm:$0xff] }
 0x31e   : > { %5205 = vst.msk [vmem:[#allocation3 + $0x1e8] sm:$0xff] %vm3468_vm2, %v5109_v48  ;;  %12078 = vmatprep.mubr.msk.bf16.mxu1 %vm3468_vm2, %v5374_v30 }
 0x320   : > { %v11964_v24 = vpop.f32.mrb[160].mxu1 }
 0x321   : > { %v5114_v2 = vadd.f32 %v11964_v24, %v4376_v41  ;;  %v4921_v63 = vpop.f32.mrb[161].mxu1  ;;  %v4382_v41 = vld [vmem:[#allocation3 + $0x240] sm:$0xff] }
 0x322   : > { %v5112_v21 = vadd.f32 %v4921_v63, %v4374_v57  ;;  %v11965_v14 = vpop.f32.mrb[162].mxu1  ;;  %v15489_v10 = vpop.f32.mrb[232].mxu0  ;;  %v4385_v63 = vld [vmem:[#allocation3 + $0x258] sm:$0xff] }
 0x323   : > { %5210 = vst.msk [vmem:[#allocation3 + $0x210] sm:$0xff] %vm3468_vm2, %v5114_v2  ;;  %v5115_v3 = vadd.f32 %v11965_v14, %v4377_v11  ;;  %v4924_v15 = vpop.f32.mrb[163].mxu1  ;;  %v15491_v1 = vpop.f32.mrb[233].mxu0 }
 0x324   : > { %5208 = vst.msk [vmem:[#allocation3 + $0x200] sm:$0xff] %vm3468_vm2, %v5112_v21  ;;  %v5113_v31 = vadd.f32 %v4924_v15, %v4375_v26  ;;  %v15493_v42 = vpop.f32.mrb[234].mxu0 }
 0x325   : > { %5211 = vst.msk [vmem:[#allocation3 + $0x218] sm:$0xff] %vm3468_vm2, %v5115_v3  ;;  %12079 = vmatmul.mubr.msk.bf16.gmra.mrb[12].mxu1 %vm3468_vm2, %v5375_v35  ;;  %v15496_v23 = vpop.f32.mrb[235].mxu0  ;;  %v4383_v3 = vld [vmem:[#allocation3 + $0x248] sm:$0xff] }
 0x326   : > { %5209 = vst.msk [vmem:[#allocation3 + $0x208] sm:$0xff] %vm3468_vm2, %v5113_v31  ;;  %12082 = vmatprep.mubr.msk.bf16.mxu1 %vm3468_vm2, %v5376_v8  ;;  %v5379_v35 = vld [vmem:[#allocation2 + $0x178] sm:$0xff]  ;;  %v5380_v8 = vld [vmem:[#allocation2 + $0x180] sm:$0xff] }
 0x328   : > { %v11968_v47 = vpop.f32.mrb[164].mxu1 }
 0x329   : > { %v5118_v51 = vadd.f32 %v11968_v47, %v4380_v4  ;;  %v4937_v40 = vpop.f32.mrb[165].mxu1  ;;  %v4388_v4 = vld [vmem:[#allocation3 + $0x270] sm:$0xff] }
 0x32a   : > { %v5116_v61 = vadd.f32 %v4937_v40, %v4378_v25  ;;  %v11969_v60 = vpop.f32.mrb[166].mxu1  ;;  %v15503_v20 = vpop.f32.mrb[236].mxu0  ;;  %v4386_v40 = vld [vmem:[#allocation3 + $0x260] sm:$0xff] }
 0x32b   : > { %5214 = vst.msk [vmem:[#allocation3 + $0x230] sm:$0xff] %vm3468_vm2, %v5118_v51  ;;  %v5119_v49 = vadd.f32 %v11969_v60, %v4381_v62  ;;  %v4940_v34 = vpop.f32.mrb[167].mxu1  ;;  %v15505_v2 = vpop.f32.mrb[237].mxu0 }
 0x32c   : > { %5212 = vst.msk [vmem:[#allocation3 + $0x220] sm:$0xff] %vm3468_vm2, %v5116_v61  ;;  %v5117_v37 = vadd.f32 %v4940_v34, %v4379_v50  ;;  %v15507_v11 = vpop.f32.mrb[238].mxu0 }
 0x32d   : > { %5215 = vst.msk [vmem:[#allocation3 + $0x238] sm:$0xff] %vm3468_vm2, %v5119_v49  ;;  %12083 = vmatmul.mubr.msk.bf16.gmra.mrb[16].mxu1 %vm3468_vm2, %v5377_v43  ;;  %v15510_v15 = vpop.f32.mrb[239].mxu0  ;;  %v4389_v49 = vld [vmem:[#allocation3 + $0x278] sm:$0xff]  ;;  %v4387_v43 = vld [vmem:[#allocation3 + $0x268] sm:$0xff] }
 0x32e   : > { %5213 = vst.msk [vmem:[#allocation3 + $0x228] sm:$0xff] %vm3468_vm2, %v5117_v37  ;;  %12086 = vmatprep.mubr.msk.bf16.mxu1 %vm3468_vm2, %v5378_v52 }
 0x330   : > { %v11972_v48 = vpop.f32.mrb[168].mxu1 }
 0x331   : > { %v5122_v30 = vadd.f32 %v11972_v48, %v4384_v39  ;;  %v4953_v24 = vpop.f32.mrb[169].mxu1 }
 0x332   : > { %v5120_v57 = vadd.f32 %v4953_v24, %v4382_v41  ;;  %v11973_v21 = vpop.f32.mrb[170].mxu1  ;;  %v15517_v51 = vpop.f32.mrb[240].mxu0  ;;  %v5382_v41 = vld [vmem:[#allocation2 + $0x190] sm:$0xff]  ;;  %v4392_v24 = vld [vmem:[#allocation3 + $0x290] sm:$0xff] }
 0x333   : > { %5218 = vst.msk [vmem:[#allocation3 + $0x250] sm:$0xff] %vm3468_vm2, %v5122_v30  ;;  %v5123_v14 = vadd.f32 %v11973_v21, %v4385_v63  ;;  %v4956_v26 = vpop.f32.mrb[171].mxu1  ;;  %v15519_v62 = vpop.f32.mrb[241].mxu0  ;;  %v5381_v30 = vld [vmem:[#allocation2 + $0x188] sm:$0xff] }
 0x334   : > { %5216 = vst.msk [vmem:[#allocation3 + $0x240] sm:$0xff] %vm3468_vm2, %v5120_v57  ;;  %v5121_v31 = vadd.f32 %v4956_v26, %v4383_v3  ;;  %v15521_v34 = vpop.f32.mrb[242].mxu0 }
 0x335   : > { %5219 = vst.msk [vmem:[#allocation3 + $0x258] sm:$0xff] %vm3468_vm2, %v5123_v14  ;;  %12087 = vmatmul.mubr.msk.bf16.gmra.mrb[20].mxu1 %vm3468_vm2, %v5379_v35  ;;  %v15524_v39 = vpop.f32.mrb[243].mxu0  ;;  %v4390_v14 = vld [vmem:[#allocation3 + $0x280] sm:$0xff]  ;;  %v4393_v35 = vld [vmem:[#allocation3 + $0x298] sm:$0xff] }
 0x336   : > { %5217 = vst.msk [vmem:[#allocation3 + $0x248] sm:$0xff] %vm3468_vm2, %v5121_v31  ;;  %12090 = vmatprep.mubr.msk.bf16.mxu1 %vm3468_vm2, %v5380_v8 }
 0x338   : > { %v11976_v47 = vpop.f32.mrb[172].mxu1 }
 0x339   : > { %v5126_v25 = vadd.f32 %v11976_v47, %v4388_v4  ;;  %v4969_v61 = vpop.f32.mrb[173].mxu1 }
 0x33a   : > { %v5124_v60 = vadd.f32 %v4969_v61, %v4386_v40  ;;  %v11977_v50 = vpop.f32.mrb[174].mxu1  ;;  %v15531_v63 = vpop.f32.mrb[244].mxu0 }
 0x33b   : > { %5222 = vst.msk [vmem:[#allocation3 + $0x270] sm:$0xff] %vm3468_vm2, %v5126_v25  ;;  %v5127_v37 = vadd.f32 %v11977_v50, %v4389_v49  ;;  %v4972_v52 = vpop.f32.mrb[175].mxu1  ;;  %v15533_v26 = vpop.f32.mrb[245].mxu0  ;;  %v4391_v25 = vld [vmem:[#allocation3 + $0x288] sm:$0xff]  ;;  %v7196_v50 = vld [vmem:[#allocation2 + $0x1b0] sm:$0xff] }
 0x33c   : > { %5220 = vst.msk [vmem:[#allocation3 + $0x260] sm:$0xff] %vm3468_vm2, %v5124_v60  ;;  %v5125_v48 = vadd.f32 %v4972_v52, %v4387_v43  ;;  %v15535_v4 = vpop.f32.mrb[246].mxu0  ;;  %v5383_v49 = vld [vmem:[#allocation2 + $0x198] sm:$0xff] }
 0x33d   : > { %5223 = vst.msk [vmem:[#allocation3 + $0x278] sm:$0xff] %vm3468_vm2, %v5127_v37  ;;  %12091 = vmatmul.mubr.msk.bf16.gmra.mrb[24].mxu1 %vm3468_vm2, %v5381_v30  ;;  %v15538_v61 = vpop.f32.mrb[247].mxu0  ;;  %v4396_v37 = vld [vmem:[#allocation3 + $0x2b0] sm:$0xff]  ;;  %v4394_v30 = vld [vmem:[#allocation3 + $0x2a0] sm:$0xff] }
 0x33e   : > { %5221 = vst.msk [vmem:[#allocation3 + $0x268] sm:$0xff] %vm3468_vm2, %v5125_v48  ;;  %12094 = vmatprep.mubr.msk.bf16.mxu1 %vm3468_vm2, %v5382_v41 }
 0x340   : > { %v11980_v57 = vpop.f32.mrb[176].mxu1 }
 0x341   : > { %v5130_v21 = vadd.f32 %v11980_v57, %v4392_v24  ;;  %v4985_v3 = vpop.f32.mrb[177].mxu1 }
 0x342   : > { %v5128_v31 = vadd.f32 %v4985_v3, %v4390_v14  ;;  %v11981_v8 = vpop.f32.mrb[178].mxu1  ;;  %v15545_v52 = vpop.f32.mrb[248].mxu0 }
 0x343   : > { %5226 = vst.msk [vmem:[#allocation3 + $0x290] sm:$0xff] %vm3468_vm2, %v5130_v21  ;;  %v5131_v47 = vadd.f32 %v11981_v8, %v4393_v35  ;;  %v4988_v40 = vpop.f32.mrb[179].mxu1  ;;  %v15547_v24 = vpop.f32.mrb[249].mxu0  ;;  %v4397_v21 = vld [vmem:[#allocation3 + $0x2b8] sm:$0xff]  ;;  %v4395_v35 = vld [vmem:[#allocation3 + $0x2a8] sm:$0xff] }
 0x344   : > { %5224 = vst.msk [vmem:[#allocation3 + $0x280] sm:$0xff] %vm3468_vm2, %v5128_v31  ;;  %v5129_v60 = vadd.f32 %v4988_v40, %v4391_v25  ;;  %v15549_v3 = vpop.f32.mrb[250].mxu0  ;;  %v7197_v40 = vld [vmem:[#allocation2 + $0x1b8] sm:$0xff] }
 0x345   : > { %5227 = vst.msk [vmem:[#allocation3 + $0x298] sm:$0xff] %vm3468_vm2, %v5131_v47  ;;  %12095 = vmatmul.mubr.msk.bf16.gmra.mrb[28].mxu1 %vm3468_vm2, %v5383_v49  ;;  %v15552_v47 = vpop.f32.mrb[251].mxu0  ;;  %v4400_v49 = vld [vmem:[#allocation3 + $0x2d0] sm:$0xff] }
 0x346   : > { %5225 = vst.msk [vmem:[#allocation3 + $0x288] sm:$0xff] %vm3468_vm2, %v5129_v60  ;;  %12210 = vmatprep.mubr.msk.bf16.mxu1 %vm3468_vm2, %v7196_v50  ;;  %17208 = vst [vmem:[#allocation5_spill] sm:$0xff] %v15552_v47  ;;  %v7198_v60 = vld [vmem:[#allocation2 + $0x1c0] sm:$0xff] }
 0x348   : > { %v11984_v43 = vpop.f32.mrb[180].mxu1 }
 0x349   : > { %v5134_v48 = vadd.f32 %v11984_v43, %v4396_v37  ;;  %v5001_v41 = vpop.f32.mrb[181].mxu1 }
 0x34a   : > { %v5132_v57 = vadd.f32 %v5001_v41, %v4394_v30  ;;  %v11985_v14 = vpop.f32.mrb[182].mxu1  ;;  %v15559_v37 = vpop.f32.mrb[252].mxu0 }
 0x34b   : > { %5230 = vst.msk [vmem:[#allocation3 + $0x2b0] sm:$0xff] %vm3468_vm2, %v5134_v48  ;;  %v5135_v31 = vadd.f32 %v11985_v14, %v4397_v21  ;;  %v5004_v8 = vpop.f32.mrb[183].mxu1  ;;  %17209 = vst [vmem:[#allocation6_spill] sm:$0xff] %v15559_v37  ;;  %v4398_v48 = vld [vmem:[#allocation3 + $0x2c0] sm:$0xff]  ;;  %v15561_v41 = vpop.f32.mrb[253].mxu0  ;;  %v4401_v21 = vld [vmem:[#allocation3 + $0x2d8] sm:$0xff] }
 0x34c   : > { %5228 = vst.msk [vmem:[#allocation3 + $0x2a0] sm:$0xff] %vm3468_vm2, %v5132_v57  ;;  %v5133_v25 = vadd.f32 %v5004_v8, %v4395_v35  ;;  %17210 = vst [vmem:[#allocation7_spill] sm:$0xff] %v15561_v41  ;;  %v4399_v8 = vld [vmem:[#allocation3 + $0x2c8] sm:$0xff] }
 0x34d   : > { %5231 = vst.msk [vmem:[#allocation3 + $0x2b8] sm:$0xff] %vm3468_vm2, %v5135_v31  ;;  %12211 = vmatmul.mubr.msk.bf16.vlgmr.msra.gmra.mrb[32].mxu1 %vm3468_vm2, %v7197_v40  ;;  %v15563_v31 = vpop.f32.mrb[254].mxu0 }
 0x34e   : > { %5229 = vst.msk [vmem:[#allocation3 + $0x2a8] sm:$0xff] %vm3468_vm2, %v5133_v25  ;;  %12214 = vmatprep.mubr.msk.bf16.mxu1 %vm3468_vm2, %v7198_v60  ;;  %17211 = vst [vmem:[#allocation8_spill] sm:$0xff] %v15563_v31  ;;  %v15566_v40 = vpop.f32.mrb[255].mxu0 }
 0x34f   : > { %17212 = vst [vmem:[#allocation9_spill] sm:$0xff] %v15566_v40 }
 0x350   : > { %v11988_v50 = vpop.f32.mrb[184].mxu1 }
 0x351   : > { %v5138_v43 = vadd.f32 %v11988_v50, %v4400_v49  ;;  %v5017_v30 = vpop.f32.mrb[185].mxu1  ;;  %v7199_v49 = vld [vmem:[#allocation2 + $0x1c8] sm:$0xff]  ;;  %v7200_v50 = vld [vmem:[#allocation2 + $0x1d0] sm:$0xff] }
 0x352   : > { %v5136_v57 = vadd.f32 %v5017_v30, %v4398_v48  ;;  %v11989_v14 = vpop.f32.mrb[186].mxu1  ;;  %v4404_v48 = vld [vmem:[#allocation3 + $0x2f0] sm:$0xff]  ;;  %v15573_v30 = vpop.f32.mrb[0].mxu0 }
 0x353   : > { %5234 = vst.msk [vmem:[#allocation3 + $0x2d0] sm:$0xff] %vm3468_vm2, %v5138_v43  ;;  %v5139_v35 = vadd.f32 %v11989_v14, %v4401_v21  ;;  %v5020_v25 = vpop.f32.mrb[187].mxu1  ;;  %17213 = vst [vmem:[#allocation10_spill] sm:$0xff] %v15573_v30  ;;  %v4402_v14 = vld [vmem:[#allocation3 + $0x2e0] sm:$0xff]  ;;  %v15575_v31 = vpop.f32.mrb[1].mxu0 }
 0x354   : > { %5232 = vst.msk [vmem:[#allocation3 + $0x2c0] sm:$0xff] %vm3468_vm2, %v5136_v57  ;;  %v5137_v60 = vadd.f32 %v5020_v25, %v4399_v8  ;;  %17214 = vst [vmem:[#allocation11_spill] sm:$0xff] %v15575_v31  ;;  %v4405_v8 = vld [vmem:[#allocation3 + $0x2f8] sm:$0xff] }
 0x355   : > { %5235 = vst.msk [vmem:[#allocation3 + $0x2d8] sm:$0xff] %vm3468_vm2, %v5139_v35  ;;  %12215 = vmatmul.mubr.msk.bf16.gmra.mrb[36].mxu1 %vm3468_vm2, %v7199_v49  ;;  %v15577_v35 = vpop.f32.mrb[2].mxu0 }
 0x356   : > { %5233 = vst.msk [vmem:[#allocation3 + $0x2c8] sm:$0xff] %vm3468_vm2, %v5137_v60  ;;  %12218 = vmatprep.mubr.msk.bf16.mxu1 %vm3468_vm2, %v7200_v50  ;;  %17215 = vst [vmem:[#allocation12_spill] sm:$0xff] %v15577_v35  ;;  %v4403_v60 = vld [vmem:[#allocation3 + $0x2e8] sm:$0xff]  ;;  %v15580_v50 = vpop.f32.mrb[3].mxu0 }
 0x357   : > { %17216 = vst [vmem:[#allocation13_spill] sm:$0xff] %v15580_v50 }
 0x358   : > { %v11992_v43 = vpop.f32.mrb[188].mxu1 }
 0x359   : > { %v5142_v21 = vadd.f32 %v11992_v43, %v4404_v48  ;;  %v5033_v40 = vpop.f32.mrb[189].mxu1  ;;  %v7201_v48 = vld [vmem:[#allocation2 + $0x1d8] sm:$0xff]  ;;  %v5242_v43 = vld [vmem:[#allocation3 + $0x10] sm:$0xff] }
 0x35a   : > { %v5140_v57 = vadd.f32 %v5033_v40, %v4402_v14  ;;  %v11993_v25 = vpop.f32.mrb[190].mxu1  ;;  %v7202_v40 = vld [vmem:[#allocation2 + $0x1e0] sm:$0xff]  ;;  %v15587_v14 = vpop.f32.mrb[4].mxu0 }
 0x35b   : > { %5238 = vst.msk [vmem:[#allocation3 + $0x2f0] sm:$0xff] %vm3468_vm2, %v5142_v21  ;;  %v5143_v49 = vadd.f32 %v11993_v25, %v4405_v8  ;;  %v5036_v41 = vpop.f32.mrb[191].mxu1  ;;  %17217 = vst [vmem:[#allocation14_spill] sm:$0xff] %v15587_v14  ;;  %v5240_v25 = vld [vmem:[#allocation3] sm:$0xff]  ;;  %v15589_v35 = vpop.f32.mrb[5].mxu0 }
 0x35c   : > { %5236 = vst.msk [vmem:[#allocation3 + $0x2e0] sm:$0xff] %vm3468_vm2, %v5140_v57  ;;  %v5141_v30 = vadd.f32 %v5036_v41, %v4403_v60  ;;  %17218 = vst [vmem:[#allocation15_spill] sm:$0xff] %v15589_v35  ;;  %v5243_v57 = vld [vmem:[#allocation3 + $0x18] sm:$0xff] }
 0x35d   : > { %5239 = vst.msk [vmem:[#allocation3 + $0x2f8] sm:$0xff] %vm3468_vm2, %v5143_v49  ;;  %12219 = vmatmul.mubr.msk.bf16.gmra.mrb[40].mxu1 %vm3468_vm2, %v7201_v48  ;;  %v15591_v49 = vpop.f32.mrb[6].mxu0 }
 0x35e   : > { %5237 = vst.msk [vmem:[#allocation3 + $0x2e8] sm:$0xff] %vm3468_vm2, %v5141_v30  ;;  %12222 = vmatprep.mubr.msk.bf16.mxu1 %vm3468_vm2, %v7202_v40  ;;  %17219 = vst [vmem:[#allocation16_spill] sm:$0xff] %v15591_v49  ;;  %v5241_v30 = vld [vmem:[#allocation3 + $0x8] sm:$0xff]  ;;  %v15594_v40 = vpop.f32.mrb[7].mxu0 }
 0x35f   : > { %17220 = vst [vmem:[#allocation17_spill] sm:$0xff] %v15594_v40 }
 0x360   : > { %v12004_v21 = vpop.f32.mrb[192].mxu1 }
 0x361   : > { %v5980_v8 = vadd.f32 %v12004_v21, %v5242_v43  ;;  %v5595_v50 = vpop.f32.mrb[193].mxu1  ;;  %v7203_v43 = vld [vmem:[#allocation2 + $0x1e8] sm:$0xff]  ;;  %v5246_v21 = vld [vmem:[#allocation3 + $0x30] sm:$0xff] }
 0x362   : > { %v5978_v41 = vadd.f32 %v5595_v50, %v5240_v25  ;;  %v12005_v60 = vpop.f32.mrb[194].mxu1  ;;  %v7204_v50 = vld [vmem:[#allocation2 + $0x1f0] sm:$0xff] }
 0x363   : > { %6076 = vst.msk [vmem:[#allocation3 + $0x10] sm:$0xff] %vm3468_vm2, %v5980_v8  ;;  %v5981_v48 = vadd.f32 %v12005_v60, %v5243_v57  ;;  %v5598_v31 = vpop.f32.mrb[195].mxu1  ;;  %v15601_v25 = vpop.f32.mrb[8].mxu0  ;;  %v5244_v60 = vld [vmem:[#allocation3 + $0x20] sm:$0xff] }
 0x364   : > { %6074 = vst.msk [vmem:[#allocation3] sm:$0xff] %vm3468_vm2, %v5978_v41  ;;  %v5979_v14 = vadd.f32 %v5598_v31, %v5241_v30  ;;  %17221 = vst [vmem:[#allocation18_spill] sm:$0xff] %v15601_v25  ;;  %v15603_v49 = vpop.f32.mrb[9].mxu0  ;;  %v5247_v41 = vld [vmem:[#allocation3 + $0x38] sm:$0xff] }
 0x365   : > { %6077 = vst.msk [vmem:[#allocation3 + $0x18] sm:$0xff] %vm3468_vm2, %v5981_v48  ;;  %12223 = vmatmul.mubr.msk.bf16.gmra.mrb[44].mxu1 %vm3468_vm2, %v7203_v43  ;;  %v15605_v35 = vpop.f32.mrb[10].mxu0 }
 0x366   : > { %6075 = vst.msk [vmem:[#allocation3 + $0x8] sm:$0xff] %vm3468_vm2, %v5979_v14  ;;  %12226 = vmatprep.mubr.msk.bf16.mxu1 %vm3468_vm2, %v7204_v50  ;;  %v5245_v50 = vld [vmem:[#allocation3 + $0x28] sm:$0xff]  ;;  %v15609_v25 = vpop.f32.mrb[11].mxu0 }
 0x368   : > { %v12008_v8 = vpop.f32.mrb[196].mxu1 }
 0x369   : > { %v5984_v57 = vadd.f32 %v12008_v8, %v5246_v21  ;;  %v5611_v40 = vpop.f32.mrb[197].mxu1 }
 0x36a   : > { %v5982_v31 = vadd.f32 %v5611_v40, %v5244_v60  ;;  %v12009_v30 = vpop.f32.mrb[198].mxu1  ;;  %v6172_v48 = vld [vmem:[#allocation3 + $0x10] sm:$0xff]  ;;  %v7205_v60 = vld [vmem:[#allocation2 + $0x1f8] sm:$0xff] }
 0x36b   : > { %6080 = vst.msk [vmem:[#allocation3 + $0x30] sm:$0xff] %vm3468_vm2, %v5984_v57  ;;  %v5985_v14 = vadd.f32 %v12009_v30, %v5247_v41  ;;  %v6910_v43 = vadd.f32 %v15376_v29, %v6172_v48  ;;  %v5614_v37 = vpop.f32.mrb[199].mxu1  ;;  %v6170_v47 = vld [vmem:[#allocation3] sm:$0xff]  ;;  %v7206_v29 = vld [vmem:[#allocation2 + $0x200] sm:$0xff] }
 0x36c   : > { %6078 = vst.msk [vmem:[#allocation3 + $0x20] sm:$0xff] %vm3468_vm2, %v5982_v31  ;;  %v5983_v21 = vadd.f32 %v5614_v37, %v5245_v50  ;;  %v6908_v40 = vadd.f32 %v15380_v6, %v6170_v47  ;;  %v6173_v8 = vld [vmem:[#allocation3 + $0x18] sm:$0xff]  ;;  %v5250_v6 = vld [vmem:[#allocation3 + $0x50] sm:$0xff]  ;;  %v15623_v31 = vpop.f32.mrb[12].mxu0  ;;  %v5248_v30 = vld [vmem:[#allocation3 + $0x40] sm:$0xff] }
 0x36d   : > { %6081 = vst.msk [vmem:[#allocation3 + $0x38] sm:$0xff] %vm3468_vm2, %v5985_v14  ;;  %7006 = vst.msk [vmem:[#allocation3 + $0x10] sm:$0xff] %vm3468_vm2, %v6910_v43  ;;  %v6911_v57 = vadd.f32 %v15385_v9, %v6173_v8  ;;  %v6171_v41 = vld [vmem:[#allocation3 + $0x8] sm:$0xff]  ;;  %12227 = vmatmul.mubr.msk.bf16.gmra.mrb[48].mxu1 %vm3468_vm2, %v7205_v60  ;;  %v15625_v14 = vpop.f32.mrb[13].mxu0  ;;  %v5251_v50 = vld [vmem:[#allocation3 + $0x58] sm:$0xff] }
 0x36e   : > { %6079 = vst.msk [vmem:[#allocation3 + $0x28] sm:$0xff] %vm3468_vm2, %v5983_v21  ;;  %7004 = vst.msk [vmem:[#allocation3] sm:$0xff] %vm3468_vm2, %v6908_v40  ;;  %v6909_v37 = vadd.f32 %v15387_v55, %v6171_v41  ;;  %12230 = vmatprep.mubr.msk.bf16.mxu1 %vm3468_vm2, %v7206_v29  ;;  %v15627_v55 = vpop.f32.mrb[14].mxu0 }
 0x36f   : > { %7007 = vst.msk [vmem:[#allocation3 + $0x18] sm:$0xff] %vm3468_vm2, %v6911_v57  ;;  %v5249_v57 = vld [vmem:[#allocation3 + $0x48] sm:$0xff] }
 0x370   : > { %7005 = vst.msk [vmem:[#allocation3 + $0x8] sm:$0xff] %vm3468_vm2, %v6909_v37  ;;  %v12012_v47 = vpop.f32.mrb[200].mxu1  ;;  %v15631_v37 = vpop.f32.mrb[15].mxu0 }
 0x371   : > { %v5988_v9 = vadd.f32 %v12012_v47, %v5250_v6  ;;  %v5627_v48 = vpop.f32.mrb[201].mxu1 }
 0x372   : > { %v5986_v43 = vadd.f32 %v5627_v48, %v5248_v30  ;;  %v12013_v21 = vpop.f32.mrb[202].mxu1  ;;  %v6176_v40 = vld [vmem:[#allocation3 + $0x30] sm:$0xff]  ;;  %v7207_v48 = vld [vmem:[#allocation2 + $0x208] sm:$0xff] }
 0x373   : > { %6084 = vst.msk [vmem:[#allocation3 + $0x50] sm:$0xff] %vm3468_vm2, %v5988_v9  ;;  %v5989_v8 = vadd.f32 %v12013_v21, %v5251_v50  ;;  %v6914_v60 = vadd.f32 %v15391_v12, %v6176_v40  ;;  %v5630_v41 = vpop.f32.mrb[203].mxu1  ;;  %v6174_v29 = vld [vmem:[#allocation3 + $0x20] sm:$0xff]  ;;  %v15645_v40 = vpop.f32.mrb[16].mxu0 }
 0x374   : > { %6082 = vst.msk [vmem:[#allocation3 + $0x40] sm:$0xff] %vm3468_vm2, %v5986_v43  ;;  %v5987_v6 = vadd.f32 %v5630_v41, %v5249_v57  ;;  %v6912_v47 = vadd.f32 %v15395_v46, %v6174_v29  ;;  %v6177_v30 = vld [vmem:[#allocation3 + $0x38] sm:$0xff]  ;;  %v7208_v12 = vld [vmem:[#allocation2 + $0x210] sm:$0xff]  ;;  %v5254_v46 = vld [vmem:[#allocation3 + $0x70] sm:$0xff]  ;;  %v15647_v57 = vpop.f32.mrb[17].mxu0 }
 0x375   : > { %6085 = vst.msk [vmem:[#allocation3 + $0x58] sm:$0xff] %vm3468_vm2, %v5989_v8  ;;  %7010 = vst.msk [vmem:[#allocation3 + $0x30] sm:$0xff] %vm3468_vm2, %v6914_v60  ;;  %v6915_v9 = vadd.f32 %v15399_v54, %v6177_v30  ;;  %v6175_v50 = vld [vmem:[#allocation3 + $0x28] sm:$0xff]  ;;  %12231 = vmatmul.mubr.msk.bf16.gmra.mrb[52].mxu1 %vm3468_vm2, %v7207_v48  ;;  %v5252_v8 = vld [vmem:[#allocation3 + $0x60] sm:$0xff] }
 0x376   : > { %6083 = vst.msk [vmem:[#allocation3 + $0x48] sm:$0xff] %vm3468_vm2, %v5987_v6  ;;  %7008 = vst.msk [vmem:[#allocation3 + $0x20] sm:$0xff] %vm3468_vm2, %v6912_v47  ;;  %v6913_v43 = vadd.f32 %v15402_v7, %v6175_v50  ;;  %12234 = vmatprep.mubr.msk.bf16.mxu1 %vm3468_vm2, %v7208_v12  ;;  %v5255_v29 = vld [vmem:[#allocation3 + $0x78] sm:$0xff]  ;;  %v15649_v7 = vpop.f32.mrb[18].mxu0 }
 0x377   : > { %7011 = vst.msk [vmem:[#allocation3 + $0x38] sm:$0xff] %vm3468_vm2, %v6915_v9  ;;  %v5253_v9 = vld [vmem:[#allocation3 + $0x68] sm:$0xff] }
 0x378   : > { %7009 = vst.msk [vmem:[#allocation3 + $0x28] sm:$0xff] %vm3468_vm2, %v6913_v43  ;;  %v12016_v21 = vpop.f32.mrb[204].mxu1  ;;  %v15653_v43 = vpop.f32.mrb[19].mxu0 }
 0x379   : > { %v5992_v54 = vadd.f32 %v12016_v21, %v5254_v46  ;;  %v5643_v60 = vpop.f32.mrb[205].mxu1 }
 0x37a   : > { %v5990_v41 = vadd.f32 %v5643_v60, %v5252_v8  ;;  %v12017_v6 = vpop.f32.mrb[206].mxu1  ;;  %v6180_v47 = vld [vmem:[#allocation3 + $0x50] sm:$0xff]  ;;  %v7209_v60 = vld [vmem:[#allocation2 + $0x218] sm:$0xff] }
 0x37b   : > { %6088 = vst.msk [vmem:[#allocation3 + $0x70] sm:$0xff] %vm3468_vm2, %v5992_v54  ;;  %v5993_v30 = vadd.f32 %v12017_v6, %v5255_v29  ;;  %v6918_v48 = vadd.f32 %v15418_v56, %v6180_v47  ;;  %v5646_v50 = vpop.f32.mrb[207].mxu1  ;;  %v6178_v12 = vld [vmem:[#allocation3 + $0x40] sm:$0xff]  ;;  %v7210_v56 = vld [vmem:[#allocation2 + $0x220] sm:$0xff]  ;;  %v15667_v47 = vpop.f32.mrb[20].mxu0 }
 0x37c   : > { %6086 = vst.msk [vmem:[#allocation3 + $0x60] sm:$0xff] %vm3468_vm2, %v5990_v41  ;;  %v5991_v46 = vadd.f32 %v5646_v50, %v5253_v9  ;;  %v6916_v21 = vadd.f32 %v15420_v38, %v6178_v12  ;;  %v6181_v8 = vld [vmem:[#allocation3 + $0x58] sm:$0xff]  ;;  %v5258_v38 = vld [vmem:[#allocation3 + $0x90] sm:$0xff]  ;;  %v15669_v9 = vpop.f32.mrb[21].mxu0 }
 0x37d   : > { %6089 = vst.msk [vmem:[#allocation3 + $0x78] sm:$0xff] %vm3468_vm2, %v5993_v30  ;;  %7014 = vst.msk [vmem:[#allocation3 + $0x50] sm:$0xff] %vm3468_vm2, %v6918_v48  ;;  %v6919_v54 = vadd.f32 %v15422_v16, %v6181_v8  ;;  %v6179_v29 = vld [vmem:[#allocation3 + $0x48] sm:$0xff]  ;;  %12235 = vmatmul.mubr.msk.bf16.gmra.mrb[56].mxu1 %vm3468_vm2, %v7209_v60  ;;  %v5256_v30 = vld [vmem:[#allocation3 + $0x80] sm:$0xff] }
 0x37e   : > { %6087 = vst.msk [vmem:[#allocation3 + $0x68] sm:$0xff] %vm3468_vm2, %v5991_v46  ;;  %7012 = vst.msk [vmem:[#allocation3 + $0x40] sm:$0xff] %vm3468_vm2, %v6916_v21  ;;  %v6917_v41 = vadd.f32 %v15425_v27, %v6179_v29  ;;  %12238 = vmatprep.mubr.msk.bf16.mxu1 %vm3468_vm2, %v7210_v56  ;;  %v5259_v12 = vld [vmem:[#allocation3 + $0x98] sm:$0xff]  ;;  %v15671_v27 = vpop.f32.mrb[22].mxu0 }
 0x37f   : > { %7015 = vst.msk [vmem:[#allocation3 + $0x58] sm:$0xff] %vm3468_vm2, %v6919_v54  ;;  %v5257_v54 = vld [vmem:[#allocation3 + $0x88] sm:$0xff] }
 0x380   : > { %7013 = vst.msk [vmem:[#allocation3 + $0x48] sm:$0xff] %vm3468_vm2, %v6917_v41  ;;  %v12020_v6 = vpop.f32.mrb[208].mxu1  ;;  %v15675_v41 = vpop.f32.mrb[23].mxu0 }
 0x381   : > { %v5996_v16 = vadd.f32 %v12020_v6, %v5258_v38  ;;  %v5659_v48 = vpop.f32.mrb[209].mxu1 }
 0x382   : > { %v5994_v50 = vadd.f32 %v5659_v48, %v5256_v30  ;;  %v12021_v46 = vpop.f32.mrb[210].mxu1  ;;  %v6184_v21 = vld [vmem:[#allocation3 + $0x70] sm:$0xff]  ;;  %v7211_v48 = vld [vmem:[#allocation2 + $0x228] sm:$0xff] }
 0x383   : > { %6092 = vst.msk [vmem:[#allocation3 + $0x90] sm:$0xff] %vm3468_vm2, %v5996_v16  ;;  %v5997_v8 = vadd.f32 %v12021_v46, %v5259_v12  ;;  %v6922_v60 = vadd.f32 %v15433_v28, %v6184_v21  ;;  %v5662_v29 = vpop.f32.mrb[211].mxu1  ;;  %v6182_v56 = vld [vmem:[#allocation3 + $0x60] sm:$0xff]  ;;  %v15689_v21 = vpop.f32.mrb[24].mxu0 }
 0x384   : > { %6090 = vst.msk [vmem:[#allocation3 + $0x80] sm:$0xff] %vm3468_vm2, %v5994_v50  ;;  %v5995_v38 = vadd.f32 %v5662_v29, %v5257_v54  ;;  %v6920_v6 = vadd.f32 %v15435_v18, %v6182_v56  ;;  %v6185_v30 = vld [vmem:[#allocation3 + $0x78] sm:$0xff]  ;;  %v7212_v28 = vld [vmem:[#allocation2 + $0x230] sm:$0xff]  ;;  %v5262_v18 = vld [vmem:[#allocation3 + $0xb0] sm:$0xff]  ;;  %v15691_v54 = vpop.f32.mrb[25].mxu0 }
 0x385   : > { %6093 = vst.msk [vmem:[#allocation3 + $0x98] sm:$0xff] %vm3468_vm2, %v5997_v8  ;;  %7018 = vst.msk [vmem:[#allocation3 + $0x70] sm:$0xff] %vm3468_vm2, %v6922_v60  ;;  %v6923_v16 = vadd.f32 %v15437_v19, %v6185_v30  ;;  %v6183_v12 = vld [vmem:[#allocation3 + $0x68] sm:$0xff]  ;;  %12239 = vmatmul.mubr.msk.bf16.gmra.mrb[60].mxu1 %vm3468_vm2, %v7211_v48  ;;  %v5260_v8 = vld [vmem:[#allocation3 + $0xa0] sm:$0xff] }
 0x386   : > { %6091 = vst.msk [vmem:[#allocation3 + $0x88] sm:$0xff] %vm3468_vm2, %v5995_v38  ;;  %7016 = vst.msk [vmem:[#allocation3 + $0x60] sm:$0xff] %vm3468_vm2, %v6920_v6  ;;  %v6921_v50 = vadd.f32 %v15439_v33, %v6183_v12  ;;  %12242 = vmatprep.mubr.msk.bf16.mxu1 %vm3468_vm2, %v7212_v28  ;;  %v5263_v56 = vld [vmem:[#allocation3 + $0xb8] sm:$0xff]  ;;  %v15693_v33 = vpop.f32.mrb[26].mxu0 }
 0x387   : > { %7019 = vst.msk [vmem:[#allocation3 + $0x78] sm:$0xff] %vm3468_vm2, %v6923_v16  ;;  %v5261_v16 = vld [vmem:[#allocation3 + $0xa8] sm:$0xff] }
 0x388   : > { %7017 = vst.msk [vmem:[#allocation3 + $0x68] sm:$0xff] %vm3468_vm2, %v6921_v50  ;;  %v12024_v46 = vpop.f32.mrb[212].mxu1  ;;  %v15697_v50 = vpop.f32.mrb[27].mxu0 }
 0x389   : > { %v6000_v19 = vadd.f32 %v12024_v46, %v5262_v18  ;;  %v5675_v60 = vpop.f32.mrb[213].mxu1 }
 0x38a   : > { %v5998_v29 = vadd.f32 %v5675_v60, %v5260_v8  ;;  %v12025_v38 = vpop.f32.mrb[214].mxu1  ;;  %v6188_v6 = vld [vmem:[#allocation3 + $0x90] sm:$0xff]  ;;  %v7213_v60 = vld [vmem:[#allocation2 + $0x238] sm:$0xff] }
 0x38b   : > { %6096 = vst.msk [vmem:[#allocation3 + $0xb0] sm:$0xff] %vm3468_vm2, %v6000_v19  ;;  %v6001_v30 = vadd.f32 %v12025_v38, %v5263_v56  ;;  %v6926_v48 = vadd.f32 %v15447_v44, %v6188_v6  ;;  %v5678_v12 = vpop.f32.mrb[215].mxu1  ;;  %v6186_v28 = vld [vmem:[#allocation3 + $0x80] sm:$0xff]  ;;  %v7214_v44 = vld [vmem:[#allocation2 + $0x240] sm:$0xff]  ;;  %v15711_v6 = vpop.f32.mrb[28].mxu0 }
 0x38c   : > { %6094 = vst.msk [vmem:[#allocation3 + $0xa0] sm:$0xff] %vm3468_vm2, %v5998_v29  ;;  %v5999_v18 = vadd.f32 %v5678_v12, %v5261_v16  ;;  %v6924_v46 = vadd.f32 %v15449_v32, %v6186_v28  ;;  %v6189_v8 = vld [vmem:[#allocation3 + $0x98] sm:$0xff]  ;;  %v5266_v32 = vld [vmem:[#allocation3 + $0xd0] sm:$0xff]  ;;  %v15713_v16 = vpop.f32.mrb[29].mxu0 }
 0x38d   : > { %6097 = vst.msk [vmem:[#allocation3 + $0xb8] sm:$0xff] %vm3468_vm2, %v6001_v30  ;;  %7022 = vst.msk [vmem:[#allocation3 + $0x90] sm:$0xff] %vm3468_vm2, %v6926_v48  ;;  %v6927_v19 = vadd.f32 %v15451_v22, %v6189_v8  ;;  %v6187_v56 = vld [vmem:[#allocation3 + $0x88] sm:$0xff]  ;;  %12243 = vmatmul.mubr.msk.bf16.gmra.mrb[64].mxu1 %vm3468_vm2, %v7213_v60  ;;  %v5264_v30 = vld [vmem:[#allocation3 + $0xc0] sm:$0xff] }
 0x38e   : > { %6095 = vst.msk [vmem:[#allocation3 + $0xa8] sm:$0xff] %vm3468_vm2, %v5999_v18  ;;  %7020 = vst.msk [vmem:[#allocation3 + $0x80] sm:$0xff] %vm3468_vm2, %v6924_v46  ;;  %v6925_v29 = vadd.f32 %v15454_v5, %v6187_v56  ;;  %12246 = vmatprep.mubr.msk.bf16.mxu1 %vm3468_vm2, %v7214_v44  ;;  %v5267_v28 = vld [vmem:[#allocation3 + $0xd8] sm:$0xff]  ;;  %v15715_v5 = vpop.f32.mrb[30].mxu0 }
 0x38f   : > { %7023 = vst.msk [vmem:[#allocation3 + $0x98] sm:$0xff] %vm3468_vm2, %v6927_v19  ;;  %v5265_v19 = vld [vmem:[#allocation3 + $0xc8] sm:$0xff] }
 0x390   : > { %7021 = vst.msk [vmem:[#allocation3 + $0x88] sm:$0xff] %vm3468_vm2, %v6925_v29  ;;  %v12028_v38 = vpop.f32.mrb[216].mxu1  ;;  %v15719_v29 = vpop.f32.mrb[31].mxu0 }
 0x391   : > { %v6004_v22 = vadd.f32 %v12028_v38, %v5266_v32  ;;  %v5691_v48 = vpop.f32.mrb[217].mxu1 }
 0x392   : > { %v6002_v12 = vadd.f32 %v5691_v48, %v5264_v30  ;;  %v12029_v18 = vpop.f32.mrb[218].mxu1  ;;  %v6192_v46 = vld [vmem:[#allocation3 + $0xb0] sm:$0xff]  ;;  %v7215_v48 = vld [vmem:[#allocation2 + $0x248] sm:$0xff] }
 0x393   : > { %6100 = vst.msk [vmem:[#allocation3 + $0xd0] sm:$0xff] %vm3468_vm2, %v6004_v22  ;;  %v6005_v8 = vadd.f32 %v12029_v18, %v5267_v28  ;;  %v6930_v60 = vadd.f32 %v15461_v17, %v6192_v46  ;;  %v5694_v56 = vpop.f32.mrb[219].mxu1  ;;  %v6190_v44 = vld [vmem:[#allocation3 + $0xa0] sm:$0xff] }
 0x394   : > { %6098 = vst.msk [vmem:[#allocation3 + $0xc0] sm:$0xff] %vm3468_vm2, %v6002_v12  ;;  %v6003_v32 = vadd.f32 %v5694_v56, %v5265_v19  ;;  %v6928_v38 = vadd.f32 %v15463_v0, %v6190_v44  ;;  %v6193_v30 = vld [vmem:[#allocation3 + $0xb8] sm:$0xff]  ;;  %v7216_v17 = vld [vmem:[#allocation2 + $0x250] sm:$0xff]  ;;  %v5270_v0 = vld [vmem:[#allocation3 + $0xf0] sm:$0xff]  ;;  %v15733_v46 = vpop.f32.mrb[32].mxu0 }
 0x395   : > { %6101 = vst.msk [vmem:[#allocation3 + $0xd8] sm:$0xff] %vm3468_vm2, %v6005_v8  ;;  %7026 = vst.msk [vmem:[#allocation3 + $0xb0] sm:$0xff] %vm3468_vm2, %v6930_v60  ;;  %v6931_v22 = vadd.f32 %v15465_v13, %v6193_v30  ;;  %v6191_v28 = vld [vmem:[#allocation3 + $0xa8] sm:$0xff]  ;;  %12247 = vmatmul.mubr.msk.bf16.gmra.mrb[68].mxu1 %vm3468_vm2, %v7215_v48  ;;  %v5268_v8 = vld [vmem:[#allocation3 + $0xe0] sm:$0xff]  ;;  %v15735_v19 = vpop.f32.mrb[33].mxu0 }
 0x396   : > { %6099 = vst.msk [vmem:[#allocation3 + $0xc8] sm:$0xff] %vm3468_vm2, %v6003_v32  ;;  %7024 = vst.msk [vmem:[#allocation3 + $0xa0] sm:$0xff] %vm3468_vm2, %v6928_v38  ;;  %v6929_v12 = vadd.f32 %v15468_v36, %v6191_v28  ;;  %12250 = vmatprep.mubr.msk.bf16.mxu1 %vm3468_vm2, %v7216_v17  ;;  %v5271_v44 = vld [vmem:[#allocation3 + $0xf8] sm:$0xff]  ;;  %v15737_v36 = vpop.f32.mrb[34].mxu0 }
 0x397   : > { %7027 = vst.msk [vmem:[#allocation3 + $0xb8] sm:$0xff] %vm3468_vm2, %v6931_v22  ;;  %v5269_v22 = vld [vmem:[#allocation3 + $0xe8] sm:$0xff] }
 0x398   : > { %7025 = vst.msk [vmem:[#allocation3 + $0xa8] sm:$0xff] %vm3468_vm2, %v6929_v12  ;;  %v12032_v18 = vpop.f32.mrb[220].mxu1  ;;  %v15741_v12 = vpop.f32.mrb[35].mxu0 }
 0x399   : > { %v6008_v13 = vadd.f32 %v12032_v18, %v5270_v0  ;;  %v5707_v60 = vpop.f32.mrb[221].mxu1 }
 0x39a   : > { %v6006_v56 = vadd.f32 %v5707_v60, %v5268_v8  ;;  %v12033_v32 = vpop.f32.mrb[222].mxu1  ;;  %v6196_v38 = vld [vmem:[#allocation3 + $0xd0] sm:$0xff]  ;;  %v7217_v60 = vld [vmem:[#allocation2 + $0x258] sm:$0xff] }
 0x39b   : > { %6104 = vst.msk [vmem:[#allocation3 + $0xf0] sm:$0xff] %vm3468_vm2, %v6008_v13  ;;  %v6009_v30 = vadd.f32 %v12033_v32, %v5271_v44  ;;  %v6934_v48 = vadd.f32 %v15475_v45, %v6196_v38  ;;  %v5710_v28 = vpop.f32.mrb[223].mxu1  ;;  %v6194_v17 = vld [vmem:[#allocation3 + $0xc0] sm:$0xff]  ;;  %v7218_v45 = vld [vmem:[#allocation2 + $0x260] sm:$0xff] }
 0x39c   : > { %6102 = vst.msk [vmem:[#allocation3 + $0xe0] sm:$0xff] %vm3468_vm2, %v6006_v56  ;;  %v6007_v0 = vadd.f32 %v5710_v28, %v5269_v22  ;;  %v6932_v18 = vadd.f32 %v15477_v53, %v6194_v17  ;;  %v6197_v8 = vld [vmem:[#allocation3 + $0xd8] sm:$0xff]  ;;  %v12441_v32 = vld [vmem:[%s17206_s5 + $0x40] sm:$0xff]   ;;  %v5272_v22 = vld [vmem:[#allocation3 + $0x100] sm:$0xff] }
 0x39d   : > { %6105 = vst.msk [vmem:[#allocation3 + $0xf8] sm:$0xff] %vm3468_vm2, %v6009_v30  ;;  %7030 = vst.msk [vmem:[#allocation3 + $0xd0] sm:$0xff] %vm3468_vm2, %v6934_v48  ;;  %v6935_v13 = vadd.f32 %v15479_v58, %v6197_v8  ;;  %v6195_v44 = vld [vmem:[#allocation3 + $0xc8] sm:$0xff]  ;;  %12251 = vmatmul.mubr.msk.bf16.gmra.mrb[72].mxu1 %vm3468_vm2, %v7217_v60  ;;  %v12442_v58 = vld [vmem:[%s17206_s5] sm:$0xff]   ;;  %11412 = vmatprep.subr.bf16.mxu0 %v12441_v32  ;;  %v15761_v30 = vpop.f32.mrb[36].mxu0 }
 0x39e   : > { %6103 = vst.msk [vmem:[#allocation3 + $0xe8] sm:$0xff] %vm3468_vm2, %v6007_v0  ;;  %7028 = vst.msk [vmem:[#allocation3 + $0xc0] sm:$0xff] %vm3468_vm2, %v6932_v18  ;;  %v6933_v53 = vadd.f32 %v15482_v59, %v6195_v44  ;;  %12254 = vmatprep.mubr.msk.bf16.mxu1 %vm3468_vm2, %v7218_v45  ;;  %v5274_v56 = vld [vmem:[#allocation3 + $0x110] sm:$0xff]  ;;  %11413 = vmatpush3.bf16.msra.mxu0 %v12442_v58  ;;  %v15763_v59 = vpop.f32.mrb[37].mxu0  ;;  %v5275_v0 = vld [vmem:[#allocation3 + $0x118] sm:$0xff] }
 0x39f   : > { %7031 = vst.msk [vmem:[#allocation3 + $0xd8] sm:$0xff] %vm3468_vm2, %v6935_v13  ;;  %v15765_v60 = vpop.f32.mrb[38].mxu0  ;;  %v5273_v45 = vld [vmem:[#allocation3 + $0x108] sm:$0xff] }
 0x3a0   : > { %7029 = vst.msk [vmem:[#allocation3 + $0xc8] sm:$0xff] %vm3468_vm2, %v6933_v53  ;;  %v12036_v38 = vpop.f32.mrb[224].mxu1  ;;  %v15769_v58 = vpop.f32.mrb[39].mxu0 }
 0x3a1   : > { %v6012_v48 = vadd.f32 %v12036_v38, %v5274_v56  ;;  %v5723_v28 = vpop.f32.mrb[225].mxu1 }
 0x3a2   : > { %v6010_v17 = vadd.f32 %v5723_v28, %v5272_v22  ;;  %v12037_v18 = vpop.f32.mrb[226].mxu1  ;;  %v6200_v8 = vld [vmem:[#allocation3 + $0xf0] sm:$0xff]  ;;  %v7219_v28 = vld [vmem:[#allocation2 + $0x268] sm:$0xff] }
 0x3a3   : > { %6108 = vst.msk [vmem:[#allocation3 + $0x110] sm:$0xff] %vm3468_vm2, %v6012_v48  ;;  %v6013_v13 = vadd.f32 %v12037_v18, %v5275_v0  ;;  %v6938_v44 = vadd.f32 %v15489_v10, %v6200_v8  ;;  %v5726_v32 = vpop.f32.mrb[227].mxu1  ;;  %v6198_v53 = vld [vmem:[#allocation3 + $0xe0] sm:$0xff] }
 0x3a4   : > { %6106 = vst.msk [vmem:[#allocation3 + $0x100] sm:$0xff] %vm3468_vm2, %v6010_v17  ;;  %v6011_v56 = vadd.f32 %v5726_v32, %v5273_v45  ;;  %v6936_v38 = vadd.f32 %v15491_v1, %v6198_v53  ;;  %v6201_v22 = vld [vmem:[#allocation3 + $0xf8] sm:$0xff]  ;;  %v7220_v10 = vld [vmem:[#allocation2 + $0x270] sm:$0xff]  ;;  %v5278_v1 = vld [vmem:[#allocation3 + $0x130] sm:$0xff] }
 0x3a5   : > { %6109 = vst.msk [vmem:[#allocation3 + $0x118] sm:$0xff] %vm3468_vm2, %v6013_v13  ;;  %7034 = vst.msk [vmem:[#allocation3 + $0xf0] sm:$0xff] %vm3468_vm2, %v6938_v44  ;;  %v6939_v48 = vadd.f32 %v15493_v42, %v6201_v22  ;;  %v6199_v0 = vld [vmem:[#allocation3 + $0xe8] sm:$0xff]  ;;  %12255 = vmatmul.mubr.msk.bf16.gmra.mrb[76].mxu1 %vm3468_vm2, %v7219_v28  ;;  %v5276_v42 = vld [vmem:[#allocation3 + $0x120] sm:$0xff] }
 0x3a6   : > { %6107 = vst.msk [vmem:[#allocation3 + $0x108] sm:$0xff] %vm3468_vm2, %v6011_v56  ;;  %7032 = vst.msk [vmem:[#allocation3 + $0xe0] sm:$0xff] %vm3468_vm2, %v6936_v38  ;;  %v6937_v17 = vadd.f32 %v15496_v23, %v6199_v0  ;;  %12258 = vmatprep.mubr.msk.bf16.mxu1 %vm3468_vm2, %v7220_v10  ;;  %v5279_v45 = vld [vmem:[#allocation3 + $0x138] sm:$0xff]  ;;  %v15783_v56 = vpop.f32.mrb[40].mxu0  ;;  %v5277_v22 = vld [vmem:[#allocation3 + $0x128] sm:$0xff] }
 0x3a7   : > { %7035 = vst.msk [vmem:[#allocation3 + $0xf8] sm:$0xff] %vm3468_vm2, %v6939_v48  ;;  %v15787_v0 = vpop.f32.mrb[41].mxu0 }
 0x3a8   : > { %7033 = vst.msk [vmem:[#allocation3 + $0xe8] sm:$0xff] %vm3468_vm2, %v6937_v17  ;;  %v12040_v18 = vpop.f32.mrb[228].mxu1 }
 0x3a9   : > { %v6016_v8 = vadd.f32 %v12040_v18, %v5278_v1  ;;  %v5739_v13 = vpop.f32.mrb[229].mxu1  ;;  %v7221_v18 = vld [vmem:[#allocation2 + $0x278] sm:$0xff] }
 0x3aa   : > { %v6014_v44 = vadd.f32 %v5739_v13, %v5276_v42  ;;  %v12041_v32 = vpop.f32.mrb[230].mxu1  ;;  %v6204_v53 = vld [vmem:[#allocation3 + $0x110] sm:$0xff]  ;;  %v15791_v42 = vpop.f32.mrb[42].mxu0 }
 0x3ab   : > { %6112 = vst.msk [vmem:[#allocation3 + $0x130] sm:$0xff] %vm3468_vm2, %v6016_v8  ;;  %v6017_v23 = vadd.f32 %v12041_v32, %v5279_v45  ;;  %v6942_v38 = vadd.f32 %v15503_v20, %v6204_v53  ;;  %v5742_v28 = vpop.f32.mrb[231].mxu1  ;;  %v6202_v48 = vld [vmem:[#allocation3 + $0x100] sm:$0xff]  ;;  %v7222_v13 = vld [vmem:[#allocation2 + $0x280] sm:$0xff]  ;;  %v15797_v45 = vpop.f32.mrb[43].mxu0 }
 0x3ac   : > { %6110 = vst.msk [vmem:[#allocation3 + $0x120] sm:$0xff] %vm3468_vm2, %v6014_v44  ;;  %v6015_v10 = vadd.f32 %v5742_v28, %v5277_v22  ;;  %v6940_v17 = vadd.f32 %v15505_v2, %v6202_v48  ;;  %v6205_v1 = vld [vmem:[#allocation3 + $0x118] sm:$0xff]  ;;  %v5282_v44 = vld [vmem:[#allocation3 + $0x150] sm:$0xff]  ;;  %v5280_v53 = vld [vmem:[#allocation3 + $0x140] sm:$0xff] }
 0x3ad   : > { %6113 = vst.msk [vmem:[#allocation3 + $0x138] sm:$0xff] %vm3468_vm2, %v6017_v23  ;;  %7038 = vst.msk [vmem:[#allocation3 + $0x110] sm:$0xff] %vm3468_vm2, %v6942_v38  ;;  %v6943_v20 = vadd.f32 %v15507_v11, %v6205_v1  ;;  %v6203_v8 = vld [vmem:[#allocation3 + $0x108] sm:$0xff]  ;;  %12259 = vmatmul.mubr.msk.bf16.gmra.mrb[80].mxu1 %vm3468_vm2, %v7221_v18  ;;  %v5283_v22 = vld [vmem:[#allocation3 + $0x158] sm:$0xff] }
 0x3ae   : > { %6111 = vst.msk [vmem:[#allocation3 + $0x128] sm:$0xff] %vm3468_vm2, %v6015_v10  ;;  %7036 = vst.msk [vmem:[#allocation3 + $0x100] sm:$0xff] %vm3468_vm2, %v6940_v17  ;;  %v6941_v2 = vadd.f32 %v15510_v15, %v6203_v8  ;;  %12262 = vmatprep.mubr.msk.bf16.mxu1 %vm3468_vm2, %v7222_v13  ;;  %v5281_v17 = vld [vmem:[#allocation3 + $0x148] sm:$0xff] }
 0x3af   : > { %7039 = vst.msk [vmem:[#allocation3 + $0x118] sm:$0xff] %vm3468_vm2, %v6943_v20 }
 0x3b0   : > { %7037 = vst.msk [vmem:[#allocation3 + $0x108] sm:$0xff] %vm3468_vm2, %v6941_v2  ;;  %v12044_v11 = vpop.f32.mrb[232].mxu1  ;;  %v7223_v2 = vld [vmem:[#allocation2 + $0x288] sm:$0xff] }
 0x3b1   : > { %v6020_v32 = vadd.f32 %v12044_v11, %v5282_v44  ;;  %v5755_v23 = vpop.f32.mrb[233].mxu1 }
 0x3b2   : > { %v6018_v38 = vadd.f32 %v5755_v23, %v5280_v53  ;;  %v12045_v28 = vpop.f32.mrb[234].mxu1  ;;  %v6208_v48 = vld [vmem:[#allocation3 + $0x130] sm:$0xff] }
 0x3b3   : > { %6116 = vst.msk [vmem:[#allocation3 + $0x150] sm:$0xff] %vm3468_vm2, %v6020_v32  ;;  %v6021_v10 = vadd.f32 %v12045_v28, %v5283_v22  ;;  %v6946_v15 = vadd.f32 %v15517_v51, %v6208_v48  ;;  %v5758_v1 = vpop.f32.mrb[235].mxu1  ;;  %v6206_v18 = vld [vmem:[#allocation3 + $0x120] sm:$0xff]  ;;  %v12443_v32 = vld [vmem:[%s17206_s5 + $0x48] sm:$0xff]   ;;  %v5286_v53 = vld [vmem:[#allocation3 + $0x170] sm:$0xff] }
 0x3b4   : > { %6114 = vst.msk [vmem:[#allocation3 + $0x140] sm:$0xff] %vm3468_vm2, %v6018_v38  ;;  %v6019_v20 = vadd.f32 %v5758_v1, %v5281_v17  ;;  %v6944_v8 = vadd.f32 %v15519_v62, %v6206_v18  ;;  %v6209_v13 = vld [vmem:[#allocation3 + $0x138] sm:$0xff]  ;;  %v7224_v51 = vld [vmem:[#allocation2 + $0x290] sm:$0xff]  ;;  %11414 = vmatprep.subr.bf16.mxu0 %v12443_v32  ;;  %v5285_v18 = vld [vmem:[#allocation3 + $0x168] sm:$0xff] }
 0x3b5   : > { %6117 = vst.msk [vmem:[#allocation3 + $0x158] sm:$0xff] %vm3468_vm2, %v6021_v10  ;;  %7042 = vst.msk [vmem:[#allocation3 + $0x130] sm:$0xff] %vm3468_vm2, %v6946_v15  ;;  %v6947_v44 = vadd.f32 %v15521_v34, %v6209_v13  ;;  %v6207_v11 = vld [vmem:[#allocation3 + $0x128] sm:$0xff]  ;;  %12263 = vmatmul.mubr.msk.bf16.gmra.mrb[84].mxu1 %vm3468_vm2, %v7223_v2  ;;  %v12444_v34 = vld [vmem:[%s17206_s5 + $0x8] sm:$0xff]  }
 0x3b6   : > { %6115 = vst.msk [vmem:[#allocation3 + $0x148] sm:$0xff] %vm3468_vm2, %v6019_v20  ;;  %7040 = vst.msk [vmem:[#allocation3 + $0x120] sm:$0xff] %vm3468_vm2, %v6944_v8  ;;  %v6945_v62 = vadd.f32 %v15524_v39, %v6207_v11  ;;  %12266 = vmatprep.mubr.msk.bf16.mxu1 %vm3468_vm2, %v7224_v51  ;;  %11415 = vmatpush3.bf16.msra.mxu0 %v12444_v34  ;;  %v5284_v22 = vld [vmem:[#allocation3 + $0x160] sm:$0xff]  ;;  %v5287_v10 = vld [vmem:[#allocation3 + $0x178] sm:$0xff] }
 0x3b7   : > { %7043 = vst.msk [vmem:[#allocation3 + $0x138] sm:$0xff] %vm3468_vm2, %v6947_v44  ;;  %v7225_v11 = vld [vmem:[#allocation2 + $0x298] sm:$0xff] }
 0x3b8   : > { %7041 = vst.msk [vmem:[#allocation3 + $0x128] sm:$0xff] %vm3468_vm2, %v6945_v62  ;;  %v12048_v23 = vpop.f32.mrb[236].mxu1 }
 0x3b9   : > { %v6024_v38 = vadd.f32 %v12048_v23, %v5286_v53  ;;  %v5771_v28 = vpop.f32.mrb[237].mxu1 }
 0x3ba   : > { %v6022_v48 = vadd.f32 %v5771_v28, %v5284_v22  ;;  %v12049_v39 = vpop.f32.mrb[238].mxu1  ;;  %v6212_v15 = vld [vmem:[#allocation3 + $0x150] sm:$0xff]  ;;  %v5291_v22 = vld [vmem:[#allocation3 + $0x198] sm:$0xff] }
 0x3bb   : > { %6120 = vst.msk [vmem:[#allocation3 + $0x170] sm:$0xff] %vm3468_vm2, %v6024_v38  ;;  %v6025_v17 = vadd.f32 %v12049_v39, %v5287_v10  ;;  %v6950_v1 = vadd.f32 %v15531_v63, %v6212_v15  ;;  %v5774_v20 = vpop.f32.mrb[239].mxu1  ;;  %v6210_v8 = vld [vmem:[#allocation3 + $0x140] sm:$0xff]  ;;  %v7226_v63 = vld [vmem:[#allocation2 + $0x2a0] sm:$0xff]  ;;  %v5289_v39 = vld [vmem:[#allocation3 + $0x188] sm:$0xff] }
 0x3bc   : > { %6118 = vst.msk [vmem:[#allocation3 + $0x160] sm:$0xff] %vm3468_vm2, %v6022_v48  ;;  %v6023_v13 = vadd.f32 %v5774_v20, %v5285_v18  ;;  %v6948_v2 = vadd.f32 %v15533_v26, %v6210_v8  ;;  %v6213_v44 = vld [vmem:[#allocation3 + $0x158] sm:$0xff]  ;;  %v5290_v26 = vld [vmem:[#allocation3 + $0x190] sm:$0xff] }
 0x3bd   : > { %6121 = vst.msk [vmem:[#allocation3 + $0x178] sm:$0xff] %vm3468_vm2, %v6025_v17  ;;  %7046 = vst.msk [vmem:[#allocation3 + $0x150] sm:$0xff] %vm3468_vm2, %v6950_v1  ;;  %v6951_v51 = vadd.f32 %v15535_v4, %v6213_v44  ;;  %v6211_v32 = vld [vmem:[#allocation3 + $0x148] sm:$0xff]  ;;  %12267 = vmatmul.mubr.msk.bf16.gmra.mrb[88].mxu1 %vm3468_vm2, %v7225_v11  ;;  %v5288_v4 = vld [vmem:[#allocation3 + $0x180] sm:$0xff] }
 0x3be   : > { %6119 = vst.msk [vmem:[#allocation3 + $0x168] sm:$0xff] %vm3468_vm2, %v6023_v13  ;;  %7044 = vst.msk [vmem:[#allocation3 + $0x140] sm:$0xff] %vm3468_vm2, %v6948_v2  ;;  %v6949_v62 = vadd.f32 %v15538_v61, %v6211_v32  ;;  %12270 = vmatprep.mubr.msk.bf16.mxu1 %vm3468_vm2, %v7226_v63  ;;  %v7227_v8 = vld [vmem:[#allocation2 + $0x2a8] sm:$0xff]  ;;  %v17222_v44 = vld [vmem:[#allocation5_spill] sm:$0xff] }
 0x3bf   : > { %7047 = vst.msk [vmem:[#allocation3 + $0x158] sm:$0xff] %vm3468_vm2, %v6951_v51 }
 0x3c0   : > { %7045 = vst.msk [vmem:[#allocation3 + $0x148] sm:$0xff] %vm3468_vm2, %v6949_v62  ;;  %v12052_v34 = vpop.f32.mrb[240].mxu1 }
 0x3c1   : > { %v6028_v53 = vadd.f32 %v12052_v34, %v5290_v26  ;;  %v5787_v23 = vpop.f32.mrb[241].mxu1  ;;  %v5295_v26 = vld [vmem:[#allocation3 + $0x1b8] sm:$0xff] }
 0x3c2   : > { %v6026_v38 = vadd.f32 %v5787_v23, %v5288_v4  ;;  %v12053_v28 = vpop.f32.mrb[242].mxu1  ;;  %v6216_v48 = vld [vmem:[#allocation3 + $0x170] sm:$0xff]  ;;  %v17223_v23 = vld [vmem:[#allocation6_spill] sm:$0xff] }
 0x3c3   : > { %6124 = vst.msk [vmem:[#allocation3 + $0x190] sm:$0xff] %vm3468_vm2, %v6028_v53  ;;  %v6029_v10 = vadd.f32 %v12053_v28, %v5291_v22  ;;  %v6954_v61 = vadd.f32 %v15545_v52, %v6216_v48  ;;  %v5790_v15 = vpop.f32.mrb[243].mxu1  ;;  %v6214_v17 = vld [vmem:[#allocation3 + $0x160] sm:$0xff]  ;;  %v5293_v22 = vld [vmem:[#allocation3 + $0x1a8] sm:$0xff] }
 0x3c4   : > { %6122 = vst.msk [vmem:[#allocation3 + $0x180] sm:$0xff] %vm3468_vm2, %v6026_v38  ;;  %v6027_v1 = vadd.f32 %v5790_v15, %v5289_v39  ;;  %v6952_v18 = vadd.f32 %v15547_v24, %v6214_v17  ;;  %v6217_v20 = vld [vmem:[#allocation3 + $0x178] sm:$0xff]  ;;  %v7228_v52 = vld [vmem:[#allocation2 + $0x2b0] sm:$0xff]  ;;  %v5294_v24 = vld [vmem:[#allocation3 + $0x1b0] sm:$0xff] }
 0x3c5   : > { %6125 = vst.msk [vmem:[#allocation3 + $0x198] sm:$0xff] %vm3468_vm2, %v6029_v10  ;;  %7050 = vst.msk [vmem:[#allocation3 + $0x170] sm:$0xff] %vm3468_vm2, %v6954_v61  ;;  %v6955_v13 = vadd.f32 %v15549_v3, %v6217_v20  ;;  %v6215_v2 = vld [vmem:[#allocation3 + $0x168] sm:$0xff]  ;;  %12271 = vmatmul.mubr.msk.bf16.gmra.mrb[92].mxu1 %vm3468_vm2, %v7227_v8  ;;  %v5292_v3 = vld [vmem:[#allocation3 + $0x1a0] sm:$0xff] }
 0x3c6   : > { %6123 = vst.msk [vmem:[#allocation3 + $0x188] sm:$0xff] %vm3468_vm2, %v6027_v1  ;;  %7048 = vst.msk [vmem:[#allocation3 + $0x160] sm:$0xff] %vm3468_vm2, %v6952_v18  ;;  %v6953_v11 = vadd.f32 %v17222_v44, %v6215_v2  ;;  %12274 = vmatprep.mubr.msk.bf16.mxu1 %vm3468_vm2, %v7228_v52  ;;  %v17224_v61 = vld [vmem:[#allocation7_spill] sm:$0xff]  ;;  %v7229_v17 = vld [vmem:[#allocation2 + $0x2b8] sm:$0xff] }
 0x3c7   : > { %7051 = vst.msk [vmem:[#allocation3 + $0x178] sm:$0xff] %vm3468_vm2, %v6955_v13  ;;  %v17225_v1 = vld [vmem:[#allocation8_spill] sm:$0xff]  ;;  %v7230_v8 = vld [vmem:[#allocation2 + $0x2c0] sm:$0xff]  ;;  %v12445_v13 = vld [vmem:[%s17206_s5 + $0x50] sm:$0xff]  }
 0x3c8   : > { %7049 = vst.msk [vmem:[#allocation3 + $0x168] sm:$0xff] %vm3468_vm2, %v6953_v11  ;;  %v12056_v51 = vpop.f32.mrb[244].mxu1  ;;  %v17226_v2 = vld [vmem:[#allocation9_spill] sm:$0xff]  ;;  %11416 = vmatprep.subr.bf16.mxu0 %v12445_v13  ;;  %v5298_v11 = vld [vmem:[#allocation3 + $0x1d0] sm:$0xff] }
 0x3c9   : > { %v6032_v32 = vadd.f32 %v12056_v51, %v5294_v24  ;;  %v5803_v63 = vpop.f32.mrb[245].mxu1  ;;  %v12446_v44 = vld [vmem:[%s17206_s5 + $0x10] sm:$0xff]  }
 0x3ca   : > { %v6030_v62 = vadd.f32 %v5803_v63, %v5292_v3  ;;  %v12057_v34 = vpop.f32.mrb[246].mxu1  ;;  %v6220_v53 = vld [vmem:[#allocation3 + $0x190] sm:$0xff]  ;;  %11417 = vmatpush3.bf16.msra.mxu0 %v12446_v44 }
 0x3cb   : > { %6128 = vst.msk [vmem:[#allocation3 + $0x1b0] sm:$0xff] %vm3468_vm2, %v6032_v32  ;;  %v6033_v4 = vadd.f32 %v12057_v34, %v5295_v26  ;;  %v6958_v38 = vadd.f32 %v17223_v23, %v6220_v53  ;;  %v5806_v28 = vpop.f32.mrb[247].mxu1  ;;  %v6218_v48 = vld [vmem:[#allocation3 + $0x180] sm:$0xff] }
 0x3cc   : > { %6126 = vst.msk [vmem:[#allocation3 + $0x1a0] sm:$0xff] %vm3468_vm2, %v6030_v62  ;;  %v6031_v10 = vadd.f32 %v5806_v28, %v5293_v22  ;;  %v6956_v39 = vadd.f32 %v17224_v61, %v6218_v48  ;;  %v6221_v15 = vld [vmem:[#allocation3 + $0x198] sm:$0xff]  ;;  %v5296_v32 = vld [vmem:[#allocation3 + $0x1c0] sm:$0xff] }
 0x3cd   : > { %6129 = vst.msk [vmem:[#allocation3 + $0x1b8] sm:$0xff] %vm3468_vm2, %v6033_v4  ;;  %7054 = vst.msk [vmem:[#allocation3 + $0x190] sm:$0xff] %vm3468_vm2, %v6958_v38  ;;  %v6959_v18 = vadd.f32 %v17225_v1, %v6221_v15  ;;  %v6219_v20 = vld [vmem:[#allocation3 + $0x188] sm:$0xff]  ;;  %12275 = vmatmul.mubr.msk.bf16.gmra.mrb[96].mxu1 %vm3468_vm2, %v7229_v17  ;;  %v5299_v62 = vld [vmem:[#allocation3 + $0x1d8] sm:$0xff] }
 0x3ce   : > { %6127 = vst.msk [vmem:[#allocation3 + $0x1a8] sm:$0xff] %vm3468_vm2, %v6031_v10  ;;  %7052 = vst.msk [vmem:[#allocation3 + $0x180] sm:$0xff] %vm3468_vm2, %v6956_v39  ;;  %v6957_v52 = vadd.f32 %v17226_v2, %v6219_v20  ;;  %12278 = vmatprep.mubr.msk.bf16.mxu1 %vm3468_vm2, %v7230_v8  ;;  %v17227_v4 = vld [vmem:[#allocation10_spill] sm:$0xff]  ;;  %v17228_v10 = vld [vmem:[#allocation11_spill] sm:$0xff] }
 0x3cf   : > { %7055 = vst.msk [vmem:[#allocation3 + $0x198] sm:$0xff] %vm3468_vm2, %v6959_v18  ;;  %v5297_v38 = vld [vmem:[#allocation3 + $0x1c8] sm:$0xff]  ;;  %v7231_v15 = vld [vmem:[#allocation2 + $0x2c8] sm:$0xff]  ;;  %v7232_v20 = vld [vmem:[#allocation2 + $0x2d0] sm:$0xff] }
 0x3d0   : > { %7053 = vst.msk [vmem:[#allocation3 + $0x188] sm:$0xff] %vm3468_vm2, %v6957_v52  ;;  %v12060_v24 = vpop.f32.mrb[248].mxu1  ;;  %v17229_v17 = vld [vmem:[#allocation12_spill] sm:$0xff]  ;;  %v17230_v8 = vld [vmem:[#allocation13_spill] sm:$0xff]  ;;  %v5302_v2 = vld [vmem:[#allocation3 + $0x1f0] sm:$0xff] }
 0x3d1   : > { %v6036_v51 = vadd.f32 %v12060_v24, %v5298_v11  ;;  %v5819_v3 = vpop.f32.mrb[249].mxu1  ;;  %v5300_v11 = vld [vmem:[#allocation3 + $0x1e0] sm:$0xff] }
 0x3d2   : > { %v6034_v63 = vadd.f32 %v5819_v3, %v5296_v32  ;;  %v12061_v26 = vpop.f32.mrb[250].mxu1  ;;  %v6224_v34 = vld [vmem:[#allocation3 + $0x1b0] sm:$0xff]  ;;  %v5303_v32 = vld [vmem:[#allocation3 + $0x1f8] sm:$0xff] }
 0x3d3   : > { %6132 = vst.msk [vmem:[#allocation3 + $0x1d0] sm:$0xff] %vm3468_vm2, %v6036_v51  ;;  %v6037_v53 = vadd.f32 %v12061_v26, %v5299_v62  ;;  %v6962_v23 = vadd.f32 %v17227_v4, %v6224_v34  ;;  %v5822_v22 = vpop.f32.mrb[251].mxu1  ;;  %v6222_v28 = vld [vmem:[#allocation3 + $0x1a0] sm:$0xff]  ;;  %v17231_v26 = vld [vmem:[#allocation14_spill] sm:$0xff] }
 0x3d4   : > { %6130 = vst.msk [vmem:[#allocation3 + $0x1c0] sm:$0xff] %vm3468_vm2, %v6034_v63  ;;  %v6035_v48 = vadd.f32 %v5822_v22, %v5297_v38  ;;  %v6960_v61 = vadd.f32 %v17228_v10, %v6222_v28  ;;  %v6225_v39 = vld [vmem:[#allocation3 + $0x1b8] sm:$0xff]  ;;  %v17232_v22 = vld [vmem:[#allocation15_spill] sm:$0xff]  ;;  %v7233_v10 = vld [vmem:[#allocation2 + $0x2d8] sm:$0xff] }
 0x3d5   : > { %6133 = vst.msk [vmem:[#allocation3 + $0x1d8] sm:$0xff] %vm3468_vm2, %v6037_v53  ;;  %7058 = vst.msk [vmem:[#allocation3 + $0x1b0] sm:$0xff] %vm3468_vm2, %v6962_v23  ;;  %v6963_v1 = vadd.f32 %v17229_v17, %v6225_v39  ;;  %v6223_v18 = vld [vmem:[#allocation3 + $0x1a8] sm:$0xff]  ;;  %12279 = vmatmul.mubr.msk.bf16.gmra.mrb[100].mxu1 %vm3468_vm2, %v7231_v15  ;;  %v7234_v17 = vld [vmem:[#allocation2 + $0x2e0] sm:$0xff] }
 0x3d6   : > { %6131 = vst.msk [vmem:[#allocation3 + $0x1c8] sm:$0xff] %vm3468_vm2, %v6035_v48  ;;  %7056 = vst.msk [vmem:[#allocation3 + $0x1a0] sm:$0xff] %vm3468_vm2, %v6960_v61  ;;  %v6961_v13 = vadd.f32 %v17230_v8, %v6223_v18  ;;  %12282 = vmatprep.mubr.msk.bf16.mxu1 %vm3468_vm2, %v7232_v20  ;;  %v5301_v53 = vld [vmem:[#allocation3 + $0x1e8] sm:$0xff]  ;;  %v17233_v61 = vld [vmem:[#allocation16_spill] sm:$0xff] }
 0x3d7   : > { %7059 = vst.msk [vmem:[#allocation3 + $0x1b8] sm:$0xff] %vm3468_vm2, %v6963_v1  ;;  %v17234_v1 = vld [vmem:[#allocation17_spill] sm:$0xff]  ;;  %v5306_v20 = vld [vmem:[#allocation3 + $0x210] sm:$0xff] }
 0x3d8   : > { %7057 = vst.msk [vmem:[#allocation3 + $0x1a8] sm:$0xff] %vm3468_vm2, %v6961_v13  ;;  %v12064_v52 = vpop.f32.mrb[252].mxu1 }
 0x3d9   : > { %v6040_v44 = vadd.f32 %v12064_v52, %v5302_v2  ;;  %v5835_v24 = vpop.f32.mrb[253].mxu1  ;;  %v5304_v2 = vld [vmem:[#allocation3 + $0x200] sm:$0xff] }
 0x3da   : > { %v6038_v51 = vadd.f32 %v5835_v24, %v5300_v11  ;;  %v12065_v3 = vpop.f32.mrb[254].mxu1  ;;  %v6228_v63 = vld [vmem:[#allocation3 + $0x1d0] sm:$0xff]  ;;  %v5307_v11 = vld [vmem:[#allocation3 + $0x218] sm:$0xff] }
 0x3db   : > { %6136 = vst.msk [vmem:[#allocation3 + $0x1f0] sm:$0xff] %vm3468_vm2, %v6040_v44  ;;  %v6041_v62 = vadd.f32 %v12065_v3, %v5303_v32  ;;  %v6966_v34 = vadd.f32 %v17231_v26, %v6228_v63  ;;  %v5838_v4 = vpop.f32.mrb[255].mxu1  ;;  %v6226_v23 = vld [vmem:[#allocation3 + $0x1c0] sm:$0xff]  ;;  %v17235_v3 = vld [vmem:[#allocation18_spill] sm:$0xff] }
 0x3dc   : > { %6134 = vst.msk [vmem:[#allocation3 + $0x1e0] sm:$0xff] %vm3468_vm2, %v6038_v51  ;;  %v6039_v38 = vadd.f32 %v5838_v4, %v5301_v53  ;;  %v6964_v28 = vadd.f32 %v17232_v22, %v6226_v23  ;;  %v6229_v48 = vld [vmem:[#allocation3 + $0x1d8] sm:$0xff] }
 0x3dd   : > { %6137 = vst.msk [vmem:[#allocation3 + $0x1f8] sm:$0xff] %vm3468_vm2, %v6041_v62  ;;  %7062 = vst.msk [vmem:[#allocation3 + $0x1d0] sm:$0xff] %vm3468_vm2, %v6966_v34  ;;  %v6967_v39 = vadd.f32 %v17233_v61, %v6229_v48  ;;  %v6227_v15 = vld [vmem:[#allocation3 + $0x1c8] sm:$0xff]  ;;  %12283 = vmatmul.mubr.msk.bf16.gmra.mrb[104].mxu1 %vm3468_vm2, %v7233_v10  ;;  %v7236_v48 = vld [vmem:[#allocation2 + $0x2f0] sm:$0xff] }
 0x3de   : > { %6135 = vst.msk [vmem:[#allocation3 + $0x1e8] sm:$0xff] %vm3468_vm2, %v6039_v38  ;;  %7060 = vst.msk [vmem:[#allocation3 + $0x1c0] sm:$0xff] %vm3468_vm2, %v6964_v28  ;;  %v6965_v18 = vadd.f32 %v17234_v1, %v6227_v15  ;;  %12286 = vmatprep.mubr.msk.bf16.mxu1 %vm3468_vm2, %v7234_v17  ;;  %v5305_v62 = vld [vmem:[#allocation3 + $0x208] sm:$0xff]  ;;  %v7235_v38 = vld [vmem:[#allocation2 + $0x2e8] sm:$0xff] }
 0x3df   : > { %7063 = vst.msk [vmem:[#allocation3 + $0x1d8] sm:$0xff] %vm3468_vm2, %v6967_v39  ;;  %v12447_v10 = vld [vmem:[%s17206_s5 + $0x58] sm:$0xff]   ;;  %v5310_v61 = vld [vmem:[#allocation3 + $0x230] sm:$0xff]  ;;  %v5308_v17 = vld [vmem:[#allocation3 + $0x220] sm:$0xff] }
 0x3e0   : > { %7061 = vst.msk [vmem:[#allocation3 + $0x1c8] sm:$0xff] %vm3468_vm2, %v6965_v18  ;;  %v12068_v8 = vpop.f32.mrb[0].mxu1  ;;  %11418 = vmatprep.subr.bf16.mxu0 %v12447_v10  ;;  %v5313_v10 = vld [vmem:[#allocation3 + $0x248] sm:$0xff] }
 0x3e1   : > { %v6044_v13 = vadd.f32 %v12068_v8, %v5306_v20  ;;  %v5851_v52 = vpop.f32.mrb[1].mxu1  ;;  %v5311_v20 = vld [vmem:[#allocation3 + $0x238] sm:$0xff] }
 0x3e2   : > { %v6042_v44 = vadd.f32 %v5851_v52, %v5304_v2  ;;  %v12069_v24 = vpop.f32.mrb[2].mxu1  ;;  %v6232_v51 = vld [vmem:[#allocation3 + $0x1f0] sm:$0xff]  ;;  %v5309_v52 = vld [vmem:[#allocation3 + $0x228] sm:$0xff] }
 0x3e3   : > { %6140 = vst.msk [vmem:[#allocation3 + $0x210] sm:$0xff] %vm3468_vm2, %v6044_v13  ;;  %v6045_v32 = vadd.f32 %v12069_v24, %v5307_v11  ;;  %v6970_v63 = vadd.f32 %v17235_v3, %v6232_v51  ;;  %v5854_v26 = vpop.f32.mrb[3].mxu1  ;;  %v6230_v34 = vld [vmem:[#allocation3 + $0x1e0] sm:$0xff]  ;;  %v7237_v3 = vld [vmem:[#allocation2 + $0x2f8] sm:$0xff] }
 0x3e4   : > { %6138 = vst.msk [vmem:[#allocation3 + $0x200] sm:$0xff] %vm3468_vm2, %v6042_v44  ;;  %v6043_v53 = vadd.f32 %v5854_v26, %v5305_v62  ;;  %v6968_v4 = vadd.f32 %v15603_v49, %v6230_v34  ;;  %v6233_v23 = vld [vmem:[#allocation3 + $0x1f8] sm:$0xff] }
 0x3e5   : > { %6141 = vst.msk [vmem:[#allocation3 + $0x218] sm:$0xff] %vm3468_vm2, %v6045_v32  ;;  %7066 = vst.msk [vmem:[#allocation3 + $0x1f0] sm:$0xff] %vm3468_vm2, %v6970_v63  ;;  %v6971_v22 = vadd.f32 %v15605_v35, %v6233_v23  ;;  %v6231_v28 = vld [vmem:[#allocation3 + $0x1e8] sm:$0xff]  ;;  %12287 = vmatmul.mubr.msk.bf16.gmra.mrb[108].mxu1 %vm3468_vm2, %v7235_v38  ;;  %v5315_v38 = vld [vmem:[#allocation3 + $0x258] sm:$0xff] }
 0x3e6   : > { %6139 = vst.msk [vmem:[#allocation3 + $0x208] sm:$0xff] %vm3468_vm2, %v6043_v53  ;;  %7064 = vst.msk [vmem:[#allocation3 + $0x1e0] sm:$0xff] %vm3468_vm2, %v6968_v4  ;;  %v6969_v49 = vadd.f32 %v15609_v25, %v6231_v28  ;;  %12290 = vmatprep.mubr.msk.bf16.mxu1 %vm3468_vm2, %v7236_v48  ;;  %v12448_v35 = vld [vmem:[%s17206_s5 + $0x18] sm:$0xff]  }
 0x3e7   : > { %7067 = vst.msk [vmem:[#allocation3 + $0x1f8] sm:$0xff] %vm3468_vm2, %v6971_v22  ;;  %11419 = vmatpush3.bf16.msra.mxu0 %v12448_v35 }
 0x3e8   : > { %7065 = vst.msk [vmem:[#allocation3 + $0x1e8] sm:$0xff] %vm3468_vm2, %v6969_v49  ;;  %v12072_v39 = vpop.f32.mrb[4].mxu1 }
 0x3e9   : > { %v6048_v15 = vadd.f32 %v12072_v39, %v5310_v61  ;;  %v5867_v1 = vpop.f32.mrb[5].mxu1 }
 0x3ea   : > { %v6046_v18 = vadd.f32 %v5867_v1, %v5308_v17  ;;  %v12073_v25 = vpop.f32.mrb[6].mxu1  ;;  %v6236_v8 = vld [vmem:[#allocation3 + $0x210] sm:$0xff]  ;;  %v7239_v17 = vld [vmem:[#allocation2 + $0x308] sm:$0xff] }
 0x3eb   : > { %6144 = vst.msk [vmem:[#allocation3 + $0x230] sm:$0xff] %vm3468_vm2, %v6048_v15  ;;  %v6049_v13 = vadd.f32 %v12073_v25, %v5311_v20  ;;  %v6974_v2 = vadd.f32 %v15623_v31, %v6236_v8  ;;  %v5870_v44 = vpop.f32.mrb[7].mxu1  ;;  %v6234_v11 = vld [vmem:[#allocation3 + $0x200] sm:$0xff]  ;;  %v7238_v31 = vld [vmem:[#allocation2 + $0x300] sm:$0xff] }
 0x3ec   : > { %6142 = vst.msk [vmem:[#allocation3 + $0x220] sm:$0xff] %vm3468_vm2, %v6046_v18  ;;  %v6047_v24 = vadd.f32 %v5870_v44, %v5309_v52  ;;  %v6972_v51 = vadd.f32 %v15625_v14, %v6234_v11  ;;  %v6237_v32 = vld [vmem:[#allocation3 + $0x218] sm:$0xff]  ;;  %v5314_v14 = vld [vmem:[#allocation3 + $0x250] sm:$0xff] }
 0x3ed   : > { %6145 = vst.msk [vmem:[#allocation3 + $0x238] sm:$0xff] %vm3468_vm2, %v6049_v13  ;;  %7070 = vst.msk [vmem:[#allocation3 + $0x210] sm:$0xff] %vm3468_vm2, %v6974_v2  ;;  %v6975_v63 = vadd.f32 %v15627_v55, %v6237_v32  ;;  %v6235_v62 = vld [vmem:[#allocation3 + $0x208] sm:$0xff]  ;;  %12291 = vmatmul.mubr.msk.bf16.gmra.mrb[112].mxu1 %vm3468_vm2, %v7237_v3  ;;  %v5312_v55 = vld [vmem:[#allocation3 + $0x240] sm:$0xff] }
 0x3ee   : > { %6143 = vst.msk [vmem:[#allocation3 + $0x228] sm:$0xff] %vm3468_vm2, %v6047_v24  ;;  %7068 = vst.msk [vmem:[#allocation3 + $0x200] sm:$0xff] %vm3468_vm2, %v6972_v51  ;;  %v6973_v26 = vadd.f32 %v15631_v37, %v6235_v62  ;;  %12294 = vmatprep.mubr.msk.bf16.mxu1 %vm3468_vm2, %v7238_v31  ;;  %v5319_v52 = vld [vmem:[#allocation3 + $0x278] sm:$0xff]  ;;  %v5317_v51 = vld [vmem:[#allocation3 + $0x268] sm:$0xff] }
 0x3ef   : > { %7071 = vst.msk [vmem:[#allocation3 + $0x218] sm:$0xff] %vm3468_vm2, %v6975_v63 }
 0x3f0   : > { %7069 = vst.msk [vmem:[#allocation3 + $0x208] sm:$0xff] %vm3468_vm2, %v6973_v26  ;;  %v12076_v34 = vpop.f32.mrb[8].mxu1  ;;  %v7241_v26 = vld [vmem:[#allocation2 + $0x318] sm:$0xff] }
 0x3f1   : > { %v6052_v53 = vadd.f32 %v12076_v34, %v5314_v14  ;;  %v5883_v4 = vpop.f32.mrb[9].mxu1 }
 0x3f2   : > { %v6050_v23 = vadd.f32 %v5883_v4, %v5312_v55  ;;  %v12077_v22 = vpop.f32.mrb[10].mxu1  ;;  %v6240_v28 = vld [vmem:[#allocation3 + $0x230] sm:$0xff] }
 0x3f3   : > { %6148 = vst.msk [vmem:[#allocation3 + $0x250] sm:$0xff] %vm3468_vm2, %v6052_v53  ;;  %v6053_v48 = vadd.f32 %v12077_v22, %v5315_v38  ;;  %v6978_v37 = vadd.f32 %v15645_v40, %v6240_v28  ;;  %v5886_v49 = vpop.f32.mrb[11].mxu1  ;;  %v6238_v35 = vld [vmem:[#allocation3 + $0x220] sm:$0xff]  ;;  %v12449_v53 = vld [vmem:[%s17206_s5 + $0x60] sm:$0xff]  }
 0x3f4   : > { %6146 = vst.msk [vmem:[#allocation3 + $0x240] sm:$0xff] %vm3468_vm2, %v6050_v23  ;;  %v6051_v61 = vadd.f32 %v5886_v49, %v5313_v10  ;;  %v6976_v39 = vadd.f32 %v15647_v57, %v6238_v35  ;;  %v6241_v15 = vld [vmem:[#allocation3 + $0x238] sm:$0xff]  ;;  %v7240_v40 = vld [vmem:[#allocation2 + $0x310] sm:$0xff]  ;;  %v5318_v57 = vld [vmem:[#allocation3 + $0x270] sm:$0xff]  ;;  %11420 = vmatprep.subr.bf16.mxu0 %v12449_v53 }
 0x3f5   : > { %6149 = vst.msk [vmem:[#allocation3 + $0x258] sm:$0xff] %vm3468_vm2, %v6053_v48  ;;  %7074 = vst.msk [vmem:[#allocation3 + $0x230] sm:$0xff] %vm3468_vm2, %v6978_v37  ;;  %v6979_v1 = vadd.f32 %v15649_v7, %v6241_v15  ;;  %v6239_v18 = vld [vmem:[#allocation3 + $0x228] sm:$0xff]  ;;  %12295 = vmatmul.mubr.msk.bf16.gmra.mrb[116].mxu1 %vm3468_vm2, %v7239_v17  ;;  %v5316_v7 = vld [vmem:[#allocation3 + $0x260] sm:$0xff] }
 0x3f6   : > { %6147 = vst.msk [vmem:[#allocation3 + $0x248] sm:$0xff] %vm3468_vm2, %v6051_v61  ;;  %7072 = vst.msk [vmem:[#allocation3 + $0x220] sm:$0xff] %vm3468_vm2, %v6976_v39  ;;  %v6977_v20 = vadd.f32 %v15653_v43, %v6239_v18  ;;  %12298 = vmatprep.mubr.msk.bf16.mxu1 %vm3468_vm2, %v7240_v40  ;;  %v5322_v55 = vld [vmem:[#allocation3 + $0x290] sm:$0xff]  ;;  %v5320_v38 = vld [vmem:[#allocation3 + $0x280] sm:$0xff] }
 0x3f7   : > { %7075 = vst.msk [vmem:[#allocation3 + $0x238] sm:$0xff] %vm3468_vm2, %v6979_v1  ;;  %v5323_v48 = vld [vmem:[#allocation3 + $0x298] sm:$0xff]  ;;  %v5321_v35 = vld [vmem:[#allocation3 + $0x288] sm:$0xff] }
 0x3f8   : > { %7073 = vst.msk [vmem:[#allocation3 + $0x228] sm:$0xff] %vm3468_vm2, %v6977_v20  ;;  %v12080_v25 = vpop.f32.mrb[12].mxu1  ;;  %v7243_v18 = vld [vmem:[#allocation2 + $0x328] sm:$0xff] }
 0x3f9   : > { %v6056_v8 = vadd.f32 %v12080_v25, %v5318_v57  ;;  %v5899_v13 = vpop.f32.mrb[13].mxu1  ;;  %v5331_v53 = vld [vmem:[#allocation3 + $0x2d8] sm:$0xff] }
 0x3fa   : > { %v6054_v2 = vadd.f32 %v5899_v13, %v5316_v7  ;;  %v12081_v44 = vpop.f32.mrb[14].mxu1  ;;  %v6244_v11 = vld [vmem:[#allocation3 + $0x250] sm:$0xff] }
 0x3fb   : > { %6152 = vst.msk [vmem:[#allocation3 + $0x270] sm:$0xff] %vm3468_vm2, %v6056_v8  ;;  %v6057_v24 = vadd.f32 %v12081_v44, %v5319_v52  ;;  %v6982_v43 = vadd.f32 %v15667_v47, %v6244_v11  ;;  %v5902_v32 = vpop.f32.mrb[15].mxu1  ;;  %v6242_v3 = vld [vmem:[#allocation3 + $0x240] sm:$0xff]  ;;  %v7242_v47 = vld [vmem:[#allocation2 + $0x320] sm:$0xff] }
 0x3fc   : > { %6150 = vst.msk [vmem:[#allocation3 + $0x260] sm:$0xff] %vm3468_vm2, %v6054_v2  ;;  %v6055_v63 = vadd.f32 %v5902_v32, %v5317_v51  ;;  %v6980_v62 = vadd.f32 %v15669_v9, %v6242_v3  ;;  %v6245_v31 = vld [vmem:[#allocation3 + $0x258] sm:$0xff]  ;;  %v5324_v8 = vld [vmem:[#allocation3 + $0x2a0] sm:$0xff] }
 0x3fd   : > { %6153 = vst.msk [vmem:[#allocation3 + $0x278] sm:$0xff] %vm3468_vm2, %v6057_v24  ;;  %7078 = vst.msk [vmem:[#allocation3 + $0x250] sm:$0xff] %vm3468_vm2, %v6982_v43  ;;  %v6983_v14 = vadd.f32 %v15671_v27, %v6245_v31  ;;  %v6243_v34 = vld [vmem:[#allocation3 + $0x248] sm:$0xff]  ;;  %12299 = vmatmul.mubr.msk.bf16.gmra.mrb[120].mxu1 %vm3468_vm2, %v7241_v26  ;;  %v12450_v27 = vld [vmem:[%s17206_s5 + $0x20] sm:$0xff]  }
 0x3fe   : > { %6151 = vst.msk [vmem:[#allocation3 + $0x268] sm:$0xff] %vm3468_vm2, %v6055_v63  ;;  %7076 = vst.msk [vmem:[#allocation3 + $0x240] sm:$0xff] %vm3468_vm2, %v6980_v62  ;;  %v6981_v9 = vadd.f32 %v15675_v41, %v6243_v34  ;;  %12302 = vmatprep.mubr.msk.bf16.mxu1 %vm3468_vm2, %v7242_v47  ;;  %11421 = vmatpush3.bf16.msra.mxu0 %v12450_v27  ;;  %v5325_v24 = vld [vmem:[#allocation3 + $0x2a8] sm:$0xff]  ;;  %v5330_v31 = vld [vmem:[#allocation3 + $0x2d0] sm:$0xff] }
 0x3ff   : > { %7079 = vst.msk [vmem:[#allocation3 + $0x258] sm:$0xff] %vm3468_vm2, %v6983_v14  ;;  %v5328_v14 = vld [vmem:[#allocation3 + $0x2c0] sm:$0xff] }
 0x400   : > { %7077 = vst.msk [vmem:[#allocation3 + $0x248] sm:$0xff] %vm3468_vm2, %v6981_v9  ;;  %v12084_v4 = vpop.f32.mrb[16].mxu1 }
 0x401   : > { %v6060_v23 = vadd.f32 %v12084_v4, %v5322_v55  ;;  %v5915_v22 = vpop.f32.mrb[17].mxu1  ;;  %v5329_v4 = vld [vmem:[#allocation3 + $0x2c8] sm:$0xff] }
 0x402   : > { %v6058_v28 = vadd.f32 %v5915_v22, %v5320_v38  ;;  %v12085_v41 = vpop.f32.mrb[18].mxu1  ;;  %v6248_v37 = vld [vmem:[#allocation3 + $0x270] sm:$0xff] }
 0x403   : > { %6156 = vst.msk [vmem:[#allocation3 + $0x290] sm:$0xff] %vm3468_vm2, %v6060_v23  ;;  %v6061_v10 = vadd.f32 %v12085_v41, %v5323_v48  ;;  %v6986_v49 = vadd.f32 %v15689_v21, %v6248_v37  ;;  %v5918_v61 = vpop.f32.mrb[19].mxu1  ;;  %v6246_v39 = vld [vmem:[#allocation3 + $0x260] sm:$0xff] }
 0x404   : > { %6154 = vst.msk [vmem:[#allocation3 + $0x280] sm:$0xff] %vm3468_vm2, %v6058_v28  ;;  %v6059_v15 = vadd.f32 %v5918_v61, %v5321_v35  ;;  %v6984_v17 = vadd.f32 %v15691_v54, %v6246_v39  ;;  %v6249_v1 = vld [vmem:[#allocation3 + $0x278] sm:$0xff]  ;;  %v5326_v54 = vld [vmem:[#allocation3 + $0x2b0] sm:$0xff]  ;;  %v5332_v35 = vld [vmem:[#allocation3 + $0x2e0] sm:$0xff] }
 0x405   : > { %6157 = vst.msk [vmem:[#allocation3 + $0x298] sm:$0xff] %vm3468_vm2, %v6061_v10  ;;  %7082 = vst.msk [vmem:[#allocation3 + $0x270] sm:$0xff] %vm3468_vm2, %v6986_v49  ;;  %v6987_v40 = vadd.f32 %v15693_v33, %v6249_v1  ;;  %v6247_v20 = vld [vmem:[#allocation3 + $0x268] sm:$0xff]  ;;  %12303 = vmatmul.mubr.msk.bf16.gmra.mrb[124].mxu1 %vm3468_vm2, %v7243_v18  ;;  %v5327_v33 = vld [vmem:[#allocation3 + $0x2b8] sm:$0xff] }
 0x406   : > { %6155 = vst.msk [vmem:[#allocation3 + $0x288] sm:$0xff] %vm3468_vm2, %v6059_v15  ;;  %7080 = vst.msk [vmem:[#allocation3 + $0x260] sm:$0xff] %vm3468_vm2, %v6984_v17  ;;  %v6985_v21 = vadd.f32 %v15697_v50, %v6247_v20  ;;  %v5335_v15 = vld [vmem:[#allocation3 + $0x2f8] sm:$0xff] }
 0x407   : > { %7083 = vst.msk [vmem:[#allocation3 + $0x278] sm:$0xff] %vm3468_vm2, %v6987_v40  ;;  %v5333_v40 = vld [vmem:[#allocation3 + $0x2e8] sm:$0xff] }
 0x408   : > { %7081 = vst.msk [vmem:[#allocation3 + $0x268] sm:$0xff] %vm3468_vm2, %v6985_v21  ;;  %v12088_v57 = vpop.f32.mrb[20].mxu1 }
 0x409   : > { %v6064_v25 = vadd.f32 %v12088_v57, %v5326_v54  ;;  %v5931_v7 = vpop.f32.mrb[21].mxu1 }
 0x40a   : > { %v6062_v13 = vadd.f32 %v5931_v7, %v5324_v8  ;;  %v12089_v2 = vpop.f32.mrb[22].mxu1  ;;  %v6252_v52 = vld [vmem:[#allocation3 + $0x290] sm:$0xff] }
 0x40b   : > { %6160 = vst.msk [vmem:[#allocation3 + $0x2b0] sm:$0xff] %vm3468_vm2, %v6064_v25  ;;  %v6065_v44 = vadd.f32 %v12089_v2, %v5327_v33  ;;  %v6990_v11 = vadd.f32 %v15711_v6, %v6252_v52  ;;  %v5934_v50 = vpop.f32.mrb[23].mxu1  ;;  %v6250_v43 = vld [vmem:[#allocation3 + $0x280] sm:$0xff] }
 0x40c   : > { %6158 = vst.msk [vmem:[#allocation3 + $0x2a0] sm:$0xff] %vm3468_vm2, %v6062_v13  ;;  %v6063_v51 = vadd.f32 %v5934_v50, %v5325_v24  ;;  %v6988_v32 = vadd.f32 %v15713_v16, %v6250_v43  ;;  %v6253_v3 = vld [vmem:[#allocation3 + $0x298] sm:$0xff]  ;;  %v7102_v13 = vld [vmem:[#allocation3 + $0x10] sm:$0xff]  ;;  %v7100_v2 = vld [vmem:[#allocation3] sm:$0xff] }
 0x40d   : > { %6161 = vst.msk [vmem:[#allocation3 + $0x2b8] sm:$0xff] %vm3468_vm2, %v6065_v44  ;;  %7086 = vst.msk [vmem:[#allocation3 + $0x290] sm:$0xff] %vm3468_vm2, %v6990_v11  ;;  %v6991_v63 = vadd.f32 %v15715_v5, %v6253_v3  ;;  %v6251_v62 = vld [vmem:[#allocation3 + $0x288] sm:$0xff]  ;;  %v7103_v24 = vld [vmem:[#allocation3 + $0x18] sm:$0xff] }
 0x40e   : > { %6159 = vst.msk [vmem:[#allocation3 + $0x2a8] sm:$0xff] %vm3468_vm2, %v6063_v51  ;;  %7084 = vst.msk [vmem:[#allocation3 + $0x280] sm:$0xff] %vm3468_vm2, %v6988_v32  ;;  %v6989_v6 = vadd.f32 %v15719_v29, %v6251_v62 }
 0x40f   : > { %7087 = vst.msk [vmem:[#allocation3 + $0x298] sm:$0xff] %vm3468_vm2, %v6991_v63 }
 0x410   : > { %7085 = vst.msk [vmem:[#allocation3 + $0x288] sm:$0xff] %vm3468_vm2, %v6989_v6  ;;  %v12092_v16 = vpop.f32.mrb[24].mxu1 }
 0x411   : > { %v6068_v26 = vadd.f32 %v12092_v16, %v5330_v31  ;;  %v5947_v34 = vpop.f32.mrb[25].mxu1 }
 0x412   : > { %v6066_v47 = vadd.f32 %v5947_v34, %v5328_v14  ;;  %v12093_v9 = vpop.f32.mrb[26].mxu1  ;;  %v6256_v5 = vld [vmem:[#allocation3 + $0x2b0] sm:$0xff] }
 0x413   : > { %6164 = vst.msk [vmem:[#allocation3 + $0x2d0] sm:$0xff] %vm3468_vm2, %v6068_v26  ;;  %v6069_v27 = vadd.f32 %v12093_v9, %v5331_v53  ;;  %v6994_v55 = vadd.f32 %v15733_v46, %v6256_v5  ;;  %v5950_v29 = vpop.f32.mrb[27].mxu1  ;;  %v6254_v23 = vld [vmem:[#allocation3 + $0x2a0] sm:$0xff]  ;;  %v12451_v46 = vld [vmem:[%s17206_s5 + $0x68] sm:$0xff]   ;;  %v16039_v26 = vld [vmem:[%s17205_s4] ss:$0 sm:$0xff] }
 0x414   : > { %6162 = vst.msk [vmem:[#allocation3 + $0x2c0] sm:$0xff] %vm3468_vm2, %v6066_v47  ;;  %v6067_v38 = vadd.f32 %v5950_v29, %v5329_v4  ;;  %v6992_v22 = vadd.f32 %v15735_v19, %v6254_v23  ;;  %v6257_v28 = vld [vmem:[#allocation3 + $0x2b8] sm:$0xff]  ;;  %11422 = vmatprep.subr.bf16.mxu0 %v12451_v46  ;;  %v12454_v46 = vld [vmem:[%s17206_s5 + $0x30] sm:$0xff]  }
 0x415   : > { %6165 = vst.msk [vmem:[#allocation3 + $0x2d8] sm:$0xff] %vm3468_vm2, %v6069_v27  ;;  %7090 = vst.msk [vmem:[#allocation3 + $0x2b0] sm:$0xff] %vm3468_vm2, %v6994_v55  ;;  %v6995_v48 = vadd.f32 %v15737_v36, %v6257_v28  ;;  %v6255_v41 = vld [vmem:[#allocation3 + $0x2a8] sm:$0xff]  ;;  %v12452_v19 = vld [vmem:[%s17206_s5 + $0x28] sm:$0xff]  }
 0x416   : > { %6163 = vst.msk [vmem:[#allocation3 + $0x2c8] sm:$0xff] %vm3468_vm2, %v6067_v38  ;;  %7088 = vst.msk [vmem:[#allocation3 + $0x2a0] sm:$0xff] %vm3468_vm2, %v6992_v22  ;;  %v6993_v37 = vadd.f32 %v15741_v12, %v6255_v41  ;;  %v5334_v36 = vld [vmem:[#allocation3 + $0x2f0] sm:$0xff]  ;;  %11423 = vmatpush3.bf16.msra.mxu0 %v12452_v19  ;;  %v7107_v53 = vld [vmem:[#allocation3 + $0x38] sm:$0xff] }
 0x417   : > { %7091 = vst.msk [vmem:[#allocation3 + $0x2b8] sm:$0xff] %vm3468_vm2, %v6995_v48  ;;  %v7105_v27 = vld [vmem:[#allocation3 + $0x28] sm:$0xff]  ;;  %v12453_v22 = vld [vmem:[%s17206_s5 + $0x70] sm:$0xff]  }
 0x418   : > { %7089 = vst.msk [vmem:[#allocation3 + $0x2a8] sm:$0xff] %vm3468_vm2, %v6993_v37  ;;  %v12096_v10 = vpop.f32.mrb[28].mxu1  ;;  %11424 = vmatprep.subr.bf16.mxu0 %v12453_v22 }
 0x419   : > { %v6072_v49 = vadd.f32 %v12096_v10, %v5334_v36  ;;  %v5963_v61 = vpop.f32.mrb[29].mxu1 }
 0x41a   : > { %v6070_v39 = vadd.f32 %v5963_v61, %v5332_v35  ;;  %v12097_v17 = vpop.f32.mrb[30].mxu1  ;;  %v6260_v1 = vld [vmem:[#allocation3 + $0x2d0] sm:$0xff]  ;;  %11425 = vmatpush3.bf16.msra.mxu0 %v12454_v46 }
 0x41b   : > { %6168 = vst.msk [vmem:[#allocation3 + $0x2f0] sm:$0xff] %vm3468_vm2, %v6072_v49  ;;  %v6073_v12 = vadd.f32 %v12097_v17, %v5335_v15  ;;  %v6998_v18 = vadd.f32 %v15761_v30, %v6260_v1  ;;  %v5966_v20 = vpop.f32.mrb[31].mxu1  ;;  %v6258_v21 = vld [vmem:[#allocation3 + $0x2c0] sm:$0xff]  ;;  %v7110_v49 = vld [vmem:[#allocation3 + $0x50] sm:$0xff] }
 0x41c   : > { %6166 = vst.msk [vmem:[#allocation3 + $0x2e0] sm:$0xff] %vm3468_vm2, %v6070_v39  ;;  %v6071_v54 = vadd.f32 %v5966_v20, %v5333_v40  ;;  %v6996_v57 = vadd.f32 %v15763_v59, %v6258_v21  ;;  %v6261_v25 = vld [vmem:[#allocation3 + $0x2d8] sm:$0xff]  ;;  %v7108_v39 = vld [vmem:[#allocation3 + $0x40] sm:$0xff] }
 0x41d   : > { %6169 = vst.msk [vmem:[#allocation3 + $0x2f8] sm:$0xff] %vm3468_vm2, %v6073_v12  ;;  %7094 = vst.msk [vmem:[#allocation3 + $0x2d0] sm:$0xff] %vm3468_vm2, %v6998_v18  ;;  %v6999_v8 = vadd.f32 %v15765_v60, %v6261_v25  ;;  %v6259_v7 = vld [vmem:[#allocation3 + $0x2c8] sm:$0xff]  ;;  %v7111_v12 = vld [vmem:[#allocation3 + $0x58] sm:$0xff] }
 0x41e   : > { %6167 = vst.msk [vmem:[#allocation3 + $0x2e8] sm:$0xff] %vm3468_vm2, %v6071_v54  ;;  %7092 = vst.msk [vmem:[#allocation3 + $0x2c0] sm:$0xff] %vm3468_vm2, %v6996_v57  ;;  %v6997_v30 = vadd.f32 %v15769_v58, %v6259_v7  ;;  %v7101_v58 = vld [vmem:[#allocation3 + $0x8] sm:$0xff] }
 0x41f   : > { %7095 = vst.msk [vmem:[#allocation3 + $0x2d8] sm:$0xff] %vm3468_vm2, %v6999_v8  ;;  %v7109_v54 = vld [vmem:[#allocation3 + $0x48] sm:$0xff] }
 0x420   : > { %7093 = vst.msk [vmem:[#allocation3 + $0x2c8] sm:$0xff] %vm3468_vm2, %v6997_v30  ;;  %v12212_v59 = vpop.f32.mrb[32].mxu1 }
 0x421   : > { %v7840_v33 = vadd.f32 %v12212_v59, %v7102_v13  ;;  %v7455_v52 = vpop.f32.mrb[33].mxu1 }
 0x422   : > { %v7838_v44 = vadd.f32 %v7455_v52, %v7100_v2  ;;  %v6264_v11 = vld [vmem:[#allocation3 + $0x2f0] sm:$0xff]  ;;  %v12213_v60 = vpop.f32.mrb[34].mxu1 }
 0x423   : > { %7936 = vst.msk [vmem:[#allocation3 + $0x10] sm:$0xff] %vm3468_vm2, %v7840_v33  ;;  %v7002_v50 = vadd.f32 %v15783_v56, %v6264_v11  ;;  %v7841_v43 = vadd.f32 %v12213_v60, %v7103_v24  ;;  %v6262_v51 = vld [vmem:[#allocation3 + $0x2e0] sm:$0xff]  ;;  %v7458_v32 = vpop.f32.mrb[35].mxu1 }
 0x424   : > { %7934 = vst.msk [vmem:[#allocation3] sm:$0xff] %vm3468_vm2, %v7838_v44  ;;  %v7000_v3 = vadd.f32 %v15787_v0, %v6262_v51  ;;  %v7839_v63 = vadd.f32 %v7458_v32, %v7101_v58  ;;  %v6265_v62 = vld [vmem:[#allocation3 + $0x2f8] sm:$0xff]  ;;  %v7106_v0 = vld [vmem:[#allocation3 + $0x30] sm:$0xff] }
 0x425   : > { %7098 = vst.msk [vmem:[#allocation3 + $0x2f0] sm:$0xff] %vm3468_vm2, %v7002_v50  ;;  %7937 = vst.msk [vmem:[#allocation3 + $0x18] sm:$0xff] %vm3468_vm2, %v7841_v43  ;;  %v7003_v6 = vadd.f32 %v15791_v42, %v6265_v62  ;;  %v6263_v31 = vld [vmem:[#allocation3 + $0x2e8] sm:$0xff]  ;;  %v7104_v42 = vld [vmem:[#allocation3 + $0x20] sm:$0xff] }
 0x426   : > { %7096 = vst.msk [vmem:[#allocation3 + $0x2e0] sm:$0xff] %vm3468_vm2, %v7000_v3  ;;  %7935 = vst.msk [vmem:[#allocation3 + $0x8] sm:$0xff] %vm3468_vm2, %v7839_v63  ;;  %v7001_v56 = vadd.f32 %v15797_v45, %v6263_v31  ;;  %v7114_v43 = vld [vmem:[#allocation3 + $0x70] sm:$0xff]  ;;  %v7112_v63 = vld [vmem:[#allocation3 + $0x60] sm:$0xff] }
 0x427   : > { %7099 = vst.msk [vmem:[#allocation3 + $0x2f8] sm:$0xff] %vm3468_vm2, %v7003_v6 }
 0x428   : > { %7097 = vst.msk [vmem:[#allocation3 + $0x2e8] sm:$0xff] %vm3468_vm2, %v7001_v56  ;;  %v12216_v16 = vpop.f32.mrb[36].mxu1  ;;  %v7115_v56 = vld [vmem:[#allocation3 + $0x78] sm:$0xff] }
 0x429   : > { %v7844_v14 = vadd.f32 %v12216_v16, %v7106_v0  ;;  %v7471_v34 = vpop.f32.mrb[37].mxu1 }
 0x42a   : > { %v7842_v47 = vadd.f32 %v7471_v34, %v7104_v42  ;;  %v12217_v9 = vpop.f32.mrb[38].mxu1  ;;  %v8039_v5 = vld [vmem:[#allocation3 + $0x10] sm:$0xff] }
 0x42b   : > { %7940 = vst.msk [vmem:[#allocation3 + $0x30] sm:$0xff] %vm3468_vm2, %v7844_v14  ;;  %v7845_v45 = vadd.f32 %v12217_v9, %v7107_v53  ;;  %v7474_v55 = vpop.f32.mrb[39].mxu1  ;;  %v16043_v4 = vadd.f32 %v16039_v26, %v8039_v5  ;;  %v8037_v38 = vld [vmem:[#allocation3] sm:$0xff] }
 0x42c   : > { %7938 = vst.msk [vmem:[#allocation3 + $0x20] sm:$0xff] %vm3468_vm2, %v7842_v47  ;;  %v7843_v29 = vadd.f32 %v7474_v55, %v7105_v27  ;;  %v8040_v23 = vld [vmem:[#allocation3 + $0x18] sm:$0xff]  ;;  %v16063_v10 = vadd.f32 %v16039_v26, %v8037_v38  ;;  %v7113_v47 = vld [vmem:[#allocation3 + $0x68] sm:$0xff] }
 0x42d   : > { %7941 = vst.msk [vmem:[#allocation3 + $0x38] sm:$0xff] %vm3468_vm2, %v7845_v45  ;;  %v16051_v28 = vadd.f32 %v16039_v26, %v8040_v23  ;;  %v8051_v48 = vmin.f32 %v16043_v4, 0.0  ;;  %v8038_v41 = vld [vmem:[#allocation3 + $0x8] sm:$0xff]  ;;  %vm8047_vm4 = vcmp.gt.f32.partialorder %v16043_v4, 0.0 }
 0x42e   : > { %7939 = vst.msk [vmem:[#allocation3 + $0x28] sm:$0xff] %vm3468_vm2, %v7843_v29  ;;  %v16059_v37 = vadd.f32 %v16039_v26, %v8038_v41  ;;  %v8049_v7 = vmin.f32 %v16063_v10, 0.0  ;;  %vm8045_vm6 = vcmp.gt.f32.partialorder %v16063_v10, 0.0 }
 0x42f   : > { %v8052_v19 = vmin.f32 %v16051_v28, 0.0  ;;  %v8057_v36 = vmul.f32 1.442695, %v8051_v48  ;;  %vm8048_vm5 = vcmp.gt.f32.partialorder %v16051_v28, 0.0 }
 0x430   : > { %v12220_v35 = vpop.f32.mrb[40].mxu1  ;;  %v8050_v20 = vmin.f32 %v16059_v37, 0.0  ;;  %v8053_v50 = vmul.f32 1.442695, %v8049_v7  ;;  %vm8046_vm7 = vcmp.gt.f32.partialorder %v16059_v37, 0.0 }
 0x431   : > { %v7848_v61 = vadd.f32 %v12220_v35, %v7110_v49  ;;  %v7487_v15 = vpop.f32.mrb[41].mxu1  ;;  %12945 = vpow2.f32 %v8057_v36  ;;  %v8059_v17 = vmul.f32 1.442695, %v8052_v19 }
 0x432   : > { %v7846_v1 = vadd.f32 %v7487_v15, %v7108_v39  ;;  %v12221_v18 = vpop.f32.mrb[42].mxu1  ;;  %v8075_v40 = vld [vmem:[#allocation3 + $0x30] sm:$0xff]  ;;  %v8055_v24 = vmul.f32 1.442695, %v8050_v20 }
 0x433   : > { %7944 = vst.msk [vmem:[#allocation3 + $0x50] sm:$0xff] %vm3468_vm2, %v7848_v61  ;;  %v7849_v21 = vadd.f32 %v12221_v18, %v7111_v12  ;;  %v7490_v57 = vpop.f32.mrb[43].mxu1  ;;  %v16068_v25 = vadd.f32 %v16039_v26, %v8075_v40  ;;  %v8073_v8 = vld [vmem:[#allocation3 + $0x20] sm:$0xff]  ;;  %12947 = vpow2.f32 %v8059_v17  ;;  %v7118_v61 = vld [vmem:[#allocation3 + $0x90] sm:$0xff] }
 0x434   : > { %7942 = vst.msk [vmem:[#allocation3 + $0x40] sm:$0xff] %vm3468_vm2, %v7846_v1  ;;  %v7847_v30 = vadd.f32 %v7490_v57, %v7109_v54  ;;  %v8076_v13 = vld [vmem:[#allocation3 + $0x38] sm:$0xff]  ;;  %v16073_v59 = vadd.f32 %v16039_v26, %v8073_v8  ;;  %12949 = vpow2.f32 %v8055_v24  ;;  %v7116_v40 = vld [vmem:[#allocation3 + $0x80] sm:$0xff] }
 0x435   : > { %7945 = vst.msk [vmem:[#allocation3 + $0x58] sm:$0xff] %vm3468_vm2, %v7849_v21  ;;  %v16077_v33 = vadd.f32 %v16039_v26, %v8076_v13  ;;  %v8087_v2 = vmin.f32 %v16068_v25, 0.0  ;;  %v8074_v52 = vld [vmem:[#allocation3 + $0x28] sm:$0xff]  ;;  %12951 = vpow2.f32 %v8053_v50  ;;  %v7119_v8 = vld [vmem:[#allocation3 + $0x98] sm:$0xff]  ;;  %vm8083_vm9 = vcmp.gt.f32.partialorder %v16068_v25, 0.0 }
 0x436   : > { %7943 = vst.msk [vmem:[#allocation3 + $0x48] sm:$0xff] %vm3468_vm2, %v7847_v30  ;;  %v16082_v44 = vadd.f32 %v16039_v26, %v8074_v52  ;;  %v8085_v11 = vmin.f32 %v16073_v59, 0.0  ;;  %v7117_v52 = vld [vmem:[#allocation3 + $0x88] sm:$0xff]  ;;  %vm8081_vm3 = vcmp.gt.f32.partialorder %v16073_v59, 0.0 }
 0x437   : > { %v8088_v60 = vmin.f32 %v16077_v33, 0.0  ;;  %v8093_v58 = vmul.f32 1.442695, %v8087_v2  ;;  %vm8084_vm13 = vcmp.gt.f32.partialorder %v16077_v33, 0.0 }
 0x438   : > { %v12224_v51 = vpop.f32.mrb[44].mxu1  ;;  %v8086_v32 = vmin.f32 %v16082_v44, 0.0  ;;  %v8089_v6 = vmul.f32 1.442695, %v8085_v11  ;;  %vm8082_vm14 = vcmp.gt.f32.partialorder %v16082_v44, 0.0 }
 0x439   : > { %v7852_v3 = vadd.f32 %v12224_v51, %v7114_v43  ;;  %v7503_v62 = vpop.f32.mrb[45].mxu1  ;;  %v8095_v16 = vmul.f32 1.442695, %v8088_v60  ;;  %12953 = vpow2.f32 %v8093_v58 }
 0x43a   : > { %v7850_v31 = vadd.f32 %v7503_v62, %v7112_v63  ;;  %v12225_v0 = vpop.f32.mrb[46].mxu1  ;;  %v8120_v14 = vld [vmem:[#allocation3 + $0x50] sm:$0xff]  ;;  %v8091_v9 = vmul.f32 1.442695, %v8086_v32  ;;  %12955 = vpow2.f32 %v8089_v6  ;;  %v12455_v63 = vld [vmem:[%s17206_s5 + $0x78] sm:$0xff]  }
 0x43b   : > { %v12946_v42 = vpop.eup %12945  ;;  %7948 = vst.msk [vmem:[#allocation3 + $0x70] sm:$0xff] %vm3468_vm2, %v7852_v3  ;;  %v7853_v34 = vadd.f32 %v12225_v0, %v7115_v56  ;;  %v7506_v53 = vpop.f32.mrb[47].mxu1  ;;  %v16089_v5 = vadd.f32 %v16039_v26, %v8120_v14  ;;  %v8118_v45 = vld [vmem:[#allocation3 + $0x40] sm:$0xff]  ;;  %12957 = vpow2.f32 %v8095_v16  ;;  %v12456_v56 = vld [vmem:[%s17206_s5 + $0x38] sm:$0xff]   ;;  %v7122_v16 = vld [vmem:[#allocation3 + $0xb0] sm:$0xff]  ;;  %11426 = vmatprep.subr.bf16.mxu0 %v12455_v63 }
 0x43c   : > { %7946 = vst.msk [vmem:[#allocation3 + $0x60] sm:$0xff] %vm3468_vm2, %v7850_v31  ;;  %v7851_v27 = vadd.f32 %v7506_v53, %v7113_v47  ;;  %v8121_v55 = vld [vmem:[#allocation3 + $0x58] sm:$0xff]  ;;  %v16093_v29 = vadd.f32 %v16039_v26, %v8118_v45  ;;  %v10857_v23 = vadd.f32 -1.0, %v12946_v42  ;;  %12959 = vpow2.f32 %v8091_v9  ;;  %11427 = vmatpush3.bf16.msra.mxu0 %v12456_v56  ;;  %v7124_v56 = vld [vmem:[#allocation3 + $0xc0] sm:$0xff] }
 0x43d   : > { %v12948_v38 = vpop.eup %12947  ;;  %7949 = vst.msk [vmem:[#allocation3 + $0x78] sm:$0xff] %vm3468_vm2, %v7853_v34  ;;  %v16097_v22 = vadd.f32 %v16039_v26, %v8121_v55  ;;  %v8132_v48 = vmin.f32 %v16089_v5, 0.0  ;;  %v8119_v41 = vld [vmem:[#allocation3 + $0x48] sm:$0xff]  ;;  %vm8128_vm8 = vcmp.gt.f32.partialorder %v16089_v5, 0.0 }
 0x43e   : > { %7947 = vst.msk [vmem:[#allocation3 + $0x68] sm:$0xff] %vm3468_vm2, %v7851_v27  ;;  %v16103_v46 = vadd.f32 %v16039_v26, %v8119_v41  ;;  %v8130_v19 = vmin.f32 %v16093_v29, 0.0  ;;  %v10858_v36 = vadd.f32 -1.0, %v12948_v38  ;;  %v8067_v1 = vsel %vm8047_vm4, %v16043_v4, %v10857_v23  ;;  %v12950_v24 = vpop.eup %12949  ;;  %v7120_v38 = vld [vmem:[#allocation3 + $0xa0] sm:$0xff] }
 0x43f   : > { %v8133_v49 = vmin.f32 %v16097_v22, 0.0  ;;  %v8138_v35 = vmul.f32 1.442695, %v8132_v48  ;;  %v12952_v51 = vpop.eup %12951  ;;  %v10856_v34 = vadd.f32 -1.0, %v12950_v24  ;;  %vm8126_vm10 = vcmp.gt.f32.partialorder %v16093_v29, 0.0 }
 0x440   : > { %v12228_v39 = vpop.f32.mrb[48].mxu1  ;;  %v8131_v15 = vmin.f32 %v16103_v46, 0.0  ;;  %v8134_v17 = vmul.f32 1.442695, %v8130_v19  ;;  %v8068_v12 = vsel %vm8048_vm5, %v16051_v28, %v10858_v36  ;;  %v10855_v27 = vadd.f32 -1.0, %v12952_v51  ;;  %v7123_v36 = vld [vmem:[#allocation3 + $0xb8] sm:$0xff] }
 0x441   : > { %v7856_v18 = vadd.f32 %v12228_v39, %v7118_v61  ;;  %v7519_v20 = vpop.f32.mrb[49].mxu1  ;;  %12961 = vpow2.f32 %v8138_v35  ;;  %v8140_v21 = vmul.f32 1.442695, %v8133_v49  ;;  %v8070_v54 = vpack.c.bf16 %v8068_v12, %v8067_v1 }
 0x442   : > { %v7854_v57 = vadd.f32 %v7519_v20, %v7116_v40  ;;  %v12229_v7 = vpop.f32.mrb[50].mxu1  ;;  %v8156_v30 = vld [vmem:[#allocation3 + $0x70] sm:$0xff]  ;;  %12963 = vpow2.f32 %v8134_v17  ;;  %v8136_v13 = vmul.f32 1.442695, %v8131_v15  ;;  %vm8129_vm11 = vcmp.gt.f32.partialorder %v16097_v22, 0.0  ;;  %v7121_v15 = vld [vmem:[#allocation3 + $0xa8] sm:$0xff] }
 0x443   : > { %7952 = vst.msk [vmem:[#allocation3 + $0x90] sm:$0xff] %vm3468_vm2, %v7856_v18  ;;  %v7857_v2 = vadd.f32 %v12229_v7, %v7119_v8  ;;  %v7522_v11 = vpop.f32.mrb[51].mxu1  ;;  %v16113_v4 = vadd.f32 %v16039_v26, %v8156_v30  ;;  %v8154_v28 = vld [vmem:[#allocation3 + $0x60] sm:$0xff]  ;;  %12965 = vpow2.f32 %v8140_v21  ;;  %8072 = vst.msk [vmem:[#allocation4 + $0x60] sm:$0xff] %vm3468_vm2, %v8070_v54  ;;  %v12954_v62 = vpop.eup %12953  ;;  %vm8127_vm12 = vcmp.gt.f32.partialorder %v16103_v46, 0.0 }
 0x444   : > { %7950 = vst.msk [vmem:[#allocation3 + $0x80] sm:$0xff] %vm3468_vm2, %v7854_v57  ;;  %v7855_v60 = vadd.f32 %v7522_v11, %v7117_v52  ;;  %v8157_v50 = vld [vmem:[#allocation3 + $0x78] sm:$0xff]  ;;  %v16118_v43 = vadd.f32 %v16039_v26, %v8154_v28  ;;  %12967 = vpow2.f32 %v8136_v13  ;;  %v12956_v0 = vpop.eup %12955  ;;  %v8066_v1 = vsel %vm8046_vm7, %v16059_v37, %v10856_v34 }
 0x445   : > { %7953 = vst.msk [vmem:[#allocation3 + $0x98] sm:$0xff] %vm3468_vm2, %v7857_v2  ;;  %v16122_v58 = vadd.f32 %v16039_v26, %v8157_v50  ;;  %v8168_v32 = vmin.f32 %v16113_v4, 0.0  ;;  %v8155_v3 = vld [vmem:[#allocation3 + $0x68] sm:$0xff]  ;;  %v12958_v47 = vpop.eup %12957  ;;  %v8065_v21 = vsel %vm8045_vm6, %v16063_v10, %v10855_v27  ;;  %v10861_v57 = vadd.f32 -1.0, %v12954_v62  ;;  %v7126_v50 = vld [vmem:[#allocation3 + $0xd0] sm:$0xff]  ;;  %v7127_v34 = vld [vmem:[#allocation3 + $0xd8] sm:$0xff] }
 0x446   : > { %7951 = vst.msk [vmem:[#allocation3 + $0x88] sm:$0xff] %vm3468_vm2, %v7855_v60  ;;  %v16130_v6 = vadd.f32 %v16039_v26, %v8155_v3  ;;  %v8166_v31 = vmin.f32 %v16118_v43, 0.0  ;;  %v12960_v55 = vpop.eup %12959  ;;  %v8069_v8 = vpack.c.bf16 %v8066_v1, %v8065_v21  ;;  %vm8164_vm15 = vcmp.gt.f32.partialorder %v16113_v4, 0.0 }
 0x447   : > { %v8169_v14 = vmin.f32 %v16122_v58, 0.0  ;;  %v8174_v42 = vmul.f32 1.442695, %v8168_v32  ;;  %v10862_v2 = vadd.f32 -1.0, %v12958_v47  ;;  %v16161_v52 = vadd.f32 -1.0, %v12956_v0 }
 0x448   : > { %v12232_v53 = vpop.f32.mrb[52].mxu1  ;;  %v8167_v9 = vmin.f32 %v16130_v6, 0.0  ;;  %v8170_v45 = vmul.f32 1.442695, %v8166_v31  ;;  %vm8165_vm1 = vcmp.gt.f32.partialorder %v16122_v58, 0.0  ;;  %vm8162_vm0 = vcmp.gt.f32.partialorder %v16118_v43, 0.0 }
 0x449   : > { %v7860_v23 = vadd.f32 %v12232_v53, %v7122_v16  ;;  %v7535_v48 = vpop.f32.mrb[53].mxu1  ;;  %12969 = vpow2.f32 %v8174_v42  ;;  %v8176_v41 = vmul.f32 1.442695, %v8169_v14  ;;  %v10860_v28 = vadd.f32 -1.0, %v12960_v55  ;;  %8071 = vst.msk [vmem:[#allocation4] sm:$0xff] %vm3468_vm2, %v8069_v8  ;;  %v7125_v55 = vld [vmem:[#allocation3 + $0xc8] sm:$0xff] }
 0x44a   : > { %v7858_v19 = vadd.f32 %v7535_v48, %v7120_v38  ;;  %v12233_v49 = vpop.f32.mrb[54].mxu1  ;;  %12971 = vpow2.f32 %v8170_v45  ;;  %v8172_v35 = vmul.f32 1.442695, %v8167_v9  ;;  %vm8163_vm4 = vcmp.gt.f32.partialorder %v16130_v6, 0.0  ;;  %v7130_v8 = vld [vmem:[#allocation3 + $0xf0] sm:$0xff] }
 0x44b   : > { %v12962_v61 = vpop.eup %12961  ;;  %7956 = vst.msk [vmem:[#allocation3 + $0xb0] sm:$0xff] %vm3468_vm2, %v7860_v23  ;;  %v7861_v39 = vadd.f32 %v12233_v49, %v7123_v36  ;;  %v7538_v17 = vpop.f32.mrb[55].mxu1  ;;  %12973 = vpow2.f32 %v8176_v41  ;;  %v8198_v12 = vld [vmem:[#allocation3 + $0x80] sm:$0xff] }
 0x44c   : > { %v12964_v18 = vpop.eup %12963  ;;  %7954 = vst.msk [vmem:[#allocation3 + $0xa0] sm:$0xff] %vm3468_vm2, %v7858_v19  ;;  %v7859_v40 = vadd.f32 %v7538_v17, %v7121_v15  ;;  %12975 = vpow2.f32 %v8172_v35  ;;  %v10865_v20 = vadd.f32 -1.0, %v12962_v61  ;;  %v16157_v30 = vadd.f32 %v16039_v26, %v8198_v12  ;;  %v8201_v35 = vld [vmem:[#allocation3 + $0x98] sm:$0xff] }
 0x44d   : > { %v12966_v54 = vpop.eup %12965  ;;  %7957 = vst.msk [vmem:[#allocation3 + $0xb8] sm:$0xff] %vm3468_vm2, %v7861_v39  ;;  %v10863_v37 = vadd.f32 -1.0, %v12964_v18  ;;  %v8199_v7 = vld [vmem:[#allocation3 + $0x88] sm:$0xff]  ;;  %v8104_v15 = vsel %vm8084_vm13, %v16077_v33, %v10862_v2  ;;  %v16207_v17 = vsel %vm8082_vm14, %v16082_v44, %v10860_v28 }
 0x44e   : > { %v12968_v13 = vpop.eup %12967  ;;  %7955 = vst.msk [vmem:[#allocation3 + $0xa8] sm:$0xff] %vm3468_vm2, %v7859_v40  ;;  %v10866_v11 = vadd.f32 -1.0, %v12966_v54  ;;  %v16164_v10 = vadd.f32 %v16039_v26, %v8199_v7  ;;  %v8210_v60 = vmin.f32 %v16157_v30, 0.0  ;;  %v8148_v32 = vsel %vm8128_vm8, %v16089_v5, %v10865_v20 }
 0x44f   : > { %v10864_v24 = vadd.f32 -1.0, %v12968_v13  ;;  %v8146_v63 = vsel %vm8126_vm10, %v16093_v29, %v10863_v37  ;;  %v16225_v37 = vadd.f32 %v16039_v26, %v8201_v35  ;;  %vm8206_vm5 = vcmp.gt.f32.partialorder %v16157_v30, 0.0 }
 0x450   : > { %v12236_v51 = vpop.f32.mrb[56].mxu1  ;;  %v8149_v3 = vsel %vm8129_vm11, %v16097_v22, %v10866_v11  ;;  %v8211_v62 = vmin.f32 %v16164_v10, 0.0  ;;  %v8214_v42 = vmul.f32 1.442695, %v8210_v60  ;;  %v16186_v22 = vsel %vm8083_vm9, %v16068_v25, %v10861_v57  ;;  %v8200_v25 = vld [vmem:[#allocation3 + $0x90] sm:$0xff] }
 0x451   : > { %v7864_v31 = vadd.f32 %v12236_v51, %v7126_v50  ;;  %v7551_v0 = vpop.f32.mrb[57].mxu1  ;;  %v8151_v16 = vpack.c.bf16 %v8149_v3, %v8148_v32  ;;  %v8147_v14 = vsel %vm8127_vm12, %v16103_v46, %v10864_v24  ;;  %v16218_v33 = vadd.f32 %v16039_v26, %v8200_v25  ;;  %v7128_v24 = vld [vmem:[#allocation3 + $0xe0] sm:$0xff] }
 0x452   : > { %v7862_v5 = vadd.f32 %v7551_v0, %v7124_v56  ;;  %v12237_v47 = vpop.f32.mrb[58].mxu1  ;;  %v8236_v29 = vld [vmem:[#allocation3 + $0xb0] sm:$0xff]  ;;  %v8150_v53 = vpack.c.bf16 %v8147_v14, %v8146_v63  ;;  %v8216_v9 = vmul.f32 1.442695, %v8211_v62  ;;  %12977 = vpow2.f32 %v8214_v42  ;;  %v7131_v63 = vld [vmem:[#allocation3 + $0xf8] sm:$0xff]  ;;  %v7129_v0 = vld [vmem:[#allocation3 + $0xe8] sm:$0xff] }
 0x453   : > { %v12970_v45 = vpop.eup %12969  ;;  %7960 = vst.msk [vmem:[#allocation3 + $0xd0] sm:$0xff] %vm3468_vm2, %v7864_v31  ;;  %v7865_v27 = vadd.f32 %v12237_v47, %v7127_v34  ;;  %v7554_v46 = vpop.f32.mrb[59].mxu1  ;;  %v8234_v23 = vld [vmem:[#allocation3 + $0xa0] sm:$0xff]  ;;  %v16192_v38 = vadd.f32 %v16039_v26, %v8236_v29  ;;  %8153 = vst.msk [vmem:[#allocation4 + $0x68] sm:$0xff] %vm3468_vm2, %v8151_v16  ;;  %v8212_v34 = vmin.f32 %v16218_v33, 0.0  ;;  %v8213_v47 = vmin.f32 %v16225_v37, 0.0 }
 0x454   : > { %v12972_v48 = vpop.eup %12971  ;;  %7958 = vst.msk [vmem:[#allocation3 + $0xc0] sm:$0xff] %vm3468_vm2, %v7862_v5  ;;  %v7863_v41 = vadd.f32 %v7554_v46, %v7125_v55  ;;  %v10869_v19 = vadd.f32 -1.0, %v12970_v45  ;;  %v16197_v36 = vadd.f32 %v16039_v26, %v8234_v23  ;;  %v8237_v49 = vld [vmem:[#allocation3 + $0xb8] sm:$0xff]  ;;  %8152 = vst.msk [vmem:[#allocation4 + $0x8] sm:$0xff] %vm3468_vm2, %v8150_v53  ;;  %12979 = vpow2.f32 %v8216_v9 }
 0x455   : > { %v12974_v61 = vpop.eup %12973  ;;  %7961 = vst.msk [vmem:[#allocation3 + $0xd8] sm:$0xff] %vm3468_vm2, %v7865_v27  ;;  %v10867_v39 = vadd.f32 -1.0, %v12972_v48  ;;  %v8235_v1 = vld [vmem:[#allocation3 + $0xa8] sm:$0xff]  ;;  %v16210_v12 = vadd.f32 %v16039_v26, %v8237_v49  ;;  %v8248_v21 = vmin.f32 %v16192_v38, 0.0  ;;  %v8106_v53 = vpack.c.bf16 %v8104_v15, %v16186_v22 }
 0x456   : > { %v12976_v18 = vpop.eup %12975  ;;  %7959 = vst.msk [vmem:[#allocation3 + $0xc8] sm:$0xff] %vm3468_vm2, %v7863_v41  ;;  %v10870_v40 = vadd.f32 -1.0, %v12974_v61  ;;  %v16214_v20 = vadd.f32 %v16039_v26, %v8235_v1  ;;  %v8184_v44 = vsel %vm8164_vm15, %v16113_v4, %v10869_v19  ;;  %v8246_v57 = vmin.f32 %v16197_v36, 0.0  ;;  %v7134_v19 = vld [vmem:[#allocation3 + $0x110] sm:$0xff] }
 0x457   : > { %v10868_v54 = vadd.f32 -1.0, %v12976_v18  ;;  %v8182_v2 = vsel %vm8162_vm0, %v16118_v43, %v10867_v39  ;;  %v8249_v4 = vmin.f32 %v16210_v12, 0.0  ;;  %v8254_v56 = vmul.f32 1.442695, %v8248_v21 }
 0x458   : > { %v12240_v7 = vpop.f32.mrb[60].mxu1  ;;  %v8185_v13 = vsel %vm8165_vm1, %v16122_v58, %v10870_v40  ;;  %v8247_v11 = vmin.f32 %v16214_v20, 0.0  ;;  %v8250_v32 = vmul.f32 1.442695, %v8246_v57  ;;  %v8218_v46 = vmul.f32 1.442695, %v8212_v34 }
 0x459   : > { %v7868_v28 = vadd.f32 %v12240_v7, %v7130_v8  ;;  %v7567_v60 = vpop.f32.mrb[61].mxu1  ;;  %v8187_v50 = vpack.c.bf16 %v8185_v13, %v8184_v44  ;;  %v8183_v51 = vsel %vm8163_vm4, %v16130_v6, %v10868_v54  ;;  %v8101_v6 = vsel %vm8081_vm3, %v16073_v59, %v16161_v52  ;;  %v12457_v52 = vld [vmem:[%s17206_s5 + $0xc0] sm:$0xff]   ;;  %v7135_v44 = vld [vmem:[#allocation3 + $0x118] sm:$0xff] }
 0x45a   : > { %v7866_v3 = vadd.f32 %v7567_v60, %v7128_v24  ;;  %v12241_v58 = vpop.f32.mrb[62].mxu1  ;;  %v8186_v62 = vpack.c.bf16 %v8183_v51, %v8182_v2  ;;  %v8252_v31 = vmul.f32 1.442695, %v8247_v11  ;;  %12981 = vpow2.f32 %v8250_v32  ;;  %11440 = vmatprep.subr.bf16.mxu0 %v12457_v52  ;;  %v8280_v41 = vld [vmem:[#allocation3 + $0xd0] sm:$0xff]  ;;  %v7133_v2 = vld [vmem:[#allocation3 + $0x108] sm:$0xff] }
 0x45b   : > { %7964 = vst.msk [vmem:[#allocation3 + $0xf0] sm:$0xff] %vm3468_vm2, %v7868_v28  ;;  %v7869_v43 = vadd.f32 %v12241_v58, %v7131_v63  ;;  %8192 = vrot.lane.b32.xlu1 %v8187_v50, %s13168_s9  ;;  %v7570_v16 = vpop.f32.mrb[63].mxu1  ;;  %v8256_v14 = vmul.f32 1.442695, %v8249_v4  ;;  %v8278_v42 = vld [vmem:[#allocation3 + $0xc0] sm:$0xff]  ;;  %v8105_v59 = vpack.c.bf16 %v16207_v17, %v8101_v6  ;;  %vm8207_vm6 = vcmp.gt.f32.partialorder %v16164_v10, 0.0 }
 0x45c   : > { %7962 = vst.msk [vmem:[#allocation3 + $0xe0] sm:$0xff] %vm3468_vm2, %v7866_v3  ;;  %v7867_v5 = vadd.f32 %v7570_v16, %v7129_v0  ;;  %8190 = vrot.lane.b32.xlu0 %v8186_v62, %s13168_s9  ;;  %12983 = vpow2.f32 %v8252_v31  ;;  %v12978_v29 = vpop.eup %12977  ;;  %v16255_v45 = vadd.f32 %v16039_v26, %v8278_v42  ;;  %v8220_v25 = vmul.f32 1.442695, %v8213_v47  ;;  %v8281_v39 = vld [vmem:[#allocation3 + $0xd8] sm:$0xff]  ;;  %v7132_v17 = vld [vmem:[#allocation3 + $0x100] sm:$0xff] }
 0x45d   : > { %7965 = vst.msk [vmem:[#allocation3 + $0xf8] sm:$0xff] %vm3468_vm2, %v7869_v43  ;;  %12985 = vpow2.f32 %v8254_v56  ;;  %v8279_v9 = vld [vmem:[#allocation3 + $0xc8] sm:$0xff]  ;;  %v10871_v55 = vadd.f32 -1.0, %v12978_v29  ;;  %v16270_v13 = vadd.f32 %v16039_v26, %v8280_v41  ;;  %vm8244_vm7 = vcmp.gt.f32.partialorder %v16192_v38, 0.0  ;;  %v7139_v41 = vld [vmem:[#allocation3 + $0x138] sm:$0xff] }
 0x45e   : > { %v12980_v27 = vpop.eup %12979  ;;  %7963 = vst.msk [vmem:[#allocation3 + $0xe8] sm:$0xff] %vm3468_vm2, %v7867_v5  ;;  %12987 = vpow2.f32 %v8256_v14  ;;  %v16259_v23 = vadd.f32 %v16039_v26, %v8279_v9  ;;  %v8290_v48 = vmin.f32 %v16255_v45, 0.0  ;;  %vm8242_vm8 = vcmp.gt.f32.partialorder %v16197_v36, 0.0  ;;  %v7138_v5 = vld [vmem:[#allocation3 + $0x130] sm:$0xff]  ;;  %v7136_v9 = vld [vmem:[#allocation3 + $0x120] sm:$0xff] }
 0x45f   : > { %8111 = vrot.lane.b32.xlu1 %v8106_v53, %s13168_s9  ;;  %v10872_v22 = vadd.f32 -1.0, %v12980_v27  ;;  %v8226_v35 = vsel %vm8206_vm5, %v16157_v30, %v10871_v55  ;;  %12989 = vpow2.f32 %v8218_v46  ;;  %vm8245_vm9 = vcmp.gt.f32.partialorder %v16210_v12, 0.0 }
 0x460   : > { %8109 = vrot.lane.b32.xlu0 %v8105_v59, %s13168_s9  ;;  %v12244_v49 = vpop.f32.mrb[64].mxu1  ;;  %v8291_v61 = vmin.f32 %v16259_v23, 0.0  ;;  %12991 = vpow2.f32 %v8220_v25  ;;  %v8294_v40 = vmul.f32 1.442695, %v8290_v48  ;;  %vm8243_vm10 = vcmp.gt.f32.partialorder %v16214_v20, 0.0 }
 0x461   : > { %v7872_v15 = vadd.f32 %v12244_v49, %v7134_v19  ;;  %v7583_v1 = vpop.f32.mrb[65].mxu1  ;;  %v8227_v18 = vsel %vm8207_vm6, %v16164_v10, %v10872_v22  ;;  %v16277_v10 = vadd.f32 %v16039_v26, %v8281_v39  ;;  %vm8208_vm11 = vcmp.gt.f32.partialorder %v16218_v33, 0.0  ;;  %v7137_v39 = vld [vmem:[#allocation3 + $0x128] sm:$0xff] }
 0x462   : > { %v7870_v21 = vadd.f32 %v7583_v1, %v7132_v17  ;;  %v12245_v54 = vpop.f32.mrb[66].mxu1  ;;  %v8316_v57 = vld [vmem:[#allocation3 + $0xf0] sm:$0xff]  ;;  %v8230_v8 = vpack.c.bf16 %v8227_v18, %v8226_v35  ;;  %v8296_v7 = vmul.f32 1.442695, %v8291_v61  ;;  %12993 = vpow2.f32 %v8294_v40 }
 0x463   : > { %7968 = vst.msk [vmem:[#allocation3 + $0x110] sm:$0xff] %vm3468_vm2, %v7872_v15  ;;  %v7873_v30 = vadd.f32 %v12245_v54, %v7135_v44  ;;  %v7586_v11 = vpop.f32.mrb[67].mxu1  ;;  %v8314_v4 = vld [vmem:[#allocation3 + $0xe0] sm:$0xff]  ;;  %v16274_v28 = vadd.f32 %v16039_v26, %v8316_v57  ;;  %v8292_v6 = vmin.f32 %v16270_v13, 0.0  ;;  %v8293_v14 = vmin.f32 %v16277_v10, 0.0 }
 0x464   : > { %7966 = vst.msk [vmem:[#allocation3 + $0x100] sm:$0xff] %vm3468_vm2, %v7870_v21  ;;  %v7871_v24 = vadd.f32 %v7586_v11, %v7133_v2  ;;  %v16282_v60 = vadd.f32 %v16039_v26, %v8314_v4  ;;  %v8317_v50 = vld [vmem:[#allocation3 + $0xf8] sm:$0xff]  ;;  %8232 = vst.msk [vmem:[#allocation4 + $0x10] sm:$0xff] %vm3468_vm2, %v8230_v8  ;;  %12995 = vpow2.f32 %v8296_v7  ;;  %v12982_v51 = vpop.eup %12981  ;;  %vm8209_vm12 = vcmp.gt.f32.partialorder %v16225_v37, 0.0 }
 0x465   : > { %7969 = vst.msk [vmem:[#allocation3 + $0x118] sm:$0xff] %vm3468_vm2, %v7873_v30  ;;  %v8315_v32 = vld [vmem:[#allocation3 + $0xe8] sm:$0xff]  ;;  %v16289_v3 = vadd.f32 %v16039_v26, %v8317_v50  ;;  %v8328_v63 = vmin.f32 %v16274_v28, 0.0  ;;  %v10875_v62 = vadd.f32 -1.0, %v12982_v51  ;;  %v8300_v57 = vmul.f32 1.442695, %v8293_v14 }
 0x466   : > { %v12984_v58 = vpop.eup %12983  ;;  %7967 = vst.msk [vmem:[#allocation3 + $0x108] sm:$0xff] %vm3468_vm2, %v7871_v24  ;;  %v16295_v31 = vadd.f32 %v16039_v26, %v8315_v32  ;;  %v8326_v56 = vmin.f32 %v16282_v60, 0.0  ;;  %v7142_v50 = vld [vmem:[#allocation3 + $0x150] sm:$0xff]  ;;  %vm8286_vm13 = vcmp.gt.f32.partialorder %v16255_v45, 0.0  ;;  %vm8287_vm14 = vcmp.gt.f32.partialorder %v16259_v23, 0.0 }
 0x467   : > { %v12986_v43 = vpop.eup %12985  ;;  %v10876_v0 = vadd.f32 -1.0, %v12984_v58  ;;  %v8329_v16 = vmin.f32 %v16289_v3, 0.0  ;;  %v8262_v47 = vsel %vm8242_vm8, %v16197_v36, %v10875_v62  ;;  %v8334_v59 = vmul.f32 1.442695, %v8328_v63  ;;  %v7140_v58 = vld [vmem:[#allocation3 + $0x140] sm:$0xff] }
 0x468   : > { %v12988_v42 = vpop.eup %12987  ;;  %v12248_v34 = vpop.f32.mrb[68].mxu1  ;;  %v10877_v29 = vadd.f32 -1.0, %v12986_v43  ;;  %v8327_v53 = vmin.f32 %v16295_v31, 0.0  ;;  %v8330_v22 = vmul.f32 1.442695, %v8326_v56  ;;  %vm8322_vm15 = vcmp.gt.f32.partialorder %v16282_v60, 0.0 }
 0x469   : > { %v7876_v52 = vadd.f32 %v12248_v34, %v7138_v5  ;;  %v7599_v27 = vpop.f32.mrb[69].mxu1  ;;  %v8263_v55 = vsel %vm8243_vm10, %v16214_v20, %v10876_v0  ;;  %v10878_v46 = vadd.f32 -1.0, %v12988_v42  ;;  %v12990_v25 = vpop.eup %12989  ;;  %v8336_v17 = vmul.f32 1.442695, %v8329_v16  ;;  %v7143_v0 = vld [vmem:[#allocation3 + $0x158] sm:$0xff]  ;;  %v7141_v34 = vld [vmem:[#allocation3 + $0x148] sm:$0xff] }
 0x46a   : > { %v7874_v48 = vadd.f32 %v7599_v27, %v7136_v9  ;;  %v12249_v19 = vpop.f32.mrb[70].mxu1  ;;  %v8266_v49 = vpack.c.bf16 %v8263_v55, %v8262_v47  ;;  %v8332_v35 = vmul.f32 1.442695, %v8327_v53  ;;  %v12992_v36 = vpop.eup %12991  ;;  %12997 = vpow2.f32 %v8330_v22  ;;  %v8360_v9 = vld [vmem:[#allocation3 + $0x110] sm:$0xff] }
 0x46b   : > { %7972 = vst.msk [vmem:[#allocation3 + $0x130] sm:$0xff] %vm3468_vm2, %v7876_v52  ;;  %v7877_v61 = vadd.f32 %v12249_v19, %v7139_v41  ;;  %v7602_v15 = vpop.f32.mrb[71].mxu1  ;;  %v8265_v20 = vsel %vm8245_vm9, %v16210_v12, %v10878_v46  ;;  %v8358_v1 = vld [vmem:[#allocation3 + $0x100] sm:$0xff]  ;;  %v8264_v40 = vsel %vm8244_vm7, %v16192_v38, %v10877_v29  ;;  %v10873_v21 = vadd.f32 -1.0, %v12990_v25 }
 0x46c   : > { %7970 = vst.msk [vmem:[#allocation3 + $0x120] sm:$0xff] %vm3468_vm2, %v7874_v48  ;;  %v7875_v18 = vadd.f32 %v7602_v15, %v7137_v39  ;;  %8270 = vrot.lane.b32.xlu1 %v8266_v49, %s13168_s9  ;;  %12999 = vpow2.f32 %v8332_v35  ;;  %v12994_v44 = vpop.eup %12993  ;;  %v10874_v54 = vadd.f32 -1.0, %v12992_v36  ;;  %v8298_v12 = vmul.f32 1.442695, %v8292_v6  ;;  %v8361_v27 = vld [vmem:[#allocation3 + $0x118] sm:$0xff] }
 0x46d   : > { %7973 = vst.msk [vmem:[#allocation3 + $0x138] sm:$0xff] %vm3468_vm2, %v7877_v61  ;;  %13001 = vpow2.f32 %v8334_v59  ;;  %v8267_v7 = vpack.c.bf16 %v8265_v20, %v8264_v40  ;;  %v10879_v30 = vadd.f32 -1.0, %v12994_v44  ;;  %v16322_v2 = vadd.f32 %v16039_v26, %v8358_v1  ;;  %v8359_v24 = vld [vmem:[#allocation3 + $0x108] sm:$0xff]  ;;  %v7146_v1 = vld [vmem:[#allocation3 + $0x170] sm:$0xff] }
 0x46e   : > { %v12996_v8 = vpop.eup %12995  ;;  %7971 = vst.msk [vmem:[#allocation3 + $0x128] sm:$0xff] %vm3468_vm2, %v7875_v18  ;;  %13003 = vpow2.f32 %v8336_v17  ;;  %v8228_v38 = vsel %vm8208_vm11, %v16218_v33, %v10873_v21  ;;  %v8229_v11 = vsel %vm8209_vm12, %v16225_v37, %v10874_v54  ;;  %v16338_v42 = vadd.f32 %v16039_v26, %v8359_v24  ;;  %v7147_v24 = vld [vmem:[#allocation3 + $0x178] sm:$0xff] }
 0x46f   : > { %v10880_v4 = vadd.f32 -1.0, %v12996_v8  ;;  %13005 = vpow2.f32 %v8298_v12  ;;  %v8231_v32 = vpack.c.bf16 %v8229_v11, %v8228_v38  ;;  %v8306_v62 = vsel %vm8286_vm13, %v16255_v45, %v10879_v30  ;;  %v7144_v8 = vld [vmem:[#allocation3 + $0x160] sm:$0xff] }
 0x470   : > { %8272 = vrot.lane.b32.xlu1 %v8267_v7, %s13168_s9  ;;  %v12252_v51 = vpop.f32.mrb[72].mxu1  ;;  %13007 = vpow2.f32 %v8300_v57  ;;  %v8370_v56 = vmin.f32 %v16322_v2, 0.0  ;;  %vm8325_vm1 = vcmp.gt.f32.partialorder %v16289_v3, 0.0  ;;  %vm8323_vm0 = vcmp.gt.f32.partialorder %v16295_v31, 0.0 }
 0x471   : > { %v7880_v63 = vadd.f32 %v12252_v51, %v7142_v50  ;;  %v7615_v33 = vpop.f32.mrb[73].mxu1  ;;  %v8307_v37 = vsel %vm8287_vm14, %v16259_v23, %v10880_v4  ;;  %8233 = vst.msk [vmem:[#allocation4 + $0x70] sm:$0xff] %vm3468_vm2, %v8231_v32  ;;  %vm8288_vm3 = vcmp.gt.f32.partialorder %v16270_v13, 0.0  ;;  %vm8289_vm4 = vcmp.gt.f32.partialorder %v16277_v10, 0.0 }
 0x472   : > { %v7878_v43 = vadd.f32 %v7615_v33, %v7140_v58  ;;  %v12253_v16 = vpop.f32.mrb[74].mxu1  ;;  %v8396_v6 = vld [vmem:[#allocation3 + $0x130] sm:$0xff]  ;;  %v8310_v14 = vpack.c.bf16 %v8307_v37, %v8306_v62  ;;  %v8374_v29 = vmul.f32 1.442695, %v8370_v56  ;;  %v8371_v35 = vmin.f32 %v16338_v42, 0.0  ;;  %v7145_v58 = vld [vmem:[#allocation3 + $0x168] sm:$0xff] }
 0x473   : > { %7976 = vst.msk [vmem:[#allocation3 + $0x150] sm:$0xff] %vm3468_vm2, %v7880_v63  ;;  %v7881_v5 = vadd.f32 %v12253_v16, %v7143_v0  ;;  %v7618_v47 = vpop.f32.mrb[75].mxu1  ;;  %v8394_v45 = vld [vmem:[#allocation3 + $0x120] sm:$0xff]  ;;  %v16342_v23 = vadd.f32 %v16039_v26, %v8396_v6  ;;  %v16367_v15 = vadd.f32 %v16039_v26, %v8360_v9  ;;  %v16370_v20 = vadd.f32 %v16039_v26, %v8361_v27 }
 0x474   : > { %7974 = vst.msk [vmem:[#allocation3 + $0x140] sm:$0xff] %vm3468_vm2, %v7878_v43  ;;  %v7879_v53 = vadd.f32 %v7618_v47, %v7141_v34  ;;  %v16348_v59 = vadd.f32 %v16039_v26, %v8394_v45  ;;  %v8397_v52 = vld [vmem:[#allocation3 + $0x138] sm:$0xff]  ;;  %8312 = vst.msk [vmem:[#allocation4 + $0x18] sm:$0xff] %vm3468_vm2, %v8310_v14  ;;  %v12998_v55 = vpop.eup %12997  ;;  %13009 = vpow2.f32 %v8374_v29  ;;  %v8376_v32 = vmul.f32 1.442695, %v8371_v35 }
 0x475   : > { %7977 = vst.msk [vmem:[#allocation3 + $0x158] sm:$0xff] %vm3468_vm2, %v7881_v5  ;;  %v8395_v46 = vld [vmem:[#allocation3 + $0x128] sm:$0xff]  ;;  %v16354_v22 = vadd.f32 %v16039_v26, %v8397_v52  ;;  %v8408_v25 = vmin.f32 %v16342_v23, 0.0  ;;  %v10883_v41 = vadd.f32 -1.0, %v12998_v55  ;;  %vm8324_vm5 = vcmp.gt.f32.partialorder %v16274_v28, 0.0  ;;  %v7150_v52 = vld [vmem:[#allocation3 + $0x190] sm:$0xff] }
 0x476   : > { %v13000_v48 = vpop.eup %12999  ;;  %7975 = vst.msk [vmem:[#allocation3 + $0x148] sm:$0xff] %vm3468_vm2, %v7879_v53  ;;  %v16359_v19 = vadd.f32 %v16039_v26, %v8395_v46  ;;  %v8406_v49 = vmin.f32 %v16348_v59, 0.0  ;;  %v8373_v14 = vmin.f32 %v16370_v20, 0.0  ;;  %v16394_v5 = vld [vmem:[%s17205_s4] ss:$0 sm:$0xff]  ;;  %v7151_v35 = vld [vmem:[#allocation3 + $0x198] sm:$0xff] }
 0x477   : > { %v13002_v36 = vpop.eup %13001  ;;  %v10884_v61 = vadd.f32 -1.0, %v13000_v48  ;;  %v8409_v39 = vmin.f32 %v16354_v22, 0.0  ;;  %v8342_v40 = vsel %vm8322_vm15, %v16282_v60, %v10883_v41  ;;  %v8414_v54 = vmul.f32 1.442695, %v8408_v25  ;;  %v7148_v25 = vld [vmem:[#allocation3 + $0x180] sm:$0xff] }
 0x478   : > { %v13004_v17 = vpop.eup %13003  ;;  %v12256_v18 = vpop.f32.mrb[76].mxu1  ;;  %v10885_v21 = vadd.f32 -1.0, %v13002_v36  ;;  %v8407_v44 = vmin.f32 %v16359_v19, 0.0  ;;  %v8410_v38 = vmul.f32 1.442695, %v8406_v49  ;;  %vm8366_vm6 = vcmp.gt.f32.partialorder %v16322_v2, 0.0 }
 0x479   : > { %v13006_v12 = vpop.eup %13005  ;;  %v7884_v57 = vadd.f32 %v12256_v18, %v7146_v1  ;;  %v7631_v7 = vpop.f32.mrb[77].mxu1  ;;  %v8343_v26 = vsel %vm8323_vm0, %v16295_v31, %v10884_v61  ;;  %v10886_v30 = vadd.f32 -1.0, %v13004_v17  ;;  %v8416_v31 = vmul.f32 1.442695, %v8409_v39  ;;  %v7149_v17 = vld [vmem:[#allocation3 + $0x188] sm:$0xff] }
 0x47a   : > { %v13008_v11 = vpop.eup %13007  ;;  %v7882_v4 = vadd.f32 %v7631_v7, %v7144_v8  ;;  %v12257_v50 = vpop.f32.mrb[78].mxu1  ;;  %v8346_v51 = vpack.c.bf16 %v8343_v26, %v8342_v40  ;;  %v8412_v60 = vmul.f32 1.442695, %v8407_v44  ;;  %13011 = vpow2.f32 %v8410_v38 }
 0x47b   : > { %7980 = vst.msk [vmem:[#allocation3 + $0x170] sm:$0xff] %vm3468_vm2, %v7884_v57  ;;  %v7885_v63 = vadd.f32 %v12257_v50, %v7147_v24  ;;  %v7634_v33 = vpop.f32.mrb[79].mxu1  ;;  %v8345_v62 = vsel %vm8325_vm1, %v16289_v3, %v10886_v30  ;;  %v8438_v37 = vld [vmem:[#allocation3 + $0x140] sm:$0xff]  ;;  %v10881_v43 = vadd.f32 -1.0, %v13006_v12  ;;  %v8344_v0 = vsel %vm8324_vm5, %v16274_v28, %v10885_v21  ;;  %v8440_v57 = vld [vmem:[#allocation3 + $0x150] sm:$0xff] }
 0x47c   : > { %7978 = vst.msk [vmem:[#allocation3 + $0x160] sm:$0xff] %vm3468_vm2, %v7882_v4  ;;  %v7883_v56 = vadd.f32 %v7634_v33, %v7145_v58  ;;  %8350 = vrot.lane.b32.xlu0 %v8346_v51, %s13168_s9  ;;  %13013 = vpow2.f32 %v8412_v60  ;;  %v10882_v16 = vadd.f32 -1.0, %v13008_v11  ;;  %v8372_v3 = vmin.f32 %v16367_v15, 0.0  ;;  %v7154_v33 = vld [vmem:[#allocation3 + $0x1b0] sm:$0xff] }
 0x47d   : > { %7981 = vst.msk [vmem:[#allocation3 + $0x178] sm:$0xff] %vm3468_vm2, %v7885_v63  ;;  %13015 = vpow2.f32 %v8414_v54  ;;  %v8347_v6 = vpack.c.bf16 %v8345_v62, %v8344_v0  ;;  %v16397_v34 = vadd.f32 %v16394_v5, %v8438_v37  ;;  %v8308_v28 = vsel %vm8288_vm3, %v16270_v13, %v10881_v43  ;;  %v8439_v53 = vld [vmem:[#allocation3 + $0x148] sm:$0xff] }
 0x47e   : > { %7979 = vst.msk [vmem:[#allocation3 + $0x168] sm:$0xff] %vm3468_vm2, %v7883_v56  ;;  %13017 = vpow2.f32 %v8416_v31  ;;  %v13010_v47 = vpop.eup %13009  ;;  %v8309_v45 = vsel %vm8289_vm4, %v16277_v10, %v10882_v16  ;;  %v8378_v29 = vmul.f32 1.442695, %v8372_v3  ;;  %v8380_v55 = vmul.f32 1.442695, %v8373_v14  ;;  %v7152_v3 = vld [vmem:[#allocation3 + $0x1a0] sm:$0xff] }
 0x47f   : > { %13019 = vpow2.f32 %v8376_v32  ;;  %v8311_v27 = vpack.c.bf16 %v8309_v45, %v8308_v28  ;;  %v10887_v41 = vadd.f32 -1.0, %v13010_v47  ;;  %v8450_v13 = vmin.f32 %v16397_v34, 0.0  ;;  %v8441_v45 = vld [vmem:[#allocation3 + $0x158] sm:$0xff] }
 0x480   : > { %8352 = vrot.lane.b32.xlu0 %v8347_v6, %s13168_s9  ;;  %v12260_v9 = vpop.f32.mrb[80].mxu1  ;;  %13021 = vpow2.f32 %v8378_v29  ;;  %v16409_v61 = vadd.f32 %v16394_v5, %v8439_v53  ;;  %vm8402_vm7 = vcmp.gt.f32.partialorder %v16348_v59, 0.0  ;;  %vm8404_vm8 = vcmp.gt.f32.partialorder %v16342_v23, 0.0  ;;  %v7155_v53 = vld [vmem:[#allocation3 + $0x1b8] sm:$0xff] }
 0x481   : > { %v7888_v46 = vadd.f32 %v12260_v9, %v7150_v52  ;;  %v7647_v48 = vpop.f32.mrb[81].mxu1  ;;  %8313 = vst.msk [vmem:[#allocation4 + $0x78] sm:$0xff] %vm3468_vm2, %v8311_v27  ;;  %13023 = vpow2.f32 %v8380_v55  ;;  %v8454_v21 = vmul.f32 1.442695, %v8450_v13  ;;  %vm8405_vm9 = vcmp.gt.f32.partialorder %v16354_v22, 0.0 }
 0x482   : > { %v7886_v49 = vadd.f32 %v7647_v48, %v7148_v25  ;;  %v12261_v36 = vpop.f32.mrb[82].mxu1  ;;  %v8476_v10 = vld [vmem:[#allocation3 + $0x170] sm:$0xff]  ;;  %vm8403_vm10 = vcmp.gt.f32.partialorder %v16359_v19, 0.0  ;;  %vm8367_vm11 = vcmp.gt.f32.partialorder %v16338_v42, 0.0  ;;  %v16433_v38 = vsel %vm8366_vm6, %v16322_v2, %v10887_v41  ;;  %v7153_v25 = vld [vmem:[#allocation3 + $0x1a8] sm:$0xff] }
 0x483   : > { %7984 = vst.msk [vmem:[#allocation3 + $0x190] sm:$0xff] %vm3468_vm2, %v7888_v46  ;;  %v7889_v39 = vadd.f32 %v12261_v36, %v7151_v35  ;;  %v7650_v1 = vpop.f32.mrb[83].mxu1  ;;  %v8474_v18 = vld [vmem:[#allocation3 + $0x160] sm:$0xff]  ;;  %v16413_v40 = vadd.f32 %v16394_v5, %v8476_v10  ;;  %vm8368_vm12 = vcmp.gt.f32.partialorder %v16367_v15, 0.0  ;;  %vm8369_vm13 = vcmp.gt.f32.partialorder %v16370_v20, 0.0 }
 0x484   : > { %7982 = vst.msk [vmem:[#allocation3 + $0x180] sm:$0xff] %vm3468_vm2, %v7886_v49  ;;  %v7887_v44 = vadd.f32 %v7650_v1, %v7149_v17  ;;  %v16421_v54 = vadd.f32 %v16394_v5, %v8474_v18  ;;  %v8477_v12 = vld [vmem:[#allocation3 + $0x178] sm:$0xff]  ;;  %v13012_v8 = vpop.eup %13011  ;;  %v8451_v51 = vmin.f32 %v16409_v61, 0.0  ;;  %13025 = vpow2.f32 %v8454_v21  ;;  %v7158_v21 = vld [vmem:[#allocation3 + $0x1d0] sm:$0xff] }
 0x485   : > { %7985 = vst.msk [vmem:[#allocation3 + $0x198] sm:$0xff] %vm3468_vm2, %v7889_v39  ;;  %v8475_v7 = vld [vmem:[#allocation3 + $0x168] sm:$0xff]  ;;  %v16426_v26 = vadd.f32 %v16394_v5, %v8477_v12  ;;  %v8488_v30 = vmin.f32 %v16413_v40, 0.0  ;;  %v10891_v4 = vadd.f32 -1.0, %v13012_v8  ;;  %v16445_v63 = vadd.f32 %v16394_v5, %v8440_v57 }
 0x486   : > { %v13014_v11 = vpop.eup %13013  ;;  %7983 = vst.msk [vmem:[#allocation3 + $0x188] sm:$0xff] %vm3468_vm2, %v7887_v44  ;;  %v16437_v24 = vadd.f32 %v16394_v5, %v8475_v7  ;;  %v8486_v50 = vmin.f32 %v16421_v54, 0.0  ;;  %v8456_v27 = vmul.f32 1.442695, %v8451_v51  ;;  %v16461_v36 = vadd.f32 %v16394_v5, %v8441_v45 }
 0x487   : > { %v13016_v60 = vpop.eup %13015  ;;  %v10892_v32 = vadd.f32 -1.0, %v13014_v11  ;;  %v8489_v2 = vmin.f32 %v16426_v26, 0.0  ;;  %v8422_v31 = vsel %vm8402_vm7, %v16348_v59, %v10891_v4  ;;  %v8494_v43 = vmul.f32 1.442695, %v8488_v30 }
 0x488   : > { %v13018_v58 = vpop.eup %13017  ;;  %v12264_v62 = vpop.f32.mrb[84].mxu1  ;;  %v10893_v37 = vadd.f32 -1.0, %v13016_v60  ;;  %v8487_v56 = vmin.f32 %v16437_v24, 0.0  ;;  %v8490_v28 = vmul.f32 1.442695, %v8486_v50  ;;  %v8452_v18 = vmin.f32 %v16445_v63, 0.0 }
 0x489   : > { %v13020_v0 = vpop.eup %13019  ;;  %v7892_v16 = vadd.f32 %v12264_v62, %v7154_v33  ;;  %v7663_v6 = vpop.f32.mrb[85].mxu1  ;;  %v8423_v14 = vsel %vm8403_vm10, %v16359_v19, %v10892_v32  ;;  %v10894_v47 = vadd.f32 -1.0, %v13018_v58  ;;  %v8496_v19 = vmul.f32 1.442695, %v8489_v2  ;;  %v7156_v50 = vld [vmem:[#allocation3 + $0x1c0] sm:$0xff]  ;;  %v7157_v33 = vld [vmem:[#allocation3 + $0x1c8] sm:$0xff] }
 0x48a   : > { %v7890_v29 = vadd.f32 %v7663_v6, %v7152_v3  ;;  %v12265_v52 = vpop.f32.mrb[86].mxu1  ;;  %v8426_v9 = vpack.c.bf16 %v8423_v14, %v8422_v31  ;;  %v8492_v59 = vmul.f32 1.442695, %v8487_v56  ;;  %v13022_v55 = vpop.eup %13021  ;;  %13027 = vpow2.f32 %v8490_v28 }
 0x48b   : > { %7988 = vst.msk [vmem:[#allocation3 + $0x1b0] sm:$0xff] %vm3468_vm2, %v7892_v16  ;;  %v7893_v46 = vadd.f32 %v12265_v52, %v7155_v53  ;;  %v7666_v48 = vpop.f32.mrb[87].mxu1  ;;  %v8425_v41 = vsel %vm8405_vm9, %v16354_v22, %v10894_v47  ;;  %v13024_v13 = vpop.eup %13023  ;;  %v10888_v35 = vadd.f32 -1.0, %v13020_v0  ;;  %v8424_v10 = vsel %vm8404_vm8, %v16342_v23, %v10893_v37  ;;  %v8518_v30 = vld [vmem:[#allocation3 + $0x180] sm:$0xff]  ;;  %v8520_v0 = vld [vmem:[#allocation3 + $0x190] sm:$0xff] }
 0x48c   : > { %7986 = vst.msk [vmem:[#allocation3 + $0x1a0] sm:$0xff] %vm3468_vm2, %v7890_v29  ;;  %v7891_v49 = vadd.f32 %v7666_v48, %v7153_v25  ;;  %8430 = vrot.lane.b32.xlu1 %v8426_v9, %s13168_s9  ;;  %13029 = vpow2.f32 %v8492_v59  ;;  %v10889_v22 = vadd.f32 -1.0, %v13022_v55  ;;  %v10890_v39 = vadd.f32 -1.0, %v13024_v13  ;;  %v7162_v13 = vld [vmem:[#allocation3 + $0x1f0] sm:$0xff] }
 0x48d   : > { %7989 = vst.msk [vmem:[#allocation3 + $0x1b8] sm:$0xff] %vm3468_vm2, %v7893_v46  ;;  %13031 = vpow2.f32 %v8494_v43  ;;  %v8427_v17 = vpack.c.bf16 %v8425_v41, %v8424_v10  ;;  %v8387_v1 = vsel %vm8367_vm11, %v16338_v42, %v10888_v35  ;;  %v8453_v42 = vmin.f32 %v16461_v36, 0.0  ;;  %v8519_v11 = vld [vmem:[#allocation3 + $0x188] sm:$0xff] }
 0x48e   : > { %7987 = vst.msk [vmem:[#allocation3 + $0x1a8] sm:$0xff] %vm3468_vm2, %v7891_v49  ;;  %13033 = vpow2.f32 %v8496_v19  ;;  %v8390_v44 = vpack.c.bf16 %v8387_v1, %v16433_v38  ;;  %v8388_v23 = vsel %vm8368_vm12, %v16367_v15, %v10889_v22  ;;  %v8389_v12 = vsel %vm8369_vm13, %v16370_v20, %v10890_v39  ;;  %v13026_v4 = vpop.eup %13025  ;;  %v7159_v20 = vld [vmem:[#allocation3 + $0x1d8] sm:$0xff] }
 0x48f   : > { %13035 = vpow2.f32 %v8456_v27  ;;  %v8391_v8 = vpack.c.bf16 %v8389_v12, %v8388_v23  ;;  %v8458_v7 = vmul.f32 1.442695, %v8452_v18  ;;  %vm8446_vm14 = vcmp.gt.f32.partialorder %v16397_v34, 0.0  ;;  %v7160_v18 = vld [vmem:[#allocation3 + $0x1e0] sm:$0xff] }
 0x490   : > { %8432 = vrot.lane.b32.xlu1 %v8427_v17, %s13168_s9  ;;  %v12268_v57 = vpop.f32.mrb[88].mxu1  ;;  %8392 = vst.msk [vmem:[#allocation4 + $0x20] sm:$0xff] %vm3468_vm2, %v8390_v44  ;;  %vm8482_vm15 = vcmp.gt.f32.partialorder %v16421_v54, 0.0  ;;  %v8460_v2 = vmul.f32 1.442695, %v8453_v42  ;;  %vm8484_vm1 = vcmp.gt.f32.partialorder %v16413_v40, 0.0  ;;  %v16491_v56 = vadd.f32 %v16394_v5, %v8518_v30 }
 0x491   : > { %v7896_v38 = vadd.f32 %v12268_v57, %v7158_v21  ;;  %v7679_v51 = vpop.f32.mrb[89].mxu1  ;;  %8393 = vst.msk [vmem:[#allocation4 + $0x80] sm:$0xff] %vm3468_vm2, %v8391_v8  ;;  %13037 = vpow2.f32 %v8458_v7  ;;  %v16494_v43 = vadd.f32 %v16394_v5, %v8519_v11  ;;  %vm8485_vm0 = vcmp.gt.f32.partialorder %v16426_v26, 0.0  ;;  %v7163_v8 = vld [vmem:[#allocation3 + $0x1f8] sm:$0xff] }
 0x492   : > { %v7894_v15 = vadd.f32 %v7679_v51, %v7156_v50  ;;  %v12269_v60 = vpop.f32.mrb[90].mxu1  ;;  %v8556_v32 = vld [vmem:[#allocation3 + $0x1b0] sm:$0xff]  ;;  %13039 = vpow2.f32 %v8460_v2  ;;  %vm8483_vm3 = vcmp.gt.f32.partialorder %v16437_v24, 0.0  ;;  %vm8447_vm4 = vcmp.gt.f32.partialorder %v16409_v61, 0.0  ;;  %v8521_v51 = vld [vmem:[#allocation3 + $0x198] sm:$0xff] }
 0x493   : > { %7992 = vst.msk [vmem:[#allocation3 + $0x1d0] sm:$0xff] %vm3468_vm2, %v7896_v38  ;;  %v7897_v58 = vadd.f32 %v12269_v60, %v7159_v20  ;;  %v7682_v62 = vpop.f32.mrb[91].mxu1  ;;  %v8554_v31 = vld [vmem:[#allocation3 + $0x1a0] sm:$0xff]  ;;  %v16488_v37 = vadd.f32 %v16394_v5, %v8556_v32  ;;  %v10895_v29 = vadd.f32 -1.0, %v13026_v4  ;;  %v16514_v27 = vadd.f32 %v16394_v5, %v8520_v0  ;;  %v7161_v4 = vld [vmem:[#allocation3 + $0x1e8] sm:$0xff] }
 0x494   : > { %7990 = vst.msk [vmem:[#allocation3 + $0x1c0] sm:$0xff] %vm3468_vm2, %v7894_v15  ;;  %v7895_v16 = vadd.f32 %v7682_v62, %v7157_v33  ;;  %v16499_v3 = vadd.f32 %v16394_v5, %v8554_v31  ;;  %v8557_v6 = vld [vmem:[#allocation3 + $0x1b8] sm:$0xff]  ;;  %v13028_v14 = vpop.eup %13027  ;;  %v8530_v48 = vmin.f32 %v16491_v56, 0.0  ;;  %v8531_v41 = vmin.f32 %v16494_v43, 0.0 }
 0x495   : > { %7993 = vst.msk [vmem:[#allocation3 + $0x1d8] sm:$0xff] %vm3468_vm2, %v7897_v58  ;;  %v8555_v47 = vld [vmem:[#allocation3 + $0x1a8] sm:$0xff]  ;;  %v16504_v28 = vadd.f32 %v16394_v5, %v8557_v6  ;;  %v8568_v45 = vmin.f32 %v16488_v37, 0.0  ;;  %v10899_v52 = vadd.f32 -1.0, %v13028_v14  ;;  %v16544_v31 = vadd.f32 %v16394_v5, %v8521_v51 }
 0x496   : > { %v13030_v53 = vpop.eup %13029  ;;  %7991 = vst.msk [vmem:[#allocation3 + $0x1c8] sm:$0xff] %vm3468_vm2, %v7895_v16  ;;  %v16510_v9 = vadd.f32 %v16394_v5, %v8555_v47  ;;  %v8566_v59 = vmin.f32 %v16499_v3, 0.0  ;;  %v8536_v2 = vmul.f32 1.442695, %v8531_v41  ;;  %vm8448_vm5 = vcmp.gt.f32.partialorder %v16445_v63, 0.0  ;;  %v7166_v16 = vld [vmem:[#allocation3 + $0x210] sm:$0xff] }
 0x497   : > { %v13032_v55 = vpop.eup %13031  ;;  %v10900_v46 = vadd.f32 -1.0, %v13030_v53  ;;  %v8569_v25 = vmin.f32 %v16504_v28, 0.0  ;;  %v8502_v35 = vsel %vm8482_vm15, %v16421_v54, %v10899_v52  ;;  %v8574_v39 = vmul.f32 1.442695, %v8568_v45  ;;  %v7167_v52 = vld [vmem:[#allocation3 + $0x218] sm:$0xff] }
 0x498   : > { %v13034_v19 = vpop.eup %13033  ;;  %v12272_v49 = vpop.f32.mrb[92].mxu1  ;;  %v10901_v10 = vadd.f32 -1.0, %v13032_v55  ;;  %v8567_v22 = vmin.f32 %v16510_v9, 0.0  ;;  %v8570_v12 = vmul.f32 1.442695, %v8566_v59  ;;  %v8466_v54 = vsel %vm8446_vm14, %v16397_v34, %v10895_v29  ;;  %v7164_v29 = vld [vmem:[#allocation3 + $0x200] sm:$0xff] }
 0x499   : > { %v13036_v17 = vpop.eup %13035  ;;  %v7900_v1 = vadd.f32 %v12272_v49, %v7162_v13  ;;  %v7695_v21 = vpop.f32.mrb[93].mxu1  ;;  %v8503_v44 = vsel %vm8483_vm3, %v16437_v24, %v10900_v46  ;;  %v10902_v23 = vadd.f32 -1.0, %v13034_v19  ;;  %v8576_v50 = vmul.f32 1.442695, %v8569_v25 }
 0x49a   : > { %v7898_v57 = vadd.f32 %v7695_v21, %v7160_v18  ;;  %v12273_v42 = vpop.f32.mrb[94].mxu1  ;;  %v8506_v7 = vpack.c.bf16 %v8503_v44, %v8502_v35  ;;  %v8572_v30 = vmul.f32 1.442695, %v8567_v22  ;;  %13041 = vpow2.f32 %v8570_v12  ;;  %v7165_v35 = vld [vmem:[#allocation3 + $0x208] sm:$0xff] }
 0x49b   : > { %7996 = vst.msk [vmem:[#allocation3 + $0x1f0] sm:$0xff] %vm3468_vm2, %v7900_v1  ;;  %v7901_v11 = vadd.f32 %v12273_v42, %v7163_v8  ;;  %v7698_v38 = vpop.f32.mrb[95].mxu1  ;;  %v8505_v24 = vsel %vm8485_vm0, %v16426_v26, %v10902_v23  ;;  %v13038_v15 = vpop.eup %13037  ;;  %v8504_v34 = vsel %vm8484_vm1, %v16413_v40, %v10901_v10  ;;  %v10896_v60 = vadd.f32 -1.0, %v13036_v17 }
 0x49c   : > { %7994 = vst.msk [vmem:[#allocation3 + $0x1e0] sm:$0xff] %vm3468_vm2, %v7898_v57  ;;  %v7899_v20 = vadd.f32 %v7698_v38, %v7161_v4  ;;  %8510 = vrot.lane.b32.xlu0 %v8506_v7, %s13168_s9  ;;  %13043 = vpow2.f32 %v8572_v30  ;;  %v10897_v32 = vadd.f32 -1.0, %v13038_v15  ;;  %v8534_v26 = vmul.f32 1.442695, %v8530_v48  ;;  %v13040_v58 = vpop.eup %13039 }
 0x49d   : > { %7997 = vst.msk [vmem:[#allocation3 + $0x1f8] sm:$0xff] %vm3468_vm2, %v7901_v11  ;;  %13045 = vpow2.f32 %v8574_v39  ;;  %v8507_v33 = vpack.c.bf16 %v8505_v24, %v8504_v34  ;;  %v8467_v62 = vsel %vm8447_vm4, %v16409_v61, %v10896_v60  ;;  %v10898_v0 = vadd.f32 -1.0, %v13040_v58  ;;  %v8598_v61 = vld [vmem:[#allocation3 + $0x1c0] sm:$0xff]  ;;  %v8599_v18 = vld [vmem:[#allocation3 + $0x1c8] sm:$0xff] }
 0x49e   : > { %7995 = vst.msk [vmem:[#allocation3 + $0x1e8] sm:$0xff] %vm3468_vm2, %v7899_v20  ;;  %13047 = vpow2.f32 %v8576_v50  ;;  %v8470_v40 = vpack.c.bf16 %v8467_v62, %v8466_v54  ;;  %vm8449_vm6 = vcmp.gt.f32.partialorder %v16461_v36, 0.0  ;;  %v8532_v14 = vmin.f32 %v16514_v27, 0.0  ;;  %v7170_v50 = vld [vmem:[#allocation3 + $0x230] sm:$0xff] }
 0x49f   : > { %13049 = vpow2.f32 %v8534_v26  ;;  %v8533_v47 = vmin.f32 %v16544_v31, 0.0  ;;  %v8468_v59 = vsel %vm8448_vm5, %v16445_v63, %v10897_v32  ;;  %v8469_v55 = vsel %vm8449_vm6, %v16461_v36, %v10898_v0 }
 0x4a0   : > { %8512 = vrot.lane.b32.xlu0 %v8507_v33, %s13168_s9  ;;  %v12276_v6 = vpop.f32.mrb[96].mxu1  ;;  %13051 = vpow2.f32 %v8536_v2  ;;  %8472 = vst.msk [vmem:[#allocation4 + $0x28] sm:$0xff] %vm3468_vm2, %v8470_v40  ;;  %v8471_v41 = vpack.c.bf16 %v8469_v55, %v8468_v59  ;;  %v8538_v19 = vmul.f32 1.442695, %v8532_v14  ;;  %vm8564_vm7 = vcmp.gt.f32.partialorder %v16488_v37, 0.0  ;;  %v7168_v2 = vld [vmem:[#allocation3 + $0x220] sm:$0xff] }
 0x4a1   : > { %v7904_v45 = vadd.f32 %v12276_v6, %v7166_v16  ;;  %v7711_v53 = vpop.f32.mrb[97].mxu1  ;;  %v8540_v13 = vmul.f32 1.442695, %v8533_v47  ;;  %v16562_v63 = vadd.f32 %v16394_v5, %v8598_v61  ;;  %vm8562_vm8 = vcmp.gt.f32.partialorder %v16499_v3, 0.0  ;;  %v7171_v6 = vld [vmem:[#allocation3 + $0x238] sm:$0xff]  ;;  %v8600_v59 = vld [vmem:[#allocation3 + $0x1d0] sm:$0xff] }
 0x4a2   : > { %v7902_v46 = vadd.f32 %v7711_v53, %v7164_v29  ;;  %v12277_v25 = vpop.f32.mrb[98].mxu1  ;;  %v8636_v48 = vld [vmem:[#allocation3 + $0x1f0] sm:$0xff]  ;;  %8473 = vst.msk [vmem:[#allocation4 + $0x88] sm:$0xff] %vm3468_vm2, %v8471_v41  ;;  %13053 = vpow2.f32 %v8538_v19  ;;  %vm8565_vm9 = vcmp.gt.f32.partialorder %v16504_v28, 0.0  ;;  %vm8526_vm10 = vcmp.gt.f32.partialorder %v16491_v56, 0.0  ;;  %v7169_v29 = vld [vmem:[#allocation3 + $0x228] sm:$0xff] }
 0x4a3   : > { %8000 = vst.msk [vmem:[#allocation3 + $0x210] sm:$0xff] %vm3468_vm2, %v7904_v45  ;;  %v7905_v49 = vadd.f32 %v12277_v25, %v7167_v52  ;;  %v7714_v10 = vpop.f32.mrb[99].mxu1  ;;  %v8634_v22 = vld [vmem:[#allocation3 + $0x1e0] sm:$0xff]  ;;  %v16559_v39 = vadd.f32 %v16394_v5, %v8636_v48  ;;  %13055 = vpow2.f32 %v8540_v13  ;;  %vm8563_vm11 = vcmp.gt.f32.partialorder %v16510_v9, 0.0  ;;  %v8601_v55 = vld [vmem:[#allocation3 + $0x1d8] sm:$0xff] }
 0x4a4   : > { %7998 = vst.msk [vmem:[#allocation3 + $0x200] sm:$0xff] %vm3468_vm2, %v7902_v46  ;;  %v7903_v36 = vadd.f32 %v7714_v10, %v7165_v35  ;;  %v16567_v17 = vadd.f32 %v16394_v5, %v8634_v22  ;;  %v8637_v1 = vld [vmem:[#allocation3 + $0x1f8] sm:$0xff]  ;;  %v13042_v21 = vpop.eup %13041  ;;  %vm8527_vm12 = vcmp.gt.f32.partialorder %v16494_v43, 0.0  ;;  %v16586_v4 = vadd.f32 %v16394_v5, %v8599_v18  ;;  %v7174_v18 = vld [vmem:[#allocation3 + $0x250] sm:$0xff] }
 0x4a5   : > { %8001 = vst.msk [vmem:[#allocation3 + $0x218] sm:$0xff] %vm3468_vm2, %v7905_v49  ;;  %v8635_v44 = vld [vmem:[#allocation3 + $0x1e8] sm:$0xff]  ;;  %v16573_v23 = vadd.f32 %v16394_v5, %v8637_v1  ;;  %v8648_v12 = vmin.f32 %v16559_v39, 0.0  ;;  %v10907_v8 = vadd.f32 -1.0, %v13042_v21  ;;  %v8610_v38 = vmin.f32 %v16562_v63, 0.0 }
 0x4a6   : > { %v13044_v57 = vpop.eup %13043  ;;  %7999 = vst.msk [vmem:[#allocation3 + $0x208] sm:$0xff] %vm3468_vm2, %v7903_v36  ;;  %v16580_v42 = vadd.f32 %v16394_v5, %v8635_v44  ;;  %v8646_v7 = vmin.f32 %v16567_v17, 0.0  ;;  %v8611_v41 = vmin.f32 %v16586_v4, 0.0  ;;  %v16612_v49 = vadd.f32 %v16394_v5, %v8600_v59  ;;  %v7178_v59 = vld [vmem:[#allocation3 + $0x270] sm:$0xff] }
 0x4a7   : > { %v13046_v30 = vpop.eup %13045  ;;  %v10908_v54 = vadd.f32 -1.0, %v13044_v57  ;;  %v8649_v11 = vmin.f32 %v16573_v23, 0.0  ;;  %v8582_v15 = vsel %vm8562_vm8, %v16499_v3, %v10907_v8  ;;  %v8654_v60 = vmul.f32 1.442695, %v8648_v12  ;;  %v7172_v57 = vld [vmem:[#allocation3 + $0x240] sm:$0xff] }
 0x4a8   : > { %v13048_v24 = vpop.eup %13047  ;;  %v12280_v51 = vpop.f32.mrb[100].mxu1  ;;  %v10909_v20 = vadd.f32 -1.0, %v13046_v30  ;;  %v8647_v34 = vmin.f32 %v16580_v42, 0.0  ;;  %v8650_v40 = vmul.f32 1.442695, %v8646_v7  ;;  %v16615_v35 = vadd.f32 %v16394_v5, %v8601_v55  ;;  %v7175_v30 = vld [vmem:[#allocation3 + $0x258] sm:$0xff] }
 0x4a9   : > { %v13050_v32 = vpop.eup %13049  ;;  %v7908_v26 = vadd.f32 %v12280_v51, %v7170_v50  ;;  %v7727_v58 = vpop.f32.mrb[101].mxu1  ;;  %v8583_v33 = vsel %vm8563_vm11, %v16510_v9, %v10908_v54  ;;  %v10910_v62 = vadd.f32 -1.0, %v13048_v24  ;;  %v8656_v52 = vmul.f32 1.442695, %v8649_v11 }
 0x4aa   : > { %v13052_v0 = vpop.eup %13051  ;;  %v7906_v16 = vadd.f32 %v7727_v58, %v7168_v2  ;;  %v12281_v14 = vpop.f32.mrb[102].mxu1  ;;  %v8586_v47 = vpack.c.bf16 %v8583_v33, %v8582_v15  ;;  %v8584_v3 = vsel %vm8564_vm7, %v16488_v37, %v10909_v20  ;;  %v8652_v61 = vmul.f32 1.442695, %v8647_v34  ;;  %v7173_v15 = vld [vmem:[#allocation3 + $0x248] sm:$0xff] }
 0x4ab   : > { %8004 = vst.msk [vmem:[#allocation3 + $0x230] sm:$0xff] %vm3468_vm2, %v7908_v26  ;;  %v7909_v45 = vadd.f32 %v12281_v14, %v7171_v6  ;;  %v7730_v53 = vpop.f32.mrb[103].mxu1  ;;  %v8585_v9 = vsel %vm8565_vm9, %v16504_v28, %v10910_v62  ;;  %13057 = vpow2.f32 %v8650_v40  ;;  %v10903_v25 = vadd.f32 -1.0, %v13050_v32  ;;  %v8678_v58 = vld [vmem:[#allocation3 + $0x200] sm:$0xff] }
 0x4ac   : > { %8002 = vst.msk [vmem:[#allocation3 + $0x220] sm:$0xff] %vm3468_vm2, %v7906_v16  ;;  %v7907_v46 = vadd.f32 %v7730_v53, %v7169_v29  ;;  %8590 = vrot.lane.b32.xlu1 %v8586_v47, %s13168_s9  ;;  %v8587_v37 = vpack.c.bf16 %v8585_v9, %v8584_v3  ;;  %13059 = vpow2.f32 %v8652_v61  ;;  %v10904_v48 = vadd.f32 -1.0, %v13052_v0  ;;  %v13054_v28 = vpop.eup %13053 }
 0x4ad   : > { %8005 = vst.msk [vmem:[#allocation3 + $0x238] sm:$0xff] %vm3468_vm2, %v7909_v45  ;;  %13061 = vpow2.f32 %v8654_v60  ;;  %v8614_v19 = vmul.f32 1.442695, %v8610_v38  ;;  %v8546_v13 = vsel %vm8526_vm10, %v16491_v56, %v10903_v25  ;;  %v13056_v10 = vpop.eup %13055  ;;  %v10905_v36 = vadd.f32 -1.0, %v13054_v28  ;;  %v8679_v53 = vld [vmem:[#allocation3 + $0x208] sm:$0xff]  ;;  %v7176_v28 = vld [vmem:[#allocation3 + $0x260] sm:$0xff] }
 0x4ae   : > { %8003 = vst.msk [vmem:[#allocation3 + $0x228] sm:$0xff] %vm3468_vm2, %v7907_v46  ;;  %13063 = vpow2.f32 %v8656_v52  ;;  %v8547_v22 = vsel %vm8527_vm12, %v16494_v43, %v10904_v48  ;;  %v8616_v1 = vmul.f32 1.442695, %v8611_v41  ;;  %vm8528_vm13 = vcmp.gt.f32.partialorder %v16514_v27, 0.0 }
 0x4af   : > { %13065 = vpow2.f32 %v8614_v19  ;;  %v8550_v44 = vpack.c.bf16 %v8547_v22, %v8546_v13  ;;  %v10906_v56 = vadd.f32 -1.0, %v13056_v10  ;;  %vm8529_vm14 = vcmp.gt.f32.partialorder %v16544_v31, 0.0 }
 0x4b0   : > { %8592 = vrot.lane.b32.xlu1 %v8587_v37, %s13168_s9  ;;  %v12284_v21 = vpop.f32.mrb[104].mxu1  ;;  %13067 = vpow2.f32 %v8616_v1  ;;  %v8612_v7 = vmin.f32 %v16612_v49, 0.0  ;;  %v8548_v38 = vsel %vm8528_vm13, %v16514_v27, %v10905_v36  ;;  %v8613_v50 = vmin.f32 %v16615_v35, 0.0 }
 0x4b1   : > { %v7912_v12 = vadd.f32 %v12284_v21, %v7174_v18  ;;  %v7743_v8 = vpop.f32.mrb[105].mxu1  ;;  %8552 = vst.msk [vmem:[#allocation4 + $0x30] sm:$0xff] %vm3468_vm2, %v8550_v44  ;;  %v8549_v24 = vsel %vm8529_vm14, %v16544_v31, %v10906_v56  ;;  %vm8642_vm15 = vcmp.gt.f32.partialorder %v16567_v17, 0.0  ;;  %vm8644_vm1 = vcmp.gt.f32.partialorder %v16559_v39, 0.0  ;;  %v7179_v18 = vld [vmem:[#allocation3 + $0x278] sm:$0xff] }
 0x4b2   : > { %v7910_v43 = vadd.f32 %v7743_v8, %v7172_v57  ;;  %v12285_v54 = vpop.f32.mrb[106].mxu1  ;;  %v8716_v11 = vld [vmem:[#allocation3 + $0x230] sm:$0xff]  ;;  %v8551_v32 = vpack.c.bf16 %v8549_v24, %v8548_v38  ;;  %v8618_v26 = vmul.f32 1.442695, %v8612_v7  ;;  %vm8645_vm0 = vcmp.gt.f32.partialorder %v16573_v23, 0.0  ;;  %v7177_v8 = vld [vmem:[#allocation3 + $0x268] sm:$0xff] }
 0x4b3   : > { %8008 = vst.msk [vmem:[#allocation3 + $0x250] sm:$0xff] %vm3468_vm2, %v7912_v12  ;;  %v7913_v51 = vadd.f32 %v12285_v54, %v7175_v30  ;;  %v7746_v20 = vpop.f32.mrb[107].mxu1  ;;  %v8714_v34 = vld [vmem:[#allocation3 + $0x220] sm:$0xff]  ;;  %v16630_v60 = vadd.f32 %v16394_v5, %v8716_v11  ;;  %vm8606_vm3 = vcmp.gt.f32.partialorder %v16562_v63, 0.0  ;;  %vm8643_vm4 = vcmp.gt.f32.partialorder %v16580_v42, 0.0  ;;  %v8680_v38 = vld [vmem:[#allocation3 + $0x210] sm:$0xff] }
 0x4b4   : > { %8006 = vst.msk [vmem:[#allocation3 + $0x240] sm:$0xff] %vm3468_vm2, %v7910_v43  ;;  %v7911_v2 = vadd.f32 %v7746_v20, %v7173_v15  ;;  %v16636_v27 = vadd.f32 %v16394_v5, %v8714_v34  ;;  %v8717_v31 = vld [vmem:[#allocation3 + $0x238] sm:$0xff]  ;;  %8553 = vst.msk [vmem:[#allocation4 + $0x90] sm:$0xff] %vm3468_vm2, %v8551_v32  ;;  %13069 = vpow2.f32 %v8618_v26  ;;  %v8620_v29 = vmul.f32 1.442695, %v8613_v50 }
 0x4b5   : > { %v13058_v33 = vpop.eup %13057  ;;  %8009 = vst.msk [vmem:[#allocation3 + $0x258] sm:$0xff] %vm3468_vm2, %v7913_v51  ;;  %v8715_v62 = vld [vmem:[#allocation3 + $0x228] sm:$0xff]  ;;  %v16641_v40 = vadd.f32 %v16394_v5, %v8717_v31  ;;  %v8728_v0 = vmin.f32 %v16630_v60, 0.0  ;;  %v16654_v9 = vadd.f32 %v16394_v5, %v8678_v58  ;;  %v8681_v24 = vld [vmem:[#allocation3 + $0x218] sm:$0xff]  ;;  %vm8607_vm5 = vcmp.gt.f32.partialorder %v16586_v4, 0.0 }
 0x4b6   : > { %v13060_v16 = vpop.eup %13059  ;;  %8007 = vst.msk [vmem:[#allocation3 + $0x248] sm:$0xff] %vm3468_vm2, %v7911_v2  ;;  %v10915_v6 = vadd.f32 -1.0, %v13058_v33  ;;  %v16649_v14 = vadd.f32 %v16394_v5, %v8715_v62  ;;  %v8726_v47 = vmin.f32 %v16636_v27, 0.0  ;;  %v16685_v32 = vadd.f32 %v16394_v5, %v8680_v38  ;;  %v7182_v2 = vld [vmem:[#allocation3 + $0x290] sm:$0xff] }
 0x4b7   : > { %v13062_v3 = vpop.eup %13061  ;;  %v10916_v61 = vadd.f32 -1.0, %v13060_v16  ;;  %v8729_v45 = vmin.f32 %v16641_v40, 0.0  ;;  %v8734_v48 = vmul.f32 1.442695, %v8728_v0  ;;  %v16688_v26 = vadd.f32 %v16394_v5, %v8681_v24  ;;  %v7180_v0 = vld [vmem:[#allocation3 + $0x280] sm:$0xff] }
 0x4b8   : > { %v13064_v52 = vpop.eup %13063  ;;  %v12288_v55 = vpop.f32.mrb[108].mxu1  ;;  %v8662_v46 = vsel %vm8642_vm15, %v16567_v17, %v10915_v6  ;;  %v10917_v37 = vadd.f32 -1.0, %v13062_v3  ;;  %v8727_v25 = vmin.f32 %v16649_v14, 0.0  ;;  %v8730_v36 = vmul.f32 1.442695, %v8726_v47  ;;  %v7183_v47 = vld [vmem:[#allocation3 + $0x298] sm:$0xff] }
 0x4b9   : > { %v13066_v41 = vpop.eup %13065  ;;  %v7916_v19 = vadd.f32 %v12288_v55, %v7178_v59  ;;  %v7759_v13 = vpop.f32.mrb[109].mxu1  ;;  %v8663_v10 = vsel %vm8643_vm4, %v16580_v42, %v10916_v61  ;;  %v10918_v22 = vadd.f32 -1.0, %v13064_v52  ;;  %v16664_v17 = vadd.f32 %v16394_v5, %v8679_v53  ;;  %v7181_v52 = vld [vmem:[#allocation3 + $0x288] sm:$0xff] }
 0x4ba   : > { %v7914_v1 = vadd.f32 %v7759_v13, %v7176_v28  ;;  %v12289_v21 = vpop.f32.mrb[110].mxu1  ;;  %v8666_v44 = vpack.c.bf16 %v8663_v10, %v8662_v46  ;;  %v8732_v56 = vmul.f32 1.442695, %v8727_v25  ;;  %v13068_v12 = vpop.eup %13067  ;;  %13071 = vpow2.f32 %v8730_v36 }
 0x4bb   : > { %8012 = vst.msk [vmem:[#allocation3 + $0x270] sm:$0xff] %vm3468_vm2, %v7916_v19  ;;  %v7917_v57 = vadd.f32 %v12289_v21, %v7179_v18  ;;  %v7762_v7 = vpop.f32.mrb[111].mxu1  ;;  %v8665_v42 = vsel %vm8645_vm0, %v16573_v23, %v10918_v22  ;;  %v8736_v43 = vmul.f32 1.442695, %v8729_v45  ;;  %v8664_v54 = vsel %vm8644_vm1, %v16559_v39, %v10917_v37 }
 0x4bc   : > { %8010 = vst.msk [vmem:[#allocation3 + $0x260] sm:$0xff] %vm3468_vm2, %v7914_v1  ;;  %v7915_v30 = vadd.f32 %v7762_v7, %v7177_v8  ;;  %8670 = vrot.lane.b32.xlu0 %v8666_v44, %s13168_s9  ;;  %13073 = vpow2.f32 %v8732_v56  ;;  %v10911_v11 = vadd.f32 -1.0, %v13066_v41  ;;  %v8667_v50 = vpack.c.bf16 %v8665_v42, %v8664_v54  ;;  %v8758_v8 = vld [vmem:[#allocation3 + $0x240] sm:$0xff]  ;;  %v7186_v42 = vld [vmem:[#allocation3 + $0x2b0] sm:$0xff] }
 0x4bd   : > { %8013 = vst.msk [vmem:[#allocation3 + $0x278] sm:$0xff] %vm3468_vm2, %v7917_v57  ;;  %13075 = vpow2.f32 %v8734_v48  ;;  %v10912_v23 = vadd.f32 -1.0, %v13068_v12  ;;  %v8690_v39 = vmin.f32 %v16654_v9, 0.0  ;;  %v8691_v15 = vmin.f32 %v16664_v17, 0.0 }
 0x4be   : > { %8011 = vst.msk [vmem:[#allocation3 + $0x268] sm:$0xff] %vm3468_vm2, %v7915_v30  ;;  %13077 = vpow2.f32 %v8736_v43  ;;  %v8626_v51 = vsel %vm8606_vm3, %v16562_v63, %v10911_v11  ;;  %v13070_v20 = vpop.eup %13069  ;;  %vm8608_vm6 = vcmp.gt.f32.partialorder %v16612_v49, 0.0  ;;  %vm8115_vm7 = vcmask 1048064  }
 0x4bf   : > { %v8627_v34 = vsel %vm8607_vm5, %v16586_v4, %v10912_v23  ;;  %13079 = vpow2.f32 %v8620_v29  ;;  %v8694_v63 = vmul.f32 1.442695, %v8690_v39  ;;  %v8696_v33 = vmul.f32 1.442695, %v8691_v15 }
 0x4c0   : > { %8672 = vrot.lane.b32.xlu0 %v8667_v50, %s13168_s9  ;;  %v12292_v31 = vpop.f32.mrb[112].mxu1  ;;  %v8630_v58 = vpack.c.bf16 %v8627_v34, %v8626_v51  ;;  %v8692_v4 = vmin.f32 %v16685_v32, 0.0  ;;  %v10913_v45 = vadd.f32 -1.0, %v13070_v20  ;;  %v8693_v29 = vmin.f32 %v16688_v26, 0.0  ;;  %v7184_v50 = vld [vmem:[#allocation3 + $0x2a0] sm:$0xff]  ;;  %v7187_v34 = vld [vmem:[#allocation3 + $0x2b8] sm:$0xff] }
 0x4c1   : > { %v7920_v62 = vadd.f32 %v12292_v31, %v7182_v2  ;;  %v7775_v16 = vpop.f32.mrb[113].mxu1  ;;  %13081 = vpow2.f32 %v8694_v63  ;;  %vm8722_vm8 = vcmp.gt.f32.partialorder %v16636_v27, 0.0  ;;  %vm8724_vm9 = vcmp.gt.f32.partialorder %v16630_v60, 0.0 }
 0x4c2   : > { %v7918_v6 = vadd.f32 %v7775_v16, %v7180_v0  ;;  %v12293_v3 = vpop.f32.mrb[114].mxu1  ;;  %v8796_v61 = vld [vmem:[#allocation3 + $0x270] sm:$0xff]  ;;  %8632 = vst.msk [vmem:[#allocation4 + $0x38] sm:$0xff] %vm3468_vm2, %v8630_v58  ;;  %13083 = vpow2.f32 %v8696_v33  ;;  %v8698_v37 = vmul.f32 1.442695, %v8692_v4  ;;  %vm8723_vm10 = vcmp.gt.f32.partialorder %v16649_v14, 0.0 }
 0x4c3   : > { %8016 = vst.msk [vmem:[#allocation3 + $0x290] sm:$0xff] %vm3468_vm2, %v7920_v62  ;;  %v7921_v53 = vadd.f32 %v12293_v3, %v7183_v47  ;;  %v7778_v59 = vpop.f32.mrb[115].mxu1  ;;  %v8794_v55 = vld [vmem:[#allocation3 + $0x260] sm:$0xff]  ;;  %v16697_v46 = vadd.f32 %v16394_v5, %v8796_v61  ;;  %vm8725_vm11 = vcmp.gt.f32.partialorder %v16641_v40, 0.0  ;;  %vm8609_vm12 = vcmp.gt.f32.partialorder %v16615_v35, 0.0  ;;  %v7185_v62 = vld [vmem:[#allocation3 + $0x2a8] sm:$0xff] }
 0x4c4   : > { %8014 = vst.msk [vmem:[#allocation3 + $0x280] sm:$0xff] %vm3468_vm2, %v7918_v6  ;;  %v7919_v25 = vadd.f32 %v7778_v59, %v7181_v52  ;;  %v16703_v48 = vadd.f32 %v16394_v5, %v8794_v55  ;;  %v8797_v41 = vld [vmem:[#allocation3 + $0x278] sm:$0xff]  ;;  %v13072_v19 = vpop.eup %13071  ;;  %v16721_v21 = vsel %vm8608_vm6, %v16612_v49, %v10913_v45  ;;  %13085 = vpow2.f32 %v8698_v37  ;;  %v7190_v37 = vld [vmem:[#allocation3 + $0x2d0] sm:$0xff] }
 0x4c5   : > { %8017 = vst.msk [vmem:[#allocation3 + $0x298] sm:$0xff] %vm3468_vm2, %v7921_v53  ;;  %v8795_v28 = vld [vmem:[#allocation3 + $0x268] sm:$0xff]  ;;  %v16709_v13 = vadd.f32 %v16394_v5, %v8797_v41  ;;  %v8808_v10 = vmin.f32 %v16697_v46, 0.0  ;;  %v10923_v36 = vadd.f32 -1.0, %v13072_v19  ;;  %v8700_v57 = vmul.f32 1.442695, %v8693_v29 }
 0x4c6   : > { %v13074_v22 = vpop.eup %13073  ;;  %8015 = vst.msk [vmem:[#allocation3 + $0x288] sm:$0xff] %vm3468_vm2, %v7919_v25  ;;  %v16715_v1 = vadd.f32 %v16394_v5, %v8795_v28  ;;  %v8806_v18 = vmin.f32 %v16703_v48, 0.0  ;;  %v16732_v63 = vadd.f32 %v16394_v5, %v8758_v8  ;;  %v16747_v29 = vld [vmem:[%s17205_s4] ss:$0 sm:$0xff]  ;;  %vm8686_vm13 = vcmp.gt.f32.partialorder %v16654_v9, 0.0 }
 0x4c7   : > { %v13076_v44 = vpop.eup %13075  ;;  %v10924_v56 = vadd.f32 -1.0, %v13074_v22  ;;  %v8809_v12 = vmin.f32 %v16709_v13, 0.0  ;;  %v8742_v30 = vsel %vm8722_vm8, %v16636_v27, %v10923_v36  ;;  %v8814_v38 = vmul.f32 1.442695, %v8808_v10  ;;  %v8759_v27 = vld [vmem:[#allocation3 + $0x248] sm:$0xff]  ;;  %v8760_v22 = vld [vmem:[#allocation3 + $0x250] sm:$0xff] }
 0x4c8   : > { %v13078_v7 = vpop.eup %13077  ;;  %v12296_v43 = vpop.f32.mrb[116].mxu1  ;;  %v10925_v54 = vadd.f32 -1.0, %v13076_v44  ;;  %v8807_v11 = vmin.f32 %v16715_v1, 0.0  ;;  %v8810_v15 = vmul.f32 1.442695, %v8806_v18  ;;  %v16750_v53 = vadd.f32 %v16747_v29, %v8759_v27  ;;  %v8761_v36 = vld [vmem:[#allocation3 + $0x258] sm:$0xff] }
 0x4c9   : > { %v13080_v49 = vpop.eup %13079  ;;  %v7924_v24 = vadd.f32 %v12296_v43, %v7186_v42  ;;  %v7791_v23 = vpop.f32.mrb[117].mxu1  ;;  %v8743_v51 = vsel %vm8723_vm10, %v16649_v14, %v10924_v56  ;;  %v10926_v39 = vadd.f32 -1.0, %v13078_v7  ;;  %v8816_v16 = vmul.f32 1.442695, %v8809_v12  ;;  %v7188_v56 = vld [vmem:[#allocation3 + $0x2c0] sm:$0xff] }
 0x4ca   : > { %v7922_v20 = vadd.f32 %v7791_v23, %v7184_v50  ;;  %v12297_v2 = vpop.f32.mrb[118].mxu1  ;;  %v8746_v31 = vpack.c.bf16 %v8743_v51, %v8742_v30  ;;  %v8812_v58 = vmul.f32 1.442695, %v8807_v11  ;;  %13087 = vpow2.f32 %v8810_v15 }
 0x4cb   : > { %8020 = vst.msk [vmem:[#allocation3 + $0x2b0] sm:$0xff] %vm3468_vm2, %v7924_v24  ;;  %v7925_v33 = vadd.f32 %v12297_v2, %v7187_v34  ;;  %v7794_v0 = vpop.f32.mrb[119].mxu1  ;;  %v8745_v14 = vsel %vm8725_vm11, %v16641_v40, %v10926_v39  ;;  %v13082_v4 = vpop.eup %13081  ;;  %v8744_v5 = vsel %vm8724_vm9, %v16630_v60, %v10925_v54  ;;  %v10914_v47 = vadd.f32 -1.0, %v13080_v49  ;;  %v7189_v54 = vld [vmem:[#allocation3 + $0x2c8] sm:$0xff] }
 0x4cc   : > { %8018 = vst.msk [vmem:[#allocation3 + $0x2a0] sm:$0xff] %vm3468_vm2, %v7922_v20  ;;  %v7923_v6 = vadd.f32 %v7794_v0, %v7185_v62  ;;  %8750 = vrot.lane.b32.xlu1 %v8746_v31, %s13168_s9  ;;  %13089 = vpow2.f32 %v8812_v58  ;;  %v13084_v3 = vpop.eup %13083  ;;  %v8747_v45 = vpack.c.bf16 %v8745_v14, %v8744_v5  ;;  %v10919_v40 = vadd.f32 -1.0, %v13082_v4 }
 0x4cd   : > { %8021 = vst.msk [vmem:[#allocation3 + $0x2b8] sm:$0xff] %vm3468_vm2, %v7925_v33  ;;  %v8193_v61 = vpop.permute.xlu1 %8192  ;;  %13091 = vpow2.f32 %v8814_v38  ;;  %v8629_v52 = vsel %vm8609_vm12, %v16615_v35, %v10914_v47  ;;  %v10920_v59 = vadd.f32 -1.0, %v13084_v3  ;;  %v8770_v55 = vmin.f32 %v16732_v63, 0.0 }
 0x4ce   : > { %8019 = vst.msk [vmem:[#allocation3 + $0x2a8] sm:$0xff] %vm3468_vm2, %v7923_v6  ;;  %v8191_v60 = vpop.permute.xlu0 %8190  ;;  %13093 = vpow2.f32 %v8816_v16  ;;  %v8631_v25 = vpack.c.bf16 %v8629_v52, %v16721_v21  ;;  %vm8687_vm14 = vcmp.gt.f32.partialorder %v16664_v17, 0.0  ;;  %v8706_v19 = vsel %vm8686_vm13, %v16654_v9, %v10919_v40  ;;  %v13086_v18 = vpop.eup %13085  ;;  %v7194_v16 = vld [vmem:[#allocation3 + $0x2f0] sm:$0xff] }
 0x4cf   : > { %8197 = vst.msk [vmem:[#allocation4 + $0x68] sm:$0xff] %vm8115_vm7, %v8193_v61  ;;  %8196 = vst.msk [vmem:[#allocation4 + $0x8] sm:$0xff] %vm8115_vm7, %v8191_v60  ;;  %13095 = vpow2.f32 %v8700_v57  ;;  %v8707_v35 = vsel %vm8687_vm14, %v16664_v17, %v10920_v59  ;;  %v8771_v28 = vmin.f32 %v16750_v53, 0.0  ;;  %v8774_v10 = vmul.f32 1.442695, %v8770_v55  ;;  %v7191_v17 = vld [vmem:[#allocation3 + $0x2d8] sm:$0xff] }
 0x4d0   : > { %8752 = vrot.lane.b32.xlu1 %v8747_v45, %s13168_s9  ;;  %v12300_v41 = vpop.f32.mrb[120].mxu1  ;;  %8633 = vst.msk [vmem:[#allocation4 + $0x98] sm:$0xff] %vm3468_vm2, %v8631_v25  ;;  %v8710_v57 = vpack.c.bf16 %v8707_v35, %v8706_v19  ;;  %vm8688_vm15 = vcmp.gt.f32.partialorder %v16685_v32, 0.0  ;;  %vm8804_vm1 = vcmp.gt.f32.partialorder %v16697_v46, 0.0  ;;  %v16777_v24 = vadd.f32 %v16747_v29, %v8760_v22  ;;  %v12458_v45 = vld [vmem:[%s17206_s5 + $0x80] sm:$0xff]   ;;  %v7192_v25 = vld [vmem:[#allocation3 + $0x2e0] sm:$0xff] }
 0x4d1   : > { %v7928_v44 = vadd.f32 %v12300_v41, %v7190_v37  ;;  %v8112_v21 = vpop.permute.xlu1 %8111  ;;  %v7807_v12 = vpop.f32.mrb[121].mxu1  ;;  %13097 = vpow2.f32 %v8774_v10  ;;  %v8776_v43 = vmul.f32 1.442695, %v8771_v28  ;;  %v16780_v50 = vadd.f32 %v16747_v29, %v8761_v36  ;;  %v12459_v35 = vld [vmem:[%s17206_s5 + $0xc8] sm:$0xff]  }
 0x4d2   : > { %8117 = vst.msk [vmem:[#allocation4 + $0x60] sm:$0xff] %vm8115_vm7, %v8112_v21  ;;  %v7926_v9 = vadd.f32 %v7807_v12, %v7188_v56  ;;  %v8110_v8 = vpop.permute.xlu0 %8109  ;;  %v12301_v7 = vpop.f32.mrb[122].mxu1  ;;  %v8876_v42 = vld [vmem:[#allocation3 + $0x2b0] sm:$0xff]  ;;  %vm8802_vm0 = vcmp.gt.f32.partialorder %v16703_v48, 0.0  ;;  %vm8803_vm3 = vcmp.gt.f32.partialorder %v16715_v1, 0.0  ;;  %vm8805_vm4 = vcmp.gt.f32.partialorder %v16709_v13, 0.0 }
 0x4d3   : > { %8024 = vst.msk [vmem:[#allocation3 + $0x2d0] sm:$0xff] %vm3468_vm2, %v7928_v44  ;;  %v7929_v30 = vadd.f32 %v12301_v7, %v7191_v17  ;;  %v7810_v11 = vpop.f32.mrb[123].mxu1  ;;  %v8874_v38 = vld [vmem:[#allocation3 + $0x2a0] sm:$0xff]  ;;  %v16773_v49 = vadd.f32 %v16747_v29, %v8876_v42  ;;  %8712 = vst.msk [vmem:[#allocation4 + $0x40] sm:$0xff] %vm3468_vm2, %v8710_v57  ;;  %13099 = vpow2.f32 %v8776_v43  ;;  %vm8689_vm5 = vcmp.gt.f32.partialorder %v16688_v26, 0.0  ;;  %v8839_v42 = vld [vmem:[#allocation3 + $0x288] sm:$0xff] }
 0x4d4   : > { %8116 = vst.msk [vmem:[#allocation4] sm:$0xff] %vm8115_vm7, %v8110_v8  ;;  %v7927_v23 = vadd.f32 %v7810_v11, %v7189_v54  ;;  %v16785_v51 = vadd.f32 %v16747_v29, %v8874_v38  ;;  %v8877_v39 = vld [vmem:[#allocation3 + $0x2b8] sm:$0xff]  ;;  %v13088_v15 = vpop.eup %13087  ;;  %v10921_v0 = vadd.f32 -1.0, %v13086_v18  ;;  %v8772_v5 = vmin.f32 %v16777_v24, 0.0  ;;  %v7193_v18 = vld [vmem:[#allocation3 + $0x2e8] sm:$0xff]  ;;  %v8838_v7 = vld [vmem:[#allocation3 + $0x280] sm:$0xff] }
 0x4d5   : > { %8022 = vst.msk [vmem:[#allocation3 + $0x2c0] sm:$0xff] %vm3468_vm2, %v7926_v9  ;;  %8025 = vst.msk [vmem:[#allocation3 + $0x2d8] sm:$0xff] %vm3468_vm2, %v7929_v30  ;;  %v8875_v20 = vld [vmem:[#allocation3 + $0x2a8] sm:$0xff]  ;;  %v16791_v34 = vadd.f32 %v16747_v29, %v8877_v39  ;;  %v8888_v2 = vmin.f32 %v16773_v49, 0.0  ;;  %v10931_v27 = vadd.f32 -1.0, %v13088_v15  ;;  %v8773_v47 = vmin.f32 %v16780_v50, 0.0 }
 0x4d6   : > { %v13090_v31 = vpop.eup %13089  ;;  %8023 = vst.msk [vmem:[#allocation3 + $0x2c8] sm:$0xff] %vm3468_vm2, %v7927_v23  ;;  %v8999_v58 = vld [vmem:[#allocation4 + $0x8] sm:$0xff]  ;;  %v16797_v33 = vadd.f32 %v16747_v29, %v8875_v20  ;;  %v8886_v62 = vmin.f32 %v16785_v51, 0.0  ;;  %v8708_v12 = vsel %vm8688_vm15, %v16685_v32, %v10921_v0  ;;  %v12460_v32 = vld [vmem:[%s17206_s5 + $0x88] sm:$0xff]   ;;  %v12461_v11 = vld [vmem:[%s17206_s5 + $0xd0] sm:$0xff]   ;;  %vm8766_vm6 = vcmp.gt.f32.partialorder %v16732_v63, 0.0 }
 0x4d7   : > { %v13092_v14 = vpop.eup %13091  ;;  %9822 = vmatprep.mubr.bf16.mxu0 %v8999_v58  ;;  %v10932_v4 = vadd.f32 -1.0, %v13090_v31  ;;  %v8889_v6 = vmin.f32 %v16791_v34, 0.0  ;;  %v8822_v40 = vsel %vm8802_vm0, %v16703_v48, %v10931_v27  ;;  %v8894_v59 = vmul.f32 1.442695, %v8888_v2  ;;  %v7195_v48 = vld [vmem:[#allocation3 + $0x2f8] sm:$0xff]  ;;  %v9011_v9 = vld [vmem:[#allocation4 + $0x68] sm:$0xff] }
 0x4d8   : > { %v13094_v3 = vpop.eup %13093  ;;  %v12304_v61 = vpop.f32.mrb[124].mxu1  ;;  %v10933_v60 = vadd.f32 -1.0, %v13092_v14  ;;  %v8887_v52 = vmin.f32 %v16797_v33, 0.0  ;;  %v8890_v10 = vmul.f32 1.442695, %v8886_v62  ;;  %v16840_v2 = vadd.f32 %v16747_v29, %v8838_v7  ;;  %v12462_v0 = vld [vmem:[%s17206_s5 + $0x90] sm:$0xff]  }
 0x4d9   : > { %v13096_v55 = vpop.eup %13095  ;;  %v7932_v37 = vadd.f32 %v12304_v61, %v7194_v16  ;;  %v7823_v41 = vpop.f32.mrb[125].mxu1  ;;  %v8823_v19 = vsel %vm8803_vm3, %v16715_v1, %v10932_v4  ;;  %v10934_v28 = vadd.f32 -1.0, %v13094_v3  ;;  %v8896_v17 = vmul.f32 1.442695, %v8889_v6  ;;  %v12463_v14 = vld [vmem:[%s17206_s5 + $0xd8] sm:$0xff]   ;;  %v9010_v61 = vld [vmem:[#allocation4 + $0x60] sm:$0xff] }
 0x4da   : > { %v7930_v22 = vadd.f32 %v7823_v41, %v7192_v25  ;;  %v12305_v36 = vpop.f32.mrb[126].mxu1  ;;  %v8826_v21 = vpack.c.bf16 %v8823_v19, %v8822_v40  ;;  %v8892_v56 = vmul.f32 1.442695, %v8887_v52  ;;  %v8824_v8 = vsel %vm8804_vm1, %v16697_v46, %v10933_v60 }
 0x4db   : > { %v8998_v44 = vld [vmem:[#allocation4] sm:$0xff]  ;;  %8028 = vst.msk [vmem:[#allocation3 + $0x2f0] sm:$0xff] %vm3468_vm2, %v7932_v37  ;;  %v7933_v1 = vadd.f32 %v12305_v36, %v7195_v48  ;;  %v7826_v57 = vpop.f32.mrb[127].mxu1  ;;  %13101 = vpow2.f32 %v8890_v10  ;;  %v13098_v43 = vpop.eup %13097  ;;  %v8825_v54 = vsel %vm8805_vm4, %v16709_v13, %v10934_v28  ;;  %v10922_v46 = vadd.f32 -1.0, %v13096_v55  ;;  %v12464_v55 = vld [vmem:[%s17206_s5 + $0x98] sm:$0xff]   ;;  %v12465_v10 = vld [vmem:[%s17206_s5 + $0xe0] sm:$0xff]  }
 0x4dc   : > { %9823 = vmatmul.mubr.bf16.vlgmr.msra.gmra.mrb[44].mxu0 %v8998_v44  ;;  %8026 = vst.msk [vmem:[#allocation3 + $0x2e0] sm:$0xff] %vm3468_vm2, %v7930_v22  ;;  %v7931_v30 = vadd.f32 %v7826_v57, %v7193_v18  ;;  %13103 = vpow2.f32 %v8892_v56  ;;  %8830 = vrot.lane.b32.xlu0 %v8826_v21, %s13168_s9  ;;  %v10927_v38 = vadd.f32 -1.0, %v13098_v43  ;;  %v8778_v23 = vmul.f32 1.442695, %v8772_v5  ;;  %v8840_v5 = vld [vmem:[#allocation3 + $0x290] sm:$0xff] }
 0x4dd   : > { %11441 = vmatpush3.bf16.msra.mxu0 %v12458_v45  ;;  %9830 = vmatprep.mubr.bf16.mxu0 %v9011_v9  ;;  %8029 = vst.msk [vmem:[#allocation3 + $0x2f8] sm:$0xff] %vm3468_vm2, %v7933_v1  ;;  %13105 = vpow2.f32 %v8894_v59  ;;  %v8780_v39 = vmul.f32 1.442695, %v8773_v47  ;;  %v13100_v15 = vpop.eup %13099  ;;  %v8709_v13 = vsel %vm8689_vm5, %v16688_v26, %v10922_v46  ;;  %v16843_v31 = vadd.f32 %v16747_v29, %v8839_v42  ;;  %v8841_v47 = vld [vmem:[#allocation3 + $0x298] sm:$0xff]  ;;  %v8918_v59 = vld [vmem:[#allocation3 + $0x2c0] sm:$0xff]  ;;  %v12466_v42 = vld [vmem:[%s17206_s5 + $0xa0] sm:$0xff]  }
 0x4de   : > { %11442 = vmatprep.subr.bf16.mxu0 %v12459_v35  ;;  %8027 = vst.msk [vmem:[#allocation3 + $0x2e8] sm:$0xff] %vm3468_vm2, %v7931_v30  ;;  %v8271_v20 = vpop.permute.xlu1 %8270  ;;  %13107 = vpow2.f32 %v8896_v17  ;;  %v8827_v58 = vpack.c.bf16 %v8825_v54, %v8824_v8  ;;  %v8711_v27 = vpack.c.bf16 %v8709_v13, %v8708_v12  ;;  %v10928_v62 = vadd.f32 -1.0, %v13100_v15  ;;  %v8919_v35 = vld [vmem:[#allocation3 + $0x2c8] sm:$0xff] }
 0x4df   : > { %8276 = vst.msk [vmem:[#allocation4 + $0x10] sm:$0xff] %vm8115_vm7, %v8271_v20  ;;  %13109 = vpow2.f32 %v8778_v23  ;;  %vm8767_vm8 = vcmp.gt.f32.partialorder %v16750_v53, 0.0  ;;  %v8850_v26 = vmin.f32 %v16840_v2, 0.0  ;;  %v8786_v16 = vsel %vm8766_vm6, %v16732_v63, %v10927_v38  ;;  %v12467_v38 = vld [vmem:[%s17206_s5 + $0xe8] sm:$0xff]  }
 0x4e0   : > { %13111 = vpow2.f32 %v8780_v39  ;;  %8832 = vrot.lane.b32.xlu0 %v8827_v58, %s13168_s9  ;;  %8713 = vst.msk [vmem:[#allocation4 + $0xa0] sm:$0xff] %vm3468_vm2, %v8711_v27  ;;  %v8787_v4 = vsel %vm8767_vm8, %v16750_v53, %v10928_v62  ;;  %v8851_v6 = vmin.f32 %v16843_v31, 0.0  ;;  %vm8882_vm9 = vcmp.gt.f32.partialorder %v16785_v51, 0.0  ;;  %v12468_v27 = vld [vmem:[%s17206_s5 + $0xa8] sm:$0xff]  }
 0x4e1   : > { %11443 = vmatpush3.bf16.msra.mxu0 %v12460_v32  ;;  %v8790_v40 = vpack.c.bf16 %v8787_v4, %v8786_v16  ;;  %v8854_v60 = vmul.f32 1.442695, %v8850_v26  ;;  %vm8885_vm10 = vcmp.gt.f32.partialorder %v16791_v34, 0.0  ;;  %vm8768_vm11 = vcmp.gt.f32.partialorder %v16777_v24, 0.0  ;;  %v8920_v16 = vld [vmem:[#allocation3 + $0x2d0] sm:$0xff] }
 0x4e2   : > { %11444 = vmatprep.subr.bf16.mxu0 %v12461_v11  ;;  %v8273_v3 = vpop.permute.xlu1 %8272  ;;  %v8956_v45 = vld [vmem:[#allocation3 + $0x2f0] sm:$0xff]  ;;  %v8856_v53 = vmul.f32 1.442695, %v8851_v6  ;;  %vm8769_vm12 = vcmp.gt.f32.partialorder %v16780_v50, 0.0  ;;  %v16876_v41 = vadd.f32 %v16747_v29, %v8840_v5  ;;  %v16879_v19 = vadd.f32 %v16747_v29, %v8841_v47  ;;  %v12469_v6 = vld [vmem:[%s17206_s5 + $0xf0] sm:$0xff]   ;;  %v8921_v47 = vld [vmem:[#allocation3 + $0x2d8] sm:$0xff] }
 0x4e3   : > { %8277 = vst.msk [vmem:[#allocation4 + $0x70] sm:$0xff] %vm8115_vm7, %v8273_v3  ;;  %v8954_v52 = vld [vmem:[#allocation3 + $0x2e0] sm:$0xff]  ;;  %v16864_v63 = vadd.f32 %v16747_v29, %v8956_v45  ;;  %13113 = vpow2.f32 %v8854_v60  ;;  %vm8883_vm13 = vcmp.gt.f32.partialorder %v16797_v33, 0.0  ;;  %v16894_v12 = vadd.f32 %v16747_v29, %v8918_v59 }
 0x4e4   : > { %9831 = vmatmul.mubr.bf16.gmra.mrb[48].mxu0 %v9010_v61  ;;  %v16870_v37 = vadd.f32 %v16747_v29, %v8954_v52  ;;  %v8957_v25 = vld [vmem:[#allocation3 + $0x2f8] sm:$0xff]  ;;  %8792 = vst.msk [vmem:[#allocation4 + $0x48] sm:$0xff] %vm3468_vm2, %v8790_v40  ;;  %13115 = vpow2.f32 %v8856_v53  ;;  %v16898_v17 = vadd.f32 %v16747_v29, %v8919_v35  ;;  %v8852_v32 = vmin.f32 %v16876_v41, 0.0  ;;  %v12471_v35 = vld [vmem:[%s17206_s5 + $0xf8] sm:$0xff]  }
 0x4e5   : > { %11445 = vmatpush3.bf16.msra.mxu0 %v12462_v0  ;;  %v13102_v28 = vpop.eup %13101  ;;  %v8955_v22 = vld [vmem:[#allocation3 + $0x2e8] sm:$0xff]  ;;  %v16886_v48 = vadd.f32 %v16747_v29, %v8957_v25  ;;  %v8968_v36 = vmin.f32 %v16864_v63, 0.0  ;;  %v8853_v54 = vmin.f32 %v16879_v19, 0.0  ;;  %vm8884_vm14 = vcmp.gt.f32.partialorder %v16773_v49, 0.0 }
 0x4e6   : > { %11446 = vmatprep.subr.bf16.mxu0 %v12463_v14  ;;  %v13104_v18 = vpop.eup %13103  ;;  %v10939_v44 = vadd.f32 -1.0, %v13102_v28  ;;  %v16890_v21 = vadd.f32 %v16747_v29, %v8955_v22  ;;  %v8966_v56 = vmin.f32 %v16870_v37, 0.0  ;;  %v8858_v26 = vmul.f32 1.442695, %v8852_v32 }
 0x4e7   : > { %v13106_v1 = vpop.eup %13105  ;;  %v10940_v57 = vadd.f32 -1.0, %v13104_v18  ;;  %v8969_v9 = vmin.f32 %v16886_v48, 0.0  ;;  %v8974_v8 = vmul.f32 1.442695, %v8968_v36  ;;  %v8860_v14 = vmul.f32 1.442695, %v8853_v54 }
 0x4e8   : > { %v13108_v7 = vpop.eup %13107  ;;  %v8902_v43 = vsel %vm8882_vm9, %v16785_v51, %v10939_v44  ;;  %v8967_v30 = vmin.f32 %v16890_v21, 0.0  ;;  %v10941_v23 = vadd.f32 -1.0, %v13106_v1  ;;  %v8970_v15 = vmul.f32 1.442695, %v8966_v56  ;;  %v12474_v54 = vld [vmem:[%s17206_s5 + $0x100] sm:$0xff]  }
 0x4e9   : > { %11447 = vmatpush3.bf16.msra.mxu0 %v12464_v55  ;;  %v13110_v46 = vpop.eup %13109  ;;  %v8903_v11 = vsel %vm8883_vm13, %v16797_v33, %v10940_v57  ;;  %v10942_v39 = vadd.f32 -1.0, %v13108_v7  ;;  %13117 = vpow2.f32 %v8974_v8  ;;  %v8976_v58 = vmul.f32 1.442695, %v8969_v9  ;;  %v12472_v57 = vld [vmem:[%s17206_s5 + $0xb8] sm:$0xff]  }
 0x4ea   : > { %11448 = vmatprep.subr.bf16.mxu0 %v12465_v10  ;;  %v13112_v51 = vpop.eup %13111  ;;  %v8906_v20 = vpack.c.bf16 %v8903_v11, %v8902_v43  ;;  %v8972_v13 = vmul.f32 1.442695, %v8967_v30  ;;  %13119 = vpow2.f32 %v8970_v15  ;;  %v10929_v62 = vadd.f32 -1.0, %v13110_v46 }
 0x4eb   : > { %v8905_v33 = vsel %vm8885_vm10, %v16791_v34, %v10942_v39  ;;  %v10930_v0 = vadd.f32 -1.0, %v13112_v51  ;;  %v8904_v4 = vsel %vm8884_vm14, %v16773_v49, %v10941_v23  ;;  %v8930_v49 = vmin.f32 %v16894_v12, 0.0  ;;  %v12475_v39 = vld [vmem:[%s17206_s5 + $0x148] sm:$0xff]   ;;  %v9000_v51 = vld [vmem:[#allocation4 + $0x10] sm:$0xff] }
 0x4ec   : > { %8910 = vrot.lane.b32.xlu1 %v8906_v20, %s13168_s9  ;;  %13121 = vpow2.f32 %v8972_v13  ;;  %v8788_v34 = vsel %vm8768_vm11, %v16777_v24, %v10929_v62  ;;  %v8907_v45 = vpack.c.bf16 %v8905_v33, %v8904_v4  ;;  %v8931_v53 = vmin.f32 %v16898_v17, 0.0 }
 0x4ed   : > { %11449 = vmatpush3.bf16.msra.mxu0 %v12466_v42  ;;  %13123 = vpow2.f32 %v8976_v58  ;;  %v8789_v5 = vsel %vm8769_vm12, %v16780_v50, %v10930_v0  ;;  %v13114_v3 = vpop.eup %13113  ;;  %v16937_v24 = vadd.f32 %v16747_v29, %v8920_v16  ;;  %v12470_v50 = vld [vmem:[%s17206_s5 + $0xb0] sm:$0xff]   ;;  %v8934_v55 = vmul.f32 1.442695, %v8930_v49 }
 0x4ee   : > { %11450 = vmatprep.subr.bf16.mxu0 %v12467_v38  ;;  %v8351_v61 = vpop.permute.xlu0 %8350  ;;  %v8791_v40 = vpack.c.bf16 %v8789_v5, %v8788_v34  ;;  %13125 = vpow2.f32 %v8858_v26  ;;  %v13116_v60 = vpop.eup %13115  ;;  %v10935_v52 = vadd.f32 -1.0, %v13114_v3  ;;  %v16945_v25 = vadd.f32 %v16747_v29, %v8921_v47  ;;  %v12478_v47 = vld [vmem:[%s17206_s5 + $0x110] sm:$0xff]  }
 0x4ef   : > { %8356 = vst.msk [vmem:[#allocation4 + $0x18] sm:$0xff] %vm8115_vm7, %v8351_v61  ;;  %13127 = vpow2.f32 %v8860_v14  ;;  %v10936_v59 = vadd.f32 -1.0, %v13116_v60  ;;  %vm8846_vm15 = vcmp.gt.f32.partialorder %v16840_v2, 0.0  ;;  %vm8847_vm1 = vcmp.gt.f32.partialorder %v16843_v31, 0.0  ;;  %v12477_v14 = vld [vmem:[%s17206_s5 + $0x150] sm:$0xff]   ;;  %v9012_v60 = vld [vmem:[#allocation4 + $0x70] sm:$0xff] }
 0x4f0   : > { %8912 = vrot.lane.b32.xlu1 %v8907_v45, %s13168_s9  ;;  %8793 = vst.msk [vmem:[#allocation4 + $0xa8] sm:$0xff] %vm3468_vm2, %v8791_v40  ;;  %v8936_v28 = vmul.f32 1.442695, %v8931_v53  ;;  %v8932_v10 = vmin.f32 %v16937_v24, 0.0  ;;  %v8866_v36 = vsel %vm8846_vm15, %v16840_v2, %v10935_v52  ;;  %13129 = vpow2.f32 %v8934_v55  ;;  %v12473_v2 = vld [vmem:[%s17206_s5 + $0x140] sm:$0xff]   ;;  %v12479_v45 = vld [vmem:[%s17206_s5 + $0x158] sm:$0xff]  }
 0x4f1   : > { %11451 = vmatpush3.bf16.msra.mxu0 %v12468_v27  ;;  %v8867_v18 = vsel %vm8847_vm1, %v16843_v31, %v10936_v59  ;;  %v8933_v29 = vmin.f32 %v16945_v25, 0.0  ;;  %vm8962_vm0 = vcmp.gt.f32.partialorder %v16870_v37, 0.0  ;;  %vm8963_vm3 = vcmp.gt.f32.partialorder %v16890_v21, 0.0  ;;  %v12480_v53 = vld [vmem:[%s17206_s5 + $0x118] sm:$0xff]   ;;  %v12481_v59 = vld [vmem:[%s17206_s5 + $0x160] sm:$0xff]   ;;  %v12483_v55 = vld [vmem:[%s17206_s5 + $0x168] sm:$0xff]  }
 0x4f2   : > { %11452 = vmatprep.subr.bf16.mxu0 %v12469_v6  ;;  %v8353_v22 = vpop.permute.xlu0 %8352  ;;  %v8870_v44 = vpack.c.bf16 %v8867_v18, %v8866_v36  ;;  %13131 = vpow2.f32 %v8936_v28  ;;  %v8938_v56 = vmul.f32 1.442695, %v8932_v10  ;;  %vm8965_vm4 = vcmp.gt.f32.partialorder %v16886_v48, 0.0  ;;  %v12486_v10 = vld [vmem:[%s17206_s5 + $0x130] sm:$0xff]   ;;  %v12488_v18 = vld [vmem:[%s17206_s5 + $0x138] sm:$0xff]  }
 0x4f3   : > { %8357 = vst.msk [vmem:[#allocation4 + $0x78] sm:$0xff] %vm8115_vm7, %v8353_v22  ;;  %v13118_v1 = vpop.eup %13117  ;;  %v8940_v9 = vmul.f32 1.442695, %v8933_v29  ;;  %vm8848_vm5 = vcmp.gt.f32.partialorder %v16876_v41, 0.0  ;;  %vm8849_vm6 = vcmp.gt.f32.partialorder %v16879_v19, 0.0  ;;  %vm8964_vm8 = vcmp.gt.f32.partialorder %v16864_v63, 0.0 }
 0x4f4   : > { %v13120_v8 = vpop.eup %13119  ;;  %8872 = vst.msk [vmem:[#allocation4 + $0x50] sm:$0xff] %vm3468_vm2, %v8870_v44  ;;  %13133 = vpow2.f32 %v8938_v56  ;;  %v10949_v58 = vadd.f32 -1.0, %v13118_v1  ;;  %vm8926_vm9 = vcmp.gt.f32.partialorder %v16894_v12, 0.0  ;;  %vm8927_vm10 = vcmp.gt.f32.partialorder %v16898_v17, 0.0  ;;  %v12487_v22 = vld [vmem:[%s17206_s5 + $0x178] sm:$0xff]   ;;  %v12489_v29 = vld [vmem:[%s17206_s5 + $0x1c0] sm:$0xff]  }
 0x4f5   : > { %11453 = vmatpush3.bf16.msra.mxu0 %v12470_v50  ;;  %v10947_v42 = vadd.f32 -1.0, %v13120_v8  ;;  %13135 = vpow2.f32 %v8940_v9  ;;  %vm8928_vm11 = vcmp.gt.f32.partialorder %v16937_v24, 0.0  ;;  %vm8929_vm12 = vcmp.gt.f32.partialorder %v16945_v25, 0.0  ;;  %v12490_v56 = vld [vmem:[%s17206_s5 + $0x180] sm:$0xff]   ;;  %v12491_v1 = vld [vmem:[%s17206_s5 + $0x1c8] sm:$0xff]  }
 0x4f6   : > { %11454 = vmatprep.subr.bf16.mxu0 %v12471_v35  ;;  %v13122_v31 = vpop.eup %13121  ;;  %v9001_v7 = vld [vmem:[#allocation4 + $0x18] sm:$0xff]  ;;  %v8984_v34 = vsel %vm8964_vm8, %v16864_v63, %v10949_v58  ;;  %v12485_v35 = vld [vmem:[%s17206_s5 + $0x170] sm:$0xff]   ;;  %v12505_v58 = vld [vmem:[%s17206_s5 + $0x240] sm:$0xff]  }
 0x4f7   : > { %v13124_v43 = vpop.eup %13123  ;;  %9871 = vmatprep.mubr.bf16.mxu0 %v9001_v7  ;;  %v10948_v30 = vadd.f32 -1.0, %v13122_v31  ;;  %v8982_v38 = vsel %vm8962_vm0, %v16870_v37, %v10947_v42  ;;  %v12492_v8 = vld [vmem:[%s17206_s5 + $0x188] sm:$0xff]   ;;  %v12494_v7 = vld [vmem:[%s17206_s5 + $0x190] sm:$0xff]   ;;  %v12495_v42 = vld [vmem:[%s17206_s5 + $0x1d8] sm:$0xff]  }
 0x4f8   : > { %v13126_v32 = vpop.eup %13125  ;;  %v10950_v46 = vadd.f32 -1.0, %v13124_v43 }
 0x4f9   : > { %11455 = vmatpush3.bf16.msra.mxu0 %v12472_v57  ;;  %v13128_v11 = vpop.eup %13127  ;;  %v8983_v23 = vsel %vm8963_vm3, %v16890_v21, %v10948_v30  ;;  %v10937_v15 = vadd.f32 -1.0, %v13126_v32  ;;  %v12476_v21 = vld [vmem:[%s17206_s5 + $0x108] sm:$0xff]   ;;  %v12496_v32 = vld [vmem:[%s17206_s5 + $0x198] sm:$0xff]  }
 0x4fa   : > { %11468 = vmatprep.subr.bf16.mxu0 %v12473_v2  ;;  %v9013_v20 = vld [vmem:[#allocation4 + $0x78] sm:$0xff]  ;;  %v8986_v13 = vpack.c.bf16 %v8983_v23, %v8982_v38  ;;  %v10938_v27 = vadd.f32 -1.0, %v13128_v11  ;;  %v13130_v37 = vpop.eup %13129  ;;  %v8985_v33 = vsel %vm8965_vm4, %v16886_v48, %v10950_v46  ;;  %v12493_v2 = vld [vmem:[%s17206_s5 + $0x1d0] sm:$0xff]   ;;  %v12498_v46 = vld [vmem:[%s17206_s5 + $0x1a0] sm:$0xff]  }
 0x4fb   : > { %v8868_v62 = vsel %vm8848_vm5, %v16876_v41, %v10937_v15  ;;  %v10943_v4 = vadd.f32 -1.0, %v13130_v37  ;;  %v8987_v41 = vpack.c.bf16 %v8985_v33, %v8984_v34  ;;  %v12499_v11 = vld [vmem:[%s17206_s5 + $0x1e8] sm:$0xff]   ;;  %v12501_v23 = vld [vmem:[%s17206_s5 + $0x1f0] sm:$0xff]   ;;  %v12506_v37 = vld [vmem:[%s17206_s5 + $0x200] sm:$0xff]  }
 0x4fc   : > { %9872 = vmatmul.mubr.bf16.vlgmr.msra.gmra.mrb[52].mxu0 %v9000_v51  ;;  %v8869_v0 = vsel %vm8849_vm6, %v16879_v19, %v10938_v27  ;;  %v13132_v26 = vpop.eup %13131  ;;  %8990 = vrot.lane.b32.xlu0 %v8986_v13, %s13168_s9  ;;  %v12500_v38 = vld [vmem:[%s17206_s5 + $0x1a8] sm:$0xff]   ;;  %v12502_v15 = vld [vmem:[%s17206_s5 + $0x1b0] sm:$0xff]   ;;  %v12503_v51 = vld [vmem:[%s17206_s5 + $0x1f8] sm:$0xff]  }
 0x4fd   : > { %9879 = vmatprep.mubr.bf16.mxu0 %v9013_v20  ;;  %11469 = vmatpush3.bf16.msra.mxu0 %v12474_v54  ;;  %v8871_v16 = vpack.c.bf16 %v8869_v0, %v8868_v62  ;;  %v10944_v48 = vadd.f32 -1.0, %v13132_v26  ;;  %v8946_v3 = vsel %vm8926_vm9, %v16894_v12, %v10943_v4  ;;  %v12497_v54 = vld [vmem:[%s17206_s5 + $0x1e0] sm:$0xff]   ;;  %v12504_v13 = vld [vmem:[%s17206_s5 + $0x1b8] sm:$0xff]   ;;  %v12508_v0 = vld [vmem:[%s17206_s5 + $0x208] sm:$0xff]  }
 0x4fe   : > { %11470 = vmatprep.subr.bf16.mxu0 %v12475_v39  ;;  %v8431_v6 = vpop.permute.xlu1 %8430  ;;  %v13134_v5 = vpop.eup %13133  ;;  %v12509_v26 = vld [vmem:[%s17206_s5 + $0x250] sm:$0xff]   ;;  %v12511_v4 = vld [vmem:[%s17206_s5 + $0x258] sm:$0xff]  }
 0x4ff   : > { %8436 = vst.msk [vmem:[#allocation4 + $0x20] sm:$0xff] %vm8115_vm7, %v8431_v6  ;;  %v13136_v19 = vpop.eup %13135  ;;  %v8947_v63 = vsel %vm8927_vm10, %v16898_v17, %v10944_v48  ;;  %v10945_v61 = vadd.f32 -1.0, %v13134_v5  ;;  %v12512_v48 = vld [vmem:[%s17206_s5 + $0x218] sm:$0xff]   ;;  %v12513_v5 = vld [vmem:[%s17206_s5 + $0x260] sm:$0xff]  }
 0x500   : > { %8873 = vst.msk [vmem:[#allocation4 + $0xb0] sm:$0xff] %vm3468_vm2, %v8871_v16  ;;  %8992 = vrot.lane.b32.xlu0 %v8987_v41, %s13168_s9  ;;  %v8950_v40 = vpack.c.bf16 %v8947_v63, %v8946_v3  ;;  %v10946_v49 = vadd.f32 -1.0, %v13136_v19  ;;  %v12510_v16 = vld [vmem:[%s17206_s5 + $0x210] sm:$0xff]   ;;  %v12514_v41 = vld [vmem:[%s17206_s5 + $0x220] sm:$0xff]   ;;  %v12515_v19 = vld [vmem:[%s17206_s5 + $0x268] sm:$0xff]  }
 0x501   : > { %11471 = vmatpush3.bf16.msra.mxu0 %v12476_v21  ;;  %v8948_v12 = vsel %vm8928_vm11, %v16937_v24, %v10945_v61  ;;  %v12482_v24 = vld [vmem:[%s17206_s5 + $0x120] sm:$0xff]   ;;  %v12507_v21 = vld [vmem:[%s17206_s5 + $0x248] sm:$0xff]   ;;  %v12517_v3 = vld [vmem:[%s17206_s5 + $0x270] sm:$0xff]  }
 0x502   : > { %11472 = vmatprep.subr.bf16.mxu0 %v12477_v14  ;;  %v8433_v52 = vpop.permute.xlu1 %8432  ;;  %8952 = vst.msk [vmem:[#allocation4 + $0x58] sm:$0xff] %vm3468_vm2, %v8950_v40  ;;  %v8949_v17 = vsel %vm8929_vm12, %v16945_v25, %v10946_v49  ;;  %v12484_v25 = vld [vmem:[%s17206_s5 + $0x128] sm:$0xff]   ;;  %v12518_v61 = vld [vmem:[%s17206_s5 + $0x230] sm:$0xff]   ;;  %v12520_v49 = vld [vmem:[%s17206_s5 + $0x238] sm:$0xff]  }
 0x503   : > { %8437 = vst.msk [vmem:[#allocation4 + $0x80] sm:$0xff] %vm8115_vm7, %v8433_v52  ;;  %v8951_v50 = vpack.c.bf16 %v8949_v17, %v8948_v12  ;;  %v12522_v12 = vld [vmem:[%s17206_s5 + $0x280] sm:$0xff]   ;;  %v12523_v17 = vld [vmem:[%s17206_s5 + $0x2c8] sm:$0xff]  }
 0x504   : > { %9880 = vmatmul.mubr.bf16.gmra.mrb[56].mxu0 %v9012_v60  ;;  %v12521_v60 = vld [vmem:[%s17206_s5 + $0x2c0] sm:$0xff]  }
 0x505   : > { %11473 = vmatpush3.bf16.msra.mxu0 %v12478_v47  ;;  %8953 = vst.msk [vmem:[#allocation4 + $0xb8] sm:$0xff] %vm3468_vm2, %v8951_v50  ;;  %v12516_v47 = vld [vmem:[%s17206_s5 + $0x228] sm:$0xff]  }
 0x506   : > { %11474 = vmatprep.subr.bf16.mxu0 %v12479_v45  ;;  %v9002_v57 = vld [vmem:[#allocation4 + $0x20] sm:$0xff]  ;;  %v12519_v45 = vld [vmem:[%s17206_s5 + $0x278] sm:$0xff]  }
 0x509   : > { %11475 = vmatpush3.bf16.msra.mxu0 %v12480_v53 }
 0x50a   : > { %11476 = vmatprep.subr.bf16.mxu0 %v12481_v59  ;;  %v9014_v43 = vld [vmem:[#allocation4 + $0x80] sm:$0xff]  ;;  %v12524_v59 = vld [vmem:[%s17206_s5 + $0x288] sm:$0xff]  }
 0x50d   : > { %11477 = vmatpush3.bf16.msra.mxu0 %v12482_v24  ;;  %v12525_v24 = vld [vmem:[%s17206_s5 + $0x2d0] sm:$0xff]  }
 0x50e   : > { %11478 = vmatprep.subr.bf16.mxu0 %v12483_v55  ;;  %v8511_v28 = vpop.permute.xlu0 %8510 }
 0x50f   : > { %8516 = vst.msk [vmem:[#allocation4 + $0x28] sm:$0xff] %vm8115_vm7, %v8511_v28 }
 0x511   : > { %11479 = vmatpush3.bf16.msra.mxu0 %v12484_v25  ;;  %v12526_v25 = vld [vmem:[%s17206_s5 + $0x290] sm:$0xff]  }
 0x512   : > { %11480 = vmatprep.subr.bf16.mxu0 %v12485_v35  ;;  %v8513_v36 = vpop.permute.xlu0 %8512  ;;  %v12527_v35 = vld [vmem:[%s17206_s5 + $0x2d8] sm:$0xff]  }
 0x513   : > { %8517 = vst.msk [vmem:[#allocation4 + $0x88] sm:$0xff] %vm8115_vm7, %v8513_v36  ;;  %v12529_v36 = vld [vmem:[%s17206_s5 + $0x2e0] sm:$0xff]  }
 0x515   : > { %11481 = vmatpush3.bf16.msra.mxu0 %v12486_v10 }
 0x516   : > { %11482 = vmatprep.subr.bf16.mxu0 %v12487_v22  ;;  %v9003_v44 = vld [vmem:[#allocation4 + $0x28] sm:$0xff] }
 0x517   : > { %9920 = vmatprep.mubr.bf16.mxu0 %v9003_v44  ;;  %v12528_v22 = vld [vmem:[%s17206_s5 + $0x298] sm:$0xff]   ;;  %v12532_v44 = vld [vmem:[%s17206_s5 + $0x2a8] sm:$0xff]  }
 0x519   : > { %11483 = vmatpush3.bf16.msra.mxu0 %v12488_v18  ;;  %v12530_v18 = vld [vmem:[%s17206_s5 + $0x2a0] sm:$0xff]  }
 0x51a   : > { %11496 = vmatprep.subr.bf16.mxu0 %v12489_v29  ;;  %v9015_v9 = vld [vmem:[#allocation4 + $0x88] sm:$0xff]  ;;  %v12531_v29 = vld [vmem:[%s17206_s5 + $0x2e8] sm:$0xff]  }
 0x51c   : > { %9921 = vmatmul.mubr.bf16.vlgmr.msra.gmra.mrb[60].mxu0 %v9002_v57  ;;  %v12534_v57 = vld [vmem:[%s17206_s5 + $0x2b0] sm:$0xff]  }
 0x51d   : > { %9928 = vmatprep.mubr.bf16.mxu0 %v9015_v9  ;;  %11497 = vmatpush3.bf16.msra.mxu0 %v12490_v56  ;;  %v12533_v56 = vld [vmem:[%s17206_s5 + $0x2f0] sm:$0xff]   ;;  %v12535_v9 = vld [vmem:[%s17206_s5 + $0x2f8] sm:$0xff]  }
 0x51e   : > { %11498 = vmatprep.subr.bf16.mxu0 %v12491_v1  ;;  %v8591_v31 = vpop.permute.xlu1 %8590 }
 0x51f   : > { %8596 = vst.msk [vmem:[#allocation4 + $0x30] sm:$0xff] %vm8115_vm7, %v8591_v31 }
 0x521   : > { %11499 = vmatpush3.bf16.msra.mxu0 %v12492_v8 }
 0x522   : > { %11500 = vmatprep.subr.bf16.mxu0 %v12493_v2  ;;  %v8593_v30 = vpop.permute.xlu1 %8592  ;;  %v12536_v2 = vld [vmem:[%s17206_s5 + $0x2b8] sm:$0xff]  }
 0x523   : > { %8597 = vst.msk [vmem:[#allocation4 + $0x90] sm:$0xff] %vm8115_vm7, %v8593_v30 }
 0x524   : > { %9929 = vmatmul.mubr.bf16.gmra.mrb[64].mxu0 %v9014_v43 }
 0x525   : > { %11501 = vmatpush3.bf16.msra.mxu0 %v12494_v7 }
 0x526   : > { %11502 = vmatprep.subr.bf16.mxu0 %v12495_v42  ;;  %v9004_v33 = vld [vmem:[#allocation4 + $0x30] sm:$0xff] }
 0x529   : > { %11503 = vmatpush3.bf16.msra.mxu0 %v12496_v32 }
 0x52a   : > { %11504 = vmatprep.subr.bf16.mxu0 %v12497_v54  ;;  %v9016_v6 = vld [vmem:[#allocation4 + $0x90] sm:$0xff] }
 0x52d   : > { %11505 = vmatpush3.bf16.msra.mxu0 %v12498_v46 }
 0x52e   : > { %11506 = vmatprep.subr.bf16.mxu0 %v12499_v11  ;;  %v8671_v39 = vpop.permute.xlu0 %8670 }
 0x52f   : > { %8676 = vst.msk [vmem:[#allocation4 + $0x38] sm:$0xff] %vm8115_vm7, %v8671_v39 }
 0x531   : > { %11507 = vmatpush3.bf16.msra.mxu0 %v12500_v38 }
 0x532   : > { %11508 = vmatprep.subr.bf16.mxu0 %v12501_v23  ;;  %v8673_v20 = vpop.permute.xlu0 %8672 }
 0x533   : > { %8677 = vst.msk [vmem:[#allocation4 + $0x98] sm:$0xff] %vm8115_vm7, %v8673_v20 }
 0x535   : > { %11509 = vmatpush3.bf16.msra.mxu0 %v12502_v15 }
 0x536   : > { %11510 = vmatprep.subr.bf16.mxu0 %v12503_v51  ;;  %v9005_v27 = vld [vmem:[#allocation4 + $0x38] sm:$0xff] }
 0x537   : > { %9969 = vmatprep.mubr.bf16.mxu0 %v9005_v27 }
 0x539   : > { %11511 = vmatpush3.bf16.msra.mxu0 %v12504_v13 }
 0x53a   : > { %11524 = vmatprep.subr.bf16.mxu0 %v12505_v58  ;;  %v9017_v62 = vld [vmem:[#allocation4 + $0x98] sm:$0xff] }
 0x53c   : > { %9970 = vmatmul.mubr.bf16.vlgmr.msra.gmra.mrb[68].mxu0 %v9004_v33 }
 0x53d   : > { %9977 = vmatprep.mubr.bf16.mxu0 %v9017_v62  ;;  %11525 = vmatpush3.bf16.msra.mxu0 %v12506_v37 }
 0x53e   : > { %11526 = vmatprep.subr.bf16.mxu0 %v12507_v21  ;;  %v8751_v14 = vpop.permute.xlu1 %8750 }
 0x53f   : > { %8756 = vst.msk [vmem:[#allocation4 + $0x40] sm:$0xff] %vm8115_vm7, %v8751_v14 }
 0x541   : > { %11527 = vmatpush3.bf16.msra.mxu0 %v12508_v0 }
 0x542   : > { %11528 = vmatprep.subr.bf16.mxu0 %v12509_v26  ;;  %v8753_v34 = vpop.permute.xlu1 %8752 }
 0x543   : > { %8757 = vst.msk [vmem:[#allocation4 + $0xa0] sm:$0xff] %vm8115_vm7, %v8753_v34 }
 0x544   : > { %9978 = vmatmul.mubr.bf16.gmra.mrb[72].mxu0 %v9016_v6 }
 0x545   : > { %11529 = vmatpush3.bf16.msra.mxu0 %v12510_v16 }
 0x546   : > { %11530 = vmatprep.subr.bf16.mxu0 %v12511_v4  ;;  %v9006_v53 = vld [vmem:[#allocation4 + $0x40] sm:$0xff] }
 0x549   : > { %11531 = vmatpush3.bf16.msra.mxu0 %v12512_v48 }
 0x54a   : > { %11532 = vmatprep.subr.bf16.mxu0 %v12513_v5  ;;  %v9018_v28 = vld [vmem:[#allocation4 + $0xa0] sm:$0xff] }
 0x54d   : > { %11533 = vmatpush3.bf16.msra.mxu0 %v12514_v41 }
 0x54e   : > { %11534 = vmatprep.subr.bf16.mxu0 %v12515_v19  ;;  %v8831_v63 = vpop.permute.xlu0 %8830 }
 0x54f   : > { %8836 = vst.msk [vmem:[#allocation4 + $0x48] sm:$0xff] %vm8115_vm7, %v8831_v63 }
 0x551   : > { %11535 = vmatpush3.bf16.msra.mxu0 %v12516_v47 }
 0x552   : > { %11536 = vmatprep.subr.bf16.mxu0 %v12517_v3  ;;  %v8833_v40 = vpop.permute.xlu0 %8832 }
 0x553   : > { %8837 = vst.msk [vmem:[#allocation4 + $0xa8] sm:$0xff] %vm8115_vm7, %v8833_v40 }
 0x555   : > { %11537 = vmatpush3.bf16.msra.mxu0 %v12518_v61 }
 0x556   : > { %11538 = vmatprep.subr.bf16.mxu0 %v12519_v45  ;;  %v9007_v52 = vld [vmem:[#allocation4 + $0x48] sm:$0xff] }
 0x557   : > { %10018 = vmatprep.mubr.bf16.mxu0 %v9007_v52 }
 0x559   : > { %11539 = vmatpush3.bf16.msra.mxu0 %v12520_v49 }
 0x55a   : > { %11552 = vmatprep.subr.bf16.mxu0 %v12521_v60  ;;  %v9019_v50 = vld [vmem:[#allocation4 + $0xa8] sm:$0xff] }
 0x55c   : > { %10019 = vmatmul.mubr.bf16.vlgmr.msra.gmra.mrb[76].mxu0 %v9006_v53 }
 0x55d   : > { %10026 = vmatprep.mubr.bf16.mxu0 %v9019_v50  ;;  %11553 = vmatpush3.bf16.msra.mxu0 %v12522_v12 }
 0x55e   : > { %11554 = vmatprep.subr.bf16.mxu0 %v12523_v17  ;;  %v8911_v55 = vpop.permute.xlu1 %8910 }
 0x55f   : > { %8916 = vst.msk [vmem:[#allocation4 + $0x50] sm:$0xff] %vm8115_vm7, %v8911_v55 }
 0x561   : > { %11555 = vmatpush3.bf16.msra.mxu0 %v12524_v59 }
 0x562   : > { %11556 = vmatprep.subr.bf16.mxu0 %v12525_v24  ;;  %v8913_v10 = vpop.permute.xlu1 %8912 }
 0x563   : > { %8917 = vst.msk [vmem:[#allocation4 + $0xb0] sm:$0xff] %vm8115_vm7, %v8913_v10 }
 0x564   : > { %10027 = vmatmul.mubr.bf16.gmra.mrb[80].mxu0 %v9018_v28 }
 0x565   : > { %11557 = vmatpush3.bf16.msra.mxu0 %v12526_v25 }
 0x566   : > { %11558 = vmatprep.subr.bf16.mxu0 %v12527_v35  ;;  %v9008_v7 = vld [vmem:[#allocation4 + $0x50] sm:$0xff] }
 0x569   : > { %11559 = vmatpush3.bf16.msra.mxu0 %v12528_v22 }
 0x56a   : > { %11560 = vmatprep.subr.bf16.mxu0 %v12529_v36  ;;  %v9020_v43 = vld [vmem:[#allocation4 + $0xb0] sm:$0xff] }
 0x56d   : > { %11561 = vmatpush3.bf16.msra.mxu0 %v12530_v18 }
 0x56e   : > { %11562 = vmatprep.subr.bf16.mxu0 %v12531_v29  ;;  %v8991_v1 = vpop.permute.xlu0 %8990 }
 0x56f   : > { %8996 = vst.msk [vmem:[#allocation4 + $0x58] sm:$0xff] %vm8115_vm7, %v8991_v1 }
 0x571   : > { %11563 = vmatpush3.bf16.msra.mxu0 %v12532_v44 }
 0x572   : > { %11564 = vmatprep.subr.bf16.mxu0 %v12533_v56  ;;  %v8993_v8 = vpop.permute.xlu0 %8992 }
 0x573   : > { %8997 = vst.msk [vmem:[#allocation4 + $0xb8] sm:$0xff] %vm8115_vm7, %v8993_v8 }
 0x575   : > { %11565 = vmatpush3.bf16.msra.mxu0 %v12534_v57 }
 0x576   : > { %11566 = vmatprep.subr.bf16.mxu0 %v12535_v9  ;;  %v9009_v31 = vld [vmem:[#allocation4 + $0x58] sm:$0xff] }
 0x577   : > { %10067 = vmatprep.mubr.bf16.mxu0 %v9009_v31 }
 0x579   : > { %11567 = vmatpush3.bf16.msra.mxu0 %v12536_v2 }
 0x57a   : > { %v9021_v42 = vld [vmem:[#allocation4 + $0xb8] sm:$0xff] }
 0x57c   : > { %10068 = vmatmul.mubr.bf16.vlgmr.msra.gmra.mrb[84].mxu0 %v9008_v7 }
 0x57d   : > { %10075 = vmatprep.mubr.bf16.mxu0 %v9021_v42 }
 0x584   : > { %10076 = vmatmul.mubr.bf16.gmra.mrb[88].mxu0 %v9020_v43 }
 0x5af   : > { %v11428_v30 = vpop.f32.mrb[44].mxu0 }
 0x5b0   : > { %v11429_v32 = vpop.f32.mrb[45].mxu0 }
 0x5b1   : > { %v11430_v54 = vadd.f32 %v11429_v32, %v11428_v30  ;;  %v11431_v46 = vpop.f32.mrb[46].mxu0 }
 0x5b2   : > { %v11432_v11 = vpop.f32.mrb[47].mxu0 }
 0x5b3   : > { %v11433_v38 = vadd.f32 %v11432_v11, %v11431_v46 }
 0x5b7   : > { %v11434_v23 = vpop.f32.mrb[48].mxu0 }
 0x5b8   : > { %v11435_v39 = vpop.f32.mrb[49].mxu0 }
 0x5b9   : > { %v11436_v15 = vadd.f32 %v11435_v39, %v11434_v23  ;;  %v11437_v51 = vpop.f32.mrb[50].mxu0 }
 0x5ba   : > { %v11438_v20 = vpop.f32.mrb[51].mxu0 }
 0x5bb   : > { %v11439_v13 = vadd.f32 %v11438_v20, %v11437_v51 }
 0x5cf   : > { %v11456_v58 = vpop.f32.mrb[52].mxu0 }
 0x5d0   : > { %v11457_v27 = vpop.f32.mrb[53].mxu0 }
 0x5d1   : > { %v11458_v37 = vadd.f32 %v11457_v27, %v11456_v58  ;;  %v11459_v21 = vpop.f32.mrb[54].mxu0 }
 0x5d2   : > { %v11460_v33 = vpop.f32.mrb[55].mxu0 }
 0x5d3   : > { %v9874_v62 = vadd.f32 %v11458_v37, %v11430_v54  ;;  %v11461_v0 = vadd.f32 %v11460_v33, %v11459_v21 }
 0x5d5   : > { %v9877_v26 = vadd.f32 %v11461_v0, %v11433_v38 }
 0x5d7   : > { %v11462_v14 = vpop.f32.mrb[56].mxu0 }
 0x5d8   : > { %v11463_v16 = vpop.f32.mrb[57].mxu0 }
 0x5d9   : > { %v11464_v4 = vadd.f32 %v11463_v16, %v11462_v14  ;;  %v11465_v6 = vpop.f32.mrb[58].mxu0 }
 0x5da   : > { %v11466_v34 = vpop.f32.mrb[59].mxu0 }
 0x5db   : > { %v9882_v48 = vadd.f32 %v11464_v4, %v11436_v15  ;;  %v11467_v5 = vadd.f32 %v11466_v34, %v11465_v6 }
 0x5dd   : > { %v9885_v41 = vadd.f32 %v11467_v5, %v11439_v13 }
 0x5ef   : > { %v11484_v19 = vpop.f32.mrb[60].mxu0 }
 0x5f0   : > { %v11485_v47 = vpop.f32.mrb[61].mxu0 }
 0x5f1   : > { %v11486_v3 = vadd.f32 %v11485_v47, %v11484_v19  ;;  %v11487_v63 = vpop.f32.mrb[62].mxu0 }
 0x5f2   : > { %v11488_v61 = vpop.f32.mrb[63].mxu0 }
 0x5f3   : > { %v9923_v45 = vadd.f32 %v11486_v3, %v9874_v62  ;;  %v11489_v40 = vadd.f32 %v11488_v61, %v11487_v63 }
 0x5f5   : > { %v9926_v49 = vadd.f32 %v11489_v40, %v9877_v26 }
 0x5f7   : > { %v11490_v60 = vpop.f32.mrb[64].mxu0 }
 0x5f8   : > { %v11491_v52 = vpop.f32.mrb[65].mxu0 }
 0x5f9   : > { %v11492_v12 = vadd.f32 %v11491_v52, %v11490_v60  ;;  %v11493_v17 = vpop.f32.mrb[66].mxu0 }
 0x5fa   : > { %v11494_v53 = vpop.f32.mrb[67].mxu0 }
 0x5fb   : > { %v9931_v50 = vadd.f32 %v11492_v12, %v9882_v48  ;;  %v11495_v59 = vadd.f32 %v11494_v53, %v11493_v17 }
 0x5fd   : > { %v9934_v24 = vadd.f32 %v11495_v59, %v9885_v41 }
 0x60f   : > { %v11512_v55 = vpop.f32.mrb[68].mxu0 }
 0x610   : > { %v11513_v25 = vpop.f32.mrb[69].mxu0 }
 0x611   : > { %v11514_v35 = vadd.f32 %v11513_v25, %v11512_v55  ;;  %v11515_v28 = vpop.f32.mrb[70].mxu0 }
 0x612   : > { %v11516_v10 = vpop.f32.mrb[71].mxu0 }
 0x613   : > { %v9972_v22 = vadd.f32 %v11514_v35, %v9923_v45  ;;  %v11517_v36 = vadd.f32 %v11516_v10, %v11515_v28 }
 0x615   : > { %v9975_v18 = vadd.f32 %v11517_v36, %v9926_v49 }
 0x617   : > { %v11518_v29 = vpop.f32.mrb[72].mxu0 }
 0x618   : > { %v11519_v44 = vpop.f32.mrb[73].mxu0 }
 0x619   : > { %v11520_v56 = vadd.f32 %v11519_v44, %v11518_v29  ;;  %v11521_v1 = vpop.f32.mrb[74].mxu0 }
 0x61a   : > { %v11522_v57 = vpop.f32.mrb[75].mxu0 }
 0x61b   : > { %v9980_v9 = vadd.f32 %v11520_v56, %v9931_v50  ;;  %v11523_v8 = vadd.f32 %v11522_v57, %v11521_v1 }
 0x61d   : > { %v9983_v2 = vadd.f32 %v11523_v8, %v9934_v24 }
 0x62f   : > { %v11540_v31 = vpop.f32.mrb[76].mxu0 }
 0x630   : > { %v11541_v7 = vpop.f32.mrb[77].mxu0 }
 0x631   : > { %v11542_v42 = vadd.f32 %v11541_v7, %v11540_v31  ;;  %v11543_v43 = vpop.f32.mrb[78].mxu0 }
 0x632   : > { %v11544_v30 = vpop.f32.mrb[79].mxu0 }
 0x633   : > { %v10021_v32 = vadd.f32 %v11542_v42, %v9972_v22  ;;  %v11545_v54 = vadd.f32 %v11544_v30, %v11543_v43 }
 0x635   : > { %v10024_v46 = vadd.f32 %v11545_v54, %v9975_v18 }
 0x637   : > { %v11546_v11 = vpop.f32.mrb[80].mxu0 }
 0x638   : > { %v11547_v38 = vpop.f32.mrb[81].mxu0 }
 0x639   : > { %v11548_v23 = vadd.f32 %v11547_v38, %v11546_v11  ;;  %v11549_v39 = vpop.f32.mrb[82].mxu0 }
 0x63a   : > { %v11550_v15 = vpop.f32.mrb[83].mxu0 }
 0x63b   : > { %v10029_v51 = vadd.f32 %v11548_v23, %v9980_v9  ;;  %v11551_v20 = vadd.f32 %v11550_v15, %v11549_v39 }
 0x63d   : > { %v10032_v13 = vadd.f32 %v11551_v20, %v9983_v2 }
 0x64f   : > { %v11568_v58 = vpop.f32.mrb[84].mxu0 }
 0x650   : > { %v11569_v27 = vpop.f32.mrb[85].mxu0 }
 0x651   : > { %v11570_v37 = vadd.f32 %v11569_v27, %v11568_v58  ;;  %v11571_v21 = vpop.f32.mrb[86].mxu0 }
 0x652   : > { %v11572_v33 = vpop.f32.mrb[87].mxu0 }
 0x653   : > { %v10070_v62 = vadd.f32 %v11570_v37, %v10021_v32  ;;  %v11573_v0 = vadd.f32 %v11572_v33, %v11571_v21 }
 0x655   : > { %10084 = vst [vmem:[%s251_s29] sm:$0xff] %v10070_v62  ;;  %v10073_v26 = vadd.f32 %v11573_v0, %v10024_v46 }
 0x657   : > { %10085 = vst [vmem:[%s251_s29 + $0x8] sm:$0xff] %v10073_v26  ;;  %v11574_v14 = vpop.f32.mrb[88].mxu0 }
 0x658   : > { %v11575_v16 = vpop.f32.mrb[89].mxu0 }
 0x659   : > { %v11576_v4 = vadd.f32 %v11575_v16, %v11574_v14  ;;  %v11577_v6 = vpop.f32.mrb[90].mxu0 }
 0x65a   : > { %v11578_v34 = vpop.f32.mrb[91].mxu0 }
 0x65b   : > { %v10078_v48 = vadd.f32 %v11576_v4, %v10029_v51  ;;  %v11579_v5 = vadd.f32 %v11578_v34, %v11577_v6 }
 0x65d   : > { %10086 = vst [vmem:[%s251_s29 + $0x10] sm:$0xff] %v10078_v48  ;;  %v10081_v41 = vadd.f32 %v11579_v5, %v10032_v13 }
 0x65f   : > { %10087 = vst [vmem:[%s251_s29 + $0x18] sm:$0xff] %v10081_v41 }
 0x660 PF: > { %s16_s21 = sadd.s32 1, %s13165_s21  }
 0x661   : > { %p13_p5 = scmp.ge.s32.totalorder %s16_s21, 4  }
 0x663   :  { %15 = sbr.rel (!%p13_p5) target bundleno = 1 (0x1), region = 78 }

</bundles_post_ra>
